<compile_context>
chip_gen: v6e
topology: v6e:2x2x1
jax: 0.10.0
libtpu: 0.0.40
codegen_flags: <defaults>
</compile_context>

<pallas_src>
import functools

import numpy as np

import jax
import jax.numpy as jnp
from jax.experimental import pallas as pl
from jax.experimental.pallas import tpu as pltpu

# Geometry implied by fc1 = Linear(16*5*5, 120): 3x32x32 input, VALID convs.
H = W = 32
CIN, C1, C2 = 3, 6, 16
KH = KW = 5
HO1, WO1 = H - KH + 1, W - KW + 1            # 28, 28
HP1, WP1 = HO1 // 2, WO1 // 2                # 14, 14
HO2, WO2 = HP1 - KH + 1, WP1 - KW + 1        # 10, 10
HP2, WP2 = HO2 // 2, WO2 // 2                # 5, 5
F1, F2, F3 = 120, 84, 10
OUT_PAD = 128                                 # lane-dense output width


# ----------------------------------------------------------------------------
# Fused forward kernel (one grid step == B_TILE batch samples)
#
# Row layout: every activation slab is flattened over (sample, per-sample row)
# with a fixed per-sample stride of 8 rows:
#   x phases   : X_j[b*8 + k]  = input row 4k+j of sample b          (k=0..7)
#   conv1 phase: phase_j[b*8+q] = conv1 row 4q+j of sample b         (q=0..6)
#   p1e / p1o  : pool1 rows 2q / 2q+1 of sample b at row b*8+q       (q=0..6)
#   a2e / a2o  : conv2 rows 2q / 2q+1 of sample b at row b*8+q       (q=0..4)
#   p2         : pool2 row q of sample b at row b*8+q                (q=0..4)
# Rows outside the valid q range are garbage and never read by valid outputs.
# ----------------------------------------------------------------------------
def _net_kernel(x_ref, t1_ref, b1_ref, sc1e_ref, sc1o_ref,
                t2_ref, b2_ref, sc2e_ref, sc2o_ref,
                wf1_ref, bf1_ref, wf2_ref, bf2_ref, wf3_ref, bf3_ref,
                sel_ref, out_ref):
    dot = functools.partial(jnp.dot, preferred_element_type=jnp.float32)
    b8 = x_ref.shape[1]            # B_TILE * 8
    rc1 = b8 - 1                   # rows in conv1 phase slabs
    rc2 = b8 - 3                   # rows in conv2 / pool2 slabs

    # ---- conv1 + ReLU as 4 row-phase slabs (banded width-matmul taps) ------
    def conv1_phase(j):
        acc = None
        for i in range(KH):
            ph = (j + i) % 4           # which input phase slab
            sh = (j + i) // 4          # unit-stride row shift (0 or 1)
            term = dot(x_ref[ph, sh:sh + rc1, :], t1_ref[i])
            acc = term if acc is None else acc + term
        return jnp.maximum(acc + b1_ref[...], 0.0)            # (rc1, 168)

    a1_0, a1_1, a1_2, a1_3 = (conv1_phase(j) for j in range(4))

    # ---- pool1: rows on the VPU, columns via exact 0/1 selection matmuls ---
    rp_e = jnp.maximum(a1_0, a1_1)                            # pool rows 2q
    rp_o = jnp.maximum(a1_2, a1_3)                            # pool rows 2q+1
    p1e = jnp.maximum(dot(rp_e, sc1e_ref[...]), dot(rp_e, sc1o_ref[...]))
    p1o = jnp.maximum(dot(rp_o, sc1e_ref[...]), dot(rp_o, sc1o_ref[...]))

    # ---- conv2 + ReLU as even/odd output-row slabs --------------------------
    def conv2_rows(terms):
        acc = None
        for i, (slab, sh) in enumerate(terms):
            term = dot(slab[sh:sh + rc2, :], t2_ref[i])
            acc = term if acc is None else acc + term
        return jnp.maximum(acc + b2_ref[...], 0.0)            # (rc2, 160)

    a2e = conv2_rows([(p1e, 0), (p1o, 0), (p1e, 1), (p1o, 1), (p1e, 2)])
    a2o = conv2_rows([(p1o, 0), (p1e, 1), (p1o, 1), (p1e, 2), (p1o, 2)])

    # ---- pool2: rows on the VPU, columns via selection matmuls --------------
    rp2 = jnp.maximum(a2e, a2o)
    p2 = jnp.maximum(dot(rp2, sc2e_ref[...]), dot(rp2, sc2o_ref[...]))  # (rc2, 80)

    # ---- fc1 + ReLU: gather per-sample pooled rows 0..4 (stride-8 blocks)
    # with tiny exact 0/1 selection matmuls and contract each against the
    # matching 80-row block of the NCHW-flatten-permuted fc1 weight. ---------
    h = None
    for r in range(HP2):
        rows = dot(sel_ref[r], p2)                   # (B, 80)
        term = dot(rows, wf1_ref[r])                 # (B, 120)
        h = term if h is None else h + term
    h = jnp.maximum(h + bf1_ref[...], 0.0)

    # ---- fc2 + ReLU, fc3 (padded to 128 lanes -> unmasked lane-dense store)
    h = jnp.maximum(dot(h, wf2_ref[...]) + bf2_ref[...], 0.0)
    out_ref[...] = dot(h, wf3_ref[...]) + bf3_ref[...]        # (B, 128)


# ----------------------------------------------------------------------------
# One-time parameter preparation (host side, outside the hot path)
# ----------------------------------------------------------------------------
def prepare_params(p):
    w1 = np.asarray(p["w1"], np.float32)
    b1 = np.asarray(p["b1"], np.float32)
    w2 = np.asarray(p["w2"], np.float32)
    b2 = np.asarray(p["b2"], np.float32)
    wf1 = np.asarray(p["wf1"], np.float32)
    bf1 = np.asarray(p["bf1"], np.float32)
    wf2 = np.asarray(p["wf2"], np.float32)
    bf2 = np.asarray(p["bf2"], np.float32)
    wf3 = np.asarray(p["wf3"], np.float32)
    bf3 = np.asarray(p["bf3"], np.float32)

    # Banded (Toeplitz-over-width) conv weights:
    #   T[i, w*Cin + ci, ow*Cout + co] = w[co, ci, i, w - ow]  (0 <= w-ow < KW)
    def banded(wgt, width_out):
        cout, cin, kh, kw = wgt.shape
        width_in = width_out + kw - 1
        t = np.zeros((kh, width_in * cin, width_out * cout), np.float32)
        for i in range(kh):
            for j in range(kw):
                blk = wgt[:, :, i, j].T                       # (cin, cout)
                for ow in range(width_out):
                    w_in = ow + j
                    t[i, w_in * cin:(w_in + 1) * cin,
                      ow * cout:(ow + 1) * cout] = blk
        return t

    t1 = banded(w1, WO1)                    # (5, 96, 168)
    t2 = banded(w2, WO2)                    # (5, 84, 160)
    b1row = np.tile(b1, WO1)[None, :]       # (1, 168)
    b2row = np.tile(b2, WO2)[None, :]       # (1, 160)

    # Exact 0/1 stride-2 column-selection matrices for the 2x2 max-pools.
    def sel_cols(n_out_w, n_in_w, c, off):
        s = np.zeros((n_in_w * c, n_out_w * c), np.float32)
        for pw in range(n_out_w):
            s[(2 * pw + off) * c + np.arange(c), pw * c + np.arange(c)] = 1.0
        return s

    sc1e, sc1o = sel_cols(WP1, WO1, C1, 0), sel_cols(WP1, WO1, C1, 1)  # (168, 84)
    sc2e, sc2o = sel_cols(WP2, WO2, C2, 0), sel_cols(WP2, WO2, C2, 1)  # (160, 80)

    # fc1: fold the torch NCHW flatten order (c*25 + h*5 + w) into a one-time
    # row permutation so the kernel consumes (h, w, c)-ordered activations,
    # then split into HP2 blocks of (WP2*C2, F1) for the per-row contraction.
    perm = np.empty(C2 * HP2 * WP2, np.int64)
    for hh in range(HP2):
        for ww in range(WP2):
            for cc in range(C2):
                perm[hh * WP2 * C2 + ww * C2 + cc] = cc * HP2 * WP2 + hh * WP2 + ww
    wf1r = wf1.T[perm].reshape(HP2, WP2 * C2, F1)   # (5, 80, 120)
    wf2t = wf2.T                                    # (120, 84)

    # fc3 padded to 128 output lanes -> lane-dense unmasked stores.
    wf3p = np.zeros((F2, OUT_PAD), np.float32)
    wf3p[:, :F3] = wf3.T
    bf3p = np.zeros((1, OUT_PAD), np.float32)
    bf3p[0, :F3] = bf3

    arrs = (t1, b1row, sc1e, sc1o, t2, b2row, sc2e, sc2o,
            wf1r, bf1[None, :], wf2t, bf2[None, :], wf3p, bf3p)
    return tuple(jnp.asarray(a) for a in arrs)


# ----------------------------------------------------------------------------
# Forward wrapper: one batch-tiled pallas_call for the whole network
# ----------------------------------------------------------------------------
def _choose_b_tile(n):
    # Multiple of 8 (keeps every block's second-to-minor dim 8-aligned),
    # capped at 32 (conv M ~ 8*B fills the 256-row MXU on v6e/v7x); aim for
    # >=2 grid steps once the batch allows it so both v7x TCs get a share.
    if n < 16:
        return 8
    return min(32, 8 * ((n + 15) // 16))


@jax.jit
def net_forward(x_nchw, prep):
    n = x_nchw.shape[0]
    bt = _choose_b_tile(n)
    n_pad = ((n + bt - 1) // bt) * bt

    # One cheap relayout of the small input: NCHW -> (n, H, W*CIN) lane-dense
    # rows, zero-pad the batch to a multiple of B_TILE, then de-interleave
    # rows by (row mod 4) so in-kernel row pooling is a unit-stride VPU max.
    # TODO(synk): accept NHWC input upstream to drop this separate relayout.
    x = jnp.transpose(x_nchw, (0, 2, 3, 1)).reshape(n, H, W * CIN)
    if n_pad != n:
        x = jnp.concatenate(
            [x, jnp.zeros((n_pad - n, H, W * CIN), x.dtype)], axis=0)
    x4 = (x.reshape(n_pad, H // 4, 4, W * CIN)
            .transpose(2, 0, 1, 3)
            .reshape(4, n_pad * (H // 4), W * CIN))       # (4, n_pad*8, 96)

    # Exact 0/1 selectors picking per-sample pooled row r (stride-8 blocks)
    # for the fc1 contraction; depends only on the static tile size.
    rc2 = bt * 8 - 3
    sel = np.zeros((HP2, bt, rc2), np.float32)
    for r in range(HP2):
        sel[r, np.arange(bt), 8 * np.arange(bt) + r] = 1.0
    sel = jnp.asarray(sel)

    def const_spec(a):
        zeros = (0,) * a.ndim
        return pl.BlockSpec(a.shape, lambda i, z=zeros: z)

    in_specs = [pl.BlockSpec((4, bt * 8, W * CIN), lambda i: (0, i, 0))]
    in_specs += [const_spec(a) for a in prep]     # constant index_map ->
    in_specs += [const_spec(sel)]                 # weights fetched once

    out = pl.pallas_call(
        _net_kernel,
        grid=(n_pad // bt,),
        out_shape=jax.ShapeDtypeStruct((n_pad, OUT_PAD), jnp.float32),
        in_specs=in_specs,
        out_specs=pl.BlockSpec((bt, OUT_PAD), lambda i: (i, 0)),
        compiler_params=pltpu.CompilerParams(
            dimension_semantics=("parallel",)),
    )(x4, *prep, sel)
    return out[:n, :F3]


# ----------------------------------------------------------------------------
# Pure-JAX reference for the correctness check
# ----------------------------------------------------------------------------
def net_reference(x, p):
    def conv(x, w, b):
        y = jax.lax.conv_general_dilated(
            x, w, (1, 1), "VALID",
            dimension_numbers=("NCHW", "OIHW", "NCHW"))
        return y + b[None, :, None, None]

    def pool(x):
        return jax.lax.reduce_window(
            x, -jnp.inf, jax.lax.max, (1, 1, 2, 2), (1, 1, 2, 2), "VALID")

    y = pool(jax.nn.relu(conv(x, p["w1"], p["b1"])))
    y = pool(jax.nn.relu(conv(y, p["w2"], p["b2"])))
    y = y.reshape(y.shape[0], -1)
    y = jax.nn.relu(y @ p["wf1"].T + p["bf1"])
    y = jax.nn.relu(y @ p["wf2"].T + p["bf2"])
    return y @ p["wf3"].T + p["bf3"]


# ----------------------------------------------------------------------------
# Deterministic parameter init (shapes from Net.__init__)
# ----------------------------------------------------------------------------
def init_params(key):
    ks = jax.random.split(key, 10)
    s = 0.1
    return {
        "w1": s * jax.random.normal(ks[0], (C1, CIN, KH, KW), jnp.float32),
        "b1": s * jax.random.normal(ks[1], (C1,), jnp.float32),
        "w2": s * jax.random.normal(ks[2], (C2, C1, KH, KW), jnp.float32),
        "b2": s * jax.random.normal(ks[3], (C2,), jnp.float32),
        "wf1": s * jax.random.normal(ks[4], (F1, C2 * HP2 * WP2), jnp.float32),
        "bf1": s * jax.random.normal(ks[5], (F1,), jnp.float32),
        "wf2": s * jax.random.normal(ks[6], (F2, F1), jnp.float32),
        "bf2": s * jax.random.normal(ks[7], (F2,), jnp.float32),
        "wf3": s * jax.random.normal(ks[8], (F3, F2), jnp.float32),
        "bf3": s * jax.random.normal(ks[9], (F3,), jnp.float32),
    }


if __name__ == "__main__":
    key = jax.random.PRNGKey(0)
    k_in, k_par = jax.random.split(key)
    params = init_params(k_par)
    prep = prepare_params(params)

    # Small batch (padded single-tile path).
    x = jax.random.normal(k_in, (2, CIN, H, W), jnp.float32)
    out = jax.block_until_ready(net_forward(x, prep))
    assert out.shape == (2, F3), out.shape
    with jax.default_matmul_precision("highest"):
        ref = jax.block_until_ready(net_reference(x, params))
    assert jnp.allclose(out, ref, atol=1e-3, rtol=1e-3), (
        "batch=2 mismatch vs reference, max abs diff = "
        + str(float(jnp.max(jnp.abs(out - ref)))))

    # Larger batch: exercises a full tile, a padded remainder tile, and a
    # multi-step parallel grid (2 steps -> both v7x TensorCores).
    x2 = jax.random.normal(jax.random.PRNGKey(1), (19, CIN, H, W), jnp.float32)
    out2 = jax.block_until_ready(net_forward(x2, prep))
    assert out2.shape == (19, F3), out2.shape
    with jax.default_matmul_precision("highest"):
        ref2 = jax.block_until_ready(net_reference(x2, params))
    assert jnp.allclose(out2, ref2, atol=1e-3, rtol=1e-3), (
        "batch=19 mismatch vs reference, max abs diff = "
        + str(float(jnp.max(jnp.abs(out2 - ref2)))))

    print("KERNEL_OK")
</pallas_src>

<mosaic_0001>
module attributes {stable_mosaic.version = 11 : i64} {
  func.func @_net_kernel(%arg0: i32, %arg1: memref<4x64x96xf32, #tpu.memory_space<vmem>>, %arg2: memref<5x96x168xf32, #tpu.memory_space<vmem>>, %arg3: memref<1x168xf32, #tpu.memory_space<vmem>>, %arg4: memref<168x84xf32, #tpu.memory_space<vmem>>, %arg5: memref<168x84xf32, #tpu.memory_space<vmem>>, %arg6: memref<5x84x160xf32, #tpu.memory_space<vmem>>, %arg7: memref<1x160xf32, #tpu.memory_space<vmem>>, %arg8: memref<160x80xf32, #tpu.memory_space<vmem>>, %arg9: memref<160x80xf32, #tpu.memory_space<vmem>>, %arg10: memref<5x80x120xf32, #tpu.memory_space<vmem>>, %arg11: memref<1x120xf32, #tpu.memory_space<vmem>>, %arg12: memref<120x84xf32, #tpu.memory_space<vmem>>, %arg13: memref<1x84xf32, #tpu.memory_space<vmem>>, %arg14: memref<84x128xf32, #tpu.memory_space<vmem>>, %arg15: memref<1x128xf32, #tpu.memory_space<vmem>>, %arg16: memref<5x8x61xf32, #tpu.memory_space<vmem>>, %arg17: memref<8x128xf32, #tpu.memory_space<vmem>>) attributes {dimension_semantics = [#tpu.dimension_semantics<parallel>], iteration_bounds = array<i64: 1>, scalar_prefetch = 0 : i64, scratch_operands = 0 : i64, tpu.core_type = #tpu.core_type<tc>, window_params = [{transform_indices = @transform_0, window_bounds = array<i64: 4, 64, 96>}, {pipeline_mode = #tpu.pipeline_mode<synchronous>, transform_indices = @transform_1, window_bounds = array<i64: 5, 96, 168>}, {pipeline_mode = #tpu.pipeline_mode<synchronous>, transform_indices = @transform_2, window_bounds = array<i64: 1, 168>}, {pipeline_mode = #tpu.pipeline_mode<synchronous>, transform_indices = @transform_3, window_bounds = array<i64: 168, 84>}, {pipeline_mode = #tpu.pipeline_mode<synchronous>, transform_indices = @transform_4, window_bounds = array<i64: 168, 84>}, {pipeline_mode = #tpu.pipeline_mode<synchronous>, transform_indices = @transform_5, window_bounds = array<i64: 5, 84, 160>}, {pipeline_mode = #tpu.pipeline_mode<synchronous>, transform_indices = @transform_6, window_bounds = array<i64: 1, 160>}, {pipeline_mode = #tpu.pipeline_mode<synchronous>, transform_indices = @transform_7, window_bounds = array<i64: 160, 80>}, {pipeline_mode = #tpu.pipeline_mode<synchronous>, transform_indices = @transform_8, window_bounds = array<i64: 160, 80>}, {pipeline_mode = #tpu.pipeline_mode<synchronous>, transform_indices = @transform_9, window_bounds = array<i64: 5, 80, 120>}, {pipeline_mode = #tpu.pipeline_mode<synchronous>, transform_indices = @transform_10, window_bounds = array<i64: 1, 120>}, {pipeline_mode = #tpu.pipeline_mode<synchronous>, transform_indices = @transform_11, window_bounds = array<i64: 120, 84>}, {pipeline_mode = #tpu.pipeline_mode<synchronous>, transform_indices = @transform_12, window_bounds = array<i64: 1, 84>}, {pipeline_mode = #tpu.pipeline_mode<synchronous>, transform_indices = @transform_13, window_bounds = array<i64: 84, 128>}, {pipeline_mode = #tpu.pipeline_mode<synchronous>, transform_indices = @transform_14, window_bounds = array<i64: 1, 128>}, {pipeline_mode = #tpu.pipeline_mode<synchronous>, transform_indices = @transform_15, window_bounds = array<i64: 5, 8, 61>}, {transform_indices = @transform_16, window_bounds = array<i64: 8, 128>}]} {
    %c0 = arith.constant 0 : index
    %c0_0 = arith.constant 0 : index
    %c0_1 = arith.constant 0 : index
    %0 = vector.load %arg1[%c0, %c0_0, %c0_1] : memref<4x64x96xf32, #tpu.memory_space<vmem>>, vector<1x63x96xf32>
    %1 = vector.shape_cast %0 : vector<1x63x96xf32> to vector<63x96xf32>
    %c0_2 = arith.constant 0 : index
    %c0_3 = arith.constant 0 : index
    %c0_4 = arith.constant 0 : index
    %2 = vector.load %arg2[%c0_2, %c0_3, %c0_4] : memref<5x96x168xf32, #tpu.memory_space<vmem>>, vector<1x96x168xf32>
    %3 = vector.shape_cast %2 : vector<1x96x168xf32> to vector<96x168xf32>
    %cst = arith.constant dense<0.000000e+00> : vector<63x168xf32>
    %4 = tpu.matmul %1, %3, %cst {dimension_numbers = #tpu.dot_dimension_numbers<[1], [0], [0], [1], [0, 0, 1, 1], [], []>} : vector<63x96xf32>, vector<96x168xf32>, vector<63x168xf32> -> vector<63x168xf32>
    %c1 = arith.constant 1 : index
    %c0_5 = arith.constant 0 : index
    %c0_6 = arith.constant 0 : index
    %5 = vector.load %arg1[%c1, %c0_5, %c0_6] : memref<4x64x96xf32, #tpu.memory_space<vmem>>, vector<1x63x96xf32>
    %6 = vector.shape_cast %5 : vector<1x63x96xf32> to vector<63x96xf32>
    %c1_7 = arith.constant 1 : index
    %c0_8 = arith.constant 0 : index
    %c0_9 = arith.constant 0 : index
    %7 = vector.load %arg2[%c1_7, %c0_8, %c0_9] : memref<5x96x168xf32, #tpu.memory_space<vmem>>, vector<1x96x168xf32>
    %8 = vector.shape_cast %7 : vector<1x96x168xf32> to vector<96x168xf32>
    %cst_10 = arith.constant dense<0.000000e+00> : vector<63x168xf32>
    %9 = tpu.matmul %6, %8, %cst_10 {dimension_numbers = #tpu.dot_dimension_numbers<[1], [0], [0], [1], [0, 0, 1, 1], [], []>} : vector<63x96xf32>, vector<96x168xf32>, vector<63x168xf32> -> vector<63x168xf32>
    %10 = arith.addf %4, %9 : vector<63x168xf32>
    %c2 = arith.constant 2 : index
    %c0_11 = arith.constant 0 : index
    %c0_12 = arith.constant 0 : index
    %11 = vector.load %arg1[%c2, %c0_11, %c0_12] : memref<4x64x96xf32, #tpu.memory_space<vmem>>, vector<1x63x96xf32>
    %12 = vector.shape_cast %11 : vector<1x63x96xf32> to vector<63x96xf32>
    %c2_13 = arith.constant 2 : index
    %c0_14 = arith.constant 0 : index
    %c0_15 = arith.constant 0 : index
    %13 = vector.load %arg2[%c2_13, %c0_14, %c0_15] : memref<5x96x168xf32, #tpu.memory_space<vmem>>, vector<1x96x168xf32>
    %14 = vector.shape_cast %13 : vector<1x96x168xf32> to vector<96x168xf32>
    %cst_16 = arith.constant dense<0.000000e+00> : vector<63x168xf32>
    %15 = tpu.matmul %12, %14, %cst_16 {dimension_numbers = #tpu.dot_dimension_numbers<[1], [0], [0], [1], [0, 0, 1, 1], [], []>} : vector<63x96xf32>, vector<96x168xf32>, vector<63x168xf32> -> vector<63x168xf32>
    %16 = arith.addf %10, %15 : vector<63x168xf32>
    %c3 = arith.constant 3 : index
    %c0_17 = arith.constant 0 : index
    %c0_18 = arith.constant 0 : index
    %17 = vector.load %arg1[%c3, %c0_17, %c0_18] : memref<4x64x96xf32, #tpu.memory_space<vmem>>, vector<1x63x96xf32>
    %18 = vector.shape_cast %17 : vector<1x63x96xf32> to vector<63x96xf32>
    %c3_19 = arith.constant 3 : index
    %c0_20 = arith.constant 0 : index
    %c0_21 = arith.constant 0 : index
    %19 = vector.load %arg2[%c3_19, %c0_20, %c0_21] : memref<5x96x168xf32, #tpu.memory_space<vmem>>, vector<1x96x168xf32>
    %20 = vector.shape_cast %19 : vector<1x96x168xf32> to vector<96x168xf32>
    %cst_22 = arith.constant dense<0.000000e+00> : vector<63x168xf32>
    %21 = tpu.matmul %18, %20, %cst_22 {dimension_numbers = #tpu.dot_dimension_numbers<[1], [0], [0], [1], [0, 0, 1, 1], [], []>} : vector<63x96xf32>, vector<96x168xf32>, vector<63x168xf32> -> vector<63x168xf32>
    %22 = arith.addf %16, %21 : vector<63x168xf32>
    %c0_23 = arith.constant 0 : index
    %c1_24 = arith.constant 1 : index
    %c0_25 = arith.constant 0 : index
    %23 = vector.load %arg1[%c0_23, %c1_24, %c0_25] : memref<4x64x96xf32, #tpu.memory_space<vmem>>, vector<1x63x96xf32>
    %24 = vector.shape_cast %23 : vector<1x63x96xf32> to vector<63x96xf32>
    %c4 = arith.constant 4 : index
    %c0_26 = arith.constant 0 : index
    %c0_27 = arith.constant 0 : index
    %25 = vector.load %arg2[%c4, %c0_26, %c0_27] : memref<5x96x168xf32, #tpu.memory_space<vmem>>, vector<1x96x168xf32>
    %26 = vector.shape_cast %25 : vector<1x96x168xf32> to vector<96x168xf32>
    %cst_28 = arith.constant dense<0.000000e+00> : vector<63x168xf32>
    %27 = tpu.matmul %24, %26, %cst_28 {dimension_numbers = #tpu.dot_dimension_numbers<[1], [0], [0], [1], [0, 0, 1, 1], [], []>} : vector<63x96xf32>, vector<96x168xf32>, vector<63x168xf32> -> vector<63x168xf32>
    %28 = arith.addf %22, %27 : vector<63x168xf32>
    %c0_29 = arith.constant 0 : index
    %c0_30 = arith.constant 0 : index
    %29 = vector.load %arg3[%c0_29, %c0_30] : memref<1x168xf32, #tpu.memory_space<vmem>>, vector<1x168xf32>
    %30 = vector.broadcast %29 : vector<1x168xf32> to vector<63x168xf32>
    %31 = arith.addf %28, %30 : vector<63x168xf32>
    %cst_31 = arith.constant 0.000000e+00 : f32
    %32 = vector.broadcast %cst_31 : f32 to vector<63x168xf32>
    %33 = arith.maximumf %31, %32 : vector<63x168xf32>
    %c1_32 = arith.constant 1 : index
    %c0_33 = arith.constant 0 : index
    %c0_34 = arith.constant 0 : index
    %34 = vector.load %arg1[%c1_32, %c0_33, %c0_34] : memref<4x64x96xf32, #tpu.memory_space<vmem>>, vector<1x63x96xf32>
    %35 = vector.shape_cast %34 : vector<1x63x96xf32> to vector<63x96xf32>
    %c0_35 = arith.constant 0 : index
    %c0_36 = arith.constant 0 : index
    %c0_37 = arith.constant 0 : index
    %36 = vector.load %arg2[%c0_35, %c0_36, %c0_37] : memref<5x96x168xf32, #tpu.memory_space<vmem>>, vector<1x96x168xf32>
    %37 = vector.shape_cast %36 : vector<1x96x168xf32> to vector<96x168xf32>
    %cst_38 = arith.constant dense<0.000000e+00> : vector<63x168xf32>
    %38 = tpu.matmul %35, %37, %cst_38 {dimension_numbers = #tpu.dot_dimension_numbers<[1], [0], [0], [1], [0, 0, 1, 1], [], []>} : vector<63x96xf32>, vector<96x168xf32>, vector<63x168xf32> -> vector<63x168xf32>
    %c2_39 = arith.constant 2 : index
    %c0_40 = arith.constant 0 : index
    %c0_41 = arith.constant 0 : index
    %39 = vector.load %arg1[%c2_39, %c0_40, %c0_41] : memref<4x64x96xf32, #tpu.memory_space<vmem>>, vector<1x63x96xf32>
    %40 = vector.shape_cast %39 : vector<1x63x96xf32> to vector<63x96xf32>
    %c1_42 = arith.constant 1 : index
    %c0_43 = arith.constant 0 : index
    %c0_44 = arith.constant 0 : index
    %41 = vector.load %arg2[%c1_42, %c0_43, %c0_44] : memref<5x96x168xf32, #tpu.memory_space<vmem>>, vector<1x96x168xf32>
    %42 = vector.shape_cast %41 : vector<1x96x168xf32> to vector<96x168xf32>
    %cst_45 = arith.constant dense<0.000000e+00> : vector<63x168xf32>
    %43 = tpu.matmul %40, %42, %cst_45 {dimension_numbers = #tpu.dot_dimension_numbers<[1], [0], [0], [1], [0, 0, 1, 1], [], []>} : vector<63x96xf32>, vector<96x168xf32>, vector<63x168xf32> -> vector<63x168xf32>
    %44 = arith.addf %38, %43 : vector<63x168xf32>
    %c3_46 = arith.constant 3 : index
    %c0_47 = arith.constant 0 : index
    %c0_48 = arith.constant 0 : index
    %45 = vector.load %arg1[%c3_46, %c0_47, %c0_48] : memref<4x64x96xf32, #tpu.memory_space<vmem>>, vector<1x63x96xf32>
    %46 = vector.shape_cast %45 : vector<1x63x96xf32> to vector<63x96xf32>
    %c2_49 = arith.constant 2 : index
    %c0_50 = arith.constant 0 : index
    %c0_51 = arith.constant 0 : index
    %47 = vector.load %arg2[%c2_49, %c0_50, %c0_51] : memref<5x96x168xf32, #tpu.memory_space<vmem>>, vector<1x96x168xf32>
    %48 = vector.shape_cast %47 : vector<1x96x168xf32> to vector<96x168xf32>
    %cst_52 = arith.constant dense<0.000000e+00> : vector<63x168xf32>
    %49 = tpu.matmul %46, %48, %cst_52 {dimension_numbers = #tpu.dot_dimension_numbers<[1], [0], [0], [1], [0, 0, 1, 1], [], []>} : vector<63x96xf32>, vector<96x168xf32>, vector<63x168xf32> -> vector<63x168xf32>
    %50 = arith.addf %44, %49 : vector<63x168xf32>
    %c0_53 = arith.constant 0 : index
    %c1_54 = arith.constant 1 : index
    %c0_55 = arith.constant 0 : index
    %51 = vector.load %arg1[%c0_53, %c1_54, %c0_55] : memref<4x64x96xf32, #tpu.memory_space<vmem>>, vector<1x63x96xf32>
    %52 = vector.shape_cast %51 : vector<1x63x96xf32> to vector<63x96xf32>
    %c3_56 = arith.constant 3 : index
    %c0_57 = arith.constant 0 : index
    %c0_58 = arith.constant 0 : index
    %53 = vector.load %arg2[%c3_56, %c0_57, %c0_58] : memref<5x96x168xf32, #tpu.memory_space<vmem>>, vector<1x96x168xf32>
    %54 = vector.shape_cast %53 : vector<1x96x168xf32> to vector<96x168xf32>
    %cst_59 = arith.constant dense<0.000000e+00> : vector<63x168xf32>
    %55 = tpu.matmul %52, %54, %cst_59 {dimension_numbers = #tpu.dot_dimension_numbers<[1], [0], [0], [1], [0, 0, 1, 1], [], []>} : vector<63x96xf32>, vector<96x168xf32>, vector<63x168xf32> -> vector<63x168xf32>
    %56 = arith.addf %50, %55 : vector<63x168xf32>
    %c1_60 = arith.constant 1 : index
    %c1_61 = arith.constant 1 : index
    %c0_62 = arith.constant 0 : index
    %57 = vector.load %arg1[%c1_60, %c1_61, %c0_62] : memref<4x64x96xf32, #tpu.memory_space<vmem>>, vector<1x63x96xf32>
    %58 = vector.shape_cast %57 : vector<1x63x96xf32> to vector<63x96xf32>
    %c4_63 = arith.constant 4 : index
    %c0_64 = arith.constant 0 : index
    %c0_65 = arith.constant 0 : index
    %59 = vector.load %arg2[%c4_63, %c0_64, %c0_65] : memref<5x96x168xf32, #tpu.memory_space<vmem>>, vector<1x96x168xf32>
    %60 = vector.shape_cast %59 : vector<1x96x168xf32> to vector<96x168xf32>
    %cst_66 = arith.constant dense<0.000000e+00> : vector<63x168xf32>
    %61 = tpu.matmul %58, %60, %cst_66 {dimension_numbers = #tpu.dot_dimension_numbers<[1], [0], [0], [1], [0, 0, 1, 1], [], []>} : vector<63x96xf32>, vector<96x168xf32>, vector<63x168xf32> -> vector<63x168xf32>
    %62 = arith.addf %56, %61 : vector<63x168xf32>
    %c0_67 = arith.constant 0 : index
    %c0_68 = arith.constant 0 : index
    %63 = vector.load %arg3[%c0_67, %c0_68] : memref<1x168xf32, #tpu.memory_space<vmem>>, vector<1x168xf32>
    %64 = vector.broadcast %63 : vector<1x168xf32> to vector<63x168xf32>
    %65 = arith.addf %62, %64 : vector<63x168xf32>
    %cst_69 = arith.constant 0.000000e+00 : f32
    %66 = vector.broadcast %cst_69 : f32 to vector<63x168xf32>
    %67 = arith.maximumf %65, %66 : vector<63x168xf32>
    %c2_70 = arith.constant 2 : index
    %c0_71 = arith.constant 0 : index
    %c0_72 = arith.constant 0 : index
    %68 = vector.load %arg1[%c2_70, %c0_71, %c0_72] : memref<4x64x96xf32, #tpu.memory_space<vmem>>, vector<1x63x96xf32>
    %69 = vector.shape_cast %68 : vector<1x63x96xf32> to vector<63x96xf32>
    %c0_73 = arith.constant 0 : index
    %c0_74 = arith.constant 0 : index
    %c0_75 = arith.constant 0 : index
    %70 = vector.load %arg2[%c0_73, %c0_74, %c0_75] : memref<5x96x168xf32, #tpu.memory_space<vmem>>, vector<1x96x168xf32>
    %71 = vector.shape_cast %70 : vector<1x96x168xf32> to vector<96x168xf32>
    %cst_76 = arith.constant dense<0.000000e+00> : vector<63x168xf32>
    %72 = tpu.matmul %69, %71, %cst_76 {dimension_numbers = #tpu.dot_dimension_numbers<[1], [0], [0], [1], [0, 0, 1, 1], [], []>} : vector<63x96xf32>, vector<96x168xf32>, vector<63x168xf32> -> vector<63x168xf32>
    %c3_77 = arith.constant 3 : index
    %c0_78 = arith.constant 0 : index
    %c0_79 = arith.constant 0 : index
    %73 = vector.load %arg1[%c3_77, %c0_78, %c0_79] : memref<4x64x96xf32, #tpu.memory_space<vmem>>, vector<1x63x96xf32>
    %74 = vector.shape_cast %73 : vector<1x63x96xf32> to vector<63x96xf32>
    %c1_80 = arith.constant 1 : index
    %c0_81 = arith.constant 0 : index
    %c0_82 = arith.constant 0 : index
    %75 = vector.load %arg2[%c1_80, %c0_81, %c0_82] : memref<5x96x168xf32, #tpu.memory_space<vmem>>, vector<1x96x168xf32>
    %76 = vector.shape_cast %75 : vector<1x96x168xf32> to vector<96x168xf32>
    %cst_83 = arith.constant dense<0.000000e+00> : vector<63x168xf32>
    %77 = tpu.matmul %74, %76, %cst_83 {dimension_numbers = #tpu.dot_dimension_numbers<[1], [0], [0], [1], [0, 0, 1, 1], [], []>} : vector<63x96xf32>, vector<96x168xf32>, vector<63x168xf32> -> vector<63x168xf32>
    %78 = arith.addf %72, %77 : vector<63x168xf32>
    %c0_84 = arith.constant 0 : index
    %c1_85 = arith.constant 1 : index
    %c0_86 = arith.constant 0 : index
    %79 = vector.load %arg1[%c0_84, %c1_85, %c0_86] : memref<4x64x96xf32, #tpu.memory_space<vmem>>, vector<1x63x96xf32>
    %80 = vector.shape_cast %79 : vector<1x63x96xf32> to vector<63x96xf32>
    %c2_87 = arith.constant 2 : index
    %c0_88 = arith.constant 0 : index
    %c0_89 = arith.constant 0 : index
    %81 = vector.load %arg2[%c2_87, %c0_88, %c0_89] : memref<5x96x168xf32, #tpu.memory_space<vmem>>, vector<1x96x168xf32>
    %82 = vector.shape_cast %81 : vector<1x96x168xf32> to vector<96x168xf32>
    %cst_90 = arith.constant dense<0.000000e+00> : vector<63x168xf32>
    %83 = tpu.matmul %80, %82, %cst_90 {dimension_numbers = #tpu.dot_dimension_numbers<[1], [0], [0], [1], [0, 0, 1, 1], [], []>} : vector<63x96xf32>, vector<96x168xf32>, vector<63x168xf32> -> vector<63x168xf32>
    %84 = arith.addf %78, %83 : vector<63x168xf32>
    %c1_91 = arith.constant 1 : index
    %c1_92 = arith.constant 1 : index
    %c0_93 = arith.constant 0 : index
    %85 = vector.load %arg1[%c1_91, %c1_92, %c0_93] : memref<4x64x96xf32, #tpu.memory_space<vmem>>, vector<1x63x96xf32>
    %86 = vector.shape_cast %85 : vector<1x63x96xf32> to vector<63x96xf32>
    %c3_94 = arith.constant 3 : index
    %c0_95 = arith.constant 0 : index
    %c0_96 = arith.constant 0 : index
    %87 = vector.load %arg2[%c3_94, %c0_95, %c0_96] : memref<5x96x168xf32, #tpu.memory_space<vmem>>, vector<1x96x168xf32>
    %88 = vector.shape_cast %87 : vector<1x96x168xf32> to vector<96x168xf32>
    %cst_97 = arith.constant dense<0.000000e+00> : vector<63x168xf32>
    %89 = tpu.matmul %86, %88, %cst_97 {dimension_numbers = #tpu.dot_dimension_numbers<[1], [0], [0], [1], [0, 0, 1, 1], [], []>} : vector<63x96xf32>, vector<96x168xf32>, vector<63x168xf32> -> vector<63x168xf32>
    %90 = arith.addf %84, %89 : vector<63x168xf32>
    %c2_98 = arith.constant 2 : index
    %c1_99 = arith.constant 1 : index
    %c0_100 = arith.constant 0 : index
    %91 = vector.load %arg1[%c2_98, %c1_99, %c0_100] : memref<4x64x96xf32, #tpu.memory_space<vmem>>, vector<1x63x96xf32>
    %92 = vector.shape_cast %91 : vector<1x63x96xf32> to vector<63x96xf32>
    %c4_101 = arith.constant 4 : index
    %c0_102 = arith.constant 0 : index
    %c0_103 = arith.constant 0 : index
    %93 = vector.load %arg2[%c4_101, %c0_102, %c0_103] : memref<5x96x168xf32, #tpu.memory_space<vmem>>, vector<1x96x168xf32>
    %94 = vector.shape_cast %93 : vector<1x96x168xf32> to vector<96x168xf32>
    %cst_104 = arith.constant dense<0.000000e+00> : vector<63x168xf32>
    %95 = tpu.matmul %92, %94, %cst_104 {dimension_numbers = #tpu.dot_dimension_numbers<[1], [0], [0], [1], [0, 0, 1, 1], [], []>} : vector<63x96xf32>, vector<96x168xf32>, vector<63x168xf32> -> vector<63x168xf32>
    %96 = arith.addf %90, %95 : vector<63x168xf32>
    %c0_105 = arith.constant 0 : index
    %c0_106 = arith.constant 0 : index
    %97 = vector.load %arg3[%c0_105, %c0_106] : memref<1x168xf32, #tpu.memory_space<vmem>>, vector<1x168xf32>
    %98 = vector.broadcast %97 : vector<1x168xf32> to vector<63x168xf32>
    %99 = arith.addf %96, %98 : vector<63x168xf32>
    %cst_107 = arith.constant 0.000000e+00 : f32
    %100 = vector.broadcast %cst_107 : f32 to vector<63x168xf32>
    %101 = arith.maximumf %99, %100 : vector<63x168xf32>
    %c3_108 = arith.constant 3 : index
    %c0_109 = arith.constant 0 : index
    %c0_110 = arith.constant 0 : index
    %102 = vector.load %arg1[%c3_108, %c0_109, %c0_110] : memref<4x64x96xf32, #tpu.memory_space<vmem>>, vector<1x63x96xf32>
    %103 = vector.shape_cast %102 : vector<1x63x96xf32> to vector<63x96xf32>
    %c0_111 = arith.constant 0 : index
    %c0_112 = arith.constant 0 : index
    %c0_113 = arith.constant 0 : index
    %104 = vector.load %arg2[%c0_111, %c0_112, %c0_113] : memref<5x96x168xf32, #tpu.memory_space<vmem>>, vector<1x96x168xf32>
    %105 = vector.shape_cast %104 : vector<1x96x168xf32> to vector<96x168xf32>
    %cst_114 = arith.constant dense<0.000000e+00> : vector<63x168xf32>
    %106 = tpu.matmul %103, %105, %cst_114 {dimension_numbers = #tpu.dot_dimension_numbers<[1], [0], [0], [1], [0, 0, 1, 1], [], []>} : vector<63x96xf32>, vector<96x168xf32>, vector<63x168xf32> -> vector<63x168xf32>
    %c0_115 = arith.constant 0 : index
    %c1_116 = arith.constant 1 : index
    %c0_117 = arith.constant 0 : index
    %107 = vector.load %arg1[%c0_115, %c1_116, %c0_117] : memref<4x64x96xf32, #tpu.memory_space<vmem>>, vector<1x63x96xf32>
    %108 = vector.shape_cast %107 : vector<1x63x96xf32> to vector<63x96xf32>
    %c1_118 = arith.constant 1 : index
    %c0_119 = arith.constant 0 : index
    %c0_120 = arith.constant 0 : index
    %109 = vector.load %arg2[%c1_118, %c0_119, %c0_120] : memref<5x96x168xf32, #tpu.memory_space<vmem>>, vector<1x96x168xf32>
    %110 = vector.shape_cast %109 : vector<1x96x168xf32> to vector<96x168xf32>
    %cst_121 = arith.constant dense<0.000000e+00> : vector<63x168xf32>
    %111 = tpu.matmul %108, %110, %cst_121 {dimension_numbers = #tpu.dot_dimension_numbers<[1], [0], [0], [1], [0, 0, 1, 1], [], []>} : vector<63x96xf32>, vector<96x168xf32>, vector<63x168xf32> -> vector<63x168xf32>
    %112 = arith.addf %106, %111 : vector<63x168xf32>
    %c1_122 = arith.constant 1 : index
    %c1_123 = arith.constant 1 : index
    %c0_124 = arith.constant 0 : index
    %113 = vector.load %arg1[%c1_122, %c1_123, %c0_124] : memref<4x64x96xf32, #tpu.memory_space<vmem>>, vector<1x63x96xf32>
    %114 = vector.shape_cast %113 : vector<1x63x96xf32> to vector<63x96xf32>
    %c2_125 = arith.constant 2 : index
    %c0_126 = arith.constant 0 : index
    %c0_127 = arith.constant 0 : index
    %115 = vector.load %arg2[%c2_125, %c0_126, %c0_127] : memref<5x96x168xf32, #tpu.memory_space<vmem>>, vector<1x96x168xf32>
    %116 = vector.shape_cast %115 : vector<1x96x168xf32> to vector<96x168xf32>
    %cst_128 = arith.constant dense<0.000000e+00> : vector<63x168xf32>
    %117 = tpu.matmul %114, %116, %cst_128 {dimension_numbers = #tpu.dot_dimension_numbers<[1], [0], [0], [1], [0, 0, 1, 1], [], []>} : vector<63x96xf32>, vector<96x168xf32>, vector<63x168xf32> -> vector<63x168xf32>
    %118 = arith.addf %112, %117 : vector<63x168xf32>
    %c2_129 = arith.constant 2 : index
    %c1_130 = arith.constant 1 : index
    %c0_131 = arith.constant 0 : index
    %119 = vector.load %arg1[%c2_129, %c1_130, %c0_131] : memref<4x64x96xf32, #tpu.memory_space<vmem>>, vector<1x63x96xf32>
    %120 = vector.shape_cast %119 : vector<1x63x96xf32> to vector<63x96xf32>
    %c3_132 = arith.constant 3 : index
    %c0_133 = arith.constant 0 : index
    %c0_134 = arith.constant 0 : index
    %121 = vector.load %arg2[%c3_132, %c0_133, %c0_134] : memref<5x96x168xf32, #tpu.memory_space<vmem>>, vector<1x96x168xf32>
    %122 = vector.shape_cast %121 : vector<1x96x168xf32> to vector<96x168xf32>
    %cst_135 = arith.constant dense<0.000000e+00> : vector<63x168xf32>
    %123 = tpu.matmul %120, %122, %cst_135 {dimension_numbers = #tpu.dot_dimension_numbers<[1], [0], [0], [1], [0, 0, 1, 1], [], []>} : vector<63x96xf32>, vector<96x168xf32>, vector<63x168xf32> -> vector<63x168xf32>
    %124 = arith.addf %118, %123 : vector<63x168xf32>
    %c3_136 = arith.constant 3 : index
    %c1_137 = arith.constant 1 : index
    %c0_138 = arith.constant 0 : index
    %125 = vector.load %arg1[%c3_136, %c1_137, %c0_138] : memref<4x64x96xf32, #tpu.memory_space<vmem>>, vector<1x63x96xf32>
    %126 = vector.shape_cast %125 : vector<1x63x96xf32> to vector<63x96xf32>
    %c4_139 = arith.constant 4 : index
    %c0_140 = arith.constant 0 : index
    %c0_141 = arith.constant 0 : index
    %127 = vector.load %arg2[%c4_139, %c0_140, %c0_141] : memref<5x96x168xf32, #tpu.memory_space<vmem>>, vector<1x96x168xf32>
    %128 = vector.shape_cast %127 : vector<1x96x168xf32> to vector<96x168xf32>
    %cst_142 = arith.constant dense<0.000000e+00> : vector<63x168xf32>
    %129 = tpu.matmul %126, %128, %cst_142 {dimension_numbers = #tpu.dot_dimension_numbers<[1], [0], [0], [1], [0, 0, 1, 1], [], []>} : vector<63x96xf32>, vector<96x168xf32>, vector<63x168xf32> -> vector<63x168xf32>
    %130 = arith.addf %124, %129 : vector<63x168xf32>
    %c0_143 = arith.constant 0 : index
    %c0_144 = arith.constant 0 : index
    %131 = vector.load %arg3[%c0_143, %c0_144] : memref<1x168xf32, #tpu.memory_space<vmem>>, vector<1x168xf32>
    %132 = vector.broadcast %131 : vector<1x168xf32> to vector<63x168xf32>
    %133 = arith.addf %130, %132 : vector<63x168xf32>
    %cst_145 = arith.constant 0.000000e+00 : f32
    %134 = vector.broadcast %cst_145 : f32 to vector<63x168xf32>
    %135 = arith.maximumf %133, %134 : vector<63x168xf32>
    %136 = arith.maximumf %33, %67 : vector<63x168xf32>
    %137 = arith.maximumf %101, %135 : vector<63x168xf32>
    %c0_146 = arith.constant 0 : index
    %c0_147 = arith.constant 0 : index
    %138 = vector.load %arg4[%c0_146, %c0_147] : memref<168x84xf32, #tpu.memory_space<vmem>>, vector<168x84xf32>
    %cst_148 = arith.constant dense<0.000000e+00> : vector<63x84xf32>
    %139 = tpu.matmul %136, %138, %cst_148 {dimension_numbers = #tpu.dot_dimension_numbers<[1], [0], [0], [1], [0, 0, 1, 1], [], []>} : vector<63x168xf32>, vector<168x84xf32>, vector<63x84xf32> -> vector<63x84xf32>
    %c0_149 = arith.constant 0 : index
    %c0_150 = arith.constant 0 : index
    %140 = vector.load %arg5[%c0_149, %c0_150] : memref<168x84xf32, #tpu.memory_space<vmem>>, vector<168x84xf32>
    %cst_151 = arith.constant dense<0.000000e+00> : vector<63x84xf32>
    %141 = tpu.matmul %136, %140, %cst_151 {dimension_numbers = #tpu.dot_dimension_numbers<[1], [0], [0], [1], [0, 0, 1, 1], [], []>} : vector<63x168xf32>, vector<168x84xf32>, vector<63x84xf32> -> vector<63x84xf32>
    %142 = arith.maximumf %139, %141 : vector<63x84xf32>
    %c0_152 = arith.constant 0 : index
    %c0_153 = arith.constant 0 : index
    %143 = vector.load %arg4[%c0_152, %c0_153] : memref<168x84xf32, #tpu.memory_space<vmem>>, vector<168x84xf32>
    %cst_154 = arith.constant dense<0.000000e+00> : vector<63x84xf32>
    %144 = tpu.matmul %137, %143, %cst_154 {dimension_numbers = #tpu.dot_dimension_numbers<[1], [0], [0], [1], [0, 0, 1, 1], [], []>} : vector<63x168xf32>, vector<168x84xf32>, vector<63x84xf32> -> vector<63x84xf32>
    %c0_155 = arith.constant 0 : index
    %c0_156 = arith.constant 0 : index
    %145 = vector.load %arg5[%c0_155, %c0_156] : memref<168x84xf32, #tpu.memory_space<vmem>>, vector<168x84xf32>
    %cst_157 = arith.constant dense<0.000000e+00> : vector<63x84xf32>
    %146 = tpu.matmul %137, %145, %cst_157 {dimension_numbers = #tpu.dot_dimension_numbers<[1], [0], [0], [1], [0, 0, 1, 1], [], []>} : vector<63x168xf32>, vector<168x84xf32>, vector<63x84xf32> -> vector<63x84xf32>
    %147 = arith.maximumf %144, %146 : vector<63x84xf32>
    %148 = vector.extract_strided_slice %142 {offsets = [0, 0], sizes = [61, 84], strides = [1, 1]} : vector<63x84xf32> to vector<61x84xf32>
    %c0_158 = arith.constant 0 : index
    %c0_159 = arith.constant 0 : index
    %c0_160 = arith.constant 0 : index
    %149 = vector.load %arg6[%c0_158, %c0_159, %c0_160] : memref<5x84x160xf32, #tpu.memory_space<vmem>>, vector<1x84x160xf32>
    %150 = vector.shape_cast %149 : vector<1x84x160xf32> to vector<84x160xf32>
    %cst_161 = arith.constant dense<0.000000e+00> : vector<61x160xf32>
    %151 = tpu.matmul %148, %150, %cst_161 {dimension_numbers = #tpu.dot_dimension_numbers<[1], [0], [0], [1], [0, 0, 1, 1], [], []>} : vector<61x84xf32>, vector<84x160xf32>, vector<61x160xf32> -> vector<61x160xf32>
    %152 = vector.extract_strided_slice %147 {offsets = [0, 0], sizes = [61, 84], strides = [1, 1]} : vector<63x84xf32> to vector<61x84xf32>
    %c1_162 = arith.constant 1 : index
    %c0_163 = arith.constant 0 : index
    %c0_164 = arith.constant 0 : index
    %153 = vector.load %arg6[%c1_162, %c0_163, %c0_164] : memref<5x84x160xf32, #tpu.memory_space<vmem>>, vector<1x84x160xf32>
    %154 = vector.shape_cast %153 : vector<1x84x160xf32> to vector<84x160xf32>
    %cst_165 = arith.constant dense<0.000000e+00> : vector<61x160xf32>
    %155 = tpu.matmul %152, %154, %cst_165 {dimension_numbers = #tpu.dot_dimension_numbers<[1], [0], [0], [1], [0, 0, 1, 1], [], []>} : vector<61x84xf32>, vector<84x160xf32>, vector<61x160xf32> -> vector<61x160xf32>
    %156 = arith.addf %151, %155 : vector<61x160xf32>
    %157 = vector.extract_strided_slice %142 {offsets = [1, 0], sizes = [61, 84], strides = [1, 1]} : vector<63x84xf32> to vector<61x84xf32>
    %c2_166 = arith.constant 2 : index
    %c0_167 = arith.constant 0 : index
    %c0_168 = arith.constant 0 : index
    %158 = vector.load %arg6[%c2_166, %c0_167, %c0_168] : memref<5x84x160xf32, #tpu.memory_space<vmem>>, vector<1x84x160xf32>
    %159 = vector.shape_cast %158 : vector<1x84x160xf32> to vector<84x160xf32>
    %cst_169 = arith.constant dense<0.000000e+00> : vector<61x160xf32>
    %160 = tpu.matmul %157, %159, %cst_169 {dimension_numbers = #tpu.dot_dimension_numbers<[1], [0], [0], [1], [0, 0, 1, 1], [], []>} : vector<61x84xf32>, vector<84x160xf32>, vector<61x160xf32> -> vector<61x160xf32>
    %161 = arith.addf %156, %160 : vector<61x160xf32>
    %162 = vector.extract_strided_slice %147 {offsets = [1, 0], sizes = [61, 84], strides = [1, 1]} : vector<63x84xf32> to vector<61x84xf32>
    %c3_170 = arith.constant 3 : index
    %c0_171 = arith.constant 0 : index
    %c0_172 = arith.constant 0 : index
    %163 = vector.load %arg6[%c3_170, %c0_171, %c0_172] : memref<5x84x160xf32, #tpu.memory_space<vmem>>, vector<1x84x160xf32>
    %164 = vector.shape_cast %163 : vector<1x84x160xf32> to vector<84x160xf32>
    %cst_173 = arith.constant dense<0.000000e+00> : vector<61x160xf32>
    %165 = tpu.matmul %162, %164, %cst_173 {dimension_numbers = #tpu.dot_dimension_numbers<[1], [0], [0], [1], [0, 0, 1, 1], [], []>} : vector<61x84xf32>, vector<84x160xf32>, vector<61x160xf32> -> vector<61x160xf32>
    %166 = arith.addf %161, %165 : vector<61x160xf32>
    %167 = vector.extract_strided_slice %142 {offsets = [2, 0], sizes = [61, 84], strides = [1, 1]} : vector<63x84xf32> to vector<61x84xf32>
    %c4_174 = arith.constant 4 : index
    %c0_175 = arith.constant 0 : index
    %c0_176 = arith.constant 0 : index
    %168 = vector.load %arg6[%c4_174, %c0_175, %c0_176] : memref<5x84x160xf32, #tpu.memory_space<vmem>>, vector<1x84x160xf32>
    %169 = vector.shape_cast %168 : vector<1x84x160xf32> to vector<84x160xf32>
    %cst_177 = arith.constant dense<0.000000e+00> : vector<61x160xf32>
    %170 = tpu.matmul %167, %169, %cst_177 {dimension_numbers = #tpu.dot_dimension_numbers<[1], [0], [0], [1], [0, 0, 1, 1], [], []>} : vector<61x84xf32>, vector<84x160xf32>, vector<61x160xf32> -> vector<61x160xf32>
    %171 = arith.addf %166, %170 : vector<61x160xf32>
    %c0_178 = arith.constant 0 : index
    %c0_179 = arith.constant 0 : index
    %172 = vector.load %arg7[%c0_178, %c0_179] : memref<1x160xf32, #tpu.memory_space<vmem>>, vector<1x160xf32>
    %173 = vector.broadcast %172 : vector<1x160xf32> to vector<61x160xf32>
    %174 = arith.addf %171, %173 : vector<61x160xf32>
    %cst_180 = arith.constant 0.000000e+00 : f32
    %175 = vector.broadcast %cst_180 : f32 to vector<61x160xf32>
    %176 = arith.maximumf %174, %175 : vector<61x160xf32>
    %177 = vector.extract_strided_slice %147 {offsets = [0, 0], sizes = [61, 84], strides = [1, 1]} : vector<63x84xf32> to vector<61x84xf32>
    %c0_181 = arith.constant 0 : index
    %c0_182 = arith.constant 0 : index
    %c0_183 = arith.constant 0 : index
    %178 = vector.load %arg6[%c0_181, %c0_182, %c0_183] : memref<5x84x160xf32, #tpu.memory_space<vmem>>, vector<1x84x160xf32>
    %179 = vector.shape_cast %178 : vector<1x84x160xf32> to vector<84x160xf32>
    %cst_184 = arith.constant dense<0.000000e+00> : vector<61x160xf32>
    %180 = tpu.matmul %177, %179, %cst_184 {dimension_numbers = #tpu.dot_dimension_numbers<[1], [0], [0], [1], [0, 0, 1, 1], [], []>} : vector<61x84xf32>, vector<84x160xf32>, vector<61x160xf32> -> vector<61x160xf32>
    %181 = vector.extract_strided_slice %142 {offsets = [1, 0], sizes = [61, 84], strides = [1, 1]} : vector<63x84xf32> to vector<61x84xf32>
    %c1_185 = arith.constant 1 : index
    %c0_186 = arith.constant 0 : index
    %c0_187 = arith.constant 0 : index
    %182 = vector.load %arg6[%c1_185, %c0_186, %c0_187] : memref<5x84x160xf32, #tpu.memory_space<vmem>>, vector<1x84x160xf32>
    %183 = vector.shape_cast %182 : vector<1x84x160xf32> to vector<84x160xf32>
    %cst_188 = arith.constant dense<0.000000e+00> : vector<61x160xf32>
    %184 = tpu.matmul %181, %183, %cst_188 {dimension_numbers = #tpu.dot_dimension_numbers<[1], [0], [0], [1], [0, 0, 1, 1], [], []>} : vector<61x84xf32>, vector<84x160xf32>, vector<61x160xf32> -> vector<61x160xf32>
    %185 = arith.addf %180, %184 : vector<61x160xf32>
    %186 = vector.extract_strided_slice %147 {offsets = [1, 0], sizes = [61, 84], strides = [1, 1]} : vector<63x84xf32> to vector<61x84xf32>
    %c2_189 = arith.constant 2 : index
    %c0_190 = arith.constant 0 : index
    %c0_191 = arith.constant 0 : index
    %187 = vector.load %arg6[%c2_189, %c0_190, %c0_191] : memref<5x84x160xf32, #tpu.memory_space<vmem>>, vector<1x84x160xf32>
    %188 = vector.shape_cast %187 : vector<1x84x160xf32> to vector<84x160xf32>
    %cst_192 = arith.constant dense<0.000000e+00> : vector<61x160xf32>
    %189 = tpu.matmul %186, %188, %cst_192 {dimension_numbers = #tpu.dot_dimension_numbers<[1], [0], [0], [1], [0, 0, 1, 1], [], []>} : vector<61x84xf32>, vector<84x160xf32>, vector<61x160xf32> -> vector<61x160xf32>
    %190 = arith.addf %185, %189 : vector<61x160xf32>
    %191 = vector.extract_strided_slice %142 {offsets = [2, 0], sizes = [61, 84], strides = [1, 1]} : vector<63x84xf32> to vector<61x84xf32>
    %c3_193 = arith.constant 3 : index
    %c0_194 = arith.constant 0 : index
    %c0_195 = arith.constant 0 : index
    %192 = vector.load %arg6[%c3_193, %c0_194, %c0_195] : memref<5x84x160xf32, #tpu.memory_space<vmem>>, vector<1x84x160xf32>
    %193 = vector.shape_cast %192 : vector<1x84x160xf32> to vector<84x160xf32>
    %cst_196 = arith.constant dense<0.000000e+00> : vector<61x160xf32>
    %194 = tpu.matmul %191, %193, %cst_196 {dimension_numbers = #tpu.dot_dimension_numbers<[1], [0], [0], [1], [0, 0, 1, 1], [], []>} : vector<61x84xf32>, vector<84x160xf32>, vector<61x160xf32> -> vector<61x160xf32>
    %195 = arith.addf %190, %194 : vector<61x160xf32>
    %196 = vector.extract_strided_slice %147 {offsets = [2, 0], sizes = [61, 84], strides = [1, 1]} : vector<63x84xf32> to vector<61x84xf32>
    %c4_197 = arith.constant 4 : index
    %c0_198 = arith.constant 0 : index
    %c0_199 = arith.constant 0 : index
    %197 = vector.load %arg6[%c4_197, %c0_198, %c0_199] : memref<5x84x160xf32, #tpu.memory_space<vmem>>, vector<1x84x160xf32>
    %198 = vector.shape_cast %197 : vector<1x84x160xf32> to vector<84x160xf32>
    %cst_200 = arith.constant dense<0.000000e+00> : vector<61x160xf32>
    %199 = tpu.matmul %196, %198, %cst_200 {dimension_numbers = #tpu.dot_dimension_numbers<[1], [0], [0], [1], [0, 0, 1, 1], [], []>} : vector<61x84xf32>, vector<84x160xf32>, vector<61x160xf32> -> vector<61x160xf32>
    %200 = arith.addf %195, %199 : vector<61x160xf32>
    %c0_201 = arith.constant 0 : index
    %c0_202 = arith.constant 0 : index
    %201 = vector.load %arg7[%c0_201, %c0_202] : memref<1x160xf32, #tpu.memory_space<vmem>>, vector<1x160xf32>
    %202 = vector.broadcast %201 : vector<1x160xf32> to vector<61x160xf32>
    %203 = arith.addf %200, %202 : vector<61x160xf32>
    %cst_203 = arith.constant 0.000000e+00 : f32
    %204 = vector.broadcast %cst_203 : f32 to vector<61x160xf32>
    %205 = arith.maximumf %203, %204 : vector<61x160xf32>
    %206 = arith.maximumf %176, %205 : vector<61x160xf32>
    %c0_204 = arith.constant 0 : index
    %c0_205 = arith.constant 0 : index
    %207 = vector.load %arg8[%c0_204, %c0_205] : memref<160x80xf32, #tpu.memory_space<vmem>>, vector<160x80xf32>
    %cst_206 = arith.constant dense<0.000000e+00> : vector<61x80xf32>
    %208 = tpu.matmul %206, %207, %cst_206 {dimension_numbers = #tpu.dot_dimension_numbers<[1], [0], [0], [1], [0, 0, 1, 1], [], []>} : vector<61x160xf32>, vector<160x80xf32>, vector<61x80xf32> -> vector<61x80xf32>
    %c0_207 = arith.constant 0 : index
    %c0_208 = arith.constant 0 : index
    %209 = vector.load %arg9[%c0_207, %c0_208] : memref<160x80xf32, #tpu.memory_space<vmem>>, vector<160x80xf32>
    %cst_209 = arith.constant dense<0.000000e+00> : vector<61x80xf32>
    %210 = tpu.matmul %206, %209, %cst_209 {dimension_numbers = #tpu.dot_dimension_numbers<[1], [0], [0], [1], [0, 0, 1, 1], [], []>} : vector<61x160xf32>, vector<160x80xf32>, vector<61x80xf32> -> vector<61x80xf32>
    %211 = arith.maximumf %208, %210 : vector<61x80xf32>
    %c0_210 = arith.constant 0 : index
    %c0_211 = arith.constant 0 : index
    %c0_212 = arith.constant 0 : index
    %212 = vector.load %arg16[%c0_210, %c0_211, %c0_212] : memref<5x8x61xf32, #tpu.memory_space<vmem>>, vector<1x8x61xf32>
    %213 = vector.shape_cast %212 : vector<1x8x61xf32> to vector<8x61xf32>
    %cst_213 = arith.constant dense<0.000000e+00> : vector<8x80xf32>
    %214 = tpu.matmul %213, %211, %cst_213 {dimension_numbers = #tpu.dot_dimension_numbers<[1], [0], [0], [1], [0, 0, 1, 1], [], []>} : vector<8x61xf32>, vector<61x80xf32>, vector<8x80xf32> -> vector<8x80xf32>
    %c0_214 = arith.constant 0 : index
    %c0_215 = arith.constant 0 : index
    %c0_216 = arith.constant 0 : index
    %215 = vector.load %arg10[%c0_214, %c0_215, %c0_216] : memref<5x80x120xf32, #tpu.memory_space<vmem>>, vector<1x80x120xf32>
    %216 = vector.shape_cast %215 : vector<1x80x120xf32> to vector<80x120xf32>
    %cst_217 = arith.constant dense<0.000000e+00> : vector<8x120xf32>
    %217 = tpu.matmul %214, %216, %cst_217 {dimension_numbers = #tpu.dot_dimension_numbers<[1], [0], [0], [1], [0, 0, 1, 1], [], []>} : vector<8x80xf32>, vector<80x120xf32>, vector<8x120xf32> -> vector<8x120xf32>
    %c1_218 = arith.constant 1 : index
    %c0_219 = arith.constant 0 : index
    %c0_220 = arith.constant 0 : index
    %218 = vector.load %arg16[%c1_218, %c0_219, %c0_220] : memref<5x8x61xf32, #tpu.memory_space<vmem>>, vector<1x8x61xf32>
    %219 = vector.shape_cast %218 : vector<1x8x61xf32> to vector<8x61xf32>
    %cst_221 = arith.constant dense<0.000000e+00> : vector<8x80xf32>
    %220 = tpu.matmul %219, %211, %cst_221 {dimension_numbers = #tpu.dot_dimension_numbers<[1], [0], [0], [1], [0, 0, 1, 1], [], []>} : vector<8x61xf32>, vector<61x80xf32>, vector<8x80xf32> -> vector<8x80xf32>
    %c1_222 = arith.constant 1 : index
    %c0_223 = arith.constant 0 : index
    %c0_224 = arith.constant 0 : index
    %221 = vector.load %arg10[%c1_222, %c0_223, %c0_224] : memref<5x80x120xf32, #tpu.memory_space<vmem>>, vector<1x80x120xf32>
    %222 = vector.shape_cast %221 : vector<1x80x120xf32> to vector<80x120xf32>
    %cst_225 = arith.constant dense<0.000000e+00> : vector<8x120xf32>
    %223 = tpu.matmul %220, %222, %cst_225 {dimension_numbers = #tpu.dot_dimension_numbers<[1], [0], [0], [1], [0, 0, 1, 1], [], []>} : vector<8x80xf32>, vector<80x120xf32>, vector<8x120xf32> -> vector<8x120xf32>
    %224 = arith.addf %217, %223 : vector<8x120xf32>
    %c2_226 = arith.constant 2 : index
    %c0_227 = arith.constant 0 : index
    %c0_228 = arith.constant 0 : index
    %225 = vector.load %arg16[%c2_226, %c0_227, %c0_228] : memref<5x8x61xf32, #tpu.memory_space<vmem>>, vector<1x8x61xf32>
    %226 = vector.shape_cast %225 : vector<1x8x61xf32> to vector<8x61xf32>
    %cst_229 = arith.constant dense<0.000000e+00> : vector<8x80xf32>
    %227 = tpu.matmul %226, %211, %cst_229 {dimension_numbers = #tpu.dot_dimension_numbers<[1], [0], [0], [1], [0, 0, 1, 1], [], []>} : vector<8x61xf32>, vector<61x80xf32>, vector<8x80xf32> -> vector<8x80xf32>
    %c2_230 = arith.constant 2 : index
    %c0_231 = arith.constant 0 : index
    %c0_232 = arith.constant 0 : index
    %228 = vector.load %arg10[%c2_230, %c0_231, %c0_232] : memref<5x80x120xf32, #tpu.memory_space<vmem>>, vector<1x80x120xf32>
    %229 = vector.shape_cast %228 : vector<1x80x120xf32> to vector<80x120xf32>
    %cst_233 = arith.constant dense<0.000000e+00> : vector<8x120xf32>
    %230 = tpu.matmul %227, %229, %cst_233 {dimension_numbers = #tpu.dot_dimension_numbers<[1], [0], [0], [1], [0, 0, 1, 1], [], []>} : vector<8x80xf32>, vector<80x120xf32>, vector<8x120xf32> -> vector<8x120xf32>
    %231 = arith.addf %224, %230 : vector<8x120xf32>
    %c3_234 = arith.constant 3 : index
    %c0_235 = arith.constant 0 : index
    %c0_236 = arith.constant 0 : index
    %232 = vector.load %arg16[%c3_234, %c0_235, %c0_236] : memref<5x8x61xf32, #tpu.memory_space<vmem>>, vector<1x8x61xf32>
    %233 = vector.shape_cast %232 : vector<1x8x61xf32> to vector<8x61xf32>
    %cst_237 = arith.constant dense<0.000000e+00> : vector<8x80xf32>
    %234 = tpu.matmul %233, %211, %cst_237 {dimension_numbers = #tpu.dot_dimension_numbers<[1], [0], [0], [1], [0, 0, 1, 1], [], []>} : vector<8x61xf32>, vector<61x80xf32>, vector<8x80xf32> -> vector<8x80xf32>
    %c3_238 = arith.constant 3 : index
    %c0_239 = arith.constant 0 : index
    %c0_240 = arith.constant 0 : index
    %235 = vector.load %arg10[%c3_238, %c0_239, %c0_240] : memref<5x80x120xf32, #tpu.memory_space<vmem>>, vector<1x80x120xf32>
    %236 = vector.shape_cast %235 : vector<1x80x120xf32> to vector<80x120xf32>
    %cst_241 = arith.constant dense<0.000000e+00> : vector<8x120xf32>
    %237 = tpu.matmul %234, %236, %cst_241 {dimension_numbers = #tpu.dot_dimension_numbers<[1], [0], [0], [1], [0, 0, 1, 1], [], []>} : vector<8x80xf32>, vector<80x120xf32>, vector<8x120xf32> -> vector<8x120xf32>
    %238 = arith.addf %231, %237 : vector<8x120xf32>
    %c4_242 = arith.constant 4 : index
    %c0_243 = arith.constant 0 : index
    %c0_244 = arith.constant 0 : index
    %239 = vector.load %arg16[%c4_242, %c0_243, %c0_244] : memref<5x8x61xf32, #tpu.memory_space<vmem>>, vector<1x8x61xf32>
    %240 = vector.shape_cast %239 : vector<1x8x61xf32> to vector<8x61xf32>
    %cst_245 = arith.constant dense<0.000000e+00> : vector<8x80xf32>
    %241 = tpu.matmul %240, %211, %cst_245 {dimension_numbers = #tpu.dot_dimension_numbers<[1], [0], [0], [1], [0, 0, 1, 1], [], []>} : vector<8x61xf32>, vector<61x80xf32>, vector<8x80xf32> -> vector<8x80xf32>
    %c4_246 = arith.constant 4 : index
    %c0_247 = arith.constant 0 : index
    %c0_248 = arith.constant 0 : index
    %242 = vector.load %arg10[%c4_246, %c0_247, %c0_248] : memref<5x80x120xf32, #tpu.memory_space<vmem>>, vector<1x80x120xf32>
    %243 = vector.shape_cast %242 : vector<1x80x120xf32> to vector<80x120xf32>
    %cst_249 = arith.constant dense<0.000000e+00> : vector<8x120xf32>
    %244 = tpu.matmul %241, %243, %cst_249 {dimension_numbers = #tpu.dot_dimension_numbers<[1], [0], [0], [1], [0, 0, 1, 1], [], []>} : vector<8x80xf32>, vector<80x120xf32>, vector<8x120xf32> -> vector<8x120xf32>
    %245 = arith.addf %238, %244 : vector<8x120xf32>
    %c0_250 = arith.constant 0 : index
    %c0_251 = arith.constant 0 : index
    %246 = vector.load %arg11[%c0_250, %c0_251] : memref<1x120xf32, #tpu.memory_space<vmem>>, vector<1x120xf32>
    %247 = vector.broadcast %246 : vector<1x120xf32> to vector<8x120xf32>
    %248 = arith.addf %245, %247 : vector<8x120xf32>
    %cst_252 = arith.constant 0.000000e+00 : f32
    %249 = vector.broadcast %cst_252 : f32 to vector<8x120xf32>
    %250 = arith.maximumf %248, %249 : vector<8x120xf32>
    %c0_253 = arith.constant 0 : index
    %c0_254 = arith.constant 0 : index
    %251 = vector.load %arg12[%c0_253, %c0_254] : memref<120x84xf32, #tpu.memory_space<vmem>>, vector<120x84xf32>
    %cst_255 = arith.constant dense<0.000000e+00> : vector<8x84xf32>
    %252 = tpu.matmul %250, %251, %cst_255 {dimension_numbers = #tpu.dot_dimension_numbers<[1], [0], [0], [1], [0, 0, 1, 1], [], []>} : vector<8x120xf32>, vector<120x84xf32>, vector<8x84xf32> -> vector<8x84xf32>
    %c0_256 = arith.constant 0 : index
    %c0_257 = arith.constant 0 : index
    %253 = vector.load %arg13[%c0_256, %c0_257] : memref<1x84xf32, #tpu.memory_space<vmem>>, vector<1x84xf32>
    %254 = vector.broadcast %253 : vector<1x84xf32> to vector<8x84xf32>
    %255 = arith.addf %252, %254 : vector<8x84xf32>
    %cst_258 = arith.constant 0.000000e+00 : f32
    %256 = vector.broadcast %cst_258 : f32 to vector<8x84xf32>
    %257 = arith.maximumf %255, %256 : vector<8x84xf32>
    %c0_259 = arith.constant 0 : index
    %c0_260 = arith.constant 0 : index
    %258 = vector.load %arg14[%c0_259, %c0_260] : memref<84x128xf32, #tpu.memory_space<vmem>>, vector<84x128xf32>
    %cst_261 = arith.constant dense<0.000000e+00> : vector<8x128xf32>
    %259 = tpu.matmul %257, %258, %cst_261 {dimension_numbers = #tpu.dot_dimension_numbers<[1], [0], [0], [1], [0, 0, 1, 1], [], []>} : vector<8x84xf32>, vector<84x128xf32>, vector<8x128xf32> -> vector<8x128xf32>
    %c0_262 = arith.constant 0 : index
    %c0_263 = arith.constant 0 : index
    %260 = vector.load %arg15[%c0_262, %c0_263] : memref<1x128xf32, #tpu.memory_space<vmem>>, vector<1x128xf32>
    %261 = vector.broadcast %260 : vector<1x128xf32> to vector<8x128xf32>
    %262 = arith.addf %259, %261 : vector<8x128xf32>
    %c0_264 = arith.constant 0 : index
    %c0_265 = arith.constant 0 : index
    %263 = vector.load %arg17[%c0_264, %c0_265] : memref<8x128xf32, #tpu.memory_space<vmem>>, vector<8x128xf32>
    tpu.vector_store %arg17[%c0_264, %c0_265], %262 {strides = array<i32>} : memref<8x128xf32, #tpu.memory_space<vmem>>, vector<8x128xf32>,
    return
  }
  func.func @transform_0(%arg0: i32) -> (i32, i32, i32) {
    %c0_i32 = arith.constant 0 : i32
    %c0_i32_0 = arith.constant 0 : i32
    %c0_i32_1 = arith.constant 0 : i32
    return %c0_i32, %arg0, %c0_i32_0 : i32, i32, i32
  }
  func.func @transform_1(%arg0: i32) -> (i32, i32, i32) {
    %c0_i32 = arith.constant 0 : i32
    %c0_i32_0 = arith.constant 0 : i32
    %c0_i32_1 = arith.constant 0 : i32
    %c0_i32_2 = arith.constant 0 : i32
    return %c0_i32, %c0_i32_0, %c0_i32_1 : i32, i32, i32
  }
  func.func @transform_2(%arg0: i32) -> (i32, i32) {
    %c0_i32 = arith.constant 0 : i32
    %c0_i32_0 = arith.constant 0 : i32
    %c0_i32_1 = arith.constant 0 : i32
    return %c0_i32, %c0_i32_0 : i32, i32
  }
  func.func @transform_3(%arg0: i32) -> (i32, i32) {
    %c0_i32 = arith.constant 0 : i32
    %c0_i32_0 = arith.constant 0 : i32
    %c0_i32_1 = arith.constant 0 : i32
    return %c0_i32, %c0_i32_0 : i32, i32
  }
  func.func @transform_4(%arg0: i32) -> (i32, i32) {
    %c0_i32 = arith.constant 0 : i32
    %c0_i32_0 = arith.constant 0 : i32
    %c0_i32_1 = arith.constant 0 : i32
    return %c0_i32, %c0_i32_0 : i32, i32
  }
  func.func @transform_5(%arg0: i32) -> (i32, i32, i32) {
    %c0_i32 = arith.constant 0 : i32
    %c0_i32_0 = arith.constant 0 : i32
    %c0_i32_1 = arith.constant 0 : i32
    %c0_i32_2 = arith.constant 0 : i32
    return %c0_i32, %c0_i32_0, %c0_i32_1 : i32, i32, i32
  }
  func.func @transform_6(%arg0: i32) -> (i32, i32) {
    %c0_i32 = arith.constant 0 : i32
    %c0_i32_0 = arith.constant 0 : i32
    %c0_i32_1 = arith.constant 0 : i32
    return %c0_i32, %c0_i32_0 : i32, i32
  }
  func.func @transform_7(%arg0: i32) -> (i32, i32) {
    %c0_i32 = arith.constant 0 : i32
    %c0_i32_0 = arith.constant 0 : i32
    %c0_i32_1 = arith.constant 0 : i32
    return %c0_i32, %c0_i32_0 : i32, i32
  }
  func.func @transform_8(%arg0: i32) -> (i32, i32) {
    %c0_i32 = arith.constant 0 : i32
    %c0_i32_0 = arith.constant 0 : i32
    %c0_i32_1 = arith.constant 0 : i32
    return %c0_i32, %c0_i32_0 : i32, i32
  }
  func.func @transform_9(%arg0: i32) -> (i32, i32, i32) {
    %c0_i32 = arith.constant 0 : i32
    %c0_i32_0 = arith.constant 0 : i32
    %c0_i32_1 = arith.constant 0 : i32
    %c0_i32_2 = arith.constant 0 : i32
    return %c0_i32, %c0_i32_0, %c0_i32_1 : i32, i32, i32
  }
  func.func @transform_10(%arg0: i32) -> (i32, i32) {
    %c0_i32 = arith.constant 0 : i32
    %c0_i32_0 = arith.constant 0 : i32
    %c0_i32_1 = arith.constant 0 : i32
    return %c0_i32, %c0_i32_0 : i32, i32
  }
  func.func @transform_11(%arg0: i32) -> (i32, i32) {
    %c0_i32 = arith.constant 0 : i32
    %c0_i32_0 = arith.constant 0 : i32
    %c0_i32_1 = arith.constant 0 : i32
    return %c0_i32, %c0_i32_0 : i32, i32
  }
  func.func @transform_12(%arg0: i32) -> (i32, i32) {
    %c0_i32 = arith.constant 0 : i32
    %c0_i32_0 = arith.constant 0 : i32
    %c0_i32_1 = arith.constant 0 : i32
    return %c0_i32, %c0_i32_0 : i32, i32
  }
  func.func @transform_13(%arg0: i32) -> (i32, i32) {
    %c0_i32 = arith.constant 0 : i32
    %c0_i32_0 = arith.constant 0 : i32
    %c0_i32_1 = arith.constant 0 : i32
    return %c0_i32, %c0_i32_0 : i32, i32
  }
  func.func @transform_14(%arg0: i32) -> (i32, i32) {
    %c0_i32 = arith.constant 0 : i32
    %c0_i32_0 = arith.constant 0 : i32
    %c0_i32_1 = arith.constant 0 : i32
    return %c0_i32, %c0_i32_0 : i32, i32
  }
  func.func @transform_15(%arg0: i32) -> (i32, i32, i32) {
    %c0_i32 = arith.constant 0 : i32
    %c0_i32_0 = arith.constant 0 : i32
    %c0_i32_1 = arith.constant 0 : i32
    %c0_i32_2 = arith.constant 0 : i32
    return %c0_i32, %c0_i32_0, %c0_i32_1 : i32, i32, i32
  }
  func.func @transform_16(%arg0: i32) -> (i32, i32) {
    %c0_i32 = arith.constant 0 : i32
    %c0_i32_0 = arith.constant 0 : i32
    return %arg0, %c0_i32 : i32, i32
  }
}

</mosaic_0001>

<bundles_post_ra>
// kernel: net_forward.1
= control target key start
LH: loop header
LB: loop body
LE: loop exit
PB: predicated region body
PF: predicated region fallthrough
CT: control target
= control target key end

     0   :  { %v13651_v3 = vmov 0.0   ;;  %vm119_vm0 = vcmask 785408   ;;  %vm3082_vm1 = vcmask 326656   ;;  %vm3658_vm2 = vcmask 1043456   ;;  %s13633_s1 = inlined_call_operand.vmem [shape: f32[5,96,168], index: 1, kind: input, shape index: {}]   ;;  %s13634_s0 = inlined_call_operand.vmem [shape: f32[4,64,96], index: 0, kind: input, shape index: {}]   ;;  %s13635_s2 = inlined_call_operand.vmem [shape: f32[1,168], index: 2, kind: input, shape index: {}]   ;;  %s13636_s3 = inlined_call_operand.vmem [shape: f32[168,84], index: 3, kind: input, shape index: {}]   ;;  %s13637_s4 = inlined_call_operand.vmem [shape: f32[168,84], index: 4, kind: input, shape index: {}]   ;;  %s13638_s5 = inlined_call_operand.vmem [shape: f32[5,84,160], index: 5, kind: input, shape index: {}]   ;;  %s13639_s7 = inlined_call_operand.vmem [shape: f32[160,80], index: 7, kind: input, shape index: {}]   ;;  %s13640_s8 = inlined_call_operand.vmem [shape: f32[160,80], index: 8, kind: input, shape index: {}]   ;;  %s13641_s6 = inlined_call_operand.vmem [shape: f32[1,160], index: 6, kind: input, shape index: {}]   ;;  %s13642_s15 = inlined_call_operand.vmem [shape: f32[5,8,61], index: 15, kind: input, shape index: {}]   ;;  %s13643_s9 = inlined_call_operand.vmem [shape: f32[5,80,120], index: 9, kind: input, shape index: {}]   ;;  %s13644_s11 = inlined_call_operand.vmem [shape: f32[120,84], index: 11, kind: input, shape index: {}]   ;;  %s13645_s13 = inlined_call_operand.vmem [shape: f32[84,128], index: 13, kind: input, shape index: {}]   ;;  %s13646_s10 = inlined_call_operand.vmem [shape: f32[1,120], index: 10, kind: input, shape index: {}]   ;;  %s13647_s12 = inlined_call_operand.vmem [shape: f32[1,84], index: 12, kind: input, shape index: {}]   ;;  %s13648_s14 = inlined_call_operand.vmem [shape: f32[1,128], index: 14, kind: input, shape index: {}]   ;;  %s13649_s16 = inlined_call_operand.vmem [shape: f32[8,128], index: 16, kind: output, shape index: {}]  }
   0x1   :  { %13863 = sst [smem:[#allocation101_spill]] %s13633_s1  ;;  %208 = vmatprep.mubr.f32.mxu0 %v13651_v3  ;;  %345 = vmatprep.mubr.f32.mxu1 %v13651_v3  ;;  %v8047_v49 = vld [vmem:[%s13634_s0 + $0x40] sm:$0xff]  ;;  %v8084_v55 = vld [vmem:[%s13634_s0 + $0x48] sm:$0xff]  ;;  %v8121_v61 = vld [vmem:[%s13634_s0 + $0x50] sm:$0xff]  ;;  %vm3633_vm3 = vcmask 687104   ;;  %vm3944_vm4 = vcmask 1046528  }
   0x2   :  { %s13864_s23 = sld [smem:[#allocation101_spill]]  ;;  %13873 = vst [vmem:[#allocation10_spill] sm:$0xff] %v8047_v49  ;;  %v53_v50 = vld [vmem:[%s13634_s0] sm:$0xff]  ;;  %13876 = vst [vmem:[#allocation13_spill] sm:$0xff] %v8084_v55  ;;  %v54_v56 = vld [vmem:[%s13634_s0 + $0x8] sm:$0xff]  ;;  %vm4323_vm5 = vcmask 1045504  }
   0x3   :  { %13879 = vst [vmem:[#allocation16_spill] sm:$0xff] %v8121_v61  ;;  %v55_v62 = vld [vmem:[%s13634_s0 + $0x10] sm:$0xff]  ;;  %vm5246_vm6 = vcmask 261120   ;;  %vm7672_vm7 = vmmov 0   ;;  %vm5514_vm8 = vcmask 1044480   ;;  %vm5510_vm9 = vcmask 498688  }
   0x4   :  { %vm5684_vm10 = vcmask 654336   ;;  %vm6342_vm11 = vcmask 982016  }
   0x8   :  { %v7761_v0 = vld [vmem:[%s13864_s23 + $0x178] sm:$0xff]  ;;  %v7771_v2 = vld [vmem:[%s13864_s23 + $0x170] sm:$0xff]  ;;  %v7785_v5 = vld [vmem:[%s13864_s23 + $0x168] sm:$0xff] }
   0x9   :  { %v7766_v1 = vld [vmem:[%s13864_s23 + $0xb8] sm:$0xff]  ;;  %152 = vmatprep.subr.mxu0 %v7761_v0  ;;  %v7780_v4 = vld [vmem:[%s13864_s23 + $0xb0] sm:$0xff]  ;;  %v7790_v6 = vld [vmem:[%s13864_s23 + $0xa8] sm:$0xff] }
   0xa   :  { %289 = vmatprep.subr.mxu1 %v7766_v1  ;;  %153 = vmatpush1.msra.mxu0 %v7771_v2  ;;  %v7797_v7 = vld [vmem:[%s13864_s23 + $0x160] sm:$0xff]  ;;  %v7807_v9 = vld [vmem:[%s13864_s23 + $0x158] sm:$0xff]  ;;  %v7819_v11 = vld [vmem:[%s13864_s23 + $0x150] sm:$0xff] }
   0xb   :  { %290 = vmatpush1.msra.mxu1 %v7780_v4  ;;  %v7802_v8 = vld [vmem:[%s13864_s23 + $0xa0] sm:$0xff]  ;;  %154 = vmatprep.subr.mxu0 %v7785_v5  ;;  %v7814_v10 = vld [vmem:[%s13864_s23 + $0x98] sm:$0xff]  ;;  %v7824_v12 = vld [vmem:[%s13864_s23 + $0x90] sm:$0xff] }
   0xc   :  { %291 = vmatprep.subr.mxu1 %v7790_v6  ;;  %155 = vmatpush1.msra.mxu0 %v7797_v7  ;;  %v7831_v13 = vld [vmem:[%s13864_s23 + $0x148] sm:$0xff]  ;;  %v7843_v15 = vld [vmem:[%s13864_s23 + $0x140] sm:$0xff]  ;;  %v7855_v17 = vld [vmem:[%s13864_s23 + $0x138] sm:$0xff] }
   0xd   :  { %292 = vmatpush1.msra.mxu1 %v7802_v8  ;;  %v7836_v14 = vld [vmem:[%s13864_s23 + $0x88] sm:$0xff]  ;;  %156 = vmatprep.subr.mxu0 %v7807_v9  ;;  %v7848_v16 = vld [vmem:[%s13864_s23 + $0x80] sm:$0xff]  ;;  %v7860_v18 = vld [vmem:[%s13864_s23 + $0x78] sm:$0xff] }
   0xe   :  { %293 = vmatprep.subr.mxu1 %v7814_v10  ;;  %157 = vmatpush1.msra.mxu0 %v7819_v11  ;;  %v7867_v19 = vld [vmem:[%s13864_s23 + $0x130] sm:$0xff]  ;;  %v7879_v21 = vld [vmem:[%s13864_s23 + $0x128] sm:$0xff]  ;;  %v7891_v23 = vld [vmem:[%s13864_s23 + $0x120] sm:$0xff] }
   0xf   :  { %294 = vmatpush1.msra.mxu1 %v7824_v12  ;;  %158 = vmatprep.subr.mxu0 %v7831_v13  ;;  %v7872_v20 = vld [vmem:[%s13864_s23 + $0x70] sm:$0xff]  ;;  %v7884_v22 = vld [vmem:[%s13864_s23 + $0x68] sm:$0xff]  ;;  %v7896_v24 = vld [vmem:[%s13864_s23 + $0x60] sm:$0xff] }
  0x10   :  { %295 = vmatprep.subr.mxu1 %v7836_v14  ;;  %159 = vmatpush1.msra.mxu0 %v7843_v15  ;;  %v7903_v25 = vld [vmem:[%s13864_s23 + $0x118] sm:$0xff]  ;;  %v7915_v27 = vld [vmem:[%s13864_s23 + $0x110] sm:$0xff]  ;;  %v7927_v29 = vld [vmem:[%s13864_s23 + $0x108] sm:$0xff] }
  0x11   :  { %296 = vmatpush1.msra.mxu1 %v7848_v16  ;;  %160 = vmatprep.subr.mxu0 %v7855_v17  ;;  %v7908_v26 = vld [vmem:[%s13864_s23 + $0x58] sm:$0xff]  ;;  %v7920_v28 = vld [vmem:[%s13864_s23 + $0x50] sm:$0xff]  ;;  %v7932_v30 = vld [vmem:[%s13864_s23 + $0x48] sm:$0xff] }
  0x12   :  { %297 = vmatprep.subr.mxu1 %v7860_v18  ;;  %161 = vmatpush1.msra.mxu0 %v7867_v19  ;;  %v7939_v31 = vld [vmem:[%s13864_s23 + $0x100] sm:$0xff]  ;;  %v7951_v33 = vld [vmem:[%s13864_s23 + $0xf8] sm:$0xff]  ;;  %v7963_v35 = vld [vmem:[%s13864_s23 + $0xf0] sm:$0xff] }
  0x13   :  { %298 = vmatpush1.msra.mxu1 %v7872_v20  ;;  %162 = vmatprep.subr.mxu0 %v7879_v21  ;;  %v7944_v32 = vld [vmem:[%s13864_s23 + $0x40] sm:$0xff]  ;;  %v7956_v34 = vld [vmem:[%s13864_s23 + $0x38] sm:$0xff]  ;;  %v7968_v36 = vld [vmem:[%s13864_s23 + $0x30] sm:$0xff] }
  0x14   :  { %299 = vmatprep.subr.mxu1 %v7884_v22  ;;  %163 = vmatpush1.msra.mxu0 %v7891_v23  ;;  %13865 = vst [vmem:[#allocation2_spill] sm:$0xff] %v7956_v34  ;;  %13866 = vst [vmem:[#allocation3_spill] sm:$0xff] %v7968_v36  ;;  %v7975_v37 = vld [vmem:[%s13864_s23 + $0xe8] sm:$0xff]  ;;  %v7987_v39 = vld [vmem:[%s13864_s23 + $0xe0] sm:$0xff] }
  0x15   :  { %300 = vmatpush1.msra.mxu1 %v7896_v24  ;;  %164 = vmatprep.subr.mxu0 %v7903_v25  ;;  %v7980_v38 = vld [vmem:[%s13864_s23 + $0x28] sm:$0xff]  ;;  %v7992_v40 = vld [vmem:[%s13864_s23 + $0x20] sm:$0xff]  ;;  %v7999_v41 = vld [vmem:[%s13864_s23 + $0xd8] sm:$0xff] }
  0x16   :  { %301 = vmatprep.subr.mxu1 %v7908_v26  ;;  %165 = vmatpush1.msra.mxu0 %v7915_v27  ;;  %13867 = vst [vmem:[#allocation4_spill] sm:$0xff] %v7980_v38  ;;  %13868 = vst [vmem:[#allocation5_spill] sm:$0xff] %v7992_v40  ;;  %v8004_v42 = vld [vmem:[%s13864_s23 + $0x18] sm:$0xff]  ;;  %v8011_v43 = vld [vmem:[%s13864_s23 + $0xd0] sm:$0xff] }
  0x17   :  { %302 = vmatpush1.msra.mxu1 %v7920_v28  ;;  %166 = vmatprep.subr.mxu0 %v7927_v29  ;;  %13869 = vst [vmem:[#allocation6_spill] sm:$0xff] %v8004_v42  ;;  %v8016_v44 = vld [vmem:[%s13864_s23 + $0x10] sm:$0xff]  ;;  %v8023_v45 = vld [vmem:[%s13864_s23 + $0xc8] sm:$0xff]  ;;  %v8035_v47 = vld [vmem:[%s13864_s23 + $0xc0] sm:$0xff] }
  0x18   :  { %303 = vmatprep.subr.mxu1 %v7932_v30  ;;  %167 = vmatpush1.msra.mxu0 %v7939_v31  ;;  %13870 = vst [vmem:[#allocation7_spill] sm:$0xff] %v8016_v44  ;;  %v8028_v46 = vld [vmem:[%s13864_s23 + $0x8] sm:$0xff]  ;;  %v8040_v48 = vld [vmem:[%s13864_s23] sm:$0xff]  ;;  %v8059_v51 = vld [vmem:[%s13864_s23 + $0x238] sm:$0xff] }
  0x19   :  { %304 = vmatpush1.msra.mxu1 %v7944_v32  ;;  %168 = vmatprep.subr.mxu0 %v7951_v33  ;;  %13871 = vst [vmem:[#allocation8_spill] sm:$0xff] %v8028_v46  ;;  %13872 = vst [vmem:[#allocation9_spill] sm:$0xff] %v8040_v48  ;;  %v8064_v52 = vld [vmem:[%s13864_s23 + $0x2f8] sm:$0xff]  ;;  %v8072_v53 = vld [vmem:[%s13864_s23 + $0x230] sm:$0xff] }
  0x1a   :  { %305 = vmatprep.subr.mxu1 %v7956_v34  ;;  %169 = vmatpush1.msra.mxu0 %v7963_v35  ;;  %13874 = vst [vmem:[#allocation11_spill] sm:$0xff] %v8064_v52  ;;  %v8077_v54 = vld [vmem:[%s13864_s23 + $0x2f0] sm:$0xff]  ;;  %v8096_v57 = vld [vmem:[%s13864_s23 + $0x228] sm:$0xff]  ;;  %v8109_v59 = vld [vmem:[%s13864_s23 + $0x220] sm:$0xff] }
  0x1b   :  { %306 = vmatpush1.msra.mxu1 %v7968_v36  ;;  %170 = vmatprep.subr.mxu0 %v7975_v37  ;;  %13875 = vst [vmem:[#allocation12_spill] sm:$0xff] %v8077_v54  ;;  %v8101_v58 = vld [vmem:[%s13864_s23 + $0x2e8] sm:$0xff]  ;;  %v8114_v60 = vld [vmem:[%s13864_s23 + $0x2e0] sm:$0xff]  ;;  %v8133_v63 = vld [vmem:[%s13864_s23 + $0x218] sm:$0xff] }
  0x1c   :  { %307 = vmatprep.subr.mxu1 %v7980_v38  ;;  %171 = vmatpush1.msra.mxu0 %v7987_v39  ;;  %13877 = vst [vmem:[#allocation14_spill] sm:$0xff] %v8101_v58  ;;  %13878 = vst [vmem:[#allocation15_spill] sm:$0xff] %v8114_v60  ;;  %v8327_v38 = vld [vmem:[%s13864_s23 + $0x1b8] sm:$0xff]  ;;  %v8339_v36 = vld [vmem:[%s13864_s23 + $0x1b0] sm:$0xff] }
  0x1d   :  { %308 = vmatpush1.msra.mxu1 %v7992_v40  ;;  %172 = vmatprep.subr.mxu0 %v7999_v41  ;;  %v8291_v40 = vld [vmem:[%s13864_s23 + $0x1c8] sm:$0xff]  ;;  %13898 = vst [vmem:[#allocation34_spill] sm:$0xff] %v8327_v38  ;;  %13900 = vst [vmem:[#allocation36_spill] sm:$0xff] %v8339_v36  ;;  %v8344_v34 = vld [vmem:[%s13864_s23 + $0x270] sm:$0xff] }
  0x1e   :  { %309 = vmatprep.subr.mxu1 %v8004_v42  ;;  %173 = vmatpush1.msra.mxu0 %v8011_v43  ;;  %v8283_v42 = vld [vmem:[%s13864_s23 + $0x290] sm:$0xff]  ;;  %13901 = vst [vmem:[#allocation37_spill] sm:$0xff] %v8344_v34 }
  0x1f   :  { %310 = vmatpush1.msra.mxu1 %v8016_v44  ;;  %174 = vmatprep.subr.mxu0 %v8023_v45  ;;  %v8278_v44 = vld [vmem:[%s13864_s23 + $0x1d0] sm:$0xff]  ;;  %13893 = vst [vmem:[#allocation29_spill] sm:$0xff] %v8283_v42 }
  0x20   :  { %311 = vmatprep.subr.mxu1 %v8028_v46  ;;  %175 = vmatpush1.msra.mxu0 %v8035_v47  ;;  %v8266_v46 = vld [vmem:[%s13864_s23 + $0x1d8] sm:$0xff] }
  0x21   :  { %312 = vmatpush1.msra.mxu1 %v8040_v48  ;;  %6548 = vmatmul.mubr.msk.f32.vlgmr.msra.gmra.mxu0 %vm119_vm0, %v8047_v49  ;;  %v8222_v49 = vld [vmem:[%s13864_s23 + $0x2b0] sm:$0xff]  ;;  %v8230_v48 = vld [vmem:[%s13864_s23 + $0x1e8] sm:$0xff] }
  0x22   :  { %6556 = vmatmul.mubr.msk.f32.vlgmr.msra.gmra.mxu1 %vm119_vm0, %v53_v50  ;;  %214 = vmatprep.mubr.f32.mxu0 %v13651_v3  ;;  %v8138_v50 = vld [vmem:[%s13864_s23 + $0x2d8] sm:$0xff]  ;;  %13888 = vst [vmem:[#allocation24_spill] sm:$0xff] %v8222_v49 }
  0x23   :  { %351 = vmatprep.mubr.f32.mxu1 %v13651_v3  ;;  %460 = vmatprep.subr.mxu0 %v8059_v51  ;;  %13880 = vst [vmem:[#allocation17_spill] sm:$0xff] %v8138_v50 }
  0x24   :  { %647 = vmatprep.subr.mxu1 %v8064_v52  ;;  %461 = vmatpush1.msra.mxu0 %v8072_v53  ;;  %v8217_v52 = vld [vmem:[%s13864_s23 + $0x1f0] sm:$0xff] }
  0x25   :  { %648 = vmatpush1.msra.mxu1 %v8077_v54  ;;  %6549 = vmatmul.mubr.msk.f32.gmra.mxu0 %vm119_vm0, %v8084_v55  ;;  %v8173_v55 = vld [vmem:[%s13864_s23 + $0x2c8] sm:$0xff]  ;;  %v8188_v54 = vld [vmem:[%s13864_s23 + $0x2c0] sm:$0xff] }
  0x26   :  { %6557 = vmatmul.mubr.msk.f32.gmra.mxu1 %vm119_vm0, %v54_v56  ;;  %220 = vmatprep.mubr.f32.mxu0 %v13651_v3  ;;  %v8146_v56 = vld [vmem:[%s13864_s23 + $0x210] sm:$0xff]  ;;  %13884 = vst [vmem:[#allocation20_spill] sm:$0xff] %v8173_v55  ;;  %13885 = vst [vmem:[#allocation21_spill] sm:$0xff] %v8188_v54 }
  0x27   :  { %357 = vmatprep.mubr.f32.mxu1 %v13651_v3  ;;  %462 = vmatprep.subr.mxu0 %v8096_v57  ;;  %v8151_v3 = vld [vmem:[%s13864_s23 + $0x2d0] sm:$0xff] }
  0x28   :  { %649 = vmatprep.subr.mxu1 %v8101_v58  ;;  %463 = vmatpush1.msra.mxu0 %v8109_v59  ;;  %13881 = vst [vmem:[#allocation18_spill] sm:$0xff] %v8151_v3  ;;  %v8168_v58 = vld [vmem:[%s13864_s23 + $0x208] sm:$0xff] }
  0x29   :  { %650 = vmatpush1.msra.mxu1 %v8114_v60  ;;  %6550 = vmatmul.mubr.msk.f32.gmra.mxu0 %vm119_vm0, %v8121_v61  ;;  %v13882_v60 = vmov 0.0   ;;  %v8158_v61 = vld [vmem:[%s13634_s0 + $0x58] sm:$0xff] }
  0x2a   :  { %6558 = vmatmul.mubr.msk.f32.gmra.mxu1 %vm119_vm0, %v55_v62  ;;  %226 = vmatprep.mubr.f32.mxu0 %v13882_v60  ;;  %13883 = vst [vmem:[#allocation19_spill] sm:$0xff] %v8158_v61  ;;  %v56_v62 = vld [vmem:[%s13634_s0 + $0x18] sm:$0xff] }
  0x2b   :  { %363 = vmatprep.mubr.f32.mxu1 %v13882_v60  ;;  %464 = vmatprep.subr.mxu0 %v8133_v63 }
  0x2c   :  { %651 = vmatprep.subr.mxu1 %v8138_v50  ;;  %465 = vmatpush1.msra.mxu0 %v8146_v56  ;;  %v8183_v50 = vld [vmem:[%s13864_s23 + $0x200] sm:$0xff] }
  0x2d   :  { %652 = vmatpush1.msra.mxu1 %v8151_v3  ;;  %6551 = vmatmul.mubr.msk.f32.gmra.mxu0 %vm119_vm0, %v8158_v61  ;;  %v8195_v61 = vld [vmem:[%s13634_s0 + $0x60] sm:$0xff]  ;;  %v8205_v3 = vld [vmem:[%s13864_s23 + $0x1f8] sm:$0xff] }
  0x2e   :  { %6559 = vmatmul.mubr.msk.f32.gmra.mxu1 %vm119_vm0, %v56_v62  ;;  %466 = vmatprep.subr.mxu0 %v8168_v58  ;;  %13886 = vst [vmem:[#allocation22_spill] sm:$0xff] %v8195_v61  ;;  %v57_v62 = vld [vmem:[%s13634_s0 + $0x20] sm:$0xff] }
  0x2f   :  { %653 = vmatprep.subr.mxu1 %v8173_v55  ;;  %232 = vmatprep.mubr.f32.mxu0 %v13882_v60  ;;  %v8210_v55 = vld [vmem:[%s13864_s23 + $0x2b8] sm:$0xff] }
  0x30   :  { %369 = vmatprep.mubr.f32.mxu1 %v13882_v60  ;;  %13887 = vst [vmem:[#allocation23_spill] sm:$0xff] %v8210_v55  ;;  %467 = vmatpush1.msra.mxu0 %v8183_v50 }
  0x31   :  { %654 = vmatpush1.msra.mxu1 %v8188_v54  ;;  %6552 = vmatmul.mubr.msk.f32.gmra.mxu0 %vm119_vm0, %v8195_v61  ;;  %v8235_v54 = vld [vmem:[%s13864_s23 + $0x2a8] sm:$0xff]  ;;  %v8249_v61 = vld [vmem:[%s13864_s23 + $0x2a0] sm:$0xff] }
  0x32   :  { %6560 = vmatmul.mubr.msk.f32.gmra.mxu1 %vm119_vm0, %v57_v62  ;;  %13889 = vst [vmem:[#allocation25_spill] sm:$0xff] %v8235_v54  ;;  %468 = vmatprep.subr.mxu0 %v8205_v3  ;;  %v8244_v62 = vld [vmem:[%s13864_s23 + $0x1e0] sm:$0xff]  ;;  %13890 = vst [vmem:[#allocation26_spill] sm:$0xff] %v8249_v61 }
  0x33   :  { %655 = vmatprep.subr.mxu1 %v8210_v55  ;;  %469 = vmatpush1.msra.mxu0 %v8217_v52  ;;  %v8256_v55 = vld [vmem:[%s13634_s0 + $0x68] sm:$0xff] }
  0x34   :  { %656 = vmatpush1.msra.mxu1 %v8222_v49  ;;  %470 = vmatprep.subr.mxu0 %v8230_v48  ;;  %13891 = vst [vmem:[#allocation27_spill] sm:$0xff] %v8256_v55  ;;  %v58_v49 = vld [vmem:[%s13634_s0 + $0x28] sm:$0xff] }
  0x35   :  { %657 = vmatprep.subr.mxu1 %v8235_v54  ;;  %238 = vmatprep.mubr.f32.mxu0 %v13882_v60  ;;  %v8271_v54 = vld [vmem:[%s13864_s23 + $0x298] sm:$0xff] }
  0x36   :  { %375 = vmatprep.mubr.f32.mxu1 %v13882_v60  ;;  %13892 = vst [vmem:[#allocation28_spill] sm:$0xff] %v8271_v54  ;;  %471 = vmatpush1.msra.mxu0 %v8244_v62 }
  0x37   :  { %658 = vmatpush1.msra.mxu1 %v8249_v61  ;;  %6553 = vmatmul.mubr.msk.f32.gmra.mxu0 %vm119_vm0, %v8256_v55  ;;  %v8296_v61 = vld [vmem:[%s13864_s23 + $0x288] sm:$0xff]  ;;  %v8310_v55 = vld [vmem:[%s13864_s23 + $0x280] sm:$0xff] }
  0x38   :  { %6561 = vmatmul.mubr.msk.f32.gmra.mxu1 %vm119_vm0, %v58_v49  ;;  %13894 = vst [vmem:[#allocation30_spill] sm:$0xff] %v8296_v61  ;;  %472 = vmatprep.subr.mxu0 %v8266_v46  ;;  %v8305_v49 = vld [vmem:[%s13864_s23 + $0x1c0] sm:$0xff]  ;;  %13896 = vst [vmem:[#allocation32_spill] sm:$0xff] %v8310_v55 }
  0x39   :  { %659 = vmatprep.subr.mxu1 %v8271_v54  ;;  %473 = vmatpush1.msra.mxu0 %v8278_v44  ;;  %13895 = vst [vmem:[#allocation31_spill] sm:$0xff] %v8305_v49  ;;  %v8317_v54 = vld [vmem:[%s13634_s0 + $0x70] sm:$0xff] }
  0x3a   :  { %660 = vmatpush1.msra.mxu1 %v8283_v42  ;;  %474 = vmatprep.subr.mxu0 %v8291_v40  ;;  %13897 = vst [vmem:[#allocation33_spill] sm:$0xff] %v8317_v54  ;;  %v59_v42 = vld [vmem:[%s13634_s0 + $0x30] sm:$0xff] }
  0x3b   :  { %661 = vmatprep.subr.mxu1 %v8296_v61  ;;  %244 = vmatprep.mubr.f32.mxu0 %v13882_v60  ;;  %v8332_v61 = vld [vmem:[%s13864_s23 + $0x278] sm:$0xff] }
  0x3c   :  { %381 = vmatprep.mubr.f32.mxu1 %v13882_v60  ;;  %13899 = vst [vmem:[#allocation35_spill] sm:$0xff] %v8332_v61  ;;  %475 = vmatpush1.msra.mxu0 %v8305_v49  ;;  %v8352_v49 = vld [vmem:[%s13864_s23 + $0x1a8] sm:$0xff] }
  0x3d   :  { %662 = vmatpush1.msra.mxu1 %v8310_v55  ;;  %6554 = vmatmul.mubr.msk.f32.gmra.mxu0 %vm119_vm0, %v8317_v54  ;;  %13902 = vst [vmem:[#allocation38_spill] sm:$0xff] %v8352_v49  ;;  %v8357_v55 = vld [vmem:[%s13864_s23 + $0x268] sm:$0xff]  ;;  %v8371_v54 = vld [vmem:[%s13864_s23 + $0x260] sm:$0xff] }
  0x3e   :  { %6562 = vmatmul.mubr.msk.f32.gmra.mxu1 %vm119_vm0, %v59_v42  ;;  %13903 = vst [vmem:[#allocation39_spill] sm:$0xff] %v8357_v55  ;;  %476 = vmatprep.subr.mxu0 %v8327_v38  ;;  %v8366_v42 = vld [vmem:[%s13864_s23 + $0x1a0] sm:$0xff]  ;;  %13905 = vst [vmem:[#allocation41_spill] sm:$0xff] %v8371_v54  ;;  %v8405_v38 = vld [vmem:[%s13864_s23 + $0x250] sm:$0xff] }
  0x3f   :  { %663 = vmatprep.subr.mxu1 %v8332_v61  ;;  %477 = vmatpush1.msra.mxu0 %v8339_v36  ;;  %13904 = vst [vmem:[#allocation40_spill] sm:$0xff] %v8366_v42  ;;  %v8378_v61 = vld [vmem:[%s13634_s0 + $0x78] sm:$0x7f]  ;;  %13909 = vst [vmem:[#allocation45_spill] sm:$0xff] %v8405_v38 }
  0x40   :  { %664 = vmatpush1.msra.mxu1 %v8344_v34  ;;  %478 = vmatprep.subr.mxu0 %v8352_v49  ;;  %13906 = vst [vmem:[#allocation42_spill] sm:$0xff] %v8378_v61  ;;  %v60_v34 = vld [vmem:[%s13634_s0 + $0x38] sm:$0x7f]  ;;  %v8400_v49 = vld [vmem:[%s13864_s23 + $0x190] sm:$0xff] }
  0x41   :  { %665 = vmatprep.subr.mxu1 %v8357_v55  ;;  %250 = vmatprep.mubr.f32.mxu0 %v13882_v60  ;;  %v8388_v36 = vld [vmem:[%s13864_s23 + $0x198] sm:$0xff]  ;;  %13908 = vst [vmem:[#allocation44_spill] sm:$0xff] %v8400_v49 }
  0x42   :  { %387 = vmatprep.mubr.f32.mxu1 %v13882_v60  ;;  %v8393_v55 = vld [vmem:[%s13864_s23 + $0x258] sm:$0xff]  ;;  %479 = vmatpush1.msra.mxu0 %v8366_v42  ;;  %v8413_v42 = vld [vmem:[%s13864_s23 + $0x188] sm:$0xff] }
  0x43   :  { %13907 = vst [vmem:[#allocation43_spill] sm:$0xff] %v8393_v55  ;;  %666 = vmatpush1.msra.mxu1 %v8371_v54  ;;  %6555 = vmatmul.mubr.msk.f32.gmra.mxu0 %vm119_vm0, %v8378_v61  ;;  %v8418_v54 = vld [vmem:[%s13864_s23 + $0x248] sm:$0xff]  ;;  %v8425_v61 = vld [vmem:[%s13864_s23 + $0x180] sm:$0xff] }
  0x44   :  { %6563 = vmatmul.mubr.msk.f32.gmra.mxu1 %vm119_vm0, %v60_v34  ;;  %13910 = vst [vmem:[#allocation46_spill] sm:$0xff] %v8418_v54  ;;  %480 = vmatprep.subr.mxu0 %v8388_v36  ;;  %13911 = vst [vmem:[#allocation47_spill] sm:$0xff] %v8425_v61  ;;  %v8432_v34 = vld [vmem:[%s13864_s23 + $0x240] sm:$0xff] }
  0x45   :  { %667 = vmatprep.subr.mxu1 %v8393_v55  ;;  %481 = vmatpush1.msra.mxu0 %v8400_v49  ;;  %13912 = vst [vmem:[#allocation48_spill] sm:$0xff] %v8432_v34  ;;  %v8439_v55 = vld [vmem:[%s13634_s0 + $0x80] sm:$0xff] }
  0x46   :  { %668 = vmatpush1.msra.mxu1 %v8405_v38  ;;  %482 = vmatprep.subr.mxu0 %v8413_v42  ;;  %v8444_v49 = vld [vmem:[%s13634_s0 + $0xc0] sm:$0xff]  ;;  %v8462_v38 = vld [vmem:[%s13864_s23 + $0x3b0] sm:$0xff] }
  0x47   :  { %669 = vmatprep.subr.mxu1 %v8418_v54  ;;  %13913 = vst [vmem:[#allocation49_spill] sm:$0xff] %v8444_v49  ;;  %483 = vmatpush1.msra.mxu0 %v8425_v61  ;;  %v8453_v54 = vld [vmem:[%s13864_s23 + $0x3b8] sm:$0xff]  ;;  %v8474_v61 = vld [vmem:[%s13634_s0 + $0xc8] sm:$0xff] }
  0x48   :  { %516 = vmatprep.mubr.f32.mxu0 %v13882_v60  ;;  %670 = vmatpush1.msra.mxu1 %v8432_v34  ;;  %13914 = vst [vmem:[#allocation50_spill] sm:$0xff] %v8453_v54  ;;  %v8469_v34 = vld [vmem:[%s13634_s0 + $0x88] sm:$0xff]  ;;  %13915 = vst [vmem:[#allocation51_spill] sm:$0xff] %v8474_v61 }
  0x49   :  { %703 = vmatprep.mubr.f32.mxu1 %v13882_v60  ;;  %6596 = vmatmul.mubr.msk.f32.vlgmr.msra.gmra.mxu0 %vm119_vm0, %v8439_v55 }
  0x4a   :  { %6636 = vmatmul.mubr.msk.f32.vlgmr.msra.gmra.mxu1 %vm119_vm0, %v8444_v49  ;;  %522 = vmatprep.mubr.f32.mxu0 %v13882_v60  ;;  %v8483_v49 = vld [vmem:[%s13864_s23 + $0x3a8] sm:$0xff] }
  0x4b   :  { %709 = vmatprep.mubr.f32.mxu1 %v13882_v60  ;;  %833 = vmatprep.subr.mxu0 %v8453_v54  ;;  %13916 = vst [vmem:[#allocation52_spill] sm:$0xff] %v8483_v49  ;;  %v8492_v54 = vld [vmem:[%s13864_s23 + $0x3a0] sm:$0xff] }
  0x4c   :  { %1006 = vmatprep.subr.mxu1 %v7761_v0  ;;  %834 = vmatpush1.msra.mxu0 %v8462_v38  ;;  %v8499_v0 = vld [vmem:[%s13634_s0 + $0x90] sm:$0xff] }
  0x4d   :  { %1007 = vmatpush1.msra.mxu1 %v7771_v2  ;;  %6597 = vmatmul.mubr.msk.f32.gmra.mxu0 %vm119_vm0, %v8469_v34  ;;  %v8504_v2 = vld [vmem:[%s13634_s0 + $0xd0] sm:$0xff] }
  0x4e   :  { %6637 = vmatmul.mubr.msk.f32.gmra.mxu1 %vm119_vm0, %v8474_v61  ;;  %528 = vmatprep.mubr.f32.mxu0 %v13882_v60  ;;  %13917 = vst [vmem:[#allocation53_spill] sm:$0xff] %v8504_v2  ;;  %v8513_v61 = vld [vmem:[%s13864_s23 + $0x398] sm:$0xff] }
  0x4f   :  { %715 = vmatprep.mubr.f32.mxu1 %v13882_v60  ;;  %835 = vmatprep.subr.mxu0 %v8483_v49  ;;  %13918 = vst [vmem:[#allocation54_spill] sm:$0xff] %v8513_v61  ;;  %v8522_v49 = vld [vmem:[%s13864_s23 + $0x390] sm:$0xff] }
  0x50   :  { %1008 = vmatprep.subr.mxu1 %v7785_v5  ;;  %836 = vmatpush1.msra.mxu0 %v8492_v54  ;;  %v8529_v5 = vld [vmem:[%s13634_s0 + $0x98] sm:$0xff] }
  0x51   :  { %1009 = vmatpush1.msra.mxu1 %v7797_v7  ;;  %6598 = vmatmul.mubr.msk.f32.gmra.mxu0 %vm119_vm0, %v8499_v0  ;;  %v8534_v7 = vld [vmem:[%s13634_s0 + $0xd8] sm:$0xff] }
  0x52   :  { %6638 = vmatmul.mubr.msk.f32.gmra.mxu1 %vm119_vm0, %v8504_v2  ;;  %534 = vmatprep.mubr.f32.mxu0 %v13882_v60  ;;  %13919 = vst [vmem:[#allocation55_spill] sm:$0xff] %v8534_v7  ;;  %v8541_v2 = vld [vmem:[%s13864_s23 + $0x388] sm:$0xff] }
  0x53   :  { %721 = vmatprep.mubr.f32.mxu1 %v13882_v60  ;;  %837 = vmatprep.subr.mxu0 %v8513_v61  ;;  %13920 = vst [vmem:[#allocation56_spill] sm:$0xff] %v8541_v2  ;;  %v8552_v61 = vld [vmem:[%s13864_s23 + $0x380] sm:$0xff] }
  0x54   :  { %1010 = vmatprep.subr.mxu1 %v7807_v9  ;;  %838 = vmatpush1.msra.mxu0 %v8522_v49  ;;  %v8559_v9 = vld [vmem:[%s13634_s0 + $0xa0] sm:$0xff] }
  0x55   :  { %1011 = vmatpush1.msra.mxu1 %v7819_v11  ;;  %6599 = vmatmul.mubr.msk.f32.gmra.mxu0 %vm119_vm0, %v8529_v5  ;;  %v8564_v11 = vld [vmem:[%s13634_s0 + $0xe0] sm:$0xff] }
  0x56   :  { %6639 = vmatmul.mubr.msk.f32.gmra.mxu1 %vm119_vm0, %v8534_v7  ;;  %839 = vmatprep.subr.mxu0 %v8541_v2  ;;  %13921 = vst [vmem:[#allocation57_spill] sm:$0xff] %v8564_v11  ;;  %v8571_v2 = vld [vmem:[%s13864_s23 + $0x378] sm:$0xff]  ;;  %v8587_v7 = vld [vmem:[%s13864_s23 + $0x368] sm:$0xff] }
  0x57   :  { %1012 = vmatprep.subr.mxu1 %v7831_v13  ;;  %540 = vmatprep.mubr.f32.mxu0 %v13882_v60  ;;  %v8578_v13 = vld [vmem:[%s13864_s23 + $0x370] sm:$0xff]  ;;  %13922 = vst [vmem:[#allocation58_spill] sm:$0xff] %v8587_v7 }
  0x58   :  { %727 = vmatprep.mubr.f32.mxu1 %v13882_v60  ;;  %840 = vmatpush1.msra.mxu0 %v8552_v61 }
  0x59   :  { %1013 = vmatpush1.msra.mxu1 %v7843_v15  ;;  %6600 = vmatmul.mubr.msk.f32.gmra.mxu0 %vm119_vm0, %v8559_v9  ;;  %v8596_v15 = vld [vmem:[%s13864_s23 + $0x360] sm:$0xff] }
  0x5a   :  { %6640 = vmatmul.mubr.msk.f32.gmra.mxu1 %vm119_vm0, %v8564_v11  ;;  %841 = vmatprep.subr.mxu0 %v8571_v2  ;;  %v8603_v11 = vld [vmem:[%s13634_s0 + $0xa8] sm:$0xff] }
  0x5b   :  { %1014 = vmatprep.subr.mxu1 %v7855_v17  ;;  %842 = vmatpush1.msra.mxu0 %v8578_v13  ;;  %v8608_v17 = vld [vmem:[%s13634_s0 + $0xe8] sm:$0xff] }
  0x5c   :  { %1015 = vmatpush1.msra.mxu1 %v7867_v19  ;;  %843 = vmatprep.subr.mxu0 %v8587_v7  ;;  %13923 = vst [vmem:[#allocation59_spill] sm:$0xff] %v8608_v17  ;;  %v8615_v19 = vld [vmem:[%s13864_s23 + $0x358] sm:$0xff]  ;;  %v8631_v7 = vld [vmem:[%s13864_s23 + $0x348] sm:$0xff] }
  0x5d   :  { %1016 = vmatprep.subr.mxu1 %v7879_v21  ;;  %546 = vmatprep.mubr.f32.mxu0 %v13882_v60  ;;  %v8622_v21 = vld [vmem:[%s13864_s23 + $0x350] sm:$0xff]  ;;  %13924 = vst [vmem:[#allocation60_spill] sm:$0xff] %v8631_v7 }
  0x5e   :  { %733 = vmatprep.mubr.f32.mxu1 %v13882_v60  ;;  %844 = vmatpush1.msra.mxu0 %v8596_v15 }
  0x5f   :  { %1017 = vmatpush1.msra.mxu1 %v7891_v23  ;;  %6601 = vmatmul.mubr.msk.f32.gmra.mxu0 %vm119_vm0, %v8603_v11  ;;  %v8640_v23 = vld [vmem:[%s13864_s23 + $0x340] sm:$0xff] }
  0x60   :  { %6641 = vmatmul.mubr.msk.f32.gmra.mxu1 %vm119_vm0, %v8608_v17  ;;  %845 = vmatprep.subr.mxu0 %v8615_v19  ;;  %v8647_v17 = vld [vmem:[%s13634_s0 + $0xb0] sm:$0xff] }
  0x61   :  { %1018 = vmatprep.subr.mxu1 %v7903_v25  ;;  %846 = vmatpush1.msra.mxu0 %v8622_v21  ;;  %v8652_v25 = vld [vmem:[%s13634_s0 + $0xf0] sm:$0xff] }
  0x62   :  { %1019 = vmatpush1.msra.mxu1 %v7915_v27  ;;  %847 = vmatprep.subr.mxu0 %v8631_v7  ;;  %13925 = vst [vmem:[#allocation61_spill] sm:$0xff] %v8652_v25  ;;  %v8659_v27 = vld [vmem:[%s13864_s23 + $0x338] sm:$0xff]  ;;  %v8675_v7 = vld [vmem:[%s13864_s23 + $0x328] sm:$0xff] }
  0x63   :  { %1020 = vmatprep.subr.mxu1 %v7927_v29  ;;  %552 = vmatprep.mubr.f32.mxu0 %v13882_v60  ;;  %v8666_v29 = vld [vmem:[%s13864_s23 + $0x330] sm:$0xff]  ;;  %13926 = vst [vmem:[#allocation62_spill] sm:$0xff] %v8675_v7 }
  0x64   :  { %739 = vmatprep.mubr.f32.mxu1 %v13882_v60  ;;  %848 = vmatpush1.msra.mxu0 %v8640_v23 }
  0x65   :  { %1021 = vmatpush1.msra.mxu1 %v7939_v31  ;;  %6602 = vmatmul.mubr.msk.f32.gmra.mxu0 %vm119_vm0, %v8647_v17  ;;  %v8684_v31 = vld [vmem:[%s13864_s23 + $0x320] sm:$0xff] }
  0x66   :  { %6642 = vmatmul.mubr.msk.f32.gmra.mxu1 %vm119_vm0, %v8652_v25  ;;  %849 = vmatprep.subr.mxu0 %v8659_v27  ;;  %v8691_v25 = vld [vmem:[%s13634_s0 + $0xb8] sm:$0x7f] }
  0x67   :  { %1022 = vmatprep.subr.mxu1 %v7951_v33  ;;  %850 = vmatpush1.msra.mxu0 %v8666_v29  ;;  %v8696_v33 = vld [vmem:[%s13634_s0 + $0xf8] sm:$0x7f] }
  0x68   :  { %1023 = vmatpush1.msra.mxu1 %v7963_v35  ;;  %851 = vmatprep.subr.mxu0 %v8675_v7  ;;  %13927 = vst [vmem:[#allocation63_spill] sm:$0xff] %v8696_v33  ;;  %v8703_v35 = vld [vmem:[%s13864_s23 + $0x318] sm:$0xff]  ;;  %v8719_v7 = vld [vmem:[%s13864_s23 + $0x308] sm:$0xff] }
  0x69   :  { %1024 = vmatprep.subr.mxu1 %v7975_v37  ;;  %558 = vmatprep.mubr.f32.mxu0 %v13882_v60  ;;  %v8710_v37 = vld [vmem:[%s13864_s23 + $0x310] sm:$0xff] }
  0x6a   :  { %745 = vmatprep.mubr.f32.mxu1 %v13882_v60  ;;  %852 = vmatpush1.msra.mxu0 %v8684_v31 }
  0x6b   :  { %1025 = vmatpush1.msra.mxu1 %v7987_v39  ;;  %6603 = vmatmul.mubr.msk.f32.gmra.mxu0 %vm119_vm0, %v8691_v25  ;;  %v8726_v39 = vld [vmem:[%s13864_s23 + $0x300] sm:$0xff] }
  0x6c   :  { %6643 = vmatmul.mubr.msk.f32.gmra.mxu1 %vm119_vm0, %v8696_v33  ;;  %853 = vmatprep.subr.mxu0 %v8703_v35  ;;  %v8735_v33 = vld [vmem:[%s13634_s0 + $0x1] sm:$0xff] }
  0x6d   :  { %1026 = vmatprep.subr.mxu1 %v7999_v41  ;;  %854 = vmatpush1.msra.mxu0 %v8710_v37  ;;  %v8750_v41 = vld [vmem:[%s13634_s0 + $0x9] sm:$0xff] }
  0x6e   :  { %1027 = vmatpush1.msra.mxu1 %v8011_v43  ;;  %855 = vmatprep.subr.mxu0 %v8719_v7  ;;  %v13940_v43 = vld [vmem:[#allocation8_spill] sm:$0xff] }
  0x6f   :  { %1028 = vmatprep.subr.mxu1 %v8023_v45  ;;  %856 = vmatpush1.msra.mxu0 %v8726_v39  ;;  %v13942_v45 = vld [vmem:[#allocation47_spill] sm:$0xff] }
  0x70   :  { %889 = vmatprep.mubr.f32.mxu0 %v13882_v60  ;;  %1029 = vmatpush1.msra.mxu1 %v8035_v47  ;;  %v13945_v47 = vld [vmem:[#allocation11_spill] sm:$0xff] }
  0x71   :  { %1062 = vmatprep.mubr.f32.mxu1 %v13882_v60  ;;  %6668 = vmatmul.mubr.msk.f32.vlgmr.msra.gmra.mxu0 %vm119_vm0, %v8735_v33 }
  0x72   :  { %6676 = vmatmul.mubr.msk.f32.vlgmr.msra.gmra.mxu1 %vm119_vm0, %v8439_v55  ;;  %895 = vmatprep.mubr.f32.mxu0 %v13882_v60 }
  0x73   :  { %1068 = vmatprep.mubr.f32.mxu1 %v13882_v60  ;;  %1119 = vmatprep.subr.mxu0 %v7766_v1  ;;  %v8765_v1 = vld [vmem:[%s13634_s0 + $0x11] sm:$0xff] }
  0x74   :  { %1232 = vmatprep.subr.mxu1 %v8059_v51  ;;  %1120 = vmatpush1.msra.mxu0 %v7780_v4  ;;  %v8780_v4 = vld [vmem:[%s13634_s0 + $0x19] sm:$0xff]  ;;  %v13947_v51 = vld [vmem:[#allocation12_spill] sm:$0xff] }
  0x75   :  { %1233 = vmatpush1.msra.mxu1 %v8072_v53  ;;  %6669 = vmatmul.mubr.msk.f32.gmra.mxu0 %vm119_vm0, %v8750_v41  ;;  %v13949_v53 = vld [vmem:[#allocation51_spill] sm:$0xff] }
  0x76   :  { %6677 = vmatmul.mubr.msk.f32.gmra.mxu1 %vm119_vm0, %v8469_v34  ;;  %901 = vmatprep.mubr.f32.mxu0 %v13882_v60 }
  0x77   :  { %1074 = vmatprep.mubr.f32.mxu1 %v13882_v60  ;;  %1121 = vmatprep.subr.mxu0 %v7790_v6  ;;  %v8795_v6 = vld [vmem:[%s13634_s0 + $0x21] sm:$0xff] }
  0x78   :  { %1234 = vmatprep.subr.mxu1 %v8096_v57  ;;  %1122 = vmatpush1.msra.mxu0 %v7802_v8  ;;  %v8814_v8 = vld [vmem:[%s13634_s0 + $0x29] sm:$0xff]  ;;  %v13950_v57 = vld [vmem:[#allocation14_spill] sm:$0xff] }
  0x79   :  { %1235 = vmatpush1.msra.mxu1 %v8109_v59  ;;  %6670 = vmatmul.mubr.msk.f32.gmra.mxu0 %vm119_vm0, %v8765_v1  ;;  %v13952_v59 = vld [vmem:[#allocation15_spill] sm:$0xff] }
  0x7a   :  { %6678 = vmatmul.mubr.msk.f32.gmra.mxu1 %vm119_vm0, %v8499_v0  ;;  %907 = vmatprep.mubr.f32.mxu0 %v13882_v60 }
  0x7b   :  { %1080 = vmatprep.mubr.f32.mxu1 %v13882_v60  ;;  %1123 = vmatprep.subr.mxu0 %v7814_v10  ;;  %v13928_v10 = vld [vmem:[#allocation31_spill] sm:$0xff] }
  0x7c   :  { %1236 = vmatprep.subr.mxu1 %v8133_v63  ;;  %1124 = vmatpush1.msra.mxu0 %v7824_v12  ;;  %v13929_v12 = vld [vmem:[#allocation2_spill] sm:$0xff]  ;;  %v13953_v63 = vld [vmem:[#allocation16_spill] sm:$0xff] }
  0x7d   :  { %1237 = vmatpush1.msra.mxu1 %v8146_v56  ;;  %6671 = vmatmul.mubr.msk.f32.gmra.mxu0 %vm119_vm0, %v8780_v4  ;;  %v13956_v56 = vld [vmem:[#allocation54_spill] sm:$0xff] }
  0x7e   :  { %6679 = vmatmul.mubr.msk.f32.gmra.mxu1 %vm119_vm0, %v8529_v5  ;;  %1125 = vmatprep.subr.mxu0 %v7836_v14  ;;  %v13930_v14 = vld [vmem:[#allocation34_spill] sm:$0xff] }
  0x7f   :  { %1238 = vmatprep.subr.mxu1 %v8168_v58  ;;  %913 = vmatprep.mubr.f32.mxu0 %v13882_v60  ;;  %v13951_v58 = vld [vmem:[#allocation52_spill] sm:$0xff] }
  0x80   :  { %1086 = vmatprep.mubr.f32.mxu1 %v13882_v60  ;;  %1126 = vmatpush1.msra.mxu0 %v7848_v16  ;;  %v13931_v16 = vld [vmem:[#allocation3_spill] sm:$0xff] }
  0x81   :  { %1239 = vmatpush1.msra.mxu1 %v8183_v50  ;;  %6672 = vmatmul.mubr.msk.f32.gmra.mxu0 %vm119_vm0, %v8795_v6  ;;  %v13955_v50 = vld [vmem:[#allocation17_spill] sm:$0xff] }
  0x82   :  { %6680 = vmatmul.mubr.msk.f32.gmra.mxu1 %vm119_vm0, %v8559_v9  ;;  %1127 = vmatprep.subr.mxu0 %v7860_v18  ;;  %v13932_v18 = vld [vmem:[#allocation36_spill] sm:$0xff] }
  0x83   :  { %1240 = vmatprep.subr.mxu1 %v8205_v3  ;;  %1128 = vmatpush1.msra.mxu0 %v7872_v20  ;;  %v8833_v3 = vld [vmem:[%s13634_s0 + $0x31] sm:$0xff] }
  0x84   :  { %1241 = vmatpush1.msra.mxu1 %v8217_v52  ;;  %1129 = vmatprep.subr.mxu0 %v7884_v22  ;;  %v13933_v20 = vld [vmem:[#allocation4_spill] sm:$0xff]  ;;  %v13934_v22 = vld [vmem:[#allocation38_spill] sm:$0xff]  ;;  %v13948_v52 = vld [vmem:[#allocation13_spill] sm:$0xff] }
  0x85   :  { %1242 = vmatprep.subr.mxu1 %v8230_v48  ;;  %919 = vmatprep.mubr.f32.mxu0 %v13882_v60  ;;  %v13946_v48 = vld [vmem:[#allocation50_spill] sm:$0xff] }
  0x86   :  { %1092 = vmatprep.mubr.f32.mxu1 %v13882_v60  ;;  %1130 = vmatpush1.msra.mxu0 %v7896_v24  ;;  %v8852_v24 = vld [vmem:[%s13634_s0 + $0x39] sm:$0x7f] }
  0x87   :  { %1243 = vmatpush1.msra.mxu1 %v8244_v62  ;;  %6673 = vmatmul.mubr.msk.f32.gmra.mxu0 %vm119_vm0, %v8814_v8  ;;  %v13957_v62 = vld [vmem:[#allocation18_spill] sm:$0xff] }
  0x88   :  { %6681 = vmatmul.mubr.msk.f32.gmra.mxu1 %vm119_vm0, %v8603_v11  ;;  %1131 = vmatprep.subr.mxu0 %v7908_v26  ;;  %v13935_v26 = vld [vmem:[#allocation5_spill] sm:$0xff] }
  0x89   :  { %1244 = vmatprep.subr.mxu1 %v8266_v46  ;;  %1132 = vmatpush1.msra.mxu0 %v7920_v28  ;;  %v13936_v28 = vld [vmem:[#allocation40_spill] sm:$0xff]  ;;  %v13943_v46 = vld [vmem:[#allocation10_spill] sm:$0xff] }
  0x8a   :  { %1245 = vmatpush1.msra.mxu1 %v8278_v44  ;;  %1133 = vmatprep.subr.mxu0 %v7932_v30  ;;  %v13937_v30 = vld [vmem:[#allocation6_spill] sm:$0xff]  ;;  %v13941_v44 = vld [vmem:[#allocation9_spill] sm:$0xff] }
  0x8b   :  { %1246 = vmatprep.subr.mxu1 %v8291_v40  ;;  %925 = vmatprep.mubr.f32.mxu0 %v13882_v60  ;;  %v13939_v40 = vld [vmem:[#allocation44_spill] sm:$0xff] }
  0x8c   :  { %1098 = vmatprep.mubr.f32.mxu1 %v13882_v60  ;;  %1134 = vmatpush1.msra.mxu0 %v7944_v32  ;;  %v13938_v32 = vld [vmem:[#allocation7_spill] sm:$0xff] }
  0x8d   :  { %1247 = vmatpush1.msra.mxu1 %v13928_v10  ;;  %6674 = vmatmul.mubr.msk.f32.gmra.mxu0 %vm119_vm0, %v8833_v3  ;;  %v13960_v10 = vld [vmem:[#allocation20_spill] sm:$0xff] }
  0x8e   :  { %6682 = vmatmul.mubr.msk.f32.gmra.mxu1 %vm119_vm0, %v8647_v17  ;;  %1135 = vmatprep.subr.mxu0 %v13929_v12  ;;  %v13961_v12 = vld [vmem:[#allocation56_spill] sm:$0xff] }
  0x8f   :  { %1248 = vmatprep.subr.mxu1 %v13930_v14  ;;  %1136 = vmatpush1.msra.mxu0 %v13931_v16  ;;  %v13962_v14 = vld [vmem:[#allocation21_spill] sm:$0xff]  ;;  %v13963_v16 = vld [vmem:[#allocation22_spill] sm:$0xff] }
  0x90   :  { %1249 = vmatpush1.msra.mxu1 %v13932_v18  ;;  %1137 = vmatprep.subr.mxu0 %v13933_v20  ;;  %v13965_v18 = vld [vmem:[#allocation23_spill] sm:$0xff]  ;;  %v13966_v20 = vld [vmem:[#allocation24_spill] sm:$0xff] }
  0x91   :  { %1250 = vmatprep.subr.mxu1 %v13934_v22  ;;  %931 = vmatprep.mubr.f32.mxu0 %v13882_v60  ;;  %v13967_v22 = vld [vmem:[#allocation25_spill] sm:$0xff] }
  0x92   :  { %1104 = vmatprep.mubr.f32.mxu1 %v13882_v60  ;;  %1138 = vmatpush1.msra.mxu0 %v13935_v26  ;;  %v13968_v26 = vld [vmem:[#allocation58_spill] sm:$0xff] }
  0x93   :  { %1251 = vmatpush1.msra.mxu1 %v13936_v28  ;;  %6675 = vmatmul.mubr.msk.f32.gmra.mxu0 %vm119_vm0, %v8852_v24  ;;  %v13970_v28 = vld [vmem:[#allocation27_spill] sm:$0xff] }
  0x94   :  { %6683 = vmatmul.mubr.msk.f32.gmra.mxu1 %vm119_vm0, %v8691_v25  ;;  %1139 = vmatprep.subr.mxu0 %v13937_v30  ;;  %v13972_v30 = vld [vmem:[#allocation28_spill] sm:$0xff] }
  0x95   :  { %1252 = vmatprep.subr.mxu1 %v8388_v36  ;;  %1140 = vmatpush1.msra.mxu0 %v13938_v32  ;;  %v13944_v36 = vld [vmem:[#allocation49_spill] sm:$0xff]  ;;  %v13974_v32 = vld [vmem:[#allocation30_spill] sm:$0xff] }
  0x96   :  { %1253 = vmatpush1.msra.mxu1 %v13939_v40  ;;  %1141 = vmatprep.subr.mxu0 %v13940_v43  ;;  %v13975_v40 = vld [vmem:[#allocation60_spill] sm:$0xff]  ;;  %v13977_v43 = vld [vmem:[#allocation33_spill] sm:$0xff] }
  0x97   :  { %1254 = vmatprep.subr.mxu1 %v8413_v42  ;;  %1142 = vmatpush1.msra.mxu0 %v13941_v44  ;;  %v13958_v42 = vld [vmem:[#allocation19_spill] sm:$0xff] }
  0x98   :  { %1175 = vmatprep.mubr.f32.mxu0 %v13882_v60  ;;  %1255 = vmatpush1.msra.mxu1 %v13942_v45  ;;  %v13979_v44 = vld [vmem:[#allocation35_spill] sm:$0xff] }
  0x99   :  { %1288 = vmatprep.mubr.f32.mxu1 %v13882_v60  ;;  %6684 = vmatmul.mubr.msk.f32.vlgmr.msra.gmra.mxu0 %vm119_vm0, %v13943_v46  ;;  %v13981_v46 = vld [vmem:[#allocation39_spill] sm:$0xff] }
  0x9a   :  { %6692 = vmatmul.mubr.msk.f32.vlgmr.msra.gmra.mxu1 %vm119_vm0, %v13944_v36  ;;  %1181 = vmatprep.mubr.f32.mxu0 %v13882_v60 }
  0x9b   :  { %1294 = vmatprep.mubr.f32.mxu1 %v13882_v60  ;;  %1361 = vmatprep.subr.mxu0 %v13945_v47  ;;  %v13982_v47 = vld [vmem:[#allocation62_spill] sm:$0xff] }
  0x9c   :  { %1522 = vmatprep.subr.mxu1 %v13946_v48  ;;  %1362 = vmatpush1.msra.mxu0 %v13947_v51  ;;  %v13984_v48 = vld [vmem:[#allocation42_spill] sm:$0xff]  ;;  %v13986_v51 = vld [vmem:[#allocation43_spill] sm:$0xff] }
  0x9d   :  { %1523 = vmatpush1.msra.mxu1 %v8462_v38  ;;  %6685 = vmatmul.mubr.msk.f32.gmra.mxu0 %vm119_vm0, %v13948_v52  ;;  %v13954_v38 = vld [vmem:[#allocation53_spill] sm:$0xff]  ;;  %v13988_v52 = vld [vmem:[#allocation46_spill] sm:$0xff] }
  0x9e   :  { %6693 = vmatmul.mubr.msk.f32.gmra.mxu1 %vm119_vm0, %v13949_v53  ;;  %1187 = vmatprep.mubr.f32.mxu0 %v13882_v60 }
  0x9f   :  { %1300 = vmatprep.mubr.f32.mxu1 %v13882_v60  ;;  %1363 = vmatprep.subr.mxu0 %v13950_v57  ;;  %v13989_v57 = vld [vmem:[#allocation48_spill] sm:$0xff] }
  0xa0   :  { %1524 = vmatprep.subr.mxu1 %v13951_v58  ;;  %1364 = vmatpush1.msra.mxu0 %v13952_v59  ;;  %v9005_v58 = vld [vmem:[%s13864_s23 + $0xb0] sm:$0xff] }
  0xa1   :  { %1525 = vmatpush1.msra.mxu1 %v8492_v54  ;;  %6686 = vmatmul.mubr.msk.f32.gmra.mxu0 %vm119_vm0, %v13953_v63  ;;  %v13959_v54 = vld [vmem:[#allocation55_spill] sm:$0xff]  ;;  %13991 = vst [vmem:[#allocation2_spill] sm:$0xff] %v9005_v58  ;;  %v9017_v59 = vld [vmem:[%s13634_s0 + $0x51] sm:$0xff] }
  0xa2   :  { %6694 = vmatmul.mubr.msk.f32.gmra.mxu1 %vm119_vm0, %v13954_v38  ;;  %1193 = vmatprep.mubr.f32.mxu0 %v13882_v60  ;;  %v9022_v63 = vld [vmem:[%s13864_s23 + $0x168] sm:$0xff] }
  0xa3   :  { %1306 = vmatprep.mubr.f32.mxu1 %v13882_v60  ;;  %1365 = vmatprep.subr.mxu0 %v13955_v50  ;;  %v9028_v50 = vld [vmem:[%s13864_s23 + $0xa8] sm:$0xff] }
  0xa4   :  { %1526 = vmatprep.subr.mxu1 %v13956_v56  ;;  %1366 = vmatpush1.msra.mxu0 %v13957_v62  ;;  %13992 = vst [vmem:[#allocation34_spill] sm:$0xff] %v9028_v50  ;;  %v9034_v56 = vld [vmem:[%s13864_s23 + $0x160] sm:$0xff] }
  0xa5   :  { %1527 = vmatpush1.msra.mxu1 %v8522_v49  ;;  %6687 = vmatmul.mubr.msk.f32.gmra.mxu0 %vm119_vm0, %v13958_v42  ;;  %v13964_v49 = vld [vmem:[#allocation57_spill] sm:$0xff]  ;;  %v9040_v62 = vld [vmem:[%s13864_s23 + $0xa0] sm:$0xff] }
  0xa6   :  { %6695 = vmatmul.mubr.msk.f32.gmra.mxu1 %vm119_vm0, %v13959_v54  ;;  %1367 = vmatprep.subr.mxu0 %v13960_v10  ;;  %13993 = vst [vmem:[#allocation3_spill] sm:$0xff] %v9040_v62  ;;  %v9052_v42 = vld [vmem:[%s13634_s0 + $0x59] sm:$0xff] }
  0xa7   :  { %1528 = vmatprep.subr.mxu1 %v13961_v12  ;;  %1199 = vmatprep.mubr.f32.mxu0 %v13882_v60  ;;  %v9057_v10 = vld [vmem:[%s13864_s23 + $0x158] sm:$0xff] }
  0xa8   :  { %1312 = vmatprep.mubr.f32.mxu1 %v13882_v60  ;;  %1368 = vmatpush1.msra.mxu0 %v13962_v14  ;;  %v9063_v12 = vld [vmem:[%s13864_s23 + $0x98] sm:$0xff]  ;;  %v9069_v14 = vld [vmem:[%s13864_s23 + $0x150] sm:$0xff] }
  0xa9   :  { %1529 = vmatpush1.msra.mxu1 %v8552_v61  ;;  %6688 = vmatmul.mubr.msk.f32.gmra.mxu0 %vm119_vm0, %v13963_v16  ;;  %v13969_v61 = vld [vmem:[#allocation26_spill] sm:$0xff]  ;;  %13994 = vst [vmem:[#allocation36_spill] sm:$0xff] %v9063_v12  ;;  %v9075_v16 = vld [vmem:[%s13864_s23 + $0x90] sm:$0xff] }
  0xaa   :  { %6696 = vmatmul.mubr.msk.f32.gmra.mxu1 %vm119_vm0, %v13964_v49  ;;  %1369 = vmatprep.subr.mxu0 %v13965_v18  ;;  %13995 = vst [vmem:[#allocation4_spill] sm:$0xff] %v9075_v16  ;;  %v9085_v18 = vld [vmem:[%s13864_s23 + $0x148] sm:$0xff] }
  0xab   :  { %1530 = vmatprep.subr.mxu1 %v8571_v2  ;;  %1370 = vmatpush1.msra.mxu0 %v13966_v20  ;;  %v13971_v2 = vld [vmem:[#allocation59_spill] sm:$0xff] }
  0xac   :  { %1531 = vmatpush1.msra.mxu1 %v8578_v13  ;;  %1371 = vmatprep.subr.mxu0 %v13967_v22  ;;  %v13973_v13 = vld [vmem:[#allocation29_spill] sm:$0xff]  ;;  %v9091_v20 = vld [vmem:[%s13864_s23 + $0x88] sm:$0xff] }
  0xad   :  { %1532 = vmatprep.subr.mxu1 %v13968_v26  ;;  %1205 = vmatprep.mubr.f32.mxu0 %v13882_v60  ;;  %13996 = vst [vmem:[#allocation38_spill] sm:$0xff] %v9091_v20  ;;  %v9097_v22 = vld [vmem:[%s13634_s0 + $0x61] sm:$0xff] }
  0xae   :  { %1318 = vmatprep.mubr.f32.mxu1 %v13882_v60  ;;  %1372 = vmatpush1.msra.mxu0 %v13969_v61  ;;  %v9104_v26 = vld [vmem:[%s13864_s23 + $0x140] sm:$0xff] }
  0xaf   :  { %1533 = vmatpush1.msra.mxu1 %v8596_v15  ;;  %6689 = vmatmul.mubr.msk.f32.gmra.mxu0 %vm119_vm0, %v13970_v28  ;;  %v13976_v15 = vld [vmem:[#allocation32_spill] sm:$0xff]  ;;  %v9110_v61 = vld [vmem:[%s13864_s23 + $0x80] sm:$0xff]  ;;  %v9120_v28 = vld [vmem:[%s13864_s23 + $0x138] sm:$0xff] }
  0xb0   :  { %6697 = vmatmul.mubr.msk.f32.gmra.mxu1 %vm119_vm0, %v13971_v2  ;;  %1373 = vmatprep.subr.mxu0 %v13972_v30  ;;  %13997 = vst [vmem:[#allocation5_spill] sm:$0xff] %v9110_v61  ;;  %v9126_v30 = vld [vmem:[%s13864_s23 + $0x78] sm:$0xff] }
  0xb1   :  { %1534 = vmatprep.subr.mxu1 %v8615_v19  ;;  %1374 = vmatpush1.msra.mxu0 %v13973_v13  ;;  %v13978_v19 = vld [vmem:[#allocation61_spill] sm:$0xff]  ;;  %13998 = vst [vmem:[#allocation40_spill] sm:$0xff] %v9126_v30  ;;  %v9132_v13 = vld [vmem:[%s13864_s23 + $0x130] sm:$0xff] }
  0xb2   :  { %1535 = vmatpush1.msra.mxu1 %v8622_v21  ;;  %1375 = vmatprep.subr.mxu0 %v13974_v32  ;;  %v13980_v21 = vld [vmem:[#allocation37_spill] sm:$0xff]  ;;  %v9138_v32 = vld [vmem:[%s13864_s23 + $0x70] sm:$0xff] }
  0xb3   :  { %1536 = vmatprep.subr.mxu1 %v13975_v40  ;;  %1211 = vmatprep.mubr.f32.mxu0 %v13882_v60  ;;  %13999 = vst [vmem:[#allocation6_spill] sm:$0xff] %v9138_v32  ;;  %v9144_v40 = vld [vmem:[%s13864_s23 + $0x128] sm:$0xff] }
  0xb4   :  { %1324 = vmatprep.mubr.f32.mxu1 %v13882_v60  ;;  %1376 = vmatpush1.msra.mxu0 %v13976_v15  ;;  %v9150_v15 = vld [vmem:[%s13864_s23 + $0x68] sm:$0xff] }
  0xb5   :  { %1537 = vmatpush1.msra.mxu1 %v8640_v23  ;;  %6690 = vmatmul.mubr.msk.f32.gmra.mxu0 %vm119_vm0, %v13977_v43  ;;  %v13983_v23 = vld [vmem:[#allocation41_spill] sm:$0xff]  ;;  %14000 = vst [vmem:[#allocation7_spill] sm:$0xff] %v9150_v15  ;;  %v9156_v43 = vld [vmem:[%s13634_s0 + $0x69] sm:$0xff] }
  0xb6   :  { %6698 = vmatmul.mubr.msk.f32.gmra.mxu1 %vm119_vm0, %v13978_v19  ;;  %1377 = vmatprep.subr.mxu0 %v13979_v44  ;;  %v9163_v44 = vld [vmem:[%s13864_s23 + $0x120] sm:$0xff] }
  0xb7   :  { %1538 = vmatprep.subr.mxu1 %v8659_v27  ;;  %1378 = vmatpush1.msra.mxu0 %v13980_v21  ;;  %v13985_v27 = vld [vmem:[#allocation63_spill] sm:$0xff]  ;;  %v9169_v21 = vld [vmem:[%s13864_s23 + $0x60] sm:$0xff] }
  0xb8   :  { %1539 = vmatpush1.msra.mxu1 %v8666_v29  ;;  %1379 = vmatprep.subr.mxu0 %v13981_v46  ;;  %v13987_v29 = vld [vmem:[#allocation45_spill] sm:$0xff]  ;;  %14001 = vst [vmem:[#allocation44_spill] sm:$0xff] %v9169_v21 }
  0xb9   :  { %1540 = vmatprep.subr.mxu1 %v13982_v47  ;;  %1217 = vmatprep.mubr.f32.mxu0 %v13882_v60  ;;  %v9179_v46 = vld [vmem:[%s13864_s23 + $0x118] sm:$0xff] }
  0xba   :  { %1330 = vmatprep.mubr.f32.mxu1 %v13882_v60  ;;  %1380 = vmatpush1.msra.mxu0 %v13983_v23  ;;  %v9185_v47 = vld [vmem:[%s13864_s23 + $0x58] sm:$0xff]  ;;  %v9191_v23 = vld [vmem:[%s13864_s23 + $0x110] sm:$0xff] }
  0xbb   :  { %1541 = vmatpush1.msra.mxu1 %v8684_v31  ;;  %6691 = vmatmul.mubr.msk.f32.gmra.mxu0 %vm119_vm0, %v13984_v48  ;;  %v8967_v31 = vld [vmem:[%s13634_s0 + $0x41] sm:$0xff]  ;;  %14002 = vst [vmem:[#allocation8_spill] sm:$0xff] %v9185_v47  ;;  %v9197_v48 = vld [vmem:[%s13864_s23 + $0x50] sm:$0xff] }
  0xbc   :  { %6699 = vmatmul.mubr.msk.f32.gmra.mxu1 %vm119_vm0, %v13985_v27  ;;  %1381 = vmatprep.subr.mxu0 %v13986_v51  ;;  %14003 = vst [vmem:[#allocation9_spill] sm:$0xff] %v9197_v48  ;;  %v9203_v51 = vld [vmem:[%s13864_s23 + $0x108] sm:$0xff] }
  0xbd   :  { %1542 = vmatprep.subr.mxu1 %v8703_v35  ;;  %1382 = vmatpush1.msra.mxu0 %v13987_v29  ;;  %v8987_v35 = vld [vmem:[%s13864_s23 + $0x178] sm:$0xff]  ;;  %v9209_v29 = vld [vmem:[%s13864_s23 + $0x48] sm:$0xff] }
  0xbe   :  { %1543 = vmatpush1.msra.mxu1 %v8710_v37  ;;  %1383 = vmatprep.subr.mxu0 %v13988_v52  ;;  %v8993_v37 = vld [vmem:[%s13864_s23 + $0xb8] sm:$0xff]  ;;  %14004 = vst [vmem:[#allocation47_spill] sm:$0xff] %v9209_v29 }
  0xbf   :  { %1544 = vmatprep.subr.mxu1 %v8719_v7  ;;  %1384 = vmatpush1.msra.mxu0 %v13989_v57  ;;  %v8982_v7 = vld [vmem:[%s13634_s0 + $0x49] sm:$0xff]  ;;  %13990 = vst [vmem:[#allocation31_spill] sm:$0xff] %v8993_v37  ;;  %v9215_v52 = vld [vmem:[%s13634_s0 + $0x71] sm:$0xff]  ;;  %v9222_v57 = vld [vmem:[%s13864_s23 + $0x100] sm:$0xff] }
  0xc0   :  { %1417 = vmatprep.mubr.f32.mxu0 %v13882_v60  ;;  %1545 = vmatpush1.msra.mxu1 %v8726_v39  ;;  %v8999_v39 = vld [vmem:[%s13864_s23 + $0x170] sm:$0xff] }
  0xc1   :  { %1578 = vmatprep.mubr.f32.mxu1 %v13882_v60  ;;  %6700 = vmatmul.mubr.msk.f32.vlgmr.msra.gmra.mxu0 %vm119_vm0, %v8735_v33 }
  0xc2   :  { %6716 = vmatmul.mubr.msk.f32.vlgmr.msra.gmra.mxu1 %vm119_vm0, %v8967_v31  ;;  %1423 = vmatprep.mubr.f32.mxu0 %v13882_v60 }
  0xc3   :  { %1584 = vmatprep.mubr.f32.mxu1 %v13882_v60  ;;  %1683 = vmatprep.subr.mxu0 %v8987_v35 }
  0xc4   :  { %1796 = vmatprep.subr.mxu1 %v8993_v37  ;;  %1684 = vmatpush1.msra.mxu0 %v8999_v39 }
  0xc5   :  { %1797 = vmatpush1.msra.mxu1 %v9005_v58  ;;  %6701 = vmatmul.mubr.msk.f32.gmra.mxu0 %vm119_vm0, %v8750_v41 }
  0xc6   :  { %6717 = vmatmul.mubr.msk.f32.gmra.mxu1 %vm119_vm0, %v8982_v7  ;;  %1429 = vmatprep.mubr.f32.mxu0 %v13882_v60 }
  0xc7   :  { %1590 = vmatprep.mubr.f32.mxu1 %v13882_v60  ;;  %1685 = vmatprep.subr.mxu0 %v9022_v63 }
  0xc8   :  { %1798 = vmatprep.subr.mxu1 %v9028_v50  ;;  %1686 = vmatpush1.msra.mxu0 %v9034_v56  ;;  %v9333_v50 = vld [vmem:[%s13864_s23 + $0x8] sm:$0xff] }
  0xc9   :  { %1799 = vmatpush1.msra.mxu1 %v9040_v62  ;;  %6702 = vmatmul.mubr.msk.f32.gmra.mxu0 %vm119_vm0, %v8765_v1  ;;  %v9303_v62 = vld [vmem:[%s13864_s23 + $0xd8] sm:$0xff]  ;;  %14016 = vst [vmem:[#allocation53_spill] sm:$0xff] %v9333_v50 }
  0xca   :  { %6718 = vmatmul.mubr.msk.f32.gmra.mxu1 %vm119_vm0, %v9017_v59  ;;  %1435 = vmatprep.mubr.f32.mxu0 %v13882_v60 }
  0xcb   :  { %1596 = vmatprep.mubr.f32.mxu1 %v13882_v60  ;;  %1687 = vmatprep.subr.mxu0 %v9057_v10 }
  0xcc   :  { %1800 = vmatprep.subr.mxu1 %v9063_v12  ;;  %1688 = vmatpush1.msra.mxu0 %v9069_v14 }
  0xcd   :  { %1801 = vmatpush1.msra.mxu1 %v9075_v16  ;;  %6703 = vmatmul.mubr.msk.f32.gmra.mxu0 %vm119_vm0, %v8780_v4 }
  0xce   :  { %6719 = vmatmul.mubr.msk.f32.gmra.mxu1 %vm119_vm0, %v9052_v42  ;;  %1689 = vmatprep.subr.mxu0 %v9085_v18 }
  0xcf   :  { %1802 = vmatprep.subr.mxu1 %v9091_v20  ;;  %1441 = vmatprep.mubr.f32.mxu0 %v13882_v60 }
  0xd0   :  { %1602 = vmatprep.mubr.f32.mxu1 %v13882_v60  ;;  %1690 = vmatpush1.msra.mxu0 %v9104_v26 }
  0xd1   :  { %1803 = vmatpush1.msra.mxu1 %v9110_v61  ;;  %6704 = vmatmul.mubr.msk.f32.gmra.mxu0 %vm119_vm0, %v8795_v6  ;;  %v9281_v61 = vld [vmem:[%s13864_s23 + $0xe0] sm:$0xff] }
  0xd2   :  { %6720 = vmatmul.mubr.msk.f32.gmra.mxu1 %vm119_vm0, %v9097_v22  ;;  %1691 = vmatprep.subr.mxu0 %v9120_v28 }
  0xd3   :  { %1804 = vmatprep.subr.mxu1 %v9126_v30  ;;  %1692 = vmatpush1.msra.mxu0 %v9132_v13 }
  0xd4   :  { %1805 = vmatpush1.msra.mxu1 %v9138_v32  ;;  %1693 = vmatprep.subr.mxu0 %v9144_v40  ;;  %v9274_v32 = vld [vmem:[%s13634_s0 + $0x79] sm:$0x7f] }
  0xd5   :  { %1806 = vmatprep.subr.mxu1 %v9150_v15  ;;  %1447 = vmatprep.mubr.f32.mxu0 %v13882_v60  ;;  %v9262_v15 = vld [vmem:[%s13864_s23 + $0xe8] sm:$0xff] }
  0xd6   :  { %1608 = vmatprep.mubr.f32.mxu1 %v13882_v60  ;;  %1694 = vmatpush1.msra.mxu0 %v9163_v44 }
  0xd7   :  { %1807 = vmatpush1.msra.mxu1 %v9169_v21  ;;  %6705 = vmatmul.mubr.msk.f32.gmra.mxu0 %vm119_vm0, %v8814_v8  ;;  %v9256_v21 = vld [vmem:[%s13864_s23 + $0x30] sm:$0xff] }
  0xd8   :  { %6721 = vmatmul.mubr.msk.f32.gmra.mxu1 %vm119_vm0, %v9156_v43  ;;  %1695 = vmatprep.subr.mxu0 %v9179_v46  ;;  %14007 = vst [vmem:[#allocation11_spill] sm:$0xff] %v9256_v21 }
  0xd9   :  { %1808 = vmatprep.subr.mxu1 %v9185_v47  ;;  %1696 = vmatpush1.msra.mxu0 %v9191_v23  ;;  %v9244_v47 = vld [vmem:[%s13864_s23 + $0x38] sm:$0xff] }
  0xda   :  { %1809 = vmatpush1.msra.mxu1 %v9197_v48  ;;  %1697 = vmatprep.subr.mxu0 %v9203_v51  ;;  %v9238_v48 = vld [vmem:[%s13864_s23 + $0xf8] sm:$0xff]  ;;  %14006 = vst [vmem:[#allocation49_spill] sm:$0xff] %v9244_v47 }
  0xdb   :  { %1810 = vmatprep.subr.mxu1 %v9209_v29  ;;  %1453 = vmatprep.mubr.f32.mxu0 %v13882_v60  ;;  %v9228_v29 = vld [vmem:[%s13864_s23 + $0x40] sm:$0xff] }
  0xdc   :  { %1614 = vmatprep.mubr.f32.mxu1 %v13882_v60  ;;  %1698 = vmatpush1.msra.mxu0 %v9222_v57  ;;  %14005 = vst [vmem:[#allocation10_spill] sm:$0xff] %v9228_v29 }
  0xdd   :  { %1811 = vmatpush1.msra.mxu1 %v9228_v29  ;;  %6706 = vmatmul.mubr.msk.f32.gmra.mxu0 %vm119_vm0, %v8833_v3  ;;  %v9250_v29 = vld [vmem:[%s13864_s23 + $0xf0] sm:$0xff] }
  0xde   :  { %6722 = vmatmul.mubr.msk.f32.gmra.mxu1 %vm119_vm0, %v9215_v52  ;;  %1699 = vmatprep.subr.mxu0 %v9238_v48 }
  0xdf   :  { %1812 = vmatprep.subr.mxu1 %v9244_v47  ;;  %1700 = vmatpush1.msra.mxu0 %v9250_v29  ;;  %v9268_v47 = vld [vmem:[%s13864_s23 + $0x28] sm:$0xff] }
  0xe0   :  { %1813 = vmatpush1.msra.mxu1 %v9256_v21  ;;  %1701 = vmatprep.subr.mxu0 %v9262_v15  ;;  %14008 = vst [vmem:[#allocation50_spill] sm:$0xff] %v9268_v47 }
  0xe1   :  { %1814 = vmatprep.subr.mxu1 %v9268_v47  ;;  %1459 = vmatprep.mubr.f32.mxu0 %v13882_v60  ;;  %v210_v21 = vpop.f32.mrf.mxu0  ;;  %v9287_v47 = vld [vmem:[%s13864_s23 + $0x20] sm:$0xff] }
  0xe2   :  { %1620 = vmatprep.mubr.f32.mxu1 %v13882_v60  ;;  %v347_v30 = vpop.f32.mrf.mxu1  ;;  %1702 = vmatpush1.msra.mxu0 %v9281_v61  ;;  %14009 = vst [vmem:[#allocation12_spill] sm:$0xff] %v9287_v47 }
  0xe3   :  { %1815 = vmatpush1.msra.mxu1 %v9287_v47  ;;  %v9290_v20 = vadd.f32 %v347_v30, %v210_v21  ;;  %6707 = vmatmul.mubr.msk.f32.gmra.mxu0 %vm119_vm0, %v8852_v24  ;;  %v9296_v16 = vpop.f32.mrf.mxu0  ;;  %v9309_v30 = vld [vmem:[%s13864_s23 + $0x18] sm:$0xff]  ;;  %v9315_v21 = vld [vmem:[%s13864_s23 + $0xd0] sm:$0xff] }
  0xe4   :  { %6723 = vmatmul.mubr.msk.f32.gmra.mxu1 %vm119_vm0, %v9274_v32  ;;  %14010 = vst [vmem:[#allocation13_spill] sm:$0xff] %v9296_v16  ;;  %v9298_v12 = vpop.f32.mrf.mxu1  ;;  %1703 = vmatprep.subr.mxu0 %v9303_v62  ;;  %14012 = vst [vmem:[#allocation14_spill] sm:$0xff] %v9309_v30 }
  0xe5   :  { %14011 = vst [vmem:[#allocation51_spill] sm:$0xff] %v9298_v12  ;;  %1816 = vmatprep.subr.mxu1 %v9309_v30  ;;  %14013 = vst [vmem:[#allocation52_spill] sm:$0xff] %v9315_v21  ;;  %1704 = vmatpush1.msra.mxu0 %v9315_v21  ;;  %v9321_v12 = vld [vmem:[%s13864_s23 + $0x10] sm:$0xff]  ;;  %v216_v16 = vpop.f32.mrf.mxu0  ;;  %v9327_v30 = vld [vmem:[%s13864_s23 + $0xc8] sm:$0xff] }
  0xe6   :  { %14014 = vst [vmem:[#allocation15_spill] sm:$0xff] %v9321_v12  ;;  %1817 = vmatpush1.msra.mxu1 %v9321_v12  ;;  %v353_v47 = vpop.f32.mrf.mxu1  ;;  %14015 = vst [vmem:[#allocation16_spill] sm:$0xff] %v9327_v30  ;;  %1705 = vmatprep.subr.mxu0 %v9327_v30  ;;  %v9341_v12 = vld [vmem:[%s13864_s23 + $0xc0] sm:$0xff] }
  0xe7   :  { %1818 = vmatprep.subr.mxu1 %v9333_v50  ;;  %v9336_v58 = vadd.f32 %v353_v47, %v216_v16  ;;  %1706 = vmatpush1.msra.mxu0 %v9341_v12  ;;  %v9345_v37 = vpop.f32.mrf.mxu0  ;;  %v9352_v21 = vld [vmem:[%s13864_s23] sm:$0xff]  ;;  %v9403_v50 = vld [vmem:[%s13864_s23 + $0x228] sm:$0xff] }
  0xe8   :  { %1739 = vmatprep.mubr.f32.mxu0 %v13882_v60  ;;  %14017 = vst [vmem:[#allocation17_spill] sm:$0xff] %v9345_v37  ;;  %v9347_v30 = vpop.f32.mrf.mxu1  ;;  %14019 = vst [vmem:[#allocation18_spill] sm:$0xff] %v9352_v21  ;;  %1819 = vmatpush1.msra.mxu1 %v9352_v21  ;;  %v9367_v37 = vld [vmem:[%s13864_s23 + $0x238] sm:$0xff] }
  0xe9   :  { %14018 = vst [vmem:[#allocation54_spill] sm:$0xff] %v9347_v30  ;;  %1852 = vmatprep.mubr.f32.mxu1 %v13882_v60  ;;  %6724 = vmatmul.mubr.msk.f32.vlgmr.msra.gmra.mxu0 %vm119_vm0, %v13944_v36  ;;  %v222_v16 = vpop.f32.mrf.mxu0  ;;  %v9373_v36 = vld [vmem:[%s13864_s23 + $0x2f8] sm:$0xff] }
  0xea   :  { %6732 = vmatmul.mubr.msk.f32.vlgmr.msra.gmra.mxu1 %vm119_vm0, %v8439_v55  ;;  %v359_v47 = vpop.f32.mrf.mxu1  ;;  %1745 = vmatprep.mubr.f32.mxu0 %v13882_v60  ;;  %14020 = vst [vmem:[#allocation19_spill] sm:$0xff] %v9373_v36 }
  0xeb   :  { %1858 = vmatprep.mubr.f32.mxu1 %v13882_v60  ;;  %v9362_v30 = vadd.f32 %v359_v47, %v222_v16  ;;  %1909 = vmatprep.subr.mxu0 %v9367_v37  ;;  %v9376_v55 = vpop.f32.mrf.mxu0  ;;  %v9383_v16 = vld [vmem:[%s13864_s23 + $0x230] sm:$0xff] }
  0xec   :  { %2038 = vmatprep.subr.mxu1 %v9373_v36  ;;  %14021 = vst [vmem:[#allocation55_spill] sm:$0xff] %v9376_v55  ;;  %v9378_v21 = vpop.f32.mrf.mxu1  ;;  %1910 = vmatpush1.msra.mxu0 %v9383_v16  ;;  %v9389_v47 = vld [vmem:[%s13864_s23 + $0x2f0] sm:$0xff] }
  0xed   :  { %14022 = vst [vmem:[#allocation20_spill] sm:$0xff] %v9378_v21  ;;  %14023 = vst [vmem:[#allocation56_spill] sm:$0xff] %v9389_v47  ;;  %2039 = vmatpush1.msra.mxu1 %v9389_v47  ;;  %6725 = vmatmul.mubr.msk.f32.gmra.mxu0 %vm119_vm0, %v13949_v53  ;;  %v228_v21 = vpop.f32.mrf.mxu0  ;;  %v9409_v53 = vld [vmem:[%s13864_s23 + $0x2e8] sm:$0xff] }
  0xee   :  { %6733 = vmatmul.mubr.msk.f32.gmra.mxu1 %vm119_vm0, %v8469_v34  ;;  %v365_v55 = vpop.f32.mrf.mxu1  ;;  %1751 = vmatprep.mubr.f32.mxu0 %v13882_v60  ;;  %14024 = vst [vmem:[#allocation21_spill] sm:$0xff] %v9409_v53 }
  0xef   :  { %1864 = vmatprep.mubr.f32.mxu1 %v13882_v60  ;;  %v9398_v36 = vadd.f32 %v365_v55, %v228_v21  ;;  %1911 = vmatprep.subr.mxu0 %v9403_v50  ;;  %v9412_v34 = vpop.f32.mrf.mxu0  ;;  %v9419_v21 = vld [vmem:[%s13864_s23 + $0x220] sm:$0xff] }
  0xf0   :  { %2040 = vmatprep.subr.mxu1 %v9409_v53  ;;  %14025 = vst [vmem:[#allocation22_spill] sm:$0xff] %v9412_v34  ;;  %v9414_v47 = vpop.f32.mrf.mxu1  ;;  %14027 = vst [vmem:[#allocation23_spill] sm:$0xff] %v9419_v21  ;;  %1912 = vmatpush1.msra.mxu0 %v9419_v21  ;;  %v9425_v55 = vld [vmem:[%s13864_s23 + $0x2e0] sm:$0xff]  ;;  %v9439_v21 = vld [vmem:[%s13864_s23 + $0x218] sm:$0xff] }
  0xf1   :  { %14026 = vst [vmem:[#allocation57_spill] sm:$0xff] %v9414_v47  ;;  %14028 = vst [vmem:[#allocation24_spill] sm:$0xff] %v9425_v55  ;;  %2041 = vmatpush1.msra.mxu1 %v9425_v55  ;;  %6726 = vmatmul.mubr.msk.f32.gmra.mxu0 %vm119_vm0, %v13954_v38  ;;  %v234_v47 = vpop.f32.mrf.mxu0  ;;  %v9445_v38 = vld [vmem:[%s13864_s23 + $0x2d8] sm:$0xff] }
  0xf2   :  { %6734 = vmatmul.mubr.msk.f32.gmra.mxu1 %vm119_vm0, %v8499_v0  ;;  %v371_v34 = vpop.f32.mrf.mxu1  ;;  %1757 = vmatprep.mubr.f32.mxu0 %v13882_v60  ;;  %14029 = vst [vmem:[#allocation25_spill] sm:$0xff] %v9445_v38 }
  0xf3   :  { %1870 = vmatprep.mubr.f32.mxu1 %v13882_v60  ;;  %v9434_v53 = vadd.f32 %v371_v34, %v234_v47  ;;  %1913 = vmatprep.subr.mxu0 %v9439_v21  ;;  %v9448_v0 = vpop.f32.mrf.mxu0  ;;  %v9455_v47 = vld [vmem:[%s13864_s23 + $0x210] sm:$0xff] }
  0xf4   :  { %2042 = vmatprep.subr.mxu1 %v9445_v38  ;;  %14030 = vst [vmem:[#allocation58_spill] sm:$0xff] %v9448_v0  ;;  %v9450_v55 = vpop.f32.mrf.mxu1  ;;  %14032 = vst [vmem:[#allocation27_spill] sm:$0xff] %v9455_v47  ;;  %1914 = vmatpush1.msra.mxu0 %v9455_v47  ;;  %v9461_v34 = vld [vmem:[%s13864_s23 + $0x2d0] sm:$0xff]  ;;  %v9477_v0 = vld [vmem:[%s13864_s23 + $0x2c8] sm:$0xff] }
  0xf5   :  { %14031 = vst [vmem:[#allocation26_spill] sm:$0xff] %v9450_v55  ;;  %14033 = vst [vmem:[#allocation59_spill] sm:$0xff] %v9461_v34  ;;  %2043 = vmatpush1.msra.mxu1 %v9461_v34  ;;  %6727 = vmatmul.mubr.msk.f32.gmra.mxu0 %vm119_vm0, %v13959_v54  ;;  %v9471_v55 = vld [vmem:[%s13864_s23 + $0x208] sm:$0xff]  ;;  %v9485_v34 = vld [vmem:[%s13864_s23 + $0x200] sm:$0xff] }
  0xf6   :  { %6735 = vmatmul.mubr.msk.f32.gmra.mxu1 %vm119_vm0, %v8529_v5  ;;  %14034 = vst [vmem:[#allocation28_spill] sm:$0xff] %v9471_v55  ;;  %1915 = vmatprep.subr.mxu0 %v9471_v55  ;;  %14035 = vst [vmem:[#allocation29_spill] sm:$0xff] %v9477_v0  ;;  %v9491_v38 = vld [vmem:[%s13864_s23 + $0x2c0] sm:$0xff] }
  0xf7   :  { %2044 = vmatprep.subr.mxu1 %v9477_v0  ;;  %1763 = vmatprep.mubr.f32.mxu0 %v13882_v60  ;;  %v240_v54 = vpop.f32.mrf.mxu0  ;;  %14036 = vst [vmem:[#allocation30_spill] sm:$0xff] %v9485_v34  ;;  %14037 = vst [vmem:[#allocation60_spill] sm:$0xff] %v9491_v38 }
  0xf8   :  { %1876 = vmatprep.mubr.f32.mxu1 %v13882_v60  ;;  %v377_v5 = vpop.f32.mrf.mxu1  ;;  %1916 = vmatpush1.msra.mxu0 %v9485_v34  ;;  %v9507_v34 = vld [vmem:[%s13864_s23 + $0x1f8] sm:$0xff] }
  0xf9   :  { %2045 = vmatpush1.msra.mxu1 %v9491_v38  ;;  %v9494_v0 = vadd.f32 %v377_v5, %v240_v54  ;;  %6728 = vmatmul.mubr.msk.f32.gmra.mxu0 %vm119_vm0, %v13964_v49  ;;  %v9500_v55 = vpop.f32.mrf.mxu0  ;;  %v9513_v54 = vld [vmem:[%s13864_s23 + $0x2b8] sm:$0xff]  ;;  %v9525_v49 = vld [vmem:[%s13864_s23 + $0x2b0] sm:$0xff]  ;;  %v9531_v5 = vld [vmem:[%s13864_s23 + $0x1e8] sm:$0xff] }
  0xfa   :  { %6736 = vmatmul.mubr.msk.f32.gmra.mxu1 %vm119_vm0, %v8559_v9  ;;  %14038 = vst [vmem:[#allocation32_spill] sm:$0xff] %v9500_v55  ;;  %v9502_v47 = vpop.f32.mrf.mxu1  ;;  %1917 = vmatprep.subr.mxu0 %v9507_v34  ;;  %14040 = vst [vmem:[#allocation61_spill] sm:$0xff] %v9513_v54  ;;  %v9519_v9 = vld [vmem:[%s13864_s23 + $0x1f0] sm:$0xff]  ;;  %v9551_v38 = vld [vmem:[%s13864_s23 + $0x2a0] sm:$0xff] }
  0xfb   :  { %14039 = vst [vmem:[#allocation33_spill] sm:$0xff] %v9502_v47  ;;  %2046 = vmatprep.subr.mxu1 %v9513_v54  ;;  %14041 = vst [vmem:[#allocation35_spill] sm:$0xff] %v9519_v9  ;;  %1918 = vmatpush1.msra.mxu0 %v9519_v9  ;;  %v9537_v47 = vld [vmem:[%s13864_s23 + $0x2a8] sm:$0xff]  ;;  %v9545_v54 = vld [vmem:[%s13864_s23 + $0x1e0] sm:$0xff] }
  0xfc   :  { %14042 = vst [vmem:[#allocation37_spill] sm:$0xff] %v9525_v49  ;;  %2047 = vmatpush1.msra.mxu1 %v9525_v49  ;;  %14043 = vst [vmem:[#allocation39_spill] sm:$0xff] %v9531_v5  ;;  %1919 = vmatprep.subr.mxu0 %v9531_v5 }
  0xfd   :  { %14044 = vst [vmem:[#allocation62_spill] sm:$0xff] %v9537_v47  ;;  %2048 = vmatprep.subr.mxu1 %v9537_v47  ;;  %1769 = vmatprep.mubr.f32.mxu0 %v13882_v60  ;;  %v246_v55 = vpop.f32.mrf.mxu0  ;;  %14045 = vst [vmem:[#allocation41_spill] sm:$0xff] %v9545_v54 }
  0xfe   :  { %1882 = vmatprep.mubr.f32.mxu1 %v13882_v60  ;;  %v383_v49 = vpop.f32.mrf.mxu1  ;;  %1920 = vmatpush1.msra.mxu0 %v9545_v54  ;;  %14046 = vst [vmem:[#allocation42_spill] sm:$0xff] %v9551_v38  ;;  %v9567_v54 = vld [vmem:[%s13864_s23 + $0x1d8] sm:$0xff] }
  0xff   :  { %2049 = vmatpush1.msra.mxu1 %v9551_v38  ;;  %v9554_v47 = vadd.f32 %v383_v49, %v246_v55  ;;  %6729 = vmatmul.mubr.msk.f32.gmra.mxu0 %vm119_vm0, %v13971_v2  ;;  %v9560_v5 = vpop.f32.mrf.mxu0  ;;  %v9573_v55 = vld [vmem:[%s13864_s23 + $0x298] sm:$0xff]  ;;  %v9585_v2 = vld [vmem:[%s13864_s23 + $0x290] sm:$0xff]  ;;  %v9591_v49 = vld [vmem:[%s13864_s23 + $0x1c8] sm:$0xff] }
 0x100   :  { %6737 = vmatmul.mubr.msk.f32.gmra.mxu1 %vm119_vm0, %v8603_v11  ;;  %14047 = vst [vmem:[#allocation63_spill] sm:$0xff] %v9560_v5  ;;  %v9562_v9 = vpop.f32.mrf.mxu1  ;;  %1921 = vmatprep.subr.mxu0 %v9567_v54  ;;  %14049 = vst [vmem:[#allocation45_spill] sm:$0xff] %v9573_v55  ;;  %v9579_v11 = vld [vmem:[%s13864_s23 + $0x1d0] sm:$0xff]  ;;  %v9611_v38 = vld [vmem:[%s13864_s23 + $0x280] sm:$0xff] }
 0x101   :  { %14048 = vst [vmem:[#allocation43_spill] sm:$0xff] %v9562_v9  ;;  %2050 = vmatprep.subr.mxu1 %v9573_v55  ;;  %14050 = vst [vmem:[#allocation46_spill] sm:$0xff] %v9579_v11  ;;  %1922 = vmatpush1.msra.mxu0 %v9579_v11  ;;  %v9597_v9 = vld [vmem:[%s13864_s23 + $0x288] sm:$0xff]  ;;  %v9605_v55 = vld [vmem:[%s13864_s23 + $0x1c0] sm:$0xff] }
 0x102   :  { %14051 = vst [vmem:[#allocation48_spill] sm:$0xff] %v9585_v2  ;;  %2051 = vmatpush1.msra.mxu1 %v9585_v2  ;;  %14052 = vst [vmem:[#allocation64_spill] sm:$0xff] %v9591_v49  ;;  %1923 = vmatprep.subr.mxu0 %v9591_v49 }
 0x103   :  { %14053 = vst [vmem:[#allocation65_spill] sm:$0xff] %v9597_v9  ;;  %2052 = vmatprep.subr.mxu1 %v9597_v9  ;;  %1775 = vmatprep.mubr.f32.mxu0 %v13882_v60  ;;  %v252_v5 = vpop.f32.mrf.mxu0  ;;  %14054 = vst [vmem:[#allocation66_spill] sm:$0xff] %v9605_v55 }
 0x104   :  { %1888 = vmatprep.mubr.f32.mxu1 %v13882_v60  ;;  %v389_v2 = vpop.f32.mrf.mxu1  ;;  %1924 = vmatpush1.msra.mxu0 %v9605_v55  ;;  %14055 = vst [vmem:[#allocation67_spill] sm:$0xff] %v9611_v38  ;;  %v9627_v55 = vld [vmem:[%s13864_s23 + $0x1b8] sm:$0xff] }
 0x105   :  { %2053 = vmatpush1.msra.mxu1 %v9611_v38  ;;  %v9614_v9 = vadd.f32 %v389_v2, %v252_v5  ;;  %6730 = vmatmul.mubr.msk.f32.gmra.mxu0 %vm119_vm0, %v13978_v19  ;;  %v9620_v49 = vpop.f32.mrf.mxu0  ;;  %v9633_v5 = vld [vmem:[%s13864_s23 + $0x278] sm:$0xff]  ;;  %v9645_v19 = vld [vmem:[%s13864_s23 + $0x270] sm:$0xff]  ;;  %v9651_v2 = vld [vmem:[%s13864_s23 + $0x1a8] sm:$0xff] }
 0x106   :  { %6738 = vmatmul.mubr.msk.f32.gmra.mxu1 %vm119_vm0, %v8647_v17  ;;  %14056 = vst [vmem:[#allocation68_spill] sm:$0xff] %v9620_v49  ;;  %v9622_v11 = vpop.f32.mrf.mxu1  ;;  %1925 = vmatprep.subr.mxu0 %v9627_v55  ;;  %14058 = vst [vmem:[#allocation70_spill] sm:$0xff] %v9633_v5  ;;  %v9639_v17 = vld [vmem:[%s13864_s23 + $0x1b0] sm:$0xff]  ;;  %v9671_v38 = vld [vmem:[%s13864_s23 + $0x260] sm:$0xff] }
 0x107   :  { %14057 = vst [vmem:[#allocation69_spill] sm:$0xff] %v9622_v11  ;;  %2054 = vmatprep.subr.mxu1 %v9633_v5  ;;  %14059 = vst [vmem:[#allocation71_spill] sm:$0xff] %v9639_v17  ;;  %1926 = vmatpush1.msra.mxu0 %v9639_v17  ;;  %v9657_v11 = vld [vmem:[%s13864_s23 + $0x268] sm:$0xff]  ;;  %v9665_v5 = vld [vmem:[%s13864_s23 + $0x1a0] sm:$0xff] }
 0x108   :  { %14060 = vst [vmem:[#allocation72_spill] sm:$0xff] %v9645_v19  ;;  %2055 = vmatpush1.msra.mxu1 %v9645_v19  ;;  %14061 = vst [vmem:[#allocation73_spill] sm:$0xff] %v9651_v2  ;;  %1927 = vmatprep.subr.mxu0 %v9651_v2 }
 0x109   :  { %14062 = vst [vmem:[#allocation74_spill] sm:$0xff] %v9657_v11  ;;  %2056 = vmatprep.subr.mxu1 %v9657_v11  ;;  %1781 = vmatprep.mubr.f32.mxu0 %v13882_v60  ;;  %v518_v49 = vpop.f32.mrf.mxu0  ;;  %14063 = vst [vmem:[#allocation75_spill] sm:$0xff] %v9665_v5 }
 0x10a   :  { %1894 = vmatprep.mubr.f32.mxu1 %v13882_v60  ;;  %v705_v19 = vpop.f32.mrf.mxu1  ;;  %1928 = vmatpush1.msra.mxu0 %v9665_v5  ;;  %14064 = vst [vmem:[#allocation76_spill] sm:$0xff] %v9671_v38  ;;  %v565_v11 = vadd.f32 %v518_v49, %v9290_v20  ;;  %v9686_v5 = vld [vmem:[%s13864_s23 + $0x198] sm:$0xff]  ;;  %v9706_v49 = vld [vmem:[%s13864_s23 + $0x250] sm:$0xff] }
 0x10b   :  { %2057 = vmatpush1.msra.mxu1 %v9671_v38  ;;  %6731 = vmatmul.mubr.msk.f32.gmra.mxu0 %vm119_vm0, %v13985_v27  ;;  %v9679_v2 = vpop.f32.mrf.mxu0  ;;  %v9692_v20 = vld [vmem:[%s13864_s23 + $0x258] sm:$0xff]  ;;  %14068 = vst [vmem:[#allocation80_spill] sm:$0xff] %v9706_v49 }
 0x10c   :  { %6739 = vmatmul.mubr.msk.f32.gmra.mxu1 %vm119_vm0, %v8691_v25  ;;  %14065 = vst [vmem:[#allocation77_spill] sm:$0xff] %v9679_v2  ;;  %v9681_v17 = vpop.f32.mrf.mxu1  ;;  %1929 = vmatprep.subr.mxu0 %v9686_v5  ;;  %14067 = vst [vmem:[#allocation79_spill] sm:$0xff] %v9692_v20  ;;  %v9695_v27 = vadd.f32 %v705_v19, %v565_v11  ;;  %v9700_v25 = vld [vmem:[%s13864_s23 + $0x190] sm:$0xff]  ;;  %v9712_v11 = vld [vmem:[%s13864_s23 + $0x188] sm:$0xff] }
 0x10d   :  { %14066 = vst [vmem:[#allocation78_spill] sm:$0xff] %v9681_v17  ;;  %2058 = vmatprep.subr.mxu1 %v9692_v20  ;;  %1930 = vmatpush1.msra.mxu0 %v9700_v25  ;;  %v524_v17 = vpop.f32.mrf.mxu0  ;;  %14069 = vst [vmem:[#allocation81_spill] sm:$0xff] %v9712_v11  ;;  %v9718_v19 = vld [vmem:[%s13864_s23 + $0x248] sm:$0xff] }
 0x10e   :  { %2059 = vmatpush1.msra.mxu1 %v9706_v49  ;;  %v711_v2 = vpop.f32.mrf.mxu1  ;;  %1931 = vmatprep.subr.mxu0 %v9712_v11  ;;  %14070 = vst [vmem:[#allocation82_spill] sm:$0xff] %v9718_v19  ;;  %v567_v20 = vadd.f32 %v524_v17, %v9336_v58  ;;  %v9731_v11 = vld [vmem:[%s13864_s23 + $0x240] sm:$0xff] }
 0x10f   :  { %2060 = vmatprep.subr.mxu1 %v9718_v19  ;;  %1932 = vmatpush1.msra.mxu0 %v13942_v45  ;;  %v9724_v49 = vpop.f32.mrf.mxu0 }
 0x110   :  { %1965 = vmatprep.mubr.f32.mxu0 %v13882_v60  ;;  %14071 = vst [vmem:[#allocation83_spill] sm:$0xff] %v9724_v49  ;;  %v9726_v38 = vpop.f32.mrf.mxu1  ;;  %2061 = vmatpush1.msra.mxu1 %v9731_v11  ;;  %v9735_v19 = vadd.f32 %v711_v2, %v567_v20  ;;  %v9758_v20 = vld [vmem:[%s13864_s23 + $0x3b0] sm:$0xff]  ;;  %v14094_v49 = vld [vmem:[#allocation2_spill] sm:$0xff] }
 0x111   :  { %14072 = vst [vmem:[#allocation84_spill] sm:$0xff] %v9726_v38  ;;  %2094 = vmatprep.mubr.f32.mxu1 %v13882_v60  ;;  %6740 = vmatmul.mubr.msk.f32.vlgmr.msra.gmra.mxu0 %vm119_vm0, %v8735_v33  ;;  %v530_v45 = vpop.f32.mrf.mxu0  ;;  %v9747_v38 = vld [vmem:[%s13864_s23 + $0x3b8] sm:$0xff] }
 0x112   :  { %6748 = vmatmul.mubr.msk.f32.vlgmr.msra.gmra.mxu1 %vm119_vm0, %v8967_v31  ;;  %v717_v58 = vpop.f32.mrf.mxu1  ;;  %1971 = vmatprep.mubr.f32.mxu0 %v13882_v60  ;;  %v569_v17 = vadd.f32 %v530_v45, %v9362_v30 }
 0x113   :  { %2100 = vmatprep.mubr.f32.mxu1 %v13882_v60  ;;  %2199 = vmatprep.subr.mxu0 %v9747_v38  ;;  %v9751_v33 = vpop.f32.mrf.mxu0 }
 0x114   :  { %2360 = vmatprep.subr.mxu1 %v8987_v35  ;;  %14073 = vst [vmem:[#allocation85_spill] sm:$0xff] %v9751_v33  ;;  %v9753_v2 = vpop.f32.mrf.mxu1  ;;  %2200 = vmatpush1.msra.mxu0 %v9758_v20  ;;  %v9762_v30 = vadd.f32 %v717_v58, %v569_v17  ;;  %v9785_v17 = vld [vmem:[%s13864_s23 + $0x3a0] sm:$0xff] }
 0x115   :  { %14074 = vst [vmem:[#allocation86_spill] sm:$0xff] %v9753_v2  ;;  %2361 = vmatpush1.msra.mxu1 %v8999_v39  ;;  %6741 = vmatmul.mubr.msk.f32.gmra.mxu0 %vm119_vm0, %v8750_v41  ;;  %v536_v35 = vpop.f32.mrf.mxu0  ;;  %v9774_v39 = vld [vmem:[%s13864_s23 + $0x3a8] sm:$0xff] }
 0x116   :  { %6749 = vmatmul.mubr.msk.f32.gmra.mxu1 %vm119_vm0, %v8982_v7  ;;  %v723_v45 = vpop.f32.mrf.mxu1  ;;  %1977 = vmatprep.mubr.f32.mxu0 %v13882_v60  ;;  %v571_v2 = vadd.f32 %v536_v35, %v9398_v36 }
 0x117   :  { %2106 = vmatprep.mubr.f32.mxu1 %v13882_v60  ;;  %2201 = vmatprep.subr.mxu0 %v9774_v39  ;;  %v9778_v41 = vpop.f32.mrf.mxu0 }
 0x118   :  { %2362 = vmatprep.subr.mxu1 %v9022_v63  ;;  %14075 = vst [vmem:[#allocation87_spill] sm:$0xff] %v9778_v41  ;;  %v9780_v58 = vpop.f32.mrf.mxu1  ;;  %2202 = vmatpush1.msra.mxu0 %v9785_v17  ;;  %v9789_v36 = vadd.f32 %v723_v45, %v571_v2  ;;  %v9812_v45 = vld [vmem:[%s13864_s23 + $0x390] sm:$0xff] }
 0x119   :  { %14076 = vst [vmem:[#allocation88_spill] sm:$0xff] %v9780_v58  ;;  %2363 = vmatpush1.msra.mxu1 %v9034_v56  ;;  %6742 = vmatmul.mubr.msk.f32.gmra.mxu0 %vm119_vm0, %v8765_v1  ;;  %v542_v63 = vpop.f32.mrf.mxu0  ;;  %v9801_v56 = vld [vmem:[%s13864_s23 + $0x398] sm:$0xff] }
 0x11a   :  { %6750 = vmatmul.mubr.msk.f32.gmra.mxu1 %vm119_vm0, %v9017_v59  ;;  %v729_v35 = vpop.f32.mrf.mxu1  ;;  %1983 = vmatprep.mubr.f32.mxu0 %v13882_v60  ;;  %v573_v58 = vadd.f32 %v542_v63, %v9434_v53 }
 0x11b   :  { %2112 = vmatprep.mubr.f32.mxu1 %v13882_v60  ;;  %2203 = vmatprep.subr.mxu0 %v9801_v56  ;;  %v9805_v1 = vpop.f32.mrf.mxu0 }
 0x11c   :  { %2364 = vmatprep.subr.mxu1 %v9057_v10  ;;  %14077 = vst [vmem:[#allocation89_spill] sm:$0xff] %v9805_v1  ;;  %v9807_v2 = vpop.f32.mrf.mxu1  ;;  %2204 = vmatpush1.msra.mxu0 %v9812_v45  ;;  %v9816_v53 = vadd.f32 %v729_v35, %v573_v58  ;;  %v9825_v10 = vld [vmem:[%s13864_s23 + $0x388] sm:$0xff] }
 0x11d   :  { %14078 = vst [vmem:[#allocation90_spill] sm:$0xff] %v9807_v2  ;;  %2365 = vmatpush1.msra.mxu1 %v9069_v14  ;;  %6743 = vmatmul.mubr.msk.f32.gmra.mxu0 %vm119_vm0, %v8780_v4  ;;  %v9834_v4 = vld [vmem:[%s13864_s23 + $0x380] sm:$0xff]  ;;  %v9850_v2 = vld [vmem:[%s13864_s23 + $0x378] sm:$0xff] }
 0x11e   :  { %6751 = vmatmul.mubr.msk.f32.gmra.mxu1 %vm119_vm0, %v9052_v42  ;;  %2205 = vmatprep.subr.mxu0 %v9825_v10 }
 0x11f   :  { %2366 = vmatprep.subr.mxu1 %v9085_v18  ;;  %1989 = vmatprep.mubr.f32.mxu0 %v13882_v60  ;;  %v548_v14 = vpop.f32.mrf.mxu0 }
 0x120   :  { %2118 = vmatprep.mubr.f32.mxu1 %v13882_v60  ;;  %v735_v58 = vpop.f32.mrf.mxu1  ;;  %2206 = vmatpush1.msra.mxu0 %v9834_v4  ;;  %v575_v63 = vadd.f32 %v548_v14, %v9494_v0  ;;  %v9866_v0 = vld [vmem:[%s13864_s23 + $0x368] sm:$0xff] }
 0x121   :  { %2367 = vmatpush1.msra.mxu1 %v9104_v26  ;;  %6744 = vmatmul.mubr.msk.f32.gmra.mxu0 %vm119_vm0, %v8795_v6  ;;  %v9843_v18 = vpop.f32.mrf.mxu0  ;;  %v9859_v6 = vld [vmem:[%s13864_s23 + $0x370] sm:$0xff] }
 0x122   :  { %6752 = vmatmul.mubr.msk.f32.gmra.mxu1 %vm119_vm0, %v9097_v22  ;;  %14079 = vst [vmem:[#allocation91_spill] sm:$0xff] %v9843_v18  ;;  %v9845_v35 = vpop.f32.mrf.mxu1  ;;  %2207 = vmatprep.subr.mxu0 %v9850_v2  ;;  %v9854_v26 = vadd.f32 %v735_v58, %v575_v63  ;;  %v9875_v58 = vld [vmem:[%s13864_s23 + $0x360] sm:$0xff] }
 0x123   :  { %14080 = vst [vmem:[#allocation92_spill] sm:$0xff] %v9845_v35  ;;  %2368 = vmatprep.subr.mxu1 %v9120_v28  ;;  %2208 = vmatpush1.msra.mxu0 %v9859_v6  ;;  %v9891_v35 = vld [vmem:[%s13864_s23 + $0x358] sm:$0xff] }
 0x124   :  { %2369 = vmatpush1.msra.mxu1 %v9132_v13  ;;  %2209 = vmatprep.subr.mxu0 %v9866_v0 }
 0x125   :  { %2370 = vmatprep.subr.mxu1 %v9144_v40  ;;  %1995 = vmatprep.mubr.f32.mxu0 %v13882_v60  ;;  %v554_v28 = vpop.f32.mrf.mxu0 }
 0x126   :  { %2124 = vmatprep.mubr.f32.mxu1 %v13882_v60  ;;  %v741_v14 = vpop.f32.mrf.mxu1  ;;  %2210 = vmatpush1.msra.mxu0 %v9875_v58  ;;  %v577_v13 = vadd.f32 %v554_v28, %v9554_v47  ;;  %v9907_v47 = vld [vmem:[%s13864_s23 + $0x348] sm:$0xff] }
 0x127   :  { %2371 = vmatpush1.msra.mxu1 %v9163_v44  ;;  %6745 = vmatmul.mubr.msk.f32.gmra.mxu0 %vm119_vm0, %v8814_v8  ;;  %v9884_v40 = vpop.f32.mrf.mxu0  ;;  %v9900_v8 = vld [vmem:[%s13864_s23 + $0x350] sm:$0xff] }
 0x128   :  { %6753 = vmatmul.mubr.msk.f32.gmra.mxu1 %vm119_vm0, %v9156_v43  ;;  %14081 = vst [vmem:[#allocation93_spill] sm:$0xff] %v9884_v40  ;;  %v9886_v63 = vpop.f32.mrf.mxu1  ;;  %2211 = vmatprep.subr.mxu0 %v9891_v35  ;;  %v9895_v44 = vadd.f32 %v741_v14, %v577_v13  ;;  %v9916_v14 = vld [vmem:[%s13864_s23 + $0x340] sm:$0xff] }
 0x129   :  { %14082 = vst [vmem:[#allocation94_spill] sm:$0xff] %v9886_v63  ;;  %2372 = vmatprep.subr.mxu1 %v9179_v46  ;;  %2212 = vmatpush1.msra.mxu0 %v9900_v8  ;;  %v9932_v63 = vld [vmem:[%s13864_s23 + $0x338] sm:$0xff]  ;;  %v10000_v40 = vld [vmem:[%s13634_s0 + $0x81] sm:$0xff] }
 0x12a   :  { %2373 = vmatpush1.msra.mxu1 %v9191_v23  ;;  %2213 = vmatprep.subr.mxu0 %v9907_v47 }
 0x12b   :  { %2374 = vmatprep.subr.mxu1 %v9203_v51  ;;  %2001 = vmatprep.mubr.f32.mxu0 %v13882_v60  ;;  %v560_v46 = vpop.f32.mrf.mxu0 }
 0x12c   :  { %2130 = vmatprep.mubr.f32.mxu1 %v13882_v60  ;;  %v747_v28 = vpop.f32.mrf.mxu1  ;;  %2214 = vmatpush1.msra.mxu0 %v9916_v14  ;;  %v579_v23 = vadd.f32 %v560_v46, %v9614_v9  ;;  %v9948_v9 = vld [vmem:[%s13864_s23 + $0x328] sm:$0xff] }
 0x12d   :  { %2375 = vmatpush1.msra.mxu1 %v9222_v57  ;;  %6746 = vmatmul.mubr.msk.f32.gmra.mxu0 %vm119_vm0, %v8833_v3  ;;  %v9925_v51 = vpop.f32.mrf.mxu0  ;;  %v9941_v3 = vld [vmem:[%s13864_s23 + $0x330] sm:$0xff] }
 0x12e   :  { %6754 = vmatmul.mubr.msk.f32.gmra.mxu1 %vm119_vm0, %v9215_v52  ;;  %14083 = vst [vmem:[#allocation95_spill] sm:$0xff] %v9925_v51  ;;  %v9927_v13 = vpop.f32.mrf.mxu1  ;;  %2215 = vmatprep.subr.mxu0 %v9932_v63  ;;  %v9936_v57 = vadd.f32 %v747_v28, %v579_v23  ;;  %v9993_v51 = vld [vmem:[%s13864_s23 + $0x308] sm:$0xff] }
 0x12f   :  { %14084 = vst [vmem:[#allocation96_spill] sm:$0xff] %v9927_v13  ;;  %2376 = vmatprep.subr.mxu1 %v9238_v48  ;;  %2216 = vmatpush1.msra.mxu0 %v9941_v3  ;;  %v9977_v13 = vld [vmem:[%s13864_s23 + $0x318] sm:$0xff] }
 0x130   :  { %2377 = vmatpush1.msra.mxu1 %v9250_v29  ;;  %2217 = vmatprep.subr.mxu0 %v9948_v9  ;;  %v9959_v29 = vld [vmem:[%s13864_s23 + $0x320] sm:$0xff] }
 0x131   :  { %2378 = vmatprep.subr.mxu1 %v9262_v15  ;;  %2007 = vmatprep.mubr.f32.mxu0 %v13882_v60  ;;  %v891_v48 = vpop.f32.mrf.mxu0 }
 0x132   :  { %2136 = vmatprep.mubr.f32.mxu1 %v13882_v60  ;;  %v9954_v46 = vpop.f32.mrf.mxu1  ;;  %2218 = vmatpush1.msra.mxu0 %v9959_v29  ;;  %v9964_v28 = vadd.f32 %v891_v48, %v9695_v27 }
 0x133   :  { %2379 = vmatpush1.msra.mxu1 %v9281_v61  ;;  %6747 = vmatmul.mubr.msk.f32.gmra.mxu0 %vm119_vm0, %v8852_v24  ;;  %v9970_v15 = vpop.f32.mrf.mxu0  ;;  %v9984_v24 = vld [vmem:[%s13864_s23 + $0x310] sm:$0xff] }
 0x134   :  { %6755 = vmatmul.mubr.msk.f32.gmra.mxu1 %vm119_vm0, %v9274_v32  ;;  %14085 = vst [vmem:[#allocation97_spill] sm:$0xff] %v9970_v15  ;;  %v9972_v23 = vpop.f32.mrf.mxu1  ;;  %2219 = vmatprep.subr.mxu0 %v9977_v13  ;;  %v14087_v61 = vld [vmem:[#allocation52_spill] sm:$0xff]  ;;  %v14091_v15 = vld [vmem:[#allocation31_spill] sm:$0xff] }
 0x135   :  { %14086 = vst [vmem:[#allocation98_spill] sm:$0xff] %v9972_v23  ;;  %2380 = vmatprep.subr.mxu1 %v9303_v62  ;;  %2220 = vmatpush1.msra.mxu0 %v9984_v24  ;;  %v897_v27 = vpop.f32.mrf.mxu0  ;;  %v14088_v62 = vld [vmem:[#allocation16_spill] sm:$0xff]  ;;  %v14106_v23 = vld [vmem:[#allocation27_spill] sm:$0xff] }
 0x136   :  { %2381 = vmatpush1.msra.mxu1 %v14087_v61  ;;  %v9988_v48 = vpop.f32.mrf.mxu1  ;;  %2221 = vmatprep.subr.mxu0 %v9993_v51  ;;  %v10003_v18 = vadd.f32 %v897_v27, %v9735_v19  ;;  %v10008_v61 = vld [vmem:[%s13864_s23 + $0x300] sm:$0xff] }
 0x137   :  { %2382 = vmatprep.subr.mxu1 %v14088_v62  ;;  %2222 = vmatpush1.msra.mxu0 %v10008_v61  ;;  %v10012_v1 = vpop.f32.mrf.mxu0  ;;  %v7638_v19 = vld [vmem:[%s13634_s0 + $0x1] sm:$0xff] }
 0x138   :  { %2255 = vmatprep.mubr.f32.mxu0 %v13882_v60  ;;  %14089 = vst [vmem:[#allocation52_spill] sm:$0xff] %v10012_v1  ;;  %v10014_v62 = vpop.f32.mrf.mxu1  ;;  %2383 = vmatpush1.msra.mxu1 %v9341_v12  ;;  %v10031_v12 = vld [vmem:[%s13634_s0 + $0x89] sm:$0xff] }
 0x139   :  { %14090 = vst [vmem:[#allocation16_spill] sm:$0xff] %v10014_v62  ;;  %2416 = vmatprep.mubr.f32.mxu1 %v13882_v60  ;;  %6764 = vmatmul.mubr.msk.f32.vlgmr.msra.gmra.mxu0 %vm119_vm0, %v10000_v40  ;;  %v903_v27 = vpop.f32.mrf.mxu0  ;;  %v14099_v62 = vld [vmem:[#allocation23_spill] sm:$0xff] }
 0x13a   :  { %6772 = vmatmul.mubr.msk.f32.vlgmr.msra.gmra.mxu1 %vm119_vm0, %v7638_v19  ;;  %v10024_v41 = vpop.f32.mrf.mxu1  ;;  %2261 = vmatprep.mubr.f32.mxu0 %v13882_v60  ;;  %v10034_v1 = vadd.f32 %v903_v27, %v9762_v30  ;;  %v7639_v30 = vld [vmem:[%s13634_s0 + $0x9] sm:$0xff] }
 0x13b   :  { %2422 = vmatprep.mubr.f32.mxu1 %v13882_v60  ;;  %2473 = vmatprep.subr.mxu0 %v14091_v15  ;;  %v10038_v19 = vpop.f32.mrf.mxu0 }
 0x13c   :  { %2586 = vmatprep.subr.mxu1 %v9367_v37  ;;  %14092 = vst [vmem:[#allocation31_spill] sm:$0xff] %v10038_v19  ;;  %v10040_v33 = vpop.f32.mrf.mxu1  ;;  %2474 = vmatpush1.msra.mxu0 %v14094_v49  ;;  %v10057_v37 = vld [vmem:[%s13634_s0 + $0x91] sm:$0xff]  ;;  %v14095_v49 = vld [vmem:[#allocation34_spill] sm:$0xff] }
 0x13d   :  { %14093 = vst [vmem:[#allocation99_spill] sm:$0xff] %v10040_v33  ;;  %2587 = vmatpush1.msra.mxu1 %v9383_v16  ;;  %6765 = vmatmul.mubr.msk.f32.gmra.mxu0 %vm119_vm0, %v10031_v12  ;;  %v909_v15 = vpop.f32.mrf.mxu0  ;;  %v14098_v33 = vld [vmem:[#allocation3_spill] sm:$0xff] }
 0x13e   :  { %6773 = vmatmul.mubr.msk.f32.gmra.mxu1 %vm119_vm0, %v7639_v30  ;;  %v10050_v27 = vpop.f32.mrf.mxu1  ;;  %2267 = vmatprep.mubr.f32.mxu0 %v13882_v60  ;;  %v10060_v16 = vadd.f32 %v909_v15, %v9789_v36  ;;  %v7640_v36 = vld [vmem:[%s13634_s0 + $0x11] sm:$0xff] }
 0x13f   :  { %2428 = vmatprep.mubr.f32.mxu1 %v13882_v60  ;;  %2475 = vmatprep.subr.mxu0 %v14095_v49  ;;  %v10064_v30 = vpop.f32.mrf.mxu0 }
 0x140   :  { %2588 = vmatprep.subr.mxu1 %v9403_v50  ;;  %14096 = vst [vmem:[#allocation2_spill] sm:$0xff] %v10064_v30  ;;  %v10066_v19 = vpop.f32.mrf.mxu1  ;;  %2476 = vmatpush1.msra.mxu0 %v14098_v33  ;;  %v10083_v50 = vld [vmem:[%s13634_s0 + $0x99] sm:$0xff] }
 0x141   :  { %14097 = vst [vmem:[#allocation34_spill] sm:$0xff] %v10066_v19  ;;  %2589 = vmatpush1.msra.mxu1 %v14099_v62  ;;  %6766 = vmatmul.mubr.msk.f32.gmra.mxu0 %vm119_vm0, %v10057_v37  ;;  %v915_v15 = vpop.f32.mrf.mxu0  ;;  %14100 = vst [vmem:[#allocation3_spill] sm:$0xff] %v10083_v50  ;;  %v14102_v62 = vld [vmem:[#allocation36_spill] sm:$0xff] }
 0x142   :  { %6774 = vmatmul.mubr.msk.f32.gmra.mxu1 %vm119_vm0, %v7640_v36  ;;  %v10076_v49 = vpop.f32.mrf.mxu1  ;;  %2273 = vmatprep.mubr.f32.mxu0 %v13882_v60  ;;  %v10086_v33 = vadd.f32 %v915_v15, %v9816_v53  ;;  %v14105_v19 = vld [vmem:[#allocation4_spill] sm:$0xff]  ;;  %v7641_v53 = vld [vmem:[%s13634_s0 + $0x19] sm:$0xff] }
 0x143   :  { %2434 = vmatprep.mubr.f32.mxu1 %v13882_v60  ;;  %2477 = vmatprep.subr.mxu0 %v14102_v62  ;;  %v10090_v36 = vpop.f32.mrf.mxu0  ;;  %v14107_v15 = vld [vmem:[#allocation38_spill] sm:$0xff] }
 0x144   :  { %14101 = vst [vmem:[#allocation23_spill] sm:$0xff] %v10086_v33  ;;  %2590 = vmatprep.subr.mxu1 %v9439_v21  ;;  %14103 = vst [vmem:[#allocation36_spill] sm:$0xff] %v10090_v36  ;;  %v10092_v30 = vpop.f32.mrf.mxu1  ;;  %2478 = vmatpush1.msra.mxu0 %v14105_v19  ;;  %v14108_v21 = vld [vmem:[#allocation28_spill] sm:$0xff]  ;;  %v10107_v62 = vld [vmem:[%s13634_s0 + $0xa1] sm:$0xff] }
 0x145   :  { %14104 = vst [vmem:[#allocation100_spill] sm:$0xff] %v10092_v30  ;;  %2591 = vmatpush1.msra.mxu1 %v14106_v23  ;;  %6767 = vmatmul.mubr.msk.f32.gmra.mxu0 %vm119_vm0, %v10083_v50  ;;  %14109 = vst [vmem:[#allocation4_spill] sm:$0xff] %v10107_v62  ;;  %v14110_v36 = vld [vmem:[#allocation5_spill] sm:$0xff]  ;;  %v14111_v30 = vld [vmem:[#allocation30_spill] sm:$0xff] }
 0x146   :  { %6775 = vmatmul.mubr.msk.f32.gmra.mxu1 %vm119_vm0, %v7641_v53  ;;  %2479 = vmatprep.subr.mxu0 %v14107_v15  ;;  %v7642_v15 = vld [vmem:[%s13634_s0 + $0x21] sm:$0xff]  ;;  %v14114_v33 = vld [vmem:[#allocation40_spill] sm:$0xff] }
 0x147   :  { %2592 = vmatprep.subr.mxu1 %v14108_v21  ;;  %2279 = vmatprep.mubr.f32.mxu0 %v13882_v60  ;;  %v921_v23 = vpop.f32.mrf.mxu0 }
 0x148   :  { %2440 = vmatprep.mubr.f32.mxu1 %v13882_v60  ;;  %v10111_v19 = vpop.f32.mrf.mxu1  ;;  %2480 = vmatpush1.msra.mxu0 %v14110_v36  ;;  %v10116_v53 = vadd.f32 %v921_v23, %v9854_v26  ;;  %v14116_v26 = vld [vmem:[#allocation35_spill] sm:$0xff] }
 0x149   :  { %2593 = vmatpush1.msra.mxu1 %v14111_v30  ;;  %6768 = vmatmul.mubr.msk.f32.gmra.mxu0 %vm119_vm0, %v10107_v62  ;;  %v10124_v21 = vpop.f32.mrf.mxu0  ;;  %v14115_v30 = vld [vmem:[#allocation6_spill] sm:$0xff]  ;;  %v14117_v36 = vld [vmem:[#allocation7_spill] sm:$0xff]  ;;  %v14124_v62 = vld [vmem:[#allocation8_spill] sm:$0xff] }
 0x14a   :  { %6776 = vmatmul.mubr.msk.f32.gmra.mxu1 %vm119_vm0, %v7642_v15  ;;  %14112 = vst [vmem:[#allocation27_spill] sm:$0xff] %v10124_v21  ;;  %v10126_v50 = vpop.f32.mrf.mxu1  ;;  %2481 = vmatprep.subr.mxu0 %v14114_v33  ;;  %v14118_v23 = vld [vmem:[#allocation39_spill] sm:$0xff] }
 0x14b   :  { %14113 = vst [vmem:[#allocation38_spill] sm:$0xff] %v10126_v50  ;;  %2594 = vmatprep.subr.mxu1 %v9507_v34  ;;  %2482 = vmatpush1.msra.mxu0 %v14115_v30  ;;  %v10137_v15 = vld [vmem:[%s13634_s0 + $0xa9] sm:$0xff]  ;;  %v14121_v30 = vld [vmem:[#allocation41_spill] sm:$0xff] }
 0x14c   :  { %2595 = vmatpush1.msra.mxu1 %v14116_v26  ;;  %2483 = vmatprep.subr.mxu0 %v14117_v36  ;;  %14119 = vst [vmem:[#allocation28_spill] sm:$0xff] %v10137_v15  ;;  %v14120_v34 = vld [vmem:[#allocation44_spill] sm:$0xff] }
 0x14d   :  { %2596 = vmatprep.subr.mxu1 %v14118_v23  ;;  %2285 = vmatprep.mubr.f32.mxu0 %v13882_v60  ;;  %v927_v33 = vpop.f32.mrf.mxu0  ;;  %v7643_v36 = vld [vmem:[%s13634_s0 + $0x29] sm:$0xff] }
 0x14e   :  { %2446 = vmatprep.mubr.f32.mxu1 %v13882_v60  ;;  %v10141_v21 = vpop.f32.mrf.mxu1  ;;  %2484 = vmatpush1.msra.mxu0 %v14120_v34  ;;  %v10146_v26 = vadd.f32 %v927_v33, %v9895_v44  ;;  %v14125_v34 = vld [vmem:[#allocation9_spill] sm:$0xff]  ;;  %v14126_v44 = vld [vmem:[#allocation46_spill] sm:$0xff]  ;;  %v14127_v33 = vld [vmem:[#allocation47_spill] sm:$0xff] }
 0x14f   :  { %2597 = vmatpush1.msra.mxu1 %v14121_v30  ;;  %6769 = vmatmul.mubr.msk.f32.gmra.mxu0 %vm119_vm0, %v10137_v15  ;;  %v10154_v23 = vpop.f32.mrf.mxu0  ;;  %v14128_v30 = vld [vmem:[#allocation64_spill] sm:$0xff]  ;;  %v14135_v15 = vld [vmem:[#allocation49_spill] sm:$0xff] }
 0x150   :  { %6777 = vmatmul.mubr.msk.f32.gmra.mxu1 %vm119_vm0, %v7643_v36  ;;  %14122 = vst [vmem:[#allocation5_spill] sm:$0xff] %v10154_v23  ;;  %v10156_v50 = vpop.f32.mrf.mxu1  ;;  %2485 = vmatprep.subr.mxu0 %v14124_v62  ;;  %v10167_v36 = vld [vmem:[%s13634_s0 + $0xb1] sm:$0xff] }
 0x151   :  { %14123 = vst [vmem:[#allocation30_spill] sm:$0xff] %v10156_v50  ;;  %2598 = vmatprep.subr.mxu1 %v9567_v54  ;;  %2486 = vmatpush1.msra.mxu0 %v14125_v34  ;;  %14129 = vst [vmem:[#allocation40_spill] sm:$0xff] %v10167_v36  ;;  %v14130_v54 = vld [vmem:[#allocation10_spill] sm:$0xff] }
 0x152   :  { %2599 = vmatpush1.msra.mxu1 %v14126_v44  ;;  %2487 = vmatprep.subr.mxu0 %v14127_v33  ;;  %v14131_v34 = vld [vmem:[#allocation66_spill] sm:$0xff]  ;;  %v7644_v33 = vld [vmem:[%s13634_s0 + $0x31] sm:$0xff] }
 0x153   :  { %2600 = vmatprep.subr.mxu1 %v14128_v30  ;;  %2291 = vmatprep.mubr.f32.mxu0 %v13882_v60  ;;  %v933_v62 = vpop.f32.mrf.mxu0 }
 0x154   :  { %2452 = vmatprep.mubr.f32.mxu1 %v13882_v60  ;;  %v10171_v23 = vpop.f32.mrf.mxu1  ;;  %2488 = vmatpush1.msra.mxu0 %v14130_v54  ;;  %v10176_v44 = vadd.f32 %v933_v62, %v9936_v57  ;;  %v14136_v54 = vld [vmem:[#allocation11_spill] sm:$0xff]  ;;  %v14138_v62 = vld [vmem:[#allocation50_spill] sm:$0xff] }
 0x155   :  { %2601 = vmatpush1.msra.mxu1 %v14131_v34  ;;  %6770 = vmatmul.mubr.msk.f32.gmra.mxu0 %vm119_vm0, %v10167_v36  ;;  %v10184_v30 = vpop.f32.mrf.mxu0  ;;  %v14137_v57 = vld [vmem:[#allocation71_spill] sm:$0xff]  ;;  %v14139_v34 = vld [vmem:[#allocation73_spill] sm:$0xff] }
 0x156   :  { %14132 = vst [vmem:[#allocation6_spill] sm:$0xff] %v10176_v44  ;;  %6778 = vmatmul.mubr.msk.f32.gmra.mxu1 %vm119_vm0, %v7644_v33  ;;  %14133 = vst [vmem:[#allocation35_spill] sm:$0xff] %v10184_v30  ;;  %v10186_v50 = vpop.f32.mrf.mxu1  ;;  %2489 = vmatprep.subr.mxu0 %v14135_v15  ;;  %v10197_v33 = vld [vmem:[%s13634_s0 + $0xb9] sm:$0x7f] }
 0x157   :  { %14134 = vst [vmem:[#allocation7_spill] sm:$0xff] %v10186_v50  ;;  %2602 = vmatprep.subr.mxu1 %v9627_v55  ;;  %2490 = vmatpush1.msra.mxu0 %v14136_v54  ;;  %14140 = vst [vmem:[#allocation39_spill] sm:$0xff] %v10197_v33  ;;  %v14141_v54 = vld [vmem:[#allocation12_spill] sm:$0xff]  ;;  %v14144_v50 = vld [vmem:[#allocation14_spill] sm:$0xff] }
 0x158   :  { %2603 = vmatpush1.msra.mxu1 %v14137_v57  ;;  %2491 = vmatprep.subr.mxu0 %v14138_v62  ;;  %v14142_v57 = vld [vmem:[#allocation75_spill] sm:$0xff]  ;;  %v7645_v62 = vld [vmem:[%s13634_s0 + $0x39] sm:$0x7f] }
 0x159   :  { %2604 = vmatprep.subr.mxu1 %v14139_v34  ;;  %2297 = vmatprep.mubr.f32.mxu0 %v13882_v60  ;;  %v10201_v15 = vpop.f32.mrf.mxu0  ;;  %v14146_v36 = vld [vmem:[#allocation53_spill] sm:$0xff] }
 0x15a   :  { %2458 = vmatprep.mubr.f32.mxu1 %v13882_v60  ;;  %v10203_v55 = vpop.f32.mrf.mxu1  ;;  %2492 = vmatpush1.msra.mxu0 %v14141_v54  ;;  %v14145_v54 = vld [vmem:[#allocation15_spill] sm:$0xff]  ;;  %v14147_v44 = vld [vmem:[#allocation81_spill] sm:$0xff] }
 0x15b   :  { %2605 = vmatpush1.msra.mxu1 %v14142_v57  ;;  %6771 = vmatmul.mubr.msk.f32.gmra.mxu0 %vm119_vm0, %v10197_v33  ;;  %v10213_v34 = vpop.f32.mrf.mxu0 }
 0x15c   :  { %6779 = vmatmul.mubr.msk.f32.gmra.mxu1 %vm119_vm0, %v7645_v62  ;;  %v10215_v30 = vpop.f32.mrf.mxu1  ;;  %2493 = vmatprep.subr.mxu0 %v14144_v50  ;;  %v14148_v62 = vld [vmem:[#allocation18_spill] sm:$0xff] }
 0x15d   :  { %14143 = vst [vmem:[#allocation44_spill] sm:$0xff] %v10215_v30  ;;  %2606 = vmatprep.subr.mxu1 %v9686_v5  ;;  %2494 = vmatpush1.msra.mxu0 %v14145_v54  ;;  %v10221_v57 = vpop.f32.mrf.mxu0  ;;  %v7646_v5 = vld [vmem:[%s13864_s23 + $0x180] sm:$0xff]  ;;  %v14149_v54 = vld [vmem:[#allocation19_spill] sm:$0xff] }
 0x15e   :  { %2607 = vmatpush1.msra.mxu1 %v9700_v25  ;;  %v10223_v33 = vpop.f32.mrf.mxu1  ;;  %2495 = vmatprep.subr.mxu0 %v14146_v36  ;;  %v7647_v25 = vld [vmem:[%s13634_s0 + $0xc0] sm:$0xff] }
 0x15f   :  { %2608 = vmatprep.subr.mxu1 %v14147_v44  ;;  %2496 = vmatpush1.msra.mxu0 %v14148_v62  ;;  %v10229_v30 = vpop.f32.mrf.mxu0 }
 0x160   :  { %2529 = vmatprep.mubr.f32.mxu0 %v13882_v60  ;;  %v10231_v50 = vpop.f32.mrf.mxu1  ;;  %2609 = vmatpush1.msra.mxu1 %v7646_v5 }
 0x161   :  { %2642 = vmatprep.mubr.f32.mxu1 %v13882_v60  ;;  %6780 = vmatmul.mubr.msk.f32.vlgmr.msra.gmra.mxu0 %vm119_vm0, %v7647_v25  ;;  %v10243_v36 = vpop.f32.mrf.mxu0  ;;  %v14151_v25 = vld [vmem:[#allocation56_spill] sm:$0xff] }
 0x162   :  { %6788 = vmatmul.mubr.msk.f32.vlgmr.msra.gmra.mxu1 %vm119_vm0, %v8967_v31  ;;  %v10245_v44 = vpop.f32.mrf.mxu1  ;;  %2535 = vmatprep.mubr.f32.mxu0 %v13882_v60  ;;  %v7648_v31 = vld [vmem:[%s13634_s0 + $0xc8] sm:$0xff] }
 0x163   :  { %2648 = vmatprep.mubr.f32.mxu1 %v13882_v60  ;;  %2715 = vmatprep.subr.mxu0 %v14149_v54  ;;  %v10251_v62 = vpop.f32.mrf.mxu0 }
 0x164   :  { %2876 = vmatprep.subr.mxu1 %v9747_v38  ;;  %v10253_v5 = vpop.f32.mrf.mxu1  ;;  %2716 = vmatpush1.msra.mxu0 %v14151_v25  ;;  %v14152_v25 = vld [vmem:[#allocation21_spill] sm:$0xff] }
 0x165   :  { %14150 = vst [vmem:[#allocation41_spill] sm:$0xff] %v10253_v5  ;;  %2877 = vmatpush1.msra.mxu1 %v9758_v20  ;;  %6781 = vmatmul.mubr.msk.f32.gmra.mxu0 %vm119_vm0, %v7648_v31  ;;  %v10263_v54 = vpop.f32.mrf.mxu0  ;;  %v14154_v31 = vld [vmem:[#allocation24_spill] sm:$0xff] }
 0x166   :  { %6789 = vmatmul.mubr.msk.f32.gmra.mxu1 %vm119_vm0, %v8982_v7  ;;  %v10265_v38 = vpop.f32.mrf.mxu1  ;;  %2541 = vmatprep.mubr.f32.mxu0 %v13882_v60  ;;  %v7649_v7 = vld [vmem:[%s13634_s0 + $0xd0] sm:$0xff] }
 0x167   :  { %2654 = vmatprep.mubr.f32.mxu1 %v13882_v60  ;;  %2717 = vmatprep.subr.mxu0 %v14152_v25  ;;  %v10271_v20 = vpop.f32.mrf.mxu0 }
 0x168   :  { %2878 = vmatprep.subr.mxu1 %v9774_v39  ;;  %v10273_v5 = vpop.f32.mrf.mxu1  ;;  %2718 = vmatpush1.msra.mxu0 %v14154_v31  ;;  %v14155_v31 = vld [vmem:[#allocation25_spill] sm:$0xff] }
 0x169   :  { %14153 = vst [vmem:[#allocation8_spill] sm:$0xff] %v10273_v5  ;;  %2879 = vmatpush1.msra.mxu1 %v9785_v17  ;;  %6782 = vmatmul.mubr.msk.f32.gmra.mxu0 %vm119_vm0, %v7649_v7  ;;  %v10283_v25 = vpop.f32.mrf.mxu0  ;;  %v14157_v7 = vld [vmem:[#allocation59_spill] sm:$0xff] }
 0x16a   :  { %6790 = vmatmul.mubr.msk.f32.gmra.mxu1 %vm119_vm0, %v9017_v59  ;;  %v10285_v39 = vpop.f32.mrf.mxu1  ;;  %2547 = vmatprep.mubr.f32.mxu0 %v13882_v60  ;;  %v7650_v59 = vld [vmem:[%s13634_s0 + $0xd8] sm:$0xff] }
 0x16b   :  { %2660 = vmatprep.mubr.f32.mxu1 %v13882_v60  ;;  %2719 = vmatprep.subr.mxu0 %v14155_v31  ;;  %v10291_v17 = vpop.f32.mrf.mxu0  ;;  %v14158_v31 = vld [vmem:[#allocation29_spill] sm:$0xff] }
 0x16c   :  { %2880 = vmatprep.subr.mxu1 %v9801_v56  ;;  %v10293_v5 = vpop.f32.mrf.mxu1  ;;  %2720 = vmatpush1.msra.mxu0 %v14157_v7  ;;  %v14159_v7 = vld [vmem:[#allocation60_spill] sm:$0xff] }
 0x16d   :  { %14156 = vst [vmem:[#allocation9_spill] sm:$0xff] %v10293_v5  ;;  %2881 = vmatpush1.msra.mxu1 %v9812_v45  ;;  %6783 = vmatmul.mubr.msk.f32.gmra.mxu0 %vm119_vm0, %v7650_v59  ;;  %v14161_v5 = vld [vmem:[#allocation37_spill] sm:$0xff] }
 0x16e   :  { %6791 = vmatmul.mubr.msk.f32.gmra.mxu1 %vm119_vm0, %v9052_v42  ;;  %2721 = vmatprep.subr.mxu0 %v14158_v31  ;;  %v7651_v42 = vld [vmem:[%s13634_s0 + $0xe0] sm:$0xff]  ;;  %v14160_v31 = vld [vmem:[#allocation61_spill] sm:$0xff] }
 0x16f   :  { %2882 = vmatprep.subr.mxu1 %v9825_v10  ;;  %2553 = vmatprep.mubr.f32.mxu0 %v13882_v60  ;;  %v10307_v56 = vpop.f32.mrf.mxu0 }
 0x170   :  { %2666 = vmatprep.mubr.f32.mxu1 %v13882_v60  ;;  %v10309_v45 = vpop.f32.mrf.mxu1  ;;  %2722 = vmatpush1.msra.mxu0 %v14159_v7  ;;  %v956_v7 = vlaneseq }
 0x171   :  { %2883 = vmatpush1.msra.mxu1 %v9834_v4  ;;  %6784 = vmatmul.mubr.msk.f32.gmra.mxu0 %vm119_vm0, %v7651_v42  ;;  %v10319_v10 = vpop.f32.mrf.mxu0  ;;  %v14162_v4 = vld [vmem:[#allocation62_spill] sm:$0xff] }
 0x172   :  { %6792 = vmatmul.mubr.msk.f32.gmra.mxu1 %vm119_vm0, %v9097_v22  ;;  %v10321_v59 = vpop.f32.mrf.mxu1  ;;  %2723 = vmatprep.subr.mxu0 %v14160_v31  ;;  %v14163_v31 = vld [vmem:[#allocation42_spill] sm:$0xff] }
 0x173   :  { %2884 = vmatprep.subr.mxu1 %v9850_v2  ;;  %2724 = vmatpush1.msra.mxu0 %v14161_v5  ;;  %v10337_v2 = vshrl.u32 %v956_v7, 7  ;;  %v14167_v7 = vld [vmem:[#allocation65_spill] sm:$0xff] }
 0x174   :  { %2885 = vmatpush1.msra.mxu1 %v9859_v6  ;;  %2725 = vmatprep.subr.mxu0 %v14162_v4  ;;  %v7652_v6 = vld [vmem:[%s13634_s0 + $0xe8] sm:$0xff]  ;;  %v14165_v4 = vld [vmem:[#allocation45_spill] sm:$0xff] }
 0x175   :  { %2886 = vmatprep.subr.mxu1 %v9866_v0  ;;  %2559 = vmatprep.mubr.f32.mxu0 %v13882_v60  ;;  %v10331_v22 = vpop.f32.mrf.mxu0  ;;  %14164 = vst [vmem:[#allocation46_spill] sm:$0xff] %v10337_v2 }
 0x176   :  { %2672 = vmatprep.mubr.f32.mxu1 %v13882_v60  ;;  %v10333_v42 = vpop.f32.mrf.mxu1  ;;  %2726 = vmatpush1.msra.mxu0 %v14163_v31  ;;  %v14169_v31 = vld [vmem:[#allocation70_spill] sm:$0xff] }
 0x177   :  { %2887 = vmatpush1.msra.mxu1 %v9875_v58  ;;  %6785 = vmatmul.mubr.msk.f32.gmra.mxu0 %vm119_vm0, %v7652_v6  ;;  %v10345_v0 = vpop.f32.mrf.mxu0  ;;  %v14166_v58 = vld [vmem:[#allocation48_spill] sm:$0xff] }
 0x178   :  { %6793 = vmatmul.mubr.msk.f32.gmra.mxu1 %vm119_vm0, %v9156_v43  ;;  %v10347_v5 = vpop.f32.mrf.mxu1  ;;  %2727 = vmatprep.subr.mxu0 %v14165_v4  ;;  %v7653_v4 = vld [vmem:[%s13634_s0 + $0xf0] sm:$0xff] }
 0x179   :  { %2888 = vmatprep.subr.mxu1 %v9891_v35  ;;  %2728 = vmatpush1.msra.mxu0 %v14166_v58  ;;  %v10365_v35 = vld [vmem:[%s13635_s2] sm:$0x3] }
 0x17a   :  { %2889 = vmatpush1.msra.mxu1 %v9900_v8  ;;  %2729 = vmatprep.subr.mxu0 %v14167_v7  ;;  %v14168_v8 = vld [vmem:[#allocation67_spill] sm:$0xff] }
 0x17b   :  { %2890 = vmatprep.subr.mxu1 %v9907_v47  ;;  %2565 = vmatprep.mubr.f32.mxu0 %v13882_v60  ;;  %v10358_v43 = vpop.f32.mrf.mxu0  ;;  %v1178_v47 = vadd.f32 %v10201_v15, %v9954_v46  ;;  %v14172_v15 = vld [vmem:[#allocation72_spill] sm:$0xff] }
 0x17c   :  { %2678 = vmatprep.mubr.f32.mxu1 %v13882_v60  ;;  %v10360_v6 = vpop.f32.mrf.mxu1  ;;  %2730 = vmatpush1.msra.mxu0 %v14168_v8  ;;  %v14173_v8 = vld [vmem:[#allocation74_spill] sm:$0xff] }
 0x17d   :  { %2891 = vmatpush1.msra.mxu1 %v9916_v14  ;;  %6786 = vmatmul.mubr.msk.f32.gmra.mxu0 %vm119_vm0, %v7653_v4  ;;  %v10377_v58 = vpop.f32.mrf.mxu0  ;;  %v14170_v14 = vsub.s32 0, %v10337_v2 }
 0x17e   :  { %6794 = vmatmul.mubr.msk.f32.gmra.mxu1 %vm119_vm0, %v9215_v52  ;;  %v10379_v7 = vpop.f32.mrf.mxu1  ;;  %2731 = vmatprep.subr.mxu0 %v14169_v31  ;;  %v1337_v52 = vadd.f32 %v10203_v55, %v1178_v47  ;;  %v1184_v31 = vadd.f32 %v10221_v57, %v9988_v48  ;;  %v14175_v57 = vld [vmem:[#allocation79_spill] sm:$0xff]  ;;  %v14176_v47 = vld [vmem:[#allocation80_spill] sm:$0xff] }
 0x17f   :  { %2892 = vmatprep.subr.mxu1 %v9932_v63  ;;  %v10386_v46 = vrot.slane %v10365_v35, %v14170_v14  ;;  %2732 = vmatpush1.msra.mxu0 %v14172_v15  ;;  %v14174_v14 = vld [vmem:[#allocation76_spill] sm:$0xff] }
 0x180   :  { %2893 = vmatpush1.msra.mxu1 %v9941_v3  ;;  %2733 = vmatprep.subr.mxu0 %v14173_v8  ;;  %v1190_v8 = vadd.f32 %v10243_v36, %v10024_v41 }
 0x181   :  { %14171 = vst [vmem:[#allocation47_spill] sm:$0xff] %v10386_v46  ;;  %2894 = vmatprep.subr.mxu1 %v9948_v9  ;;  %2571 = vmatprep.mubr.f32.mxu0 %v13882_v60  ;;  %v1419_v63 = vpop.f32.mrf.mxu0  ;;  %v966_v15 = vadd.f32 %v10386_v46, %v9964_v28  ;;  %v7654_v9 = vld [vmem:[%s13634_s0 + $0xf8] sm:$0x7f]  ;;  %v968_v36 = vadd.f32 %v10386_v46, %v10003_v18 }
 0x182   :  { %2684 = vmatprep.mubr.f32.mxu1 %v13882_v60  ;;  %v1580_v4 = vpop.f32.mrf.mxu1  ;;  %2734 = vmatpush1.msra.mxu0 %v14174_v14  ;;  %v1466_v3 = vadd.f32 %v1419_v63, %v1337_v52  ;;  %v14177_v63 = vld [vmem:[#allocation82_spill] sm:$0xff]  ;;  %v10447_v18 = vld [vmem:[%s13637_s4 + $0x78] sm:$0xff] }
 0x183   :  { %2895 = vmatpush1.msra.mxu1 %v9959_v29  ;;  %6787 = vmatmul.mubr.msk.f32.gmra.mxu0 %vm119_vm0, %v7654_v9  ;;  %v10407_v48 = vpop.f32.mrf.mxu0  ;;  %v1339_v29 = vadd.f32 %v10223_v33, %v1184_v31 }
 0x184   :  { %6795 = vmatmul.mubr.msk.f32.gmra.mxu1 %vm119_vm0, %v9274_v32  ;;  %v10409_v55 = vpop.f32.mrf.mxu1  ;;  %2735 = vmatprep.subr.mxu0 %v14175_v57  ;;  %v1627_v28 = vadd.f32 %v1580_v4, %v1466_v3  ;;  %v982_v4 = vmax.f32 %v966_v15, 0.0 }
 0x185   :  { %2896 = vmatprep.subr.mxu1 %v9977_v13  ;;  %2736 = vmatpush1.msra.mxu0 %v14176_v47  ;;  %v1425_v52 = vpop.f32.mrf.mxu0  ;;  %v6804_v13 = vld [vmem:[%s13634_s0 + $0xc1] sm:$0xff] }
 0x186   :  { %2897 = vmatpush1.msra.mxu1 %v9984_v24  ;;  %v1586_v32 = vpop.f32.mrf.mxu1  ;;  %2737 = vmatprep.subr.mxu0 %v14177_v63  ;;  %v1643_v33 = vadd.f32 %v1627_v28, %v10386_v46  ;;  %v1468_v31 = vadd.f32 %v1425_v52, %v1339_v29  ;;  %v984_v28 = vmax.f32 %v968_v36, 0.0  ;;  %v10477_v63 = vld [vmem:[%s13636_s3 + $0x70] sm:$0xff] }
 0x187   :  { %2898 = vmatprep.subr.mxu1 %v9993_v51  ;;  %2738 = vmatpush1.msra.mxu0 %v9731_v11  ;;  %v10426_v24 = vpop.f32.mrf.mxu0  ;;  %v1196_v51 = vadd.f32 %v10263_v54, %v10050_v27  ;;  %v10442_v11 = vld [vmem:[%s13636_s3 + $0x78] sm:$0xff] }
 0x188   :  { %2771 = vmatprep.mubr.f32.mxu0 %v13882_v60  ;;  %v10428_v41 = vpop.f32.mrf.mxu1  ;;  %2899 = vmatpush1.msra.mxu1 %v10008_v61  ;;  %v1659_v14 = vmax.f32 %v1643_v33, 0.0  ;;  %v1629_v3 = vadd.f32 %v1586_v32, %v1468_v31  ;;  %v1341_v61 = vadd.f32 %v10245_v44, %v1190_v8  ;;  %v1202_v8 = vadd.f32 %v10283_v25, %v10076_v49 }
 0x189   :  { %2932 = vmatprep.mubr.f32.mxu1 %v13882_v60  ;;  %6796 = vmatmul.mubr.msk.f32.vlgmr.msra.gmra.mxu0 %vm119_vm0, %v10000_v40  ;;  %v1431_v27 = vpop.f32.mrf.mxu0  ;;  %v6805_v40 = vld [vmem:[%s13634_s0 + $0xc9] sm:$0xff]  ;;  %v1343_v47 = vadd.f32 %v10265_v38, %v1196_v51  ;;  %v970_v32 = vadd.f32 %v10386_v46, %v10034_v1  ;;  %v6806_v1 = vld [vmem:[%s13634_s0 + $0xd1] sm:$0xff]  ;;  %v972_v51 = vadd.f32 %v10386_v46, %v10060_v16 }
 0x18a   :  { %6812 = vmatmul.mubr.msk.f32.vlgmr.msra.gmra.mxu1 %vm119_vm0, %v6804_v13  ;;  %v1592_v54 = vpop.f32.mrf.mxu1  ;;  %2777 = vmatprep.mubr.f32.mxu0 %v13882_v60  ;;  %v10455_v15 = vmax.f32 %v982_v4, %v1659_v14  ;;  %v1645_v9 = vadd.f32 %v1629_v3, %v10386_v46  ;;  %v1470_v57 = vadd.f32 %v1431_v27, %v1341_v61  ;;  %v10482_v38 = vld [vmem:[%s13637_s4 + $0x70] sm:$0xff]  ;;  %v10505_v14 = vld [vmem:[%s13636_s3 + $0x68] sm:$0xff] }
 0x18b   :  { %2938 = vmatprep.mubr.f32.mxu1 %v13882_v60  ;;  %3107 = vmatprep.subr.mxu0 %v13882_v60  ;;  %v10460_v44 = vpop.f32.mrf.mxu0  ;;  %v10510_v3 = vld [vmem:[%s13637_s4 + $0x68] sm:$0xff]  ;;  %v1345_v61 = vadd.f32 %v10285_v39, %v1202_v8 }
 0x18c   :  { %3233 = vmatprep.subr.mxu1 %v13882_v60  ;;  %v10462_v29 = vpop.f32.mrf.mxu1  ;;  %3108 = vmatpush1.msra.mxu0 %v10442_v11  ;;  %v1661_v52 = vmax.f32 %v1645_v9, 0.0  ;;  %v1631_v49 = vadd.f32 %v1592_v54, %v1470_v57  ;;  %v986_v54 = vmax.f32 %v970_v32, 0.0  ;;  %v1208_v57 = vadd.f32 %v10307_v56, %v10111_v19  ;;  %v14178_v32 = vld [vmem:[#allocation23_spill] sm:$0xff] }
 0x18d   :  { %3234 = vmatpush1.msra.mxu1 %v10447_v18  ;;  %6797 = vmatmul.mubr.msk.f32.gmra.mxu0 %vm119_vm0, %v10031_v12  ;;  %v1437_v25 = vpop.f32.mrf.mxu0 }
 0x18e   :  { %6813 = vmatmul.mubr.msk.f32.gmra.mxu1 %vm119_vm0, %v6805_v40  ;;  %v1598_v13 = vpop.f32.mrf.mxu1  ;;  %3109 = vmatprep.subr.mxu0 %v13882_v60  ;;  %v10489_v12 = vmax.f32 %v984_v28, %v1661_v52  ;;  %v1472_v33 = vadd.f32 %v1437_v25, %v1343_v47  ;;  %v1647_v31 = vadd.f32 %v1631_v49, %v10386_v46  ;;  %v10531_v47 = vld [vmem:[%s13637_s4 + $0x60] sm:$0xff]  ;;  %v988_v52 = vmax.f32 %v972_v51, 0.0 }
 0x18f   :  { %3235 = vmatprep.subr.mxu1 %v13882_v60  ;;  %2783 = vmatprep.mubr.f32.mxu0 %v13882_v60  ;;  %v10494_v4 = vpop.f32.mrf.mxu0  ;;  %v974_v49 = vadd.f32 %v10386_v46, %v14178_v32  ;;  %v6807_v25 = vld [vmem:[%s13634_s0 + $0xd9] sm:$0xff]  ;;  %v1347_v51 = vadd.f32 %v10309_v45, %v1208_v57 }
 0x190   :  { %2944 = vmatprep.mubr.f32.mxu1 %v13882_v60  ;;  %v10496_v36 = vpop.f32.mrf.mxu1  ;;  %3110 = vmatpush1.msra.mxu0 %v10477_v63  ;;  %v1633_v27 = vadd.f32 %v1598_v13, %v1472_v33  ;;  %v1663_v16 = vmax.f32 %v1647_v31, 0.0  ;;  %v10553_v33 = vld [vmem:[%s13636_s3 + $0x58] sm:$0xff] }
 0x191   :  { %3236 = vmatpush1.msra.mxu1 %v10482_v38  ;;  %6798 = vmatmul.mubr.msk.f32.gmra.mxu0 %vm119_vm0, %v10057_v37  ;;  %v1443_v40 = vpop.f32.mrf.mxu0  ;;  %v10526_v37 = vld [vmem:[%s13636_s3 + $0x60] sm:$0xff]  ;;  %v10558_v31 = vld [vmem:[%s13637_s4 + $0x58] sm:$0xff] }
 0x192   :  { %6814 = vmatmul.mubr.msk.f32.gmra.mxu1 %vm119_vm0, %v6806_v1  ;;  %v1604_v9 = vpop.f32.mrf.mxu1  ;;  %3111 = vmatprep.subr.mxu0 %v13882_v60  ;;  %v1649_v28 = vadd.f32 %v1633_v27, %v10386_v46  ;;  %v1474_v39 = vadd.f32 %v1443_v40, %v1345_v61  ;;  %v10533_v8 = vmax.f32 %v986_v54, %v1663_v16  ;;  %v14180_v54 = vld [vmem:[#allocation3_spill] sm:$0xff] }
 0x193   :  { %3237 = vmatprep.subr.mxu1 %v13882_v60  ;;  %3112 = vmatpush1.msra.mxu0 %v10505_v14  ;;  %v10535_v19 = vpop.f32.mrf.mxu0  ;;  %14179 = vst [vmem:[#allocation64_spill] sm:$0xff] %v10558_v31 }
 0x194   :  { %3238 = vmatpush1.msra.mxu1 %v10510_v3  ;;  %v10537_v56 = vpop.f32.mrf.mxu1  ;;  %3113 = vmatprep.subr.mxu0 %v13882_v60  ;;  %v1665_v13 = vmax.f32 %v1649_v28, 0.0  ;;  %v1635_v1 = vadd.f32 %v1604_v9, %v1474_v39  ;;  %v990_v9 = vmax.f32 %v974_v49, 0.0  ;;  %v1214_v28 = vadd.f32 %v10331_v22, %v10141_v21  ;;  %v10576_v39 = vld [vmem:[%s13636_s3 + $0x50] sm:$0xff]  ;;  %v6808_v22 = vld [vmem:[%s13634_s0 + $0xe1] sm:$0xff] }
 0x195   :  { %3239 = vmatprep.subr.mxu1 %v13882_v60  ;;  %2789 = vmatprep.mubr.f32.mxu0 %v13882_v60  ;;  %14181 = vst [vmem:[#allocation10_spill] sm:$0xff] %v10576_v39  ;;  %v976_v21 = vadd.f32 %v10386_v46, %v10116_v53  ;;  %v10603_v53 = vld [vmem:[%s13636_s3 + $0x48] sm:$0xff] }
 0x196   :  { %2950 = vmatprep.mubr.f32.mxu1 %v13882_v60  ;;  %3114 = vmatpush1.msra.mxu0 %v10526_v37  ;;  %v10561_v61 = vmax.f32 %v988_v52, %v1665_v13  ;;  %v1651_v27 = vadd.f32 %v1635_v1, %v10386_v46  ;;  %v10581_v52 = vld [vmem:[%s13637_s4 + $0x50] sm:$0xff]  ;;  %14183 = vst [vmem:[#allocation49_spill] sm:$0xff] %v10603_v53  ;;  %v10608_v1 = vld [vmem:[%s13637_s4 + $0x48] sm:$0xff] }
 0x197   :  { %3240 = vmatpush1.msra.mxu1 %v10531_v47  ;;  %6799 = vmatmul.mubr.msk.f32.gmra.mxu0 %vm119_vm0, %v14180_v54  ;;  %v1449_v16 = vpop.f32.mrf.mxu0  ;;  %14182 = vst [vmem:[#allocation66_spill] sm:$0xff] %v10581_v52  ;;  %14184 = vst [vmem:[#allocation11_spill] sm:$0xff] %v10608_v1  ;;  %v14185_v54 = vld [vmem:[#allocation4_spill] sm:$0xff] }
 0x198   :  { %6815 = vmatmul.mubr.msk.f32.gmra.mxu1 %vm119_vm0, %v6807_v25  ;;  %v1610_v40 = vpop.f32.mrf.mxu1  ;;  %3115 = vmatprep.subr.mxu0 %v13882_v60  ;;  %v1667_v45 = vmax.f32 %v1651_v27, 0.0  ;;  %v1476_v57 = vadd.f32 %v1449_v16, %v1347_v51  ;;  %v1349_v51 = vadd.f32 %v10333_v42, %v1214_v28  ;;  %v10624_v42 = vld [vmem:[%s13636_s3 + $0x40] sm:$0xff] }
 0x199   :  { %3241 = vmatprep.subr.mxu1 %v13882_v60  ;;  %3116 = vmatpush1.msra.mxu0 %v10553_v33  ;;  %v10583_v32 = vpop.f32.mrf.mxu0  ;;  %14186 = vst [vmem:[#allocation71_spill] sm:$0xff] %v10624_v42  ;;  %v10629_v28 = vld [vmem:[%s13637_s4 + $0x40] sm:$0xff] }
 0x19a   :  { %3242 = vmatpush1.msra.mxu1 %v10558_v31  ;;  %v10585_v49 = vpop.f32.mrf.mxu1  ;;  %3117 = vmatprep.subr.mxu0 %v13882_v60  ;;  %v10594_v25 = vmax.f32 %v990_v9, %v1667_v45  ;;  %v1637_v13 = vadd.f32 %v1610_v40, %v1476_v57  ;;  %v992_v9 = vmax.f32 %v976_v21, 0.0  ;;  %v1220_v45 = vadd.f32 %v10358_v43, %v10171_v23  ;;  %v6809_v43 = vld [vmem:[%s13634_s0 + $0xe9] sm:$0xff] }
 0x19b   :  { %3243 = vmatprep.subr.mxu1 %v13882_v60  ;;  %2795 = vmatprep.mubr.f32.mxu0 %v13882_v60  ;;  %14187 = vst [vmem:[#allocation50_spill] sm:$0xff] %v10629_v28  ;;  %v978_v23 = vadd.f32 %v10386_v46, %v10146_v26  ;;  %v10651_v26 = vld [vmem:[%s13636_s3 + $0x38] sm:$0xff] }
 0x19c   :  { %2956 = vmatprep.mubr.f32.mxu1 %v13882_v60  ;;  %3118 = vmatpush1.msra.mxu0 %v10576_v39  ;;  %v1653_v27 = vadd.f32 %v1637_v13, %v10386_v46  ;;  %14189 = vst [vmem:[#allocation12_spill] sm:$0xff] %v10651_v26  ;;  %v14203_v39 = vld [vmem:[#allocation17_spill] sm:$0xff] }
 0x19d   :  { %3244 = vmatpush1.msra.mxu1 %v10581_v52  ;;  %6800 = vmatmul.mubr.msk.f32.gmra.mxu0 %vm119_vm0, %v14185_v54  ;;  %v1455_v16 = vpop.f32.mrf.mxu0 }
 0x19e   :  { %6816 = vmatmul.mubr.msk.f32.gmra.mxu1 %vm119_vm0, %v6808_v22  ;;  %v1616_v40 = vpop.f32.mrf.mxu1  ;;  %3119 = vmatprep.subr.mxu0 %v13882_v60  ;;  %v1669_v57 = vmax.f32 %v1653_v27, 0.0  ;;  %v1478_v52 = vadd.f32 %v1455_v16, %v1349_v51  ;;  %v10656_v27 = vld [vmem:[%s13637_s4 + $0x38] sm:$0xff]  ;;  %v14191_v16 = vld [vmem:[#allocation28_spill] sm:$0xff] }
 0x19f   :  { %3245 = vmatprep.subr.mxu1 %v13882_v60  ;;  %3120 = vmatpush1.msra.mxu0 %v10603_v53  ;;  %v10631_v21 = vpop.f32.mrf.mxu0  ;;  %14190 = vst [vmem:[#allocation75_spill] sm:$0xff] %v10656_v27 }
 0x1a0   :  { %3246 = vmatpush1.msra.mxu1 %v10608_v1  ;;  %v10633_v22 = vpop.f32.mrf.mxu1  ;;  %3121 = vmatprep.subr.mxu0 %v13882_v60  ;;  %v10642_v13 = vmax.f32 %v992_v9, %v1669_v57  ;;  %v1639_v51 = vadd.f32 %v1616_v40, %v1478_v52  ;;  %v1351_v52 = vadd.f32 %v10360_v6, %v1220_v45  ;;  %v994_v57 = vmax.f32 %v978_v23, 0.0  ;;  %v10670_v6 = vld [vmem:[%s13636_s3 + $0x30] sm:$0xff] }
 0x1a1   :  { %3247 = vmatprep.subr.mxu1 %v13882_v60  ;;  %2801 = vmatprep.mubr.f32.mxu0 %v13882_v60  ;;  %14192 = vst [vmem:[#allocation14_spill] sm:$0xff] %v10670_v6  ;;  %v10675_v45 = vld [vmem:[%s13637_s4 + $0x30] sm:$0xff] }
 0x1a2   :  { %14188 = vst [vmem:[#allocation73_spill] sm:$0xff] %v10642_v13  ;;  %2962 = vmatprep.mubr.f32.mxu1 %v13882_v60  ;;  %3122 = vmatpush1.msra.mxu0 %v10624_v42  ;;  %v1655_v54 = vadd.f32 %v1639_v51, %v10386_v46  ;;  %14193 = vst [vmem:[#allocation15_spill] sm:$0xff] %v10675_v45  ;;  %v14194_v51 = vld [vmem:[#allocation6_spill] sm:$0xff] }
 0x1a3   :  { %3248 = vmatpush1.msra.mxu1 %v10629_v28  ;;  %6801 = vmatmul.mubr.msk.f32.gmra.mxu0 %vm119_vm0, %v14191_v16  ;;  %v1461_v40 = vpop.f32.mrf.mxu0 }
 0x1a4   :  { %6817 = vmatmul.mubr.msk.f32.gmra.mxu1 %vm119_vm0, %v6809_v43  ;;  %v1622_v9 = vpop.f32.mrf.mxu1  ;;  %3123 = vmatprep.subr.mxu0 %v13882_v60  ;;  %v1671_v28 = vmax.f32 %v1655_v54, 0.0  ;;  %v1480_v42 = vadd.f32 %v1461_v40, %v1351_v52  ;;  %v980_v52 = vadd.f32 %v10386_v46, %v14194_v51  ;;  %v6810_v54 = vld [vmem:[%s13634_s0 + $0xf1] sm:$0xff]  ;;  %v10699_v51 = vld [vmem:[%s13636_s3 + $0x28] sm:$0xff] }
 0x1a5   :  { %3249 = vmatprep.subr.mxu1 %v13882_v60  ;;  %3124 = vmatpush1.msra.mxu0 %v10651_v26  ;;  %v10677_v23 = vpop.f32.mrf.mxu0  ;;  %14197 = vst [vmem:[#allocation81_spill] sm:$0xff] %v10699_v51 }
 0x1a6   :  { %3250 = vmatpush1.msra.mxu1 %v10656_v27  ;;  %v10679_v43 = vpop.f32.mrf.mxu1  ;;  %3125 = vmatprep.subr.mxu0 %v13882_v60  ;;  %v10688_v16 = vmax.f32 %v994_v57, %v1671_v28  ;;  %v1641_v40 = vadd.f32 %v1622_v9, %v1480_v42  ;;  %v14196_v27 = vld [vmem:[#allocation98_spill] sm:$0xff]  ;;  %v10704_v42 = vld [vmem:[%s13637_s4 + $0x28] sm:$0xff]  ;;  %v14199_v28 = vld [vmem:[#allocation40_spill] sm:$0xff]  ;;  %v996_v57 = vmax.f32 %v980_v52, 0.0 }
 0x1a7   :  { %3251 = vmatprep.subr.mxu1 %v13882_v60  ;;  %v1180_v26 = vadd.f32 %v10213_v34, %v14196_v27  ;;  %2807 = vmatprep.mubr.f32.mxu0 %v13882_v60  ;;  %14198 = vst [vmem:[#allocation18_spill] sm:$0xff] %v10704_v42 }
 0x1a8   :  { %14195 = vst [vmem:[#allocation53_spill] sm:$0xff] %v10688_v16  ;;  %2968 = vmatprep.mubr.f32.mxu1 %v13882_v60  ;;  %3126 = vmatpush1.msra.mxu0 %v10670_v6  ;;  %v1657_v34 = vadd.f32 %v1641_v40, %v10386_v46  ;;  %v14201_v16 = vld [vmem:[#allocation13_spill] sm:$0xff]  ;;  %v14202_v40 = vld [vmem:[#allocation51_spill] sm:$0xff] }
 0x1a9   :  { %3252 = vmatpush1.msra.mxu1 %v10675_v45  ;;  %6802 = vmatmul.mubr.msk.f32.gmra.mxu0 %vm119_vm0, %v14199_v28  ;;  %v1741_v27 = vpop.f32.mrf.mxu0  ;;  %v14200_v45 = vld [vmem:[#allocation16_spill] sm:$0xff]  ;;  %v350_v46 = vadd.f32 %v14202_v40, %v14201_v16  ;;  %v14204_v28 = vld [vmem:[#allocation54_spill] sm:$0xff]  ;;  %v14211_v40 = vld [vmem:[#allocation83_spill] sm:$0xff] }
 0x1aa   :  { %6818 = vmatmul.mubr.msk.f32.gmra.mxu1 %vm119_vm0, %v6810_v54  ;;  %v1854_v9 = vpop.f32.mrf.mxu1  ;;  %v1186_v6 = vadd.f32 %v10229_v30, %v14200_v45  ;;  %3127 = vmatprep.subr.mxu0 %v13882_v60  ;;  %v1673_v1 = vmax.f32 %v1657_v34, 0.0  ;;  %v356_v13 = vadd.f32 %v14204_v28, %v14203_v39  ;;  %v14205_v54 = vld [vmem:[#allocation44_spill] sm:$0xff]  ;;  %v10726_v30 = vld [vmem:[%s13636_s3 + $0x20] sm:$0xff] }
 0x1ab   :  { %3253 = vmatprep.subr.mxu1 %v13882_v60  ;;  %v10714_v53 = vadd.f32 %v1854_v9, %v1741_v27  ;;  %v1338_v31 = vadd.f32 %v14205_v54, %v1180_v26  ;;  %3128 = vmatpush1.msra.mxu0 %v10699_v51  ;;  %14206 = vst [vmem:[#allocation19_spill] sm:$0xff] %v10726_v30  ;;  %v10731_v45 = vld [vmem:[%s13637_s4 + $0x20] sm:$0xff]  ;;  %v10733_v52 = vpop.f32.mrf.mxu0  ;;  %v6811_v26 = vld [vmem:[%s13634_s0 + $0xf9] sm:$0x7f] }
 0x1ac   :  { %3254 = vmatpush1.msra.mxu1 %v10704_v42  ;;  %14207 = vst [vmem:[#allocation56_spill] sm:$0xff] %v10731_v45  ;;  %14208 = vst [vmem:[#allocation21_spill] sm:$0xff] %v10733_v52  ;;  %v10735_v16 = vpop.f32.mrf.mxu1  ;;  %3129 = vmatprep.subr.mxu0 %v13882_v60  ;;  %v10743_v34 = vmax.f32 %v996_v57, %v1673_v1  ;;  %v14210_v27 = vld [vmem:[#allocation77_spill] sm:$0xff]  ;;  %v568_v28 = vadd.f32 %v14211_v40, %v356_v13  ;;  %v14212_v42 = vld [vmem:[#allocation99_spill] sm:$0xff]  ;;  %v14220_v57 = vsub.s32 1, %v10337_v2 }
 0x1ad   :  { %14209 = vst [vmem:[#allocation24_spill] sm:$0xff] %v10735_v16  ;;  %3255 = vmatprep.subr.mxu1 %v13882_v60  ;;  %v566_v9 = vadd.f32 %v14210_v27, %v350_v46  ;;  %2813 = vmatprep.mubr.f32.mxu0 %v13882_v60  ;;  %v1467_v54 = vadd.f32 %v10407_v48, %v1338_v31  ;;  %v1747_v39 = vpop.f32.mrf.mxu0  ;;  %v10758_v46 = vld [vmem:[%s13636_s3 + $0x18] sm:$0xff]  ;;  %v14218_v13 = vld [vmem:[#allocation55_spill] sm:$0xff]  ;;  %v14223_v40 = vld [vmem:[#allocation78_spill] sm:$0xff] }
 0x1ae   :  { %2974 = vmatprep.mubr.f32.mxu1 %v13882_v60  ;;  %v1860_v16 = vpop.f32.mrf.mxu1  ;;  %v1340_v52 = vadd.f32 %v10231_v50, %v1186_v6  ;;  %v1192_v51 = vadd.f32 %v10251_v62, %v14212_v42  ;;  %3130 = vmatpush1.msra.mxu0 %v10726_v30  ;;  %14213 = vst [vmem:[#allocation25_spill] sm:$0xff] %v10758_v46  ;;  %v10763_v48 = vld [vmem:[%s13637_s4 + $0x18] sm:$0xff]  ;;  %v14215_v50 = vld [vmem:[#allocation39_spill] sm:$0xff]  ;;  %v14219_v6 = vld [vmem:[#allocation20_spill] sm:$0xff] }
 0x1af   :  { %3256 = vmatpush1.msra.mxu1 %v10731_v45  ;;  %14214 = vst [vmem:[#allocation59_spill] sm:$0xff] %v10763_v48  ;;  %v10765_v31 = vadd.f32 %v1860_v16, %v1747_v39  ;;  %6803 = vmatmul.mubr.msk.f32.gmra.mxu0 %vm119_vm0, %v14215_v50  ;;  %v10770_v62 = vpop.f32.mrf.mxu0  ;;  %v362_v42 = vadd.f32 %v14219_v6, %v14218_v13  ;;  %v10786_v16 = vld [vmem:[%s13636_s3 + $0x10] sm:$0xff]  ;;  %v14226_v45 = vld [vmem:[#allocation41_spill] sm:$0xff] }
 0x1b0   :  { %6819 = vmatmul.mubr.msk.f32.gmra.mxu1 %vm119_vm0, %v6811_v26  ;;  %14216 = vst [vmem:[#allocation29_spill] sm:$0xff] %v10770_v62  ;;  %v10772_v1 = vpop.f32.mrf.mxu1  ;;  %v10779_v27 = vrot.slane %v10365_v35, %v14220_v57  ;;  %3131 = vmatprep.subr.mxu0 %v13882_v60  ;;  %14221 = vst [vmem:[#allocation61_spill] sm:$0xff] %v10786_v16  ;;  %v10791_v39 = vld [vmem:[%s13637_s4 + $0x10] sm:$0xff]  ;;  %v1469_v26 = vadd.f32 %v10426_v24, %v1340_v52  ;;  %v14224_v35 = vld [vmem:[#allocation34_spill] sm:$0xff] }
 0x1b1   :  { %14217 = vst [vmem:[#allocation60_spill] sm:$0xff] %v10772_v1  ;;  %3257 = vmatprep.subr.mxu1 %v13882_v60  ;;  %14222 = vst [vmem:[#allocation37_spill] sm:$0xff] %v10791_v39  ;;  %v753_v50 = vadd.f32 %v14223_v40, %v566_v9  ;;  %v1198_v13 = vadd.f32 %v10271_v20, %v14224_v35  ;;  %3132 = vmatpush1.msra.mxu0 %v10758_v46  ;;  %v1753_v57 = vpop.f32.mrf.mxu0  ;;  %v14225_v1 = vld [vmem:[#allocation84_spill] sm:$0xff]  ;;  %v10807_v20 = vld [vmem:[%s13636_s3 + $0x8] sm:$0xff] }
 0x1b2   :  { %3258 = vmatpush1.msra.mxu1 %v10763_v48  ;;  %v1628_v6 = vadd.f32 %v10409_v55, %v1467_v54  ;;  %v1866_v2 = vpop.f32.mrf.mxu1  ;;  %v755_v62 = vadd.f32 %v14225_v1, %v568_v28  ;;  %v1342_v30 = vadd.f32 %v14226_v45, %v1192_v51  ;;  %3133 = vmatprep.subr.mxu0 %v13882_v60  ;;  %v10812_v24 = vld [vmem:[%s13637_s4 + $0x8] sm:$0xff]  ;;  %v14229_v52 = vld [vmem:[#allocation22_spill] sm:$0xff]  ;;  %v14230_v9 = vld [vmem:[#allocation57_spill] sm:$0xff] }
 0x1b3   :  { %3259 = vmatprep.subr.mxu1 %v13882_v60  ;;  %14227 = vst [vmem:[#allocation62_spill] sm:$0xff] %v10807_v20  ;;  %14228 = vst [vmem:[#allocation42_spill] sm:$0xff] %v10812_v24  ;;  %v10814_v55 = vadd.f32 %v1866_v2, %v1753_v57  ;;  %v368_v28 = vadd.f32 %v14230_v9, %v14229_v52  ;;  %v14231_v51 = vld [vmem:[#allocation85_spill] sm:$0xff]  ;;  %3134 = vmatpush1.msra.mxu0 %v10786_v16  ;;  %v10822_v40 = vpop.f32.mrf.mxu0  ;;  %v14235_v48 = vld [vmem:[#allocation52_spill] sm:$0xff] }
 0x1b4   :  { %v570_v45 = vadd.f32 %v14231_v51, %v362_v42  ;;  %v14232_v54 = vld [vmem:[#allocation97_spill] sm:$0xff]  ;;  %3260 = vmatpush1.msra.mxu1 %v10791_v39  ;;  %14233 = vst [vmem:[#allocation45_spill] sm:$0xff] %v10822_v40  ;;  %v10824_v35 = vpop.f32.mrf.mxu1  ;;  %v941_v46 = vadd.f32 %v14235_v48, %v755_v62  ;;  %3135 = vmatprep.subr.mxu0 %v13882_v60  ;;  %v10832_v2 = vld [vmem:[%s13636_s3] sm:$0xff]  ;;  %v14238_v52 = vld [vmem:[#allocation8_spill] sm:$0xff] }
 0x1b5   :  { %v939_v1 = vadd.f32 %v14232_v54, %v753_v50  ;;  %14234 = vst [vmem:[#allocation48_spill] sm:$0xff] %v10824_v35  ;;  %3261 = vmatprep.subr.mxu1 %v13882_v60  ;;  %14236 = vst [vmem:[#allocation65_spill] sm:$0xff] %v10832_v2  ;;  %v10837_v42 = vld [vmem:[%s13637_s4] sm:$0xff]  ;;  %v1630_v50 = vadd.f32 %v10428_v41, %v1469_v26  ;;  %v1471_v57 = vadd.f32 %v10460_v44, %v1342_v30  ;;  %v14239_v62 = vld [vmem:[#allocation100_spill] sm:$0xff]  ;;  %v1759_v54 = vpop.f32.mrf.mxu0 }
 0x1b6   :  { %14237 = vst [vmem:[#allocation67_spill] sm:$0xff] %v10837_v42  ;;  %v1344_v48 = vadd.f32 %v14238_v52, %v1198_v13  ;;  %v1204_v9 = vadd.f32 %v10291_v17, %v14239_v62  ;;  %3136 = vmatpush1.msra.mxu0 %v10807_v20  ;;  %3262 = vmatpush1.msra.mxu1 %v10812_v24  ;;  %v1872_v35 = vpop.f32.mrf.mxu1  ;;  %v14240_v40 = vld [vmem:[#allocation58_spill] sm:$0xff]  ;;  %v14243_v30 = vld [vmem:[#allocation87_spill] sm:$0xff] }
 0x1b7   :  { %v1644_v51 = vadd.f32 %v1628_v6, %v10779_v27  ;;  %v14241_v39 = vld [vmem:[#allocation26_spill] sm:$0xff]  ;;  %3137 = vmatprep.subr.mxu0 %v13882_v60  ;;  %3263 = vmatprep.subr.mxu1 %v13882_v60  ;;  %v10861_v44 = vadd.f32 %v1872_v35, %v1759_v54  ;;  %v572_v26 = vadd.f32 %v14243_v30, %v368_v28  ;;  %v10868_v6 = vpop.f32.mrf.mxu0  ;;  %v14248_v30 = vld [vmem:[#allocation9_spill] sm:$0xff] }
 0x1b8   :  { %v374_v16 = vadd.f32 %v14241_v39, %v14240_v40  ;;  %v10854_v41 = vld [vmem:[%s13636_s3 + $0xa0] sm:$0xff]  ;;  %v967_v39 = vadd.f32 %v10779_v27, %v939_v1  ;;  %3138 = vmatpush1.msra.mxu0 %v10832_v2  ;;  %3264 = vmatpush1.msra.mxu1 %v10837_v42  ;;  %v1473_v13 = vadd.f32 %v10494_v4, %v1344_v48  ;;  %v10870_v40 = vpop.f32.mrf.mxu1  ;;  %v10879_v1 = vld [vmem:[%s13636_s3 + $0x98] sm:$0xff]  ;;  %v14249_v42 = vld [vmem:[#allocation31_spill] sm:$0xff] }
 0x1b9   :  { %v10859_v17 = vld [vmem:[%s13637_s4 + $0xa0] sm:$0xff]  ;;  %14244 = vst [vmem:[#allocation72_spill] sm:$0xff] %v10868_v6  ;;  %14245 = vst [vmem:[#allocation74_spill] sm:$0xff] %v10870_v40  ;;  %3161 = vmatprep.subr.mxu0 %v13882_v60  ;;  %3287 = vmatprep.subr.mxu1 %v13882_v60  ;;  %v1646_v28 = vadd.f32 %v1630_v50, %v10779_v27  ;;  %v10884_v4 = vld [vmem:[%s13637_s4 + $0x98] sm:$0xff]  ;;  %v1632_v35 = vadd.f32 %v10462_v29, %v1471_v57  ;;  %v1660_v40 = vmax.f32 %v1644_v51, 0.0  ;;  %v1765_v50 = vpop.f32.mrf.mxu0 }
 0x1ba   :  { %14242 = vst [vmem:[#allocation70_spill] sm:$0xff] %v10859_v17  ;;  %v14246_v52 = vld [vmem:[#allocation86_spill] sm:$0xff]  ;;  %v14247_v48 = vld [vmem:[#allocation89_spill] sm:$0xff]  ;;  %v969_v54 = vadd.f32 %v10779_v27, %v941_v46  ;;  %3162 = vmatpush2.msra.mxu0 %v10854_v41  ;;  %3288 = vmatpush2.msra.mxu1 %v10859_v17  ;;  %v1878_v6 = vpop.f32.mrf.mxu1  ;;  %v10900_v29 = vld [vmem:[%s13636_s3 + $0x90] sm:$0xff] }
 0x1bb   :  { %v757_v62 = vadd.f32 %v14246_v52, %v570_v45  ;;  %v574_v45 = vadd.f32 %v14247_v48, %v374_v16  ;;  %v1346_v52 = vadd.f32 %v14248_v30, %v1204_v9  ;;  %v14250_v24 = vld [vmem:[#allocation38_spill] sm:$0xff]  ;;  %3163 = vmatprep.subr.mxu0 %v13882_v60  ;;  %3289 = vmatprep.subr.mxu1 %v13882_v60  ;;  %v10905_v46 = vld [vmem:[%s13637_s4 + $0x90] sm:$0xff]  ;;  %v983_v9 = vmax.f32 %v967_v39, 0.0  ;;  %v10914_v51 = vpop.f32.mrf.mxu0  ;;  %v14255_v30 = vld [vmem:[#allocation33_spill] sm:$0xff] }
 0x1bc   :  { %v1210_v20 = vadd.f32 %v10319_v10, %v14250_v24  ;;  %v10907_v16 = vadd.f32 %v1878_v6, %v1765_v50  ;;  %3164 = vmatpush2.msra.mxu0 %v10879_v1  ;;  %3290 = vmatpush2.msra.mxu1 %v10884_v4  ;;  %v1634_v10 = vadd.f32 %v10496_v36, %v1473_v13  ;;  %v14254_v48 = vld [vmem:[#allocation32_spill] sm:$0xff]  ;;  %v1662_v6 = vmax.f32 %v1646_v28, 0.0  ;;  %v10926_v36 = vld [vmem:[%s13636_s3 + $0x88] sm:$0xff]  ;;  %v14258_v39 = vld [vmem:[#allocation90_spill] sm:$0xff] }
 0x1bd   :  { %v943_v2 = vadd.f32 %v14249_v42, %v757_v62  ;;  %v14251_v42 = vld [vmem:[#allocation88_spill] sm:$0xff]  ;;  %v1475_v24 = vadd.f32 %v10535_v19, %v1346_v52  ;;  %14252 = vst [vmem:[#allocation76_spill] sm:$0xff] %v10914_v51  ;;  %v10916_v62 = vpop.f32.mrf.mxu1  ;;  %v380_v17 = vadd.f32 %v14255_v30, %v14254_v48  ;;  %3165 = vmatprep.subr.mxu0 %v13882_v60  ;;  %14256 = vst [vmem:[#allocation80_spill] sm:$0xff] %v10926_v36  ;;  %v10931_v19 = vld [vmem:[%s13637_s4 + $0x88] sm:$0xff] }
 0x1be   :  { %v759_v57 = vadd.f32 %v14251_v42, %v572_v26  ;;  %14253 = vst [vmem:[#allocation79_spill] sm:$0xff] %v10916_v62  ;;  %3291 = vmatprep.subr.mxu1 %v13882_v60  ;;  %v1648_v26 = vadd.f32 %v1632_v35, %v10779_v27  ;;  %14257 = vst [vmem:[#allocation82_spill] sm:$0xff] %v10931_v19  ;;  %v761_v13 = vadd.f32 %v14258_v39, %v574_v45  ;;  %v14259_v28 = vld [vmem:[#allocation2_spill] sm:$0xff] }
 0x1bf   :  { %v985_v52 = vmax.f32 %v969_v54, 0.0  ;;  %v3030_v42 = vmax.f32 %v983_v9, %v1660_v40  ;;  %3166 = vmatpush2.msra.mxu0 %v10900_v29  ;;  %3292 = vmatpush2.msra.mxu1 %v10905_v46  ;;  %v971_v35 = vadd.f32 %v10779_v27, %v943_v2  ;;  %v1348_v48 = vadd.f32 %v10321_v59, %v1210_v20  ;;  %v14260_v30 = vld [vmem:[#allocation30_spill] sm:$0xff]  ;;  %v14261_v40 = vld [vmem:[#allocation91_spill] sm:$0xff]  ;;  %v1771_v2 = vpop.f32.mrf.mxu0 }
 0x1c0   :  { %v945_v50 = vadd.f32 %v14259_v28, %v759_v57  ;;  %v1216_v62 = vadd.f32 %v10345_v0, %v14260_v30  ;;  %3167 = vmatprep.subr.mxu0 %v13882_v60  ;;  %3293 = vmatprep.subr.mxu1 %v13882_v60  ;;  %v10946_v45 = vld [vmem:[%s13636_s3 + $0x80] sm:$0xff]  ;;  %v576_v54 = vadd.f32 %v14261_v40, %v380_v17  ;;  %v1884_v57 = vpop.f32.mrf.mxu1  ;;  %v1664_v39 = vmax.f32 %v1648_v26, 0.0  ;;  %v14262_v30 = vld [vmem:[#allocation63_spill] sm:$0xff] }
 0x1c1   :  { %3168 = vmatpush2.msra.mxu0 %v10926_v36  ;;  %3294 = vmatpush2.msra.mxu1 %v10931_v19  ;;  %v10954_v59 = vld [vmem:[%s13637_s4 + $0x80] sm:$0xff]  ;;  %v1650_v0 = vadd.f32 %v1634_v10, %v10779_v27  ;;  %v1636_v20 = vadd.f32 %v10537_v56, %v1475_v24  ;;  %v3032_v9 = vmax.f32 %v985_v52, %v1662_v6  ;;  %v14263_v40 = vld [vmem:[#allocation43_spill] sm:$0xff]  ;;  %v14264_v10 = vld [vmem:[#allocation36_spill] sm:$0xff]  ;;  %v10969_v56 = vpop.f32.mrf.mxu0  ;;  %v987_v6 = vmax.f32 %v971_v35, 0.0 }
 0x1c2   :  { %3169 = vmatprep.subr.mxu0 %v13882_v60  ;;  %3295 = vmatprep.subr.mxu1 %v13882_v60  ;;  %v1477_v17 = vadd.f32 %v10583_v32, %v1348_v48  ;;  %v10961_v28 = vadd.f32 %v1884_v57, %v1771_v2  ;;  %v386_v51 = vadd.f32 %v14263_v40, %v14262_v30  ;;  %v10971_v24 = vpop.f32.mrf.mxu1  ;;  %v14265_v26 = vld [vmem:[#allocation7_spill] sm:$0xff]  ;;  %v14267_v48 = vld [vmem:[#allocation93_spill] sm:$0xff] }
 0x1c3   :  { %v973_v19 = vadd.f32 %v10779_v27, %v945_v50  ;;  %v947_v36 = vadd.f32 %v14264_v10, %v761_v13  ;;  %3170 = vmatpush2.msra.mxu0 %v10946_v45  ;;  %6820 = vmatprep.mubr.msk.f32.mxu0 %vm3082_vm1, %v3030_v42  ;;  %v1350_v32 = vadd.f32 %v10347_v5, %v1216_v62  ;;  %v14266_v50 = vld [vmem:[#allocation92_spill] sm:$0xff]  ;;  %v1666_v57 = vmax.f32 %v1650_v0, 0.0 }
 0x1c4   :  { %v1222_v52 = vadd.f32 %v10377_v58, %v14265_v26  ;;  %3296 = vmatpush2.msra.mxu1 %v10954_v59  ;;  %6828 = vmatprep.mubr.msk.f32.mxu1 %vm3082_vm1, %v3030_v42  ;;  %v763_v13 = vadd.f32 %v14266_v50, %v576_v54  ;;  %v578_v2 = vadd.f32 %v14267_v48, %v386_v51  ;;  %v14268_v62 = vld [vmem:[#allocation68_spill] sm:$0xff]  ;;  %v14269_v42 = vld [vmem:[#allocation69_spill] sm:$0xff] }
 0x1c5   :  { %3172 = vmatmul.mubr.f32.vlgmr.msra.gmra.mxu0 %v10455_v15  ;;  %3298 = vmatmul.mubr.f32.vlgmr.msra.gmra.mxu1 %v10455_v15  ;;  %v1652_v35 = vadd.f32 %v1636_v20, %v10779_v27  ;;  %v3034_v30 = vmax.f32 %v987_v6, %v1664_v39  ;;  %v1638_v5 = vadd.f32 %v10585_v49, %v1477_v17  ;;  %v989_v51 = vmax.f32 %v973_v19, 0.0  ;;  %v1777_v40 = vpop.f32.mrf.mxu0  ;;  %v14270_v15 = vld [vmem:[#allocation27_spill] sm:$0xff]  ;;  %v14271_v49 = vld [vmem:[#allocation94_spill] sm:$0xff]  ;;  %v14273_v50 = vld [vmem:[#allocation5_spill] sm:$0xff] }
 0x1c6   :  { %6821 = vmatprep.mubr.msk.f32.mxu0 %vm3082_vm1, %v3032_v9  ;;  %6829 = vmatprep.mubr.msk.f32.mxu1 %vm3082_vm1, %v3032_v9  ;;  %v1479_v58 = vadd.f32 %v10631_v21, %v1350_v32  ;;  %v392_v54 = vadd.f32 %v14269_v42, %v14268_v62  ;;  %v975_v0 = vadd.f32 %v10779_v27, %v947_v36  ;;  %v1890_v10 = vpop.f32.mrf.mxu1  ;;  %v14272_v19 = vld [vmem:[#allocation95_spill] sm:$0xff]  ;;  %v14274_v48 = vld [vmem:[#allocation96_spill] sm:$0xff] }
 0x1c7   :  { %3370 = vmatprep.subr.mxu0 %v13882_v60  ;;  %3475 = vmatprep.subr.mxu1 %v13882_v60  ;;  %v949_v20 = vadd.f32 %v14270_v15, %v763_v13  ;;  %v1352_v9 = vadd.f32 %v10379_v7, %v1222_v52  ;;  %v10994_v39 = vadd.f32 %v1890_v10, %v1777_v40  ;;  %v1668_v6 = vmax.f32 %v1652_v35, 0.0  ;;  %v11002_v32 = vpop.f32.mrf.mxu0  ;;  %v14277_v42 = vld [vmem:[#allocation35_spill] sm:$0xff] }
 0x1c8   :  { %3371 = vmatpush1.msra.mxu0 %v10442_v11  ;;  %3476 = vmatpush1.msra.mxu1 %v10447_v18  ;;  %v765_v21 = vadd.f32 %v14271_v49, %v578_v2  ;;  %v580_v36 = vadd.f32 %v14272_v19, %v392_v54  ;;  %v3036_v17 = vmax.f32 %v989_v51, %v1666_v57  ;;  %v11004_v26 = vpop.f32.mrf.mxu1  ;;  %v991_v52 = vmax.f32 %v975_v0, 0.0  ;;  %v14278_v19 = vld [vmem:[#allocation64_spill] sm:$0xff] }
 0x1c9   :  { %3177 = vmatmul.mubr.f32.gmra.mxu0 %v10489_v12  ;;  %3303 = vmatmul.mubr.f32.gmra.mxu1 %v10489_v12  ;;  %v1654_v7 = vadd.f32 %v1638_v5, %v10779_v27  ;;  %v1640_v11 = vadd.f32 %v10633_v22, %v1479_v58  ;;  %v1481_v18 = vadd.f32 %v10677_v23, %v1352_v9 }
 0x1ca   :  { %6822 = vmatprep.mubr.msk.f32.mxu0 %vm3082_vm1, %v3034_v30  ;;  %6830 = vmatprep.mubr.msk.f32.mxu1 %vm3082_vm1, %v3034_v30  ;;  %v977_v12 = vadd.f32 %v10779_v27, %v949_v20  ;;  %v951_v13 = vadd.f32 %v14273_v50, %v765_v21  ;;  %v767_v2 = vadd.f32 %v14274_v48, %v580_v36  ;;  %v14279_v36 = vld [vmem:[#allocation73_spill] sm:$0xff] }
 0x1cb   :  { %3372 = vmatprep.subr.mxu0 %v13882_v60  ;;  %3477 = vmatprep.subr.mxu1 %v13882_v60  ;;  %v3038_v57 = vmax.f32 %v991_v52, %v1668_v6  ;;  %v1783_v22 = vpop.f32.mrf.mxu0  ;;  %v1670_v35 = vmax.f32 %v1654_v7, 0.0  ;;  %v1656_v30 = vadd.f32 %v1640_v11, %v10779_v27  ;;  %v14280_v52 = vld [vmem:[#allocation10_spill] sm:$0xff]  ;;  %v14282_v50 = vld [vmem:[#allocation53_spill] sm:$0xff] }
 0x1cc   :  { %3373 = vmatpush1.msra.mxu0 %v10477_v63  ;;  %3478 = vmatpush1.msra.mxu1 %v10482_v38  ;;  %v1896_v23 = vpop.f32.mrf.mxu1  ;;  %v1642_v63 = vadd.f32 %v10679_v43, %v1481_v18  ;;  %v979_v62 = vadd.f32 %v10779_v27, %v951_v13  ;;  %v953_v54 = vadd.f32 %v14277_v42, %v767_v2  ;;  %v14285_v42 = vld [vmem:[#allocation71_spill] sm:$0xff] }
 0x1cd   :  { %3182 = vmatmul.mubr.f32.gmra.mxu0 %v10533_v8  ;;  %3308 = vmatmul.mubr.f32.gmra.mxu1 %v10533_v8  ;;  %v11024_v5 = vadd.f32 %v1896_v23, %v1783_v22  ;;  %v11026_v38 = vpop.f32.mrf.mxu0  ;;  %v993_v8 = vmax.f32 %v977_v12, 0.0  ;;  %v1672_v51 = vmax.f32 %v1656_v30, 0.0  ;;  %v14281_v12 = vld [vmem:[#allocation66_spill] sm:$0xff]  ;;  %v14283_v23 = vld [vmem:[#allocation49_spill] sm:$0xff] }
 0x1ce   :  { %6823 = vmatprep.mubr.msk.f32.mxu0 %vm3082_vm1, %v3036_v17  ;;  %6831 = vmatprep.mubr.msk.f32.mxu1 %vm3082_vm1, %v3036_v17  ;;  %14275 = vst [vmem:[#allocation23_spill] sm:$0xff] %v11026_v38  ;;  %v11028_v58 = vpop.f32.mrf.mxu1  ;;  %v1658_v0 = vadd.f32 %v1642_v63, %v10779_v27 }
 0x1cf   :  { %14276 = vst [vmem:[#allocation3_spill] sm:$0xff] %v11028_v58  ;;  %3374 = vmatprep.subr.mxu0 %v13882_v60  ;;  %3479 = vmatprep.subr.mxu1 %v13882_v60  ;;  %v3040_v43 = vmax.f32 %v993_v8, %v1670_v35  ;;  %v14284_v35 = vld [vmem:[#allocation11_spill] sm:$0xff] }
 0x1d0   :  { %3375 = vmatpush1.msra.mxu0 %v10505_v14  ;;  %3480 = vmatpush1.msra.mxu1 %v10510_v3  ;;  %v995_v14 = vmax.f32 %v979_v62, 0.0  ;;  %v981_v3 = vadd.f32 %v10779_v27, %v953_v54  ;;  %v1674_v49 = vmax.f32 %v1658_v0, 0.0  ;;  %v14286_v54 = vld [vmem:[#allocation50_spill] sm:$0xff]  ;;  %v14287_v0 = vld [vmem:[#allocation12_spill] sm:$0xff] }
 0x1d1   :  { %3187 = vmatmul.mubr.f32.gmra.mxu0 %v10561_v61  ;;  %3313 = vmatmul.mubr.f32.gmra.mxu1 %v10561_v61  ;;  %v1967_v40 = vpop.f32.mrf.mxu0 }
 0x1d2   :  { %6824 = vmatprep.mubr.msk.f32.mxu0 %vm3082_vm1, %v3038_v57  ;;  %6832 = vmatprep.mubr.msk.f32.mxu1 %vm3082_vm1, %v3038_v57  ;;  %v2096_v10 = vpop.f32.mrf.mxu1  ;;  %v2014_v15 = vadd.f32 %v1967_v40, %v10714_v53  ;;  %v3042_v9 = vmax.f32 %v995_v14, %v1672_v51  ;;  %v14288_v40 = vld [vmem:[#allocation75_spill] sm:$0xff]  ;;  %v14289_v14 = vld [vmem:[#allocation14_spill] sm:$0xff] }
 0x1d3   :  { %3376 = vmatprep.subr.mxu0 %v13882_v60  ;;  %3481 = vmatprep.subr.mxu1 %v13882_v60  ;;  %v11049_v61 = vpop.f32.mrf.mxu0 }
 0x1d4   :  { %3377 = vmatpush1.msra.mxu0 %v10526_v37  ;;  %3482 = vmatpush1.msra.mxu1 %v10531_v47  ;;  %v11051_v20 = vpop.f32.mrf.mxu1  ;;  %v11055_v21 = vadd.f32 %v2096_v10, %v2014_v15  ;;  %v997_v47 = vmax.f32 %v981_v3, 0.0 }
 0x1d5   :  { %3192 = vmatmul.mubr.f32.gmra.mxu0 %v10594_v25  ;;  %3318 = vmatmul.mubr.f32.gmra.mxu1 %v10594_v25  ;;  %v1973_v53 = vpop.f32.mrf.mxu0 }
 0x1d6   :  { %6825 = vmatprep.mubr.msk.f32.mxu0 %vm3082_vm1, %v3040_v43  ;;  %6833 = vmatprep.mubr.msk.f32.mxu1 %vm3082_vm1, %v3040_v43  ;;  %v2102_v37 = vpop.f32.mrf.mxu1  ;;  %v2016_v25 = vadd.f32 %v1973_v53, %v10765_v31  ;;  %v3044_v7 = vmax.f32 %v997_v47, %v1674_v49  ;;  %v14292_v49 = vld [vmem:[#allocation18_spill] sm:$0xff] }
 0x1d7   :  { %3378 = vmatprep.subr.mxu0 %v13882_v60  ;;  %3483 = vmatprep.subr.mxu1 %v13882_v60  ;;  %v11064_v17 = vpop.f32.mrf.mxu0 }
 0x1d8   :  { %3379 = vmatpush1.msra.mxu0 %v10553_v33  ;;  %3484 = vmatpush1.msra.mxu1 %v14278_v19  ;;  %v11066_v6 = vpop.f32.mrf.mxu1  ;;  %v11070_v11 = vadd.f32 %v2102_v37, %v2016_v25  ;;  %v14294_v25 = vld [vmem:[#allocation19_spill] sm:$0xff]  ;;  %v14295_v19 = vld [vmem:[#allocation56_spill] sm:$0xff] }
 0x1d9   :  { %3197 = vmatmul.mubr.f32.gmra.mxu0 %v14279_v36  ;;  %3323 = vmatmul.mubr.f32.gmra.mxu1 %v14279_v36  ;;  %v1979_v31 = vpop.f32.mrf.mxu0 }
 0x1da   :  { %6826 = vmatprep.mubr.msk.f32.mxu0 %vm3082_vm1, %v3042_v9  ;;  %6834 = vmatprep.mubr.msk.f32.mxu1 %vm3082_vm1, %v3042_v9  ;;  %v2108_v18 = vpop.f32.mrf.mxu1  ;;  %v2018_v33 = vadd.f32 %v1979_v31, %v10814_v55  ;;  %v14291_v9 = vld [vmem:[#allocation81_spill] sm:$0xff] }
 0x1db   :  { %3380 = vmatprep.subr.mxu0 %v13882_v60  ;;  %3485 = vmatprep.subr.mxu1 %v13882_v60  ;;  %v11079_v13 = vpop.f32.mrf.mxu0 }
 0x1dc   :  { %3381 = vmatpush1.msra.mxu0 %v14280_v52  ;;  %3486 = vmatpush1.msra.mxu1 %v14281_v12  ;;  %v11081_v48 = vpop.f32.mrf.mxu1  ;;  %v11085_v2 = vadd.f32 %v2108_v18, %v2018_v33  ;;  %v14298_v33 = vld [vmem:[#allocation61_spill] sm:$0xff] }
 0x1dd   :  { %3202 = vmatmul.mubr.f32.gmra.mxu0 %v14282_v50  ;;  %3328 = vmatmul.mubr.f32.gmra.mxu1 %v14282_v50  ;;  %v1985_v57 = vpop.f32.mrf.mxu0  ;;  %v14299_v52 = vld [vmem:[#allocation37_spill] sm:$0xff] }
 0x1de   :  { %6827 = vmatprep.mubr.msk.f32.mxu0 %vm3082_vm1, %v3044_v7  ;;  %6835 = vmatprep.mubr.msk.f32.mxu1 %vm3082_vm1, %v3044_v7  ;;  %v2114_v55 = vpop.f32.mrf.mxu1  ;;  %v2020_v22 = vadd.f32 %v1985_v57, %v10861_v44  ;;  %v14296_v7 = vld [vmem:[#allocation25_spill] sm:$0xff] }
 0x1df   :  { %3382 = vmatprep.subr.mxu0 %v13882_v60  ;;  %3487 = vmatprep.subr.mxu1 %v13882_v60  ;;  %v11094_v30 = vpop.f32.mrf.mxu0 }
 0x1e0   :  { %3383 = vmatpush1.msra.mxu0 %v14283_v23  ;;  %3488 = vmatpush1.msra.mxu1 %v14284_v35  ;;  %v11096_v63 = vpop.f32.mrf.mxu1  ;;  %v11098_v8 = vadd.f32 %v2114_v55, %v2020_v22  ;;  %v14302_v55 = vld [vmem:[#allocation62_spill] sm:$0xff]  ;;  %v14304_v35 = vld [vmem:[#allocation65_spill] sm:$0xff] }
 0x1e1   :  { %3207 = vmatmul.mubr.f32.gmra.mxu0 %v10743_v34  ;;  %3333 = vmatmul.mubr.f32.gmra.mxu1 %v10743_v34  ;;  %v1991_v62 = vpop.f32.mrf.mxu0  ;;  %v14303_v22 = vld [vmem:[#allocation42_spill] sm:$0xff] }
 0x1e2   :  { %3384 = vmatprep.subr.mxu0 %v13882_v60  ;;  %3489 = vmatprep.subr.mxu1 %v13882_v60  ;;  %v2120_v44 = vpop.f32.mrf.mxu1  ;;  %v2022_v43 = vadd.f32 %v1991_v62, %v10907_v16  ;;  %v14290_v16 = vld [vmem:[#allocation15_spill] sm:$0xff] }
 0x1e3   :  { %3385 = vmatpush1.msra.mxu0 %v14285_v42  ;;  %3490 = vmatpush1.msra.mxu1 %v14286_v54  ;;  %v11107_v34 = vpop.f32.mrf.mxu0  ;;  %v14306_v42 = vld [vmem:[#allocation70_spill] sm:$0xff] }
 0x1e4   :  { %3386 = vmatprep.subr.mxu0 %v13882_v60  ;;  %3491 = vmatprep.subr.mxu1 %v13882_v60  ;;  %v11109_v51 = vpop.f32.mrf.mxu1  ;;  %v11113_v10 = vadd.f32 %v2120_v44, %v2022_v43 }
 0x1e5   :  { %3387 = vmatpush1.msra.mxu0 %v14287_v0  ;;  %3492 = vmatpush1.msra.mxu1 %v14288_v40 }
 0x1e6   :  { %3388 = vmatprep.subr.mxu0 %v13882_v60  ;;  %3493 = vmatprep.subr.mxu1 %v13882_v60 }
 0x1e7   :  { %3389 = vmatpush1.msra.mxu0 %v14289_v14  ;;  %3494 = vmatpush1.msra.mxu1 %v14290_v16  ;;  %v1997_v3 = vpop.f32.mrf.mxu0  ;;  %v14309_v14 = vld [vmem:[#allocation80_spill] sm:$0xff] }
 0x1e8   :  { %3390 = vmatprep.subr.mxu0 %v13882_v60  ;;  %3495 = vmatprep.subr.mxu1 %v13882_v60  ;;  %v2126_v15 = vpop.f32.mrf.mxu1  ;;  %v2024_v53 = vadd.f32 %v1997_v3, %v10961_v28  ;;  %v14297_v28 = vld [vmem:[#allocation59_spill] sm:$0xff] }
 0x1e9   :  { %3391 = vmatpush1.msra.mxu0 %v14291_v9  ;;  %3496 = vmatpush1.msra.mxu1 %v14292_v49  ;;  %v11126_v37 = vpop.f32.mrf.mxu0 }
 0x1ea   :  { %3392 = vmatprep.subr.mxu0 %v13882_v60  ;;  %3497 = vmatprep.subr.mxu1 %v13882_v60  ;;  %v11128_v47 = vpop.f32.mrf.mxu1  ;;  %v11132_v36 = vadd.f32 %v2126_v15, %v2024_v53 }
 0x1eb   :  { %14293 = vst [vmem:[#allocation4_spill] sm:$0xff] %v11128_v47  ;;  %3393 = vmatpush1.msra.mxu0 %v14294_v25  ;;  %3498 = vmatpush1.msra.mxu1 %v14295_v19 }
 0x1ec   :  { %3394 = vmatprep.subr.mxu0 %v13882_v60  ;;  %3499 = vmatprep.subr.mxu1 %v13882_v60 }
 0x1ed   :  { %3395 = vmatpush1.msra.mxu0 %v14296_v7  ;;  %3500 = vmatpush1.msra.mxu1 %v14297_v28  ;;  %v2003_v31 = vpop.f32.mrf.mxu0 }
 0x1ee   :  { %3396 = vmatprep.subr.mxu0 %v13882_v60  ;;  %3501 = vmatprep.subr.mxu1 %v13882_v60  ;;  %v2132_v18 = vpop.f32.mrf.mxu1  ;;  %v2026_v12 = vadd.f32 %v2003_v31, %v10994_v39  ;;  %v14305_v39 = vld [vmem:[#allocation67_spill] sm:$0xff] }
 0x1ef   :  { %3397 = vmatpush1.msra.mxu0 %v14298_v33  ;;  %3502 = vmatpush1.msra.mxu1 %v14299_v52  ;;  %v11145_v50 = vpop.f32.mrf.mxu0 }
 0x1f0   :  { %3398 = vmatprep.subr.mxu0 %v13882_v60  ;;  %3503 = vmatprep.subr.mxu1 %v13882_v60  ;;  %14300 = vst [vmem:[#allocation28_spill] sm:$0xff] %v11145_v50  ;;  %v11147_v57 = vpop.f32.mrf.mxu1  ;;  %v11151_v23 = vadd.f32 %v2132_v18, %v2026_v12 }
 0x1f1   :  { %14301 = vst [vmem:[#allocation6_spill] sm:$0xff] %v11147_v57  ;;  %3399 = vmatpush1.msra.mxu0 %v14302_v55  ;;  %3504 = vmatpush1.msra.mxu1 %v14303_v22 }
 0x1f2   :  { %3400 = vmatprep.subr.mxu0 %v13882_v60  ;;  %3505 = vmatprep.subr.mxu1 %v13882_v60 }
 0x1f3   :  { %3401 = vmatpush1.msra.mxu0 %v14304_v35  ;;  %3506 = vmatpush1.msra.mxu1 %v14305_v39  ;;  %v2009_v62 = vpop.f32.mrf.mxu0 }
 0x1f4   :  { %3424 = vmatprep.subr.mxu0 %v13882_v60  ;;  %3529 = vmatprep.subr.mxu1 %v13882_v60  ;;  %v2138_v44 = vpop.f32.mrf.mxu1  ;;  %v2028_v54 = vadd.f32 %v2009_v62, %v11024_v5 }
 0x1f5   :  { %3425 = vmatpush2.msra.mxu0 %v10854_v41  ;;  %3530 = vmatpush2.msra.mxu1 %v14306_v42  ;;  %v11164_v43 = vpop.f32.mrf.mxu0 }
 0x1f6   :  { %3426 = vmatprep.subr.mxu0 %v13882_v60  ;;  %3531 = vmatprep.subr.mxu1 %v13882_v60  ;;  %14307 = vst [vmem:[#allocation98_spill] sm:$0xff] %v11164_v43  ;;  %v11166_v0 = vpop.f32.mrf.mxu1  ;;  %v2157_v40 = vadd.f32 %v2138_v44, %v2028_v54 }
 0x1f7   :  { %14308 = vst [vmem:[#allocation40_spill] sm:$0xff] %v11166_v0  ;;  %3427 = vmatpush2.msra.mxu0 %v10879_v1  ;;  %3532 = vmatpush2.msra.mxu1 %v10884_v4  ;;  %v14310_v1 = vld [vmem:[#allocation82_spill] sm:$0xff]  ;;  %v3609_v4 = vld [vmem:[%s13638_s5 + $0xa8] sm:$0xf] }
 0x1f8   :  { %3428 = vmatprep.subr.mxu0 %v13882_v60  ;;  %3533 = vmatprep.subr.mxu1 %v13882_v60 }
 0x1f9   :  { %3429 = vmatpush2.msra.mxu0 %v10900_v29  ;;  %3534 = vmatpush2.msra.mxu1 %v10905_v46  ;;  %v2257_v41 = vpop.f32.mrf.mxu0 }
 0x1fa   :  { %3430 = vmatprep.subr.mxu0 %v13882_v60  ;;  %3535 = vmatprep.subr.mxu1 %v13882_v60  ;;  %v11176_v5 = vpop.f32.mrf.mxu1  ;;  %v11184_v29 = vadd.f32 %v2257_v41, %v11055_v21 }
 0x1fb   :  { %3431 = vmatpush2.msra.mxu0 %v14309_v14  ;;  %3536 = vmatpush2.msra.mxu1 %v14310_v1  ;;  %v11188_v46 = vpop.f32.mrf.mxu0 }
 0x1fc   :  { %3432 = vmatprep.subr.mxu0 %v13882_v60  ;;  %3537 = vmatprep.subr.mxu1 %v13882_v60  ;;  %v11190_v16 = vpop.f32.mrf.mxu1 }
 0x1fd   :  { %3433 = vmatpush2.msra.mxu0 %v10946_v45  ;;  %3538 = vmatpush2.msra.mxu1 %v10954_v59  ;;  %v2263_v3 = vpop.f32.mrf.mxu0 }
 0x1fe   :  { %6884 = vmatprep.subr.msk.mxu1 %vm3658_vm2, %v3609_v4  ;;  %v11195_v15 = vpop.f32.mrf.mxu1  ;;  %v11198_v21 = vadd.f32 %v2263_v3, %v11070_v11 }
 0x1ff   :  { %v11200_v9 = vpop.f32.mrf.mxu0 }
 0x200   :  { %v11202_v49 = vpop.f32.mrf.mxu1 }
 0x201   :  { %v2269_v53 = vpop.f32.mrf.mxu0 }
 0x202   :  { %v11204_v25 = vpop.f32.mrf.mxu1  ;;  %v11207_v19 = vadd.f32 %v2269_v53, %v11085_v2 }
 0x203   :  { %v11209_v45 = vpop.f32.mrf.mxu0 }
 0x204   :  { %v11211_v59 = vpop.f32.mrf.mxu1 }
 0x205   :  { %v2275_v7 = vpop.f32.mrf.mxu0 }
 0x206   :  { %v11213_v28 = vpop.f32.mrf.mxu1  ;;  %v11216_v11 = vadd.f32 %v2275_v7, %v11098_v8 }
 0x207   :  { %v11218_v31 = vpop.f32.mrf.mxu0 }
 0x208   :  { %14311 = vst [vmem:[#allocation16_spill] sm:$0xff] %v11216_v11  ;;  %v11220_v18 = vpop.f32.mrf.mxu1  ;;  %v14341_v11 = vld [vmem:[#allocation60_spill] sm:$0xff] }
 0x209   :  { %v2281_v33 = vpop.f32.mrf.mxu0 }
 0x20a   :  { %v11222_v52 = vpop.f32.mrf.mxu1  ;;  %v11225_v2 = vadd.f32 %v2281_v33, %v11113_v10 }
 0x20b   :  { %v11227_v12 = vpop.f32.mrf.mxu0 }
 0x20c   :  { %14312 = vst [vmem:[#allocation13_spill] sm:$0xff] %v11225_v2  ;;  %14313 = vst [vmem:[#allocation51_spill] sm:$0xff] %v11227_v12  ;;  %v11229_v55 = vpop.f32.mrf.mxu1  ;;  %v14339_v12 = vld [vmem:[#allocation24_spill] sm:$0xff] }
 0x20f   :  { %v2287_v22 = vpop.f32.mrf.mxu0 }
 0x210   :  { %v11231_v35 = vpop.f32.mrf.mxu1  ;;  %v11234_v8 = vadd.f32 %v2287_v22, %v11132_v36 }
 0x211   :  { %14314 = vst [vmem:[#allocation17_spill] sm:$0xff] %v11231_v35  ;;  %v11236_v39 = vpop.f32.mrf.mxu0  ;;  %v14338_v35 = vld [vmem:[#allocation21_spill] sm:$0xff] }
 0x212   :  { %14315 = vst [vmem:[#allocation54_spill] sm:$0xff] %v11234_v8  ;;  %14316 = vst [vmem:[#allocation44_spill] sm:$0xff] %v11236_v39  ;;  %v11238_v62 = vpop.f32.mrf.mxu1 }
 0x213   :  { %14317 = vst [vmem:[#allocation77_spill] sm:$0xff] %v11238_v62 }
 0x215   :  { %v2293_v44 = vpop.f32.mrf.mxu0 }
 0x216   :  { %v11240_v42 = vpop.f32.mrf.mxu1  ;;  %v11243_v10 = vadd.f32 %v2293_v44, %v11151_v23  ;;  %v11260_v23 = vld [vmem:[%s13638_s5 + $0x158] sm:$0xf] }
 0x217   :  { %14318 = vst [vmem:[#allocation83_spill] sm:$0xff] %v11240_v42  ;;  %v11245_v54 = vpop.f32.mrf.mxu0  ;;  %14326 = vst [vmem:[#allocation41_spill] sm:$0xff] %v11260_v23  ;;  %6874 = vmatprep.subr.msk.mxu0 %vm3658_vm2, %v11260_v23 }
 0x218   :  { %14319 = vst [vmem:[#allocation99_spill] sm:$0xff] %v11243_v10  ;;  %14320 = vst [vmem:[#allocation39_spill] sm:$0xff] %v11245_v54  ;;  %v11247_v41 = vpop.f32.mrf.mxu1 }
 0x219   :  { %14321 = vst [vmem:[#allocation55_spill] sm:$0xff] %v11247_v41 }
 0x21b   :  { %v2299_v14 = vpop.f32.mrf.mxu0 }
 0x21c   :  { %v11249_v1 = vpop.f32.mrf.mxu1  ;;  %v11251_v4 = vadd.f32 %v2299_v14, %v2157_v40 }
 0x21d   :  { %14322 = vst [vmem:[#allocation20_spill] sm:$0xff] %v11249_v1  ;;  %v11253_v36 = vpop.f32.mrf.mxu0 }
 0x21e   :  { %14323 = vst [vmem:[#allocation78_spill] sm:$0xff] %v11251_v4  ;;  %14324 = vst [vmem:[#allocation34_spill] sm:$0xff] %v11253_v36  ;;  %v11255_v3 = vpop.f32.mrf.mxu1 }
 0x21f   :  { %14325 = vst [vmem:[#allocation84_spill] sm:$0xff] %v11255_v3 }
 0x221   :  { %v2531_v53 = vpop.f32.mrf.mxu0 }
 0x222   :  { %v2644_v7 = vpop.f32.mrf.mxu1 }
 0x223   :  { %v2533_v33 = vpop.f32.mrf.mxu0 }
 0x224   :  { %v2646_v22 = vpop.f32.mrf.mxu1 }
 0x225   :  { %v2537_v44 = vpop.f32.mrf.mxu0 }
 0x226   :  { %v2650_v60 = vpop.f32.mrf.mxu1 }
 0x227   :  { %v2539_v40 = vpop.f32.mrf.mxu0 }
 0x228   :  { %v2652_v14 = vpop.f32.mrf.mxu1 }
 0x229   :  { %v2543_v4 = vpop.f32.mrf.mxu0 }
 0x22a   :  { %v11264_v36 = vpop.f32.mrf.mxu1 }
 0x22b   :  { %v2545_v0 = vpop.f32.mrf.mxu0 }
 0x22c   :  { %v11266_v3 = vpop.f32.mrf.mxu1 }
 0x22d   :  { %v11268_v10 = vpop.f32.mrf.mxu0 }
 0x22e   :  { %v11270_v1 = vpop.f32.mrf.mxu1 }
 0x22f   :  { %v11272_v54 = vpop.f32.mrf.mxu0 }
 0x230   :  { %v11274_v43 = vpop.f32.mrf.mxu1 }
 0x231   :  { %v11276_v57 = vpop.f32.mrf.mxu0 }
 0x232   :  { %v11278_v23 = vpop.f32.mrf.mxu1 }
 0x233   :  { %14327 = vst [vmem:[#allocation22_spill] sm:$0xff] %v11278_v23  ;;  %v11280_v41 = vpop.f32.mrf.mxu0  ;;  %v1857_v23 = vadd.f32 %v14339_v12, %v14338_v35  ;;  %v2534_v12 = vadd.f32 %v2533_v33, %v11190_v16  ;;  %v14347_v35 = vld [vmem:[#allocation48_spill] sm:$0xff]  ;;  %v11329_v33 = vadd.f32 %v10971_v24, %v10969_v56 }
 0x234   :  { %14328 = vst [vmem:[#allocation57_spill] sm:$0xff] %v11280_v41  ;;  %v11282_v8 = vpop.f32.mrf.mxu1 }
 0x235   :  { %14329 = vst [vmem:[#allocation85_spill] sm:$0xff] %v11282_v8  ;;  %v2015_v8 = vadd.f32 %v11049_v61, %v1857_v23  ;;  %v14346_v61 = vld [vmem:[#allocation45_spill] sm:$0xff] }
 0x236   :  { %v1869_v23 = vadd.f32 %v14347_v35, %v14346_v61 }
 0x237   :  { %v11284_v58 = vpop.f32.mrf.mxu0 }
 0x238   :  { %14330 = vst [vmem:[#allocation97_spill] sm:$0xff] %v11284_v58  ;;  %v11286_v38 = vpop.f32.mrf.mxu1  ;;  %v14340_v58 = vld [vmem:[#allocation29_spill] sm:$0xff] }
 0x239   :  { %14331 = vst [vmem:[#allocation52_spill] sm:$0xff] %v11286_v38  ;;  %v11288_v42 = vpop.f32.mrf.mxu0  ;;  %v1863_v38 = vadd.f32 %v14341_v11, %v14340_v58 }
 0x23a   :  { %14332 = vst [vmem:[#allocation8_spill] sm:$0xff] %v11288_v42  ;;  %v11290_v39 = vpop.f32.mrf.mxu1 }
 0x23b   :  { %14333 = vst [vmem:[#allocation100_spill] sm:$0xff] %v11290_v39  ;;  %v2532_v39 = vadd.f32 %v2531_v53, %v11176_v5  ;;  %v14349_v5 = vld [vmem:[#allocation74_spill] sm:$0xff] }
 0x23d   :  { %v11292_v50 = vpop.f32.mrf.mxu0  ;;  %v2691_v11 = vadd.f32 %v2644_v7, %v2532_v39  ;;  %v14352_v7 = vld [vmem:[#allocation47_spill] sm:$0xff] }
 0x23e   :  { %14334 = vst [vmem:[#allocation58_spill] sm:$0xff] %v11292_v50  ;;  %v11294_v62 = vpop.f32.mrf.mxu1 }
 0x23f   :  { %14335 = vst [vmem:[#allocation26_spill] sm:$0xff] %v11294_v62  ;;  %v11296_v2 = vpop.f32.mrf.mxu0  ;;  %v2017_v62 = vadd.f32 %v11064_v17, %v1863_v38  ;;  %v14350_v38 = vld [vmem:[#allocation76_spill] sm:$0xff]  ;;  %v14351_v17 = vld [vmem:[#allocation79_spill] sm:$0xff] }
 0x240   :  { %14336 = vst [vmem:[#allocation87_spill] sm:$0xff] %v11296_v2  ;;  %v11298_v47 = vpop.f32.mrf.mxu1 }
 0x241   :  { %14337 = vst [vmem:[#allocation86_spill] sm:$0xff] %v11298_v47  ;;  %v2144_v47 = vadd.f32 %v11051_v20, %v2015_v8  ;;  %v2019_v20 = vadd.f32 %v11079_v13, %v1869_v23 }
 0x243   :  { %v11305_v41 = vpop.f32.mrf.mxu0  ;;  %v2305_v58 = vadd.f32 %v11188_v46, %v2144_v47  ;;  %v2692_v47 = vadd.f32 %v2646_v22, %v2534_v12  ;;  %v2540_v46 = vadd.f32 %v2539_v40, %v11202_v49  ;;  %v11340_v49 = vadd.f32 %v11004_v26, %v11002_v32 }
 0x244   :  { %14342 = vst [vmem:[#allocation89_spill] sm:$0xff] %v11305_v41  ;;  %v11307_v42 = vpop.f32.mrf.mxu1  ;;  %v14348_v41 = vld [vmem:[#allocation72_spill] sm:$0xff] }
 0x245   :  { %14343 = vst [vmem:[#allocation9_spill] sm:$0xff] %v11307_v42  ;;  %v11311_v50 = vpop.f32.mrf.mxu0  ;;  %v2538_v42 = vadd.f32 %v2537_v44, %v11195_v15  ;;  %v1875_v53 = vadd.f32 %v14349_v5, %v14348_v41  ;;  %v2320_v44 = vadd.f32 %v11184_v29, %v14352_v7  ;;  %v2321_v61 = vadd.f32 %v2305_v58, %v10779_v27 }
 0x246   :  { %14344 = vst [vmem:[#allocation31_spill] sm:$0xff] %v11311_v50  ;;  %v11313_v2 = vpop.f32.mrf.mxu1  ;;  %v1881_v50 = vadd.f32 %v14351_v17, %v14350_v38 }
 0x247   :  { %14345 = vst [vmem:[#allocation38_spill] sm:$0xff] %v11313_v2  ;;  %v2146_v2 = vadd.f32 %v11066_v6, %v2017_v62  ;;  %v2021_v39 = vadd.f32 %v11094_v30, %v1875_v53  ;;  %v2693_v35 = vadd.f32 %v2650_v60, %v2538_v42  ;;  %v2148_v30 = vadd.f32 %v11081_v48, %v2019_v20 }
 0x248   :  { %v2023_v41 = vadd.f32 %v11107_v34, %v1881_v50  ;;  %v2544_v34 = vadd.f32 %v2543_v4, %v11204_v25  ;;  %v2546_v50 = vadd.f32 %v2545_v0, %v11211_v59  ;;  %v2336_v32 = vmax.f32 %v2320_v44, 0.0 }
 0x249   :  { %v2773_v8 = vpop.f32.mrf.mxu0  ;;  %v2307_v6 = vadd.f32 %v11200_v9, %v2146_v2  ;;  %v2694_v9 = vadd.f32 %v2652_v14, %v2540_v46  ;;  %v2150_v60 = vadd.f32 %v11096_v63, %v2021_v39  ;;  %v2337_v25 = vmax.f32 %v2321_v61, 0.0  ;;  %v3607_v61 = vld [vmem:[%s13638_s5 + $0x98] sm:$0xff] }
 0x24a   :  { %v2934_v16 = vpop.f32.mrf.mxu1  ;;  %v2820_v15 = vadd.f32 %v2773_v8, %v2691_v11  ;;  %v11348_v42 = vadd.f32 %v11109_v51, %v2023_v41  ;;  %v2309_v14 = vadd.f32 %v11209_v45, %v2148_v30  ;;  %v2695_v58 = vadd.f32 %v11264_v36, %v2544_v34 }
 0x24b   :  { %v2775_v13 = vpop.f32.mrf.mxu0  ;;  %v2323_v26 = vadd.f32 %v2307_v6, %v10779_v27  ;;  %v2696_v11 = vadd.f32 %v11266_v3, %v2546_v50  ;;  %v2550_v53 = vadd.f32 %v11268_v10, %v11213_v28  ;;  %v2322_v8 = vadd.f32 %v11198_v21, %v14352_v7 }
 0x24c   :  { %v2936_v62 = vpop.f32.mrf.mxu1  ;;  %v2981_v56 = vadd.f32 %v2934_v16, %v2820_v15  ;;  %v2821_v24 = vadd.f32 %v2775_v13, %v2692_v47  ;;  %v2552_v45 = vadd.f32 %v11272_v54, %v11220_v18  ;;  %v11364_v46 = vadd.f32 %v11207_v19, %v14352_v7  ;;  %v3608_v18 = vld [vmem:[%s13638_s5 + $0xa0] sm:$0xf]  ;;  %v11374_v54 = vld [vmem:[%s13638_s5 + $0x150] sm:$0xf] }
 0x24d   :  { %v2779_v29 = vpop.f32.mrf.mxu0  ;;  %v2339_v16 = vmax.f32 %v2323_v26, 0.0  ;;  %v2325_v39 = vadd.f32 %v2309_v14, %v10779_v27  ;;  %v2311_v19 = vadd.f32 %v11218_v31, %v2150_v60  ;;  %v2697_v6 = vadd.f32 %v11270_v1, %v2550_v53  ;;  %v11405_v60 = vld [vmem:[%s13638_s5 + $0x140] sm:$0xff] }
 0x24e   :  { %v2940_v22 = vpop.f32.mrf.mxu1  ;;  %v2997_v2 = vadd.f32 %v2981_v56, %v14352_v7  ;;  %v2982_v40 = vadd.f32 %v2936_v62, %v2821_v24  ;;  %v2822_v12 = vadd.f32 %v2779_v29, %v2693_v35  ;;  %v11386_v35 = vld [vmem:[%s13638_s5 + $0x148] sm:$0xff]  ;;  %v2338_v56 = vmax.f32 %v2322_v8, 0.0  ;;  %v14355_v14 = vld [vmem:[#allocation22_spill] sm:$0xff] }
 0x24f   :  { %v2781_v48 = vpop.f32.mrf.mxu0  ;;  %v2698_v31 = vadd.f32 %v11274_v43, %v2552_v45  ;;  %v2556_v1 = vadd.f32 %v11276_v57, %v11222_v52  ;;  %v2025_v43 = vadd.f32 %v11126_v37, %v11329_v33 }
 0x250   :  { %v2942_v23 = vpop.f32.mrf.mxu1  ;;  %v2998_v0 = vadd.f32 %v2982_v40, %v10779_v27  ;;  %v2983_v59 = vadd.f32 %v2940_v22, %v2822_v12  ;;  %v2823_v4 = vadd.f32 %v2781_v48, %v2694_v9  ;;  %v3013_v63 = vmax.f32 %v2997_v2, 0.0  ;;  %v3606_v12 = vld [vmem:[%s13638_s5 + $0x90] sm:$0xff] }
 0x251   :  { %v2785_v5 = vpop.f32.mrf.mxu0  ;;  %v2341_v9 = vmax.f32 %v2325_v39, 0.0  ;;  %v14360_v39 = vld [vmem:[#allocation4_spill] sm:$0xff] }
 0x252   :  { %v2946_v51 = vpop.f32.mrf.mxu1  ;;  %v3014_v38 = vmax.f32 %v2998_v0, 0.0  ;;  %v2999_v17 = vadd.f32 %v2983_v59, %v14352_v7  ;;  %v2984_v20 = vadd.f32 %v2942_v23, %v2823_v4  ;;  %v2824_v36 = vadd.f32 %v2785_v5, %v2695_v58  ;;  %v3605_v23 = vld [vmem:[%s13638_s5 + $0x88] sm:$0xff] }
 0x253   :  { %v2787_v47 = vpop.f32.mrf.mxu0  ;;  %v3045_v41 = vmax.f32 %v2336_v32, %v3013_v63  ;;  %v14353_v32 = vld [vmem:[#allocation57_spill] sm:$0xff]  ;;  %v2340_v0 = vmax.f32 %v11364_v46, 0.0  ;;  %v2327_v4 = vadd.f32 %v2311_v19, %v10779_v27  ;;  %v2699_v58 = vadd.f32 %v14355_v14, %v2556_v1  ;;  %v11490_v14 = vld [vmem:[%s13638_s5 + $0x110] sm:$0xff] }
 0x254   :  { %v2948_v3 = vpop.f32.mrf.mxu1  ;;  %v3046_v15 = vmax.f32 %v2337_v25, %v3014_v38  ;;  %v3000_v28 = vadd.f32 %v2984_v20, %v10779_v27  ;;  %v2825_v10 = vadd.f32 %v2787_v47, %v2696_v11  ;;  %v3015_v44 = vmax.f32 %v2999_v17, 0.0  ;;  %v11417_v25 = vld [vmem:[%s13638_s5 + $0x138] sm:$0xff]  ;;  %v11437_v47 = vld [vmem:[%s13638_s5 + $0x130] sm:$0xff] }
 0x255   :  { %v2985_v21 = vadd.f32 %v2946_v51, %v2824_v36  ;;  %v2558_v37 = vadd.f32 %v14353_v32, %v11229_v55  ;;  %v14354_v55 = vld [vmem:[#allocation16_spill] sm:$0xff]  ;;  %v14356_v51 = vld [vmem:[#allocation51_spill] sm:$0xff]  ;;  %v14357_v38 = vld [vmem:[#allocation17_spill] sm:$0xff] }
 0x256   :  { %v3016_v13 = vmax.f32 %v3000_v28, 0.0  ;;  %v2986_v62 = vadd.f32 %v2948_v3, %v2825_v10  ;;  %6836 = vmatprep.mubr.msk.f32.mxu0 %vm3082_vm1, %v3046_v15  ;;  %6844 = vmatprep.mubr.msk.f32.mxu1 %vm3082_vm1, %v3046_v15  ;;  %v3047_v57 = vmax.f32 %v2338_v56, %v3015_v44  ;;  %v2326_v59 = vadd.f32 %v14354_v55, %v14352_v7  ;;  %v14358_v17 = vld [vmem:[#allocation97_spill] sm:$0xff]  ;;  %v3604_v36 = vld [vmem:[%s13638_s5 + $0x80] sm:$0xff]  ;;  %v11449_v10 = vld [vmem:[%s13638_s5 + $0x128] sm:$0xff] }
 0x257   :  { %v3001_v24 = vadd.f32 %v2985_v21, %v14352_v7  ;;  %v2791_v30 = vpop.f32.mrf.mxu0  ;;  %3435 = vmatmul.mubr.f32.vlgmr.msra.gmra.mxu0 %v3045_v41  ;;  %3540 = vmatmul.mubr.f32.vlgmr.msra.gmra.mxu1 %v3045_v41  ;;  %v2313_v53 = vadd.f32 %v14356_v51, %v11348_v42  ;;  %v2562_v20 = vadd.f32 %v14358_v17, %v14357_v38  ;;  %v14359_v3 = vld [vmem:[#allocation85_spill] sm:$0xff]  ;;  %v2343_v44 = vmax.f32 %v2327_v4, 0.0  ;;  %v3600_v4 = vld [vmem:[%s13638_s5 + $0x60] sm:$0xff]  ;;  %v11502_v38 = vld [vmem:[%s13638_s5 + $0x108] sm:$0xff] }
 0x258   :  { %v2952_v34 = vpop.f32.mrf.mxu1  ;;  %v3048_v50 = vmax.f32 %v2339_v16, %v3016_v13  ;;  %v3002_v29 = vadd.f32 %v2986_v62, %v10779_v27  ;;  %v2826_v22 = vadd.f32 %v2791_v30, %v2697_v6  ;;  %6885 = vmatpush1.msk.msra.mxu1 %vm3658_vm2, %v3608_v18  ;;  %6875 = vmatpush1.msk.msra.mxu0 %vm3658_vm2, %v11374_v54  ;;  %v3603_v28 = vld [vmem:[%s13638_s5 + $0x78] sm:$0xff]  ;;  %v3602_v62 = vld [vmem:[%s13638_s5 + $0x70] sm:$0xff]  ;;  %v14370_v17 = vld [vmem:[#allocation23_spill] sm:$0xff] }
 0x259   :  { %v3017_v52 = vmax.f32 %v3001_v24, 0.0  ;;  %v2793_v2 = vpop.f32.mrf.mxu0  ;;  %3820 = vmatprep.subr.mxu1 %v3607_v61  ;;  %3677 = vmatprep.subr.mxu0 %v11386_v35  ;;  %v2700_v42 = vadd.f32 %v14359_v3, %v2558_v37  ;;  %v2154_v41 = vadd.f32 %v14360_v39, %v2025_v43  ;;  %v14361_v21 = vld [vmem:[#allocation13_spill] sm:$0xff]  ;;  %v11460_v61 = vld [vmem:[%s13638_s5 + $0x120] sm:$0xff]  ;;  %v14373_v3 = vld [vmem:[#allocation55_spill] sm:$0xff] }
 0x25a   :  { %v2954_v40 = vpop.f32.mrf.mxu1  ;;  %v3018_v33 = vmax.f32 %v3002_v29, 0.0  ;;  %v2987_v26 = vadd.f32 %v2952_v34, %v2826_v22  ;;  %v2827_v48 = vadd.f32 %v2793_v2, %v2698_v31  ;;  %6837 = vmatprep.mubr.msk.f32.mxu0 %vm3082_vm1, %v3048_v50  ;;  %6845 = vmatprep.mubr.msk.f32.mxu1 %vm3082_vm1, %v3048_v50  ;;  %v2328_v18 = vadd.f32 %v14361_v21, %v14352_v7  ;;  %v14362_v56 = vld [vmem:[#allocation77_spill] sm:$0xff]  ;;  %v14363_v31 = vld [vmem:[#allocation8_spill] sm:$0xff]  ;;  %v3601_v50 = vld [vmem:[%s13638_s5 + $0x68] sm:$0xff] }
 0x25b   :  { %3440 = vmatmul.mubr.f32.gmra.mxu0 %v3047_v57  ;;  %3545 = vmatmul.mubr.f32.gmra.mxu1 %v3047_v57  ;;  %v3049_v8 = vmax.f32 %v2340_v0, %v3017_v52  ;;  %v2564_v1 = vadd.f32 %v14363_v31, %v14362_v56  ;;  %v11471_v29 = vld [vmem:[%s13638_s5 + $0x118] sm:$0xff]  ;;  %v14364_v22 = vld [vmem:[#allocation28_spill] sm:$0xff]  ;;  %v2329_v57 = vadd.f32 %v2313_v53, %v10779_v27 }
 0x25c   :  { %v3050_v11 = vmax.f32 %v2341_v9, %v3018_v33  ;;  %v3003_v63 = vadd.f32 %v2987_v26, %v14352_v7  ;;  %v2988_v5 = vadd.f32 %v2954_v40, %v2827_v48  ;;  %3821 = vmatpush1.msra.mxu1 %v3606_v12  ;;  %3678 = vmatpush1.msra.mxu0 %v11405_v60  ;;  %v2342_v9 = vmax.f32 %v2326_v59, 0.0  ;;  %v14365_v52 = vld [vmem:[#allocation52_spill] sm:$0xff]  ;;  %v14367_v48 = vld [vmem:[#allocation83_spill] sm:$0xff]  ;;  %v3599_v53 = vld [vmem:[%s13638_s5 + $0x58] sm:$0xff] }
 0x25d   :  { %v2797_v16 = vpop.f32.mrf.mxu0  ;;  %3822 = vmatprep.subr.mxu1 %v3605_v23  ;;  %3679 = vmatprep.subr.mxu0 %v11417_v25  ;;  %v2027_v43 = vadd.f32 %v14364_v22, %v11340_v49  ;;  %v2701_v2 = vadd.f32 %v14365_v52, %v2562_v20  ;;  %v2344_v37 = vmax.f32 %v2328_v18, 0.0  ;;  %v14366_v33 = vld [vmem:[#allocation44_spill] sm:$0xff]  ;;  %v14368_v49 = vld [vmem:[#allocation58_spill] sm:$0xff]  ;;  %v14371_v20 = vld [vmem:[#allocation3_spill] sm:$0xff] }
 0x25e   :  { %v2958_v45 = vpop.f32.mrf.mxu1  ;;  %v3004_v46 = vadd.f32 %v2988_v5, %v10779_v27  ;;  %v2828_v15 = vadd.f32 %v2797_v16, %v2699_v58  ;;  %6838 = vmatprep.mubr.msk.f32.mxu0 %vm3082_vm1, %v3050_v11  ;;  %6846 = vmatprep.mubr.msk.f32.mxu1 %vm3082_vm1, %v3050_v11  ;;  %v3019_v19 = vmax.f32 %v3003_v63, 0.0  ;;  %v2315_v26 = vadd.f32 %v14366_v33, %v2154_v41  ;;  %v14369_v58 = vld [vmem:[#allocation100_spill] sm:$0xff]  ;;  %v11516_v41 = vld [vmem:[%s13638_s5 + $0x100] sm:$0xff]  ;;  %v14378_v52 = vld [vmem:[#allocation39_spill] sm:$0xff] }
 0x25f   :  { %v2799_v6 = vpop.f32.mrf.mxu0  ;;  %3445 = vmatmul.mubr.f32.gmra.mxu0 %v3049_v8  ;;  %3550 = vmatmul.mubr.f32.gmra.mxu1 %v3049_v8  ;;  %v2568_v23 = vadd.f32 %v14368_v49, %v14367_v48  ;;  %v2702_v11 = vadd.f32 %v14369_v58, %v2564_v1  ;;  %v1899_v8 = vadd.f32 %v14371_v20, %v14370_v17  ;;  %v2345_v16 = vmax.f32 %v2329_v57, 0.0  ;;  %v3598_v39 = vld [vmem:[%s13638_s5 + $0x50] sm:$0xff]  ;;  %v14376_v1 = vld [vmem:[#allocation26_spill] sm:$0xff] }
 0x260   :  { %v2960_v13 = vpop.f32.mrf.mxu1  ;;  %v3020_v24 = vmax.f32 %v3004_v46, 0.0  ;;  %v2989_v30 = vadd.f32 %v2958_v45, %v2828_v15  ;;  %v2829_v34 = vadd.f32 %v2799_v6, %v2700_v42  ;;  %3823 = vmatpush1.msra.mxu1 %v3604_v36  ;;  %3680 = vmatpush1.msra.mxu0 %v11437_v47  ;;  %v3051_v0 = vmax.f32 %v2342_v9, %v3019_v19  ;;  %v14372_v45 = vld [vmem:[#allocation54_spill] sm:$0xff]  ;;  %v14374_v42 = vld [vmem:[#allocation87_spill] sm:$0xff] }
 0x261   :  { %3824 = vmatprep.subr.mxu1 %v3603_v28  ;;  %3681 = vmatprep.subr.mxu0 %v11449_v10  ;;  %v2330_v36 = vadd.f32 %v14372_v45, %v14352_v7  ;;  %v2570_v46 = vadd.f32 %v14374_v42, %v14373_v3  ;;  %v3597_v6 = vld [vmem:[%s13638_s5 + $0x48] sm:$0xff]  ;;  %v2331_v31 = vadd.f32 %v2315_v26, %v10779_v27  ;;  %v14377_v22 = vld [vmem:[#allocation98_spill] sm:$0xff]  ;;  %v11544_v26 = vld [vmem:[%s13638_s5 + $0xf0] sm:$0xff] }
 0x262   :  { %v3052_v40 = vmax.f32 %v2343_v44, %v3020_v24  ;;  %v3005_v12 = vadd.f32 %v2989_v30, %v14352_v7  ;;  %v2990_v32 = vadd.f32 %v2960_v13, %v2829_v34  ;;  %3825 = vmatpush1.msra.mxu1 %v3602_v62  ;;  %3682 = vmatpush1.msra.mxu0 %v11460_v61  ;;  %v11525_v13 = vld [vmem:[%s13638_s5 + $0xf8] sm:$0xff]  ;;  %v14375_v62 = vld [vmem:[#allocation6_spill] sm:$0xff] }
 0x263   :  { %v2803_v55 = vpop.f32.mrf.mxu0  ;;  %3826 = vmatprep.subr.mxu1 %v3601_v50  ;;  %3683 = vmatprep.subr.mxu0 %v11471_v29  ;;  %v2156_v56 = vadd.f32 %v14375_v62, %v2027_v43  ;;  %v2703_v24 = vadd.f32 %v14376_v1, %v2568_v23  ;;  %v2029_v9 = vadd.f32 %v14377_v22, %v1899_v8  ;;  %v2346_v57 = vmax.f32 %v2330_v36, 0.0  ;;  %v14379_v43 = vld [vmem:[#allocation20_spill] sm:$0xff]  ;;  %v3596_v33 = vld [vmem:[%s13638_s5 + $0x40] sm:$0xff] }
 0x264   :  { %v2964_v59 = vpop.f32.mrf.mxu1  ;;  %v3021_v63 = vmax.f32 %v3005_v12, 0.0  ;;  %v3006_v5 = vadd.f32 %v2990_v32, %v10779_v27  ;;  %v2830_v51 = vadd.f32 %v2803_v55, %v2701_v2  ;;  %6839 = vmatprep.mubr.msk.f32.mxu0 %vm3082_vm1, %v3052_v40  ;;  %6847 = vmatprep.mubr.msk.f32.mxu1 %vm3082_vm1, %v3052_v40  ;;  %v14380_v40 = vld [vmem:[#allocation89_spill] sm:$0xff]  ;;  %v14381_v48 = vld [vmem:[#allocation86_spill] sm:$0xff]  ;;  %v2347_v58 = vmax.f32 %v2331_v31, 0.0  ;;  %v3594_v8 = vld [vmem:[%s13638_s5 + $0x30] sm:$0xff] }
 0x265   :  { %v2805_v15 = vpop.f32.mrf.mxu0  ;;  %3450 = vmatmul.mubr.f32.gmra.mxu0 %v3051_v0  ;;  %3555 = vmatmul.mubr.f32.gmra.mxu1 %v3051_v0  ;;  %v2317_v2 = vadd.f32 %v14378_v52, %v2156_v56  ;;  %v2574_v12 = vadd.f32 %v14380_v40, %v14379_v43  ;;  %v2704_v49 = vadd.f32 %v14381_v48, %v2570_v46  ;;  %v11573_v46 = vld [vmem:[%s13638_s5 + $0x28] sm:$0xff]  ;;  %v14387_v31 = vld [vmem:[#allocation34_spill] sm:$0xff]  ;;  %v11607_v43 = vld [vmem:[%s13638_s5 + $0x18] sm:$0xff] }
 0x266   :  { %v2966_v28 = vpop.f32.mrf.mxu1  ;;  %v3053_v44 = vmax.f32 %v2344_v37, %v3021_v63  ;;  %v3022_v21 = vmax.f32 %v3006_v5, 0.0  ;;  %v2991_v18 = vadd.f32 %v2964_v59, %v2830_v51  ;;  %v2831_v19 = vadd.f32 %v2805_v15, %v2702_v11  ;;  %3827 = vmatpush1.msra.mxu1 %v3600_v4  ;;  %3684 = vmatpush1.msra.mxu0 %v11490_v14  ;;  %v3595_v59 = vld [vmem:[%s13638_s5 + $0x38] sm:$0xff]  ;;  %v11556_v4 = vld [vmem:[%s13638_s5 + $0xe8] sm:$0xff]  ;;  %v14383_v5 = vld [vmem:[#allocation84_spill] sm:$0xff] }
 0x267   :  { %3828 = vmatprep.subr.mxu1 %v3599_v53  ;;  %3685 = vmatprep.subr.mxu0 %v11502_v38  ;;  %v14382_v11 = vld [vmem:[#allocation99_spill] sm:$0xff]  ;;  %v11579_v15 = vld [vmem:[%s13638_s5 + $0xd8] sm:$0xff]  ;;  %v14388_v22 = vld [vmem:[#allocation38_spill] sm:$0xff] }
 0x268   :  { %v3054_v30 = vmax.f32 %v2345_v16, %v3022_v21  ;;  %v3007_v34 = vadd.f32 %v2991_v18, %v14352_v7  ;;  %v2992_v50 = vadd.f32 %v2966_v28, %v2831_v19  ;;  %3829 = vmatpush1.msra.mxu1 %v3598_v39  ;;  %3686 = vmatpush1.msra.mxu0 %v11516_v41  ;;  %v14384_v51 = vld [vmem:[#allocation31_spill] sm:$0xff]  ;;  %v11568_v16 = vld [vmem:[%s13638_s5 + $0xe0] sm:$0xff]  ;;  %v14385_v28 = vld [vmem:[#allocation40_spill] sm:$0xff] }
 0x269   :  { %v2809_v32 = vpop.f32.mrf.mxu0  ;;  %3830 = vmatprep.subr.mxu1 %v3597_v6  ;;  %3687 = vmatprep.subr.mxu0 %v11525_v13  ;;  %v2332_v63 = vadd.f32 %v14382_v11, %v14352_v7  ;;  %v2576_v53 = vadd.f32 %v14384_v51, %v14383_v5  ;;  %v2158_v39 = vadd.f32 %v14385_v28, %v2029_v9  ;;  %v14386_v21 = vld [vmem:[#allocation9_spill] sm:$0xff]  ;;  %v11612_v40 = vld [vmem:[%s13638_s5 + $0xc8] sm:$0xff]  ;;  %v11619_v48 = vld [vmem:[%s13638_s5 + $0x10] sm:$0xff] }
 0x26a   :  { %v2970_v37 = vpop.f32.mrf.mxu1  ;;  %v3023_v23 = vmax.f32 %v3007_v34, 0.0  ;;  %v3008_v0 = vadd.f32 %v2992_v50, %v10779_v27  ;;  %v2832_v55 = vadd.f32 %v2809_v32, %v2703_v24  ;;  %6840 = vmatprep.mubr.msk.f32.mxu0 %vm3082_vm1, %v3054_v30  ;;  %6848 = vmatprep.mubr.msk.f32.mxu1 %vm3082_vm1, %v3054_v30  ;;  %v2705_v18 = vadd.f32 %v14386_v21, %v2574_v12  ;;  %v11592_v34 = vld [vmem:[%s13638_s5 + $0x20] sm:$0xff]  ;;  %v11598_v50 = vld [vmem:[%s13638_s5 + $0xd0] sm:$0xff] }
 0x26b   :  { %v2811_v17 = vpop.f32.mrf.mxu0  ;;  %3455 = vmatmul.mubr.f32.gmra.mxu0 %v3053_v44  ;;  %3560 = vmatmul.mubr.f32.gmra.mxu1 %v3053_v44  ;;  %v2333_v44 = vadd.f32 %v2317_v2, %v10779_v27  ;;  %v2348_v56 = vmax.f32 %v2332_v63, 0.0  ;;  %v2319_v1 = vadd.f32 %v14387_v31, %v2158_v39  ;;  %v2706_v9 = vadd.f32 %v14388_v22, %v2576_v53  ;;  %v14389_v32 = vld [vmem:[#allocation78_spill] sm:$0xff]  ;;  %v11657_v21 = vld [vmem:[%s13638_s5 + $0x2b0] sm:$0xf] }
 0x26c   :  { %v2972_v20 = vpop.f32.mrf.mxu1  ;;  %v3055_v45 = vmax.f32 %v2346_v57, %v3023_v23  ;;  %v3024_v36 = vmax.f32 %v3008_v0, 0.0  ;;  %v2993_v3 = vadd.f32 %v2970_v37, %v2832_v55  ;;  %v2833_v42 = vadd.f32 %v2811_v17, %v2704_v49  ;;  %3831 = vmatpush1.msra.mxu1 %v3596_v33  ;;  %3688 = vmatpush1.msra.mxu0 %v11544_v26  ;;  %v11637_v53 = vld [vmem:[%s13638_s5] sm:$0xff] }
 0x26d   :  { %3832 = vmatprep.subr.mxu1 %v3595_v59  ;;  %3689 = vmatprep.subr.mxu0 %v11556_v4  ;;  %v2349_v12 = vmax.f32 %v2333_v44, 0.0  ;;  %v2334_v37 = vadd.f32 %v14389_v32, %v14352_v7  ;;  %v11625_v59 = vld [vmem:[%s13638_s5 + $0x8] sm:$0xff]  ;;  %v2335_v11 = vadd.f32 %v2319_v1, %v10779_v27  ;;  %14391 = vst [vmem:[#allocation32_spill] sm:$0xff] %v11637_v53  ;;  %14394 = vst [vmem:[#allocation90_spill] sm:$0xff] %v11657_v21  ;;  %v11676_v1 = vld [vmem:[%s13638_s5 + $0x298] sm:$0xff] }
 0x26e   :  { %v3056_v19 = vmax.f32 %v2347_v58, %v3024_v36  ;;  %v3009_v6 = vadd.f32 %v2993_v3, %v14352_v7  ;;  %v2994_v62 = vadd.f32 %v2972_v20, %v2833_v42  ;;  %3833 = vmatpush1.msra.mxu1 %v3594_v8  ;;  %3690 = vmatpush1.msra.mxu0 %v11568_v16  ;;  %v14393_v42 = vmov 0.0  }
 0x26f   :  { %v2815_v24 = vpop.f32.mrf.mxu0  ;;  %3834 = vmatprep.subr.mxu1 %v11573_v46  ;;  %3691 = vmatprep.subr.mxu0 %v11579_v15  ;;  %14390 = vst [vmem:[#allocation88_spill] sm:$0xff] %v11625_v59  ;;  %v2350_v17 = vmax.f32 %v2334_v37, 0.0  ;;  %14397 = vst [vmem:[#allocation91_spill] sm:$0xff] %v11676_v1  ;;  %v11695_v37 = vld [vmem:[%s13638_s5 + $0x280] sm:$0xff] }
 0x270   :  { %v2976_v30 = vpop.f32.mrf.mxu1  ;;  %v3025_v57 = vmax.f32 %v3009_v6, 0.0  ;;  %v3010_v52 = vadd.f32 %v2994_v62, %v10779_v27  ;;  %v2834_v2 = vadd.f32 %v2815_v24, %v2705_v18  ;;  %6841 = vmatprep.mubr.msk.f32.mxu0 %vm3082_vm1, %v3056_v19  ;;  %6849 = vmatprep.mubr.msk.f32.mxu1 %vm3082_vm1, %v3056_v19  ;;  %v11662_v6 = vld [vmem:[%s13638_s5 + $0x2a8] sm:$0xff]  ;;  %v11668_v62 = vld [vmem:[%s13638_s5 + $0x2a0] sm:$0xff]  ;;  %14400 = vst [vmem:[#allocation36_spill] sm:$0xff] %v11695_v37 }
 0x271   :  { %v2817_v33 = vpop.f32.mrf.mxu0  ;;  %3460 = vmatmul.mubr.f32.gmra.mxu0 %v3055_v45  ;;  %3565 = vmatmul.mubr.f32.gmra.mxu1 %v3055_v45  ;;  %v2351_v45 = vmax.f32 %v2335_v11, 0.0  ;;  %14395 = vst [vmem:[#allocation2_spill] sm:$0xff] %v11662_v6  ;;  %14396 = vst [vmem:[#allocation30_spill] sm:$0xff] %v11668_v62  ;;  %v11714_v11 = vld [vmem:[%s13638_s5 + $0x270] sm:$0xff] }
 0x272   :  { %v3057_v49 = vmax.f32 %v2348_v56, %v3025_v57  ;;  %v3026_v23 = vmax.f32 %v3010_v52, 0.0  ;;  %v2995_v0 = vadd.f32 %v2976_v30, %v2834_v2  ;;  %v2835_v55 = vadd.f32 %v2817_v33, %v2706_v9  ;;  %3835 = vmatpush1.msra.mxu1 %v11592_v34  ;;  %3692 = vmatpush1.msra.mxu0 %v11598_v50  ;;  %v2978_v58 = vpop.f32.mrf.mxu1  ;;  %v11682_v30 = vld [vmem:[%s13638_s5 + $0x290] sm:$0xff]  ;;  %v11688_v57 = vld [vmem:[%s13638_s5 + $0x288] sm:$0xff] }
 0x273   :  { %3836 = vmatprep.subr.mxu1 %v11607_v43  ;;  %3693 = vmatprep.subr.mxu0 %v11612_v40  ;;  %14398 = vst [vmem:[#allocation63_spill] sm:$0xff] %v11682_v30  ;;  %14399 = vst [vmem:[#allocation43_spill] sm:$0xff] %v11688_v57 }
 0x274   :  { %v3058_v63 = vmax.f32 %v2349_v12, %v3026_v23  ;;  %v3011_v5 = vadd.f32 %v2995_v0, %v14352_v7  ;;  %v2996_v51 = vadd.f32 %v2978_v58, %v2835_v55  ;;  %3837 = vmatpush1.msra.mxu1 %v11619_v48  ;;  %v11645_v7 = vld [vmem:[%s13638_s5 + $0x2b8] sm:$0xf]  ;;  %14402 = vst [vmem:[#allocation92_spill] sm:$0xff] %v11714_v11 }
 0x275   :  { %3838 = vmatprep.subr.mxu1 %v11625_v59  ;;  %14392 = vst [vmem:[#allocation33_spill] sm:$0xff] %v11645_v7  ;;  %v11702_v23 = vld [vmem:[%s13638_s5 + $0x278] sm:$0xff] }
 0x276   :  { %v3027_v20 = vmax.f32 %v3011_v5, 0.0  ;;  %v3012_v8 = vadd.f32 %v2996_v51, %v10779_v27  ;;  %6842 = vmatprep.mubr.msk.f32.mxu0 %vm3082_vm1, %v3058_v63  ;;  %6850 = vmatprep.mubr.msk.f32.mxu1 %vm3082_vm1, %v3058_v63  ;;  %14401 = vst [vmem:[#allocation7_spill] sm:$0xff] %v11702_v23  ;;  %v11720_v51 = vld [vmem:[%s13638_s5 + $0x268] sm:$0xff] }
 0x277   :  { %3465 = vmatmul.mubr.f32.gmra.mxu0 %v3057_v49  ;;  %3570 = vmatmul.mubr.f32.gmra.mxu1 %v3057_v49  ;;  %14403 = vst [vmem:[#allocation93_spill] sm:$0xff] %v11720_v51 }
 0x278   :  { %v3059_v36 = vmax.f32 %v2350_v17, %v3027_v20  ;;  %v3028_v3 = vmax.f32 %v3012_v8, 0.0  ;;  %3839 = vmatpush1.msra.mxu1 %v11637_v53  ;;  %v11727_v8 = vld [vmem:[%s13638_s5 + $0x260] sm:$0xff] }
 0x279   :  { %6948 = vmatprep.subr.msk.mxu1 %vm3658_vm2, %v11645_v7  ;;  %14404 = vst [vmem:[#allocation68_spill] sm:$0xff] %v11727_v8 }
 0x27a   :  { %v3060_v27 = vmax.f32 %v2351_v45, %v3028_v3 }
 0x27c   :  { %6843 = vmatprep.mubr.msk.f32.mxu0 %vm3082_vm1, %v3060_v27  ;;  %6851 = vmatprep.mubr.msk.f32.mxu1 %vm3082_vm1, %v3060_v27 }
 0x27d   :  { %3470 = vmatmul.mubr.f32.gmra.mxu0 %v3059_v36  ;;  %3575 = vmatmul.mubr.f32.gmra.mxu1 %v3059_v36 }
 0x27e   :  { %3872 = vmatprep.mubr.f32.mxu1 %v14393_v42  ;;  %3729 = vmatprep.mubr.f32.mxu0 %v14393_v42 }
 0x285   :  { %v3173_v28 = vpop.f32.mrf.mxu0  ;;  %v3299_v39 = vpop.f32.mrf.mxu1 }
 0x286   :  { %v3338_v44 = vmax.f32 %v3173_v28, %v3299_v39 }
 0x287   :  { %v3175_v18 = vpop.f32.mrf.mxu0  ;;  %v3301_v19 = vpop.f32.mrf.mxu1 }
 0x288   :  { %6886 = vmatmul.mubr.msk.f32.vlgmr.msra.gmra.mxu1 %vm3633_vm3, %v3338_v44  ;;  %v3945_v52 = vrot.slane %v3338_v44, 1  ;;  %v4324_v2 = vrot.slane %v3338_v44, 2 }
 0x289   :  { %v3178_v56 = vpop.f32.mrf.mxu0  ;;  %v3304_v31 = vpop.f32.mrf.mxu1  ;;  %3878 = vmatprep.mubr.f32.mxu1 %v14393_v42  ;;  %6949 = vmatpush1.msk.msra.mxu1 %vm3658_vm2, %v11657_v21 }
 0x28a   :  { %v3339_v24 = vmax.f32 %v3178_v56, %v3304_v31  ;;  %4183 = vmatprep.subr.mxu1 %v11662_v6 }
 0x28b   :  { %v3180_v22 = vpop.f32.mrf.mxu0  ;;  %v3306_v9 = vpop.f32.mrf.mxu1  ;;  %4184 = vmatpush1.msra.mxu1 %v11668_v62  ;;  %v11939_v62 = vld [vmem:[%s13638_s5 + $0x1c8] sm:$0xff] }
 0x28c   :  { %v3946_v12 = vrot.slane %v3339_v24, 1  ;;  %v4325_v32 = vrot.slane %v3339_v24, 2  ;;  %6887 = vmatmul.mubr.msk.f32.gmra.mxu1 %vm3633_vm3, %v3339_v24  ;;  %4185 = vmatprep.subr.mxu1 %v11676_v1 }
 0x28d   :  { %v3183_v33 = vpop.f32.mrf.mxu0  ;;  %v3309_v49 = vpop.f32.mrf.mxu1  ;;  %3884 = vmatprep.mubr.f32.mxu1 %v14393_v42  ;;  %4186 = vmatpush1.msra.mxu1 %v11682_v30 }
 0x28e   :  { %v11705_v0 = vsel %vm3944_vm4, %v3945_v52, %v3946_v12  ;;  %v11708_v55 = vsel %vm4323_vm5, %v4324_v2, %v4325_v32  ;;  %v3340_v58 = vmax.f32 %v3183_v33, %v3309_v49  ;;  %4187 = vmatprep.subr.mxu1 %v11688_v57 }
 0x28f   :  { %v3185_v63 = vpop.f32.mrf.mxu0  ;;  %v3311_v5 = vpop.f32.mrf.mxu1  ;;  %4188 = vmatpush1.msra.mxu1 %v11695_v37  ;;  %v11916_v37 = vld [vmem:[%s13638_s5 + $0x1d8] sm:$0xff] }
 0x290   :  { %v3948_v17 = vrot.slane %v3340_v58, 1  ;;  %v4327_v20 = vrot.slane %v3340_v58, 2  ;;  %6888 = vmatmul.mubr.msk.f32.gmra.mxu1 %vm3633_vm3, %v3340_v58  ;;  %4189 = vmatprep.subr.mxu1 %v11702_v23 }
 0x291   :  { %v3188_v45 = vpop.f32.mrf.mxu0  ;;  %v3314_v36 = vpop.f32.mrf.mxu1  ;;  %3890 = vmatprep.mubr.f32.mxu1 %v14393_v42  ;;  %4190 = vmatpush1.msra.mxu1 %v11714_v11 }
 0x292   :  { %v3341_v3 = vmax.f32 %v3188_v45, %v3314_v36  ;;  %4191 = vmatprep.subr.mxu1 %v11720_v51  ;;  %v11733_v27 = vsel %vm3944_vm4, %v3946_v12, %v3948_v17  ;;  %v11736_v28 = vsel %vm4323_vm5, %v4325_v32, %v4327_v20 }
 0x293   :  { %v3190_v39 = vpop.f32.mrf.mxu0  ;;  %v3316_v44 = vpop.f32.mrf.mxu1  ;;  %4192 = vmatpush1.msra.mxu1 %v11727_v8 }
 0x294   :  { %v3950_v18 = vrot.slane %v3341_v3, 1  ;;  %v4329_v19 = vrot.slane %v3341_v3, 2  ;;  %6889 = vmatmul.mubr.msk.f32.gmra.mxu1 %vm3633_vm3, %v3341_v3  ;;  %v11759_v3 = vld [vmem:[%s13638_s5 + $0xc0] sm:$0xff]  ;;  %v11764_v39 = vld [vmem:[%s13638_s5 + $0x258] sm:$0xff] }
 0x295   :  { %v3193_v56 = vpop.f32.mrf.mxu0  ;;  %v3319_v31 = vpop.f32.mrf.mxu1  ;;  %3896 = vmatprep.mubr.f32.mxu1 %v14393_v42  ;;  %14405 = vst [vmem:[#allocation69_spill] sm:$0xff] %v11764_v39  ;;  %v11769_v44 = vld [vmem:[%s13638_s5 + $0xb8] sm:$0xff]  ;;  %3694 = vmatpush1.msra.mxu0 %v11759_v3 }
 0x296   :  { %v3342_v24 = vmax.f32 %v3193_v56, %v3319_v31  ;;  %v11742_v22 = vsel %vm3944_vm4, %v3948_v17, %v3950_v18  ;;  %v11745_v9 = vsel %vm4323_vm5, %v4327_v20, %v4329_v19  ;;  %v11776_v56 = vld [vmem:[%s13638_s5 + $0x250] sm:$0xff]  ;;  %4193 = vmatprep.subr.mxu1 %v11764_v39  ;;  %3695 = vmatprep.subr.mxu0 %v11769_v44 }
 0x297   :  { %v3195_v52 = vpop.f32.mrf.mxu0  ;;  %v3321_v2 = vpop.f32.mrf.mxu1  ;;  %14406 = vst [vmem:[#allocation27_spill] sm:$0xff] %v11776_v56  ;;  %v11781_v31 = vld [vmem:[%s13638_s5 + $0xb0] sm:$0xff]  ;;  %4194 = vmatpush1.msra.mxu1 %v11776_v56 }
 0x298   :  { %v3952_v12 = vrot.slane %v3342_v24, 1  ;;  %v4331_v32 = vrot.slane %v3342_v24, 2  ;;  %6890 = vmatmul.mubr.msk.f32.gmra.mxu1 %vm3633_vm3, %v3342_v24  ;;  %v11786_v24 = vld [vmem:[%s13638_s5 + $0x248] sm:$0xff]  ;;  %v11795_v2 = vld [vmem:[%s13638_s5 + $0x240] sm:$0xff]  ;;  %3696 = vmatpush1.msra.mxu0 %v11781_v31 }
 0x299   :  { %v3198_v33 = vpop.f32.mrf.mxu0  ;;  %v3324_v49 = vpop.f32.mrf.mxu1  ;;  %3902 = vmatprep.mubr.f32.mxu1 %v14393_v42  ;;  %14407 = vst [vmem:[#allocation94_spill] sm:$0xff] %v11786_v24  ;;  %14408 = vst [vmem:[#allocation95_spill] sm:$0xff] %v11795_v2  ;;  %4195 = vmatprep.subr.mxu1 %v11786_v24  ;;  %v11833_v24 = vld [vmem:[%s13638_s5 + $0x220] sm:$0xff] }
 0x29a   :  { %v3343_v58 = vmax.f32 %v3198_v33, %v3324_v49  ;;  %v11750_v63 = vsel %vm3944_vm4, %v3950_v18, %v3952_v12  ;;  %v11753_v5 = vsel %vm4323_vm5, %v4329_v19, %v4331_v32  ;;  %4196 = vmatpush1.msra.mxu1 %v11795_v2  ;;  %14412 = vst [vmem:[#allocation64_spill] sm:$0xff] %v11833_v24 }
 0x29b   :  { %v3200_v17 = vpop.f32.mrf.mxu0  ;;  %v3326_v20 = vpop.f32.mrf.mxu1 }
 0x29c   :  { %v3954_v45 = vrot.slane %v3343_v58, 1  ;;  %v4333_v36 = vrot.slane %v3343_v58, 2  ;;  %6891 = vmatmul.mubr.msk.f32.gmra.mxu1 %vm3633_vm3, %v3343_v58 }
 0x29d   :  { %v3203_v18 = vpop.f32.mrf.mxu0  ;;  %v3329_v19 = vpop.f32.mrf.mxu1  ;;  %3908 = vmatprep.mubr.f32.mxu1 %v14393_v42 }
 0x29e   :  { %v11788_v52 = vmax.f32 %v3203_v18, %v3329_v19  ;;  %v11798_v33 = vsel %vm3944_vm4, %v3952_v12, %v3954_v45  ;;  %v11801_v49 = vsel %vm4323_vm5, %v4331_v32, %v4333_v36  ;;  %v11813_v12 = vld [vmem:[%s13638_s5 + $0x238] sm:$0xff]  ;;  %v11818_v32 = vld [vmem:[%s13638_s5 + $0x230] sm:$0xff] }
 0x29f   :  { %v3205_v58 = vpop.f32.mrf.mxu0  ;;  %v3331_v17 = vpop.f32.mrf.mxu1  ;;  %14409 = vst [vmem:[#allocation5_spill] sm:$0xff] %v11813_v12  ;;  %14410 = vst [vmem:[#allocation96_spill] sm:$0xff] %v11818_v32  ;;  %4197 = vmatprep.subr.mxu1 %v11813_v12  ;;  %v11910_v12 = vld [vmem:[%s13638_s5 + $0x1e0] sm:$0xff] }
 0x2a0   :  { %v3956_v20 = vrot.slane %v11788_v52, 1  ;;  %6892 = vmatmul.mubr.msk.f32.gmra.mxu1 %vm3633_vm3, %v11788_v52  ;;  %v11825_v17 = vld [vmem:[%s13638_s5 + $0x228] sm:$0xff]  ;;  %v14413_v39 = vrot.slane %v11788_v52, 2 }
 0x2a1   :  { %v3208_v19 = vpop.f32.mrf.mxu0  ;;  %v3334_v58 = vpop.f32.mrf.mxu1  ;;  %3914 = vmatprep.mubr.f32.mxu1 %v14393_v42  ;;  %14411 = vst [vmem:[#allocation35_spill] sm:$0xff] %v11825_v17  ;;  %4198 = vmatpush1.msra.mxu1 %v11818_v32 }
 0x2a2   :  { %v11827_v18 = vmax.f32 %v3208_v19, %v3334_v58  ;;  %v11836_v56 = vsel %vm3944_vm4, %v3954_v45, %v3956_v20  ;;  %v11841_v2 = vsel %vm4323_vm5, %v4333_v36, %v14413_v39  ;;  %4199 = vmatprep.subr.mxu1 %v11825_v17  ;;  %v11853_v45 = vld [vmem:[%s13638_s5 + $0x218] sm:$0xff]  ;;  %v11873_v39 = vld [vmem:[%s13638_s5 + $0x208] sm:$0xf] }
 0x2a3   :  { %v3210_v8 = vpop.f32.mrf.mxu0  ;;  %v3336_v51 = vpop.f32.mrf.mxu1  ;;  %14414 = vst [vmem:[#allocation73_spill] sm:$0xff] %v11853_v45  ;;  %4200 = vmatpush1.msra.mxu1 %v11833_v24  ;;  %v14416_v36 = vld [vmem:[#allocation41_spill] sm:$0xff]  ;;  %6916 = vmatprep.subr.msk.mxu0 %vm3658_vm2, %v11873_v39 }
 0x2a4   :  { %v11845_v19 = vrot.slane %v11827_v18, 1  ;;  %6893 = vmatmul.mubr.msk.f32.gmra.mxu1 %vm3633_vm3, %v11827_v18  ;;  %v11858_v8 = vld [vmem:[%s13638_s5 + $0x210] sm:$0xff]  ;;  %4201 = vmatprep.subr.mxu1 %v11853_v45 }
 0x2a5   :  { %14415 = vst [vmem:[#allocation10_spill] sm:$0xff] %v11858_v8  ;;  %4235 = vmatprep.mubr.f32.mxu1 %v14393_v42  ;;  %4202 = vmatpush1.msra.mxu1 %v11858_v8 }
 0x2a6   :  { %v11865_v51 = vsel %vm3944_vm4, %v3956_v20, %v11845_v19  ;;  %6990 = vmatprep.subr.msk.mxu1 %vm3658_vm2, %v14416_v36  ;;  %v11882_v20 = vld [vmem:[%s13638_s5 + $0x200] sm:$0xf]  ;;  %v11887_v36 = vld [vmem:[%s13638_s5 + $0x1f8] sm:$0xff] }
 0x317   :  { %v3436_v58 = vpop.f32.mrf.mxu0  ;;  %v3541_v24 = vpop.f32.mrf.mxu1 }
 0x318   :  { %v11877_v45 = vmax.f32 %v3436_v58, %v3541_v24  ;;  %v11894_v24 = vld [vmem:[%s13638_s5 + $0x1f0] sm:$0xff] }
 0x319   :  { %v3438_v8 = vpop.f32.mrf.mxu0  ;;  %v3543_v17 = vpop.f32.mrf.mxu1 }
 0x31a   :  { %14417 = vst [vmem:[#allocation66_spill] sm:$0xff] %v11877_v45  ;;  %6876 = vmatmul.mubr.msk.f32.vlgmr.msra.gmra.mxu0 %vm3633_vm3, %v11877_v45  ;;  %v11902_v17 = vld [vmem:[%s13638_s5 + $0x1e8] sm:$0xff]  ;;  %v4134_v57 = vrot.slane %v11877_v45, 1 }
 0x31b   :  { %v3441_v58 = vpop.f32.mrf.mxu0  ;;  %v3546_v32 = vpop.f32.mrf.mxu1  ;;  %3735 = vmatprep.mubr.f32.mxu0 %v14393_v42  ;;  %6917 = vmatpush1.msk.msra.mxu0 %vm3658_vm2, %v11882_v20 }
 0x31c   :  { %v11904_v8 = vmax.f32 %v3441_v58, %v3546_v32  ;;  %3994 = vmatprep.subr.mxu0 %v11887_v36 }
 0x31d   :  { %v3443_v11 = vpop.f32.mrf.mxu0  ;;  %v3548_v23 = vpop.f32.mrf.mxu1  ;;  %3995 = vmatpush1.msra.mxu0 %v11894_v24 }
 0x31e   :  { %14418 = vst [vmem:[#allocation53_spill] sm:$0xff] %v11904_v8  ;;  %v4135_v32 = vrot.slane %v11904_v8, 1  ;;  %6877 = vmatmul.mubr.msk.f32.gmra.mxu0 %vm3633_vm3, %v11904_v8  ;;  %3996 = vmatprep.subr.mxu0 %v11902_v17  ;;  %v11926_v23 = vld [vmem:[%s13638_s5 + $0x1d0] sm:$0xff] }
 0x31f   :  { %v3446_v11 = vpop.f32.mrf.mxu0  ;;  %v3551_v58 = vpop.f32.mrf.mxu1  ;;  %3741 = vmatprep.mubr.f32.mxu0 %v14393_v42  ;;  %3997 = vmatpush1.msra.mxu0 %v11910_v12 }
 0x320   :  { %v11930_v30 = vmax.f32 %v3446_v11, %v3551_v58  ;;  %v11933_v1 = vsel %vm3944_vm4, %v4134_v57, %v4135_v32  ;;  %3998 = vmatprep.subr.mxu0 %v11916_v37  ;;  %v11947_v11 = vld [vmem:[%s13638_s5 + $0x1c0] sm:$0xff]  ;;  %v11969_v58 = vld [vmem:[%s13638_s5 + $0x1b0] sm:$0xff] }
 0x321   :  { %v3448_v6 = vpop.f32.mrf.mxu0  ;;  %v3553_v21 = vpop.f32.mrf.mxu1  ;;  %6950 = vmatmul.mubr.msk.f32.vlgmr.msra.gmra.mxu1 %vm3633_vm3, %v11933_v1  ;;  %3999 = vmatpush1.msra.mxu0 %v11926_v23 }
 0x322   :  { %14419 = vst [vmem:[#allocation49_spill] sm:$0xff] %v11930_v30  ;;  %v4137_v57 = vrot.slane %v11930_v30, 1  ;;  %6878 = vmatmul.mubr.msk.f32.gmra.mxu0 %vm3633_vm3, %v11930_v30  ;;  %4241 = vmatprep.mubr.f32.mxu1 %v14393_v42  ;;  %v11958_v21 = vld [vmem:[%s13638_s5 + $0x1b8] sm:$0xff] }
 0x323   :  { %3747 = vmatprep.mubr.f32.mxu0 %v14393_v42  ;;  %4000 = vmatprep.subr.mxu0 %v11939_v62 }
 0x324   :  { %v11961_v6 = vsel %vm3944_vm4, %v4135_v32, %v4137_v57  ;;  %6991 = vmatpush1.msk.msra.mxu1 %vm3658_vm2, %v11374_v54  ;;  %4001 = vmatpush1.msra.mxu0 %v11947_v11  ;;  %v11981_v54 = vld [vmem:[%s13638_s5 + $0x1a8] sm:$0xff] }
 0x325   :  { %v3451_v30 = vpop.f32.mrf.mxu0  ;;  %v3556_v7 = vpop.f32.mrf.mxu1  ;;  %6951 = vmatmul.mubr.msk.f32.gmra.mxu1 %vm3633_vm3, %v11961_v6  ;;  %4546 = vmatprep.subr.mxu1 %v11386_v35  ;;  %v11988_v35 = vld [vmem:[%s13638_s5 + $0x1a0] sm:$0xff] }
 0x326   :  { %v11974_v8 = vmax.f32 %v3451_v30, %v3556_v7  ;;  %4247 = vmatprep.mubr.f32.mxu1 %v14393_v42  ;;  %4002 = vmatprep.subr.mxu0 %v11958_v21 }
 0x327   :  { %v3453_v32 = vpop.f32.mrf.mxu0  ;;  %v3558_v45 = vpop.f32.mrf.mxu1  ;;  %4547 = vmatpush1.msra.mxu1 %v11405_v60  ;;  %4003 = vmatpush1.msra.mxu0 %v11969_v58  ;;  %v11999_v60 = vld [vmem:[%s13638_s5 + $0x198] sm:$0xff] }
 0x328   :  { %14420 = vst [vmem:[#allocation11_spill] sm:$0xff] %v11974_v8  ;;  %v4139_v7 = vrot.slane %v11974_v8, 1  ;;  %6879 = vmatmul.mubr.msk.f32.gmra.mxu0 %vm3633_vm3, %v11974_v8  ;;  %4548 = vmatprep.subr.mxu1 %v11417_v25  ;;  %v12009_v25 = vld [vmem:[%s13638_s5 + $0x190] sm:$0xff] }
 0x329   :  { %3753 = vmatprep.mubr.f32.mxu0 %v14393_v42  ;;  %4004 = vmatprep.subr.mxu0 %v11981_v54 }
 0x32a   :  { %v12002_v30 = vsel %vm3944_vm4, %v4137_v57, %v4139_v7  ;;  %4549 = vmatpush1.msra.mxu1 %v11437_v47  ;;  %4005 = vmatpush1.msra.mxu0 %v11988_v35  ;;  %v12021_v47 = vld [vmem:[%s13638_s5 + $0x188] sm:$0xff] }
 0x32b   :  { %v3456_v45 = vpop.f32.mrf.mxu0  ;;  %v3561_v32 = vpop.f32.mrf.mxu1  ;;  %6952 = vmatmul.mubr.msk.f32.gmra.mxu1 %vm3633_vm3, %v12002_v30  ;;  %4550 = vmatprep.subr.mxu1 %v11449_v10  ;;  %v12028_v10 = vld [vmem:[%s13638_s5 + $0x180] sm:$0xff] }
 0x32c   :  { %v12014_v8 = vmax.f32 %v3456_v45, %v3561_v32  ;;  %4253 = vmatprep.mubr.f32.mxu1 %v14393_v42  ;;  %4006 = vmatprep.subr.mxu0 %v11999_v60 }
 0x32d   :  { %v3458_v57 = vpop.f32.mrf.mxu0  ;;  %v3563_v53 = vpop.f32.mrf.mxu1  ;;  %4551 = vmatpush1.msra.mxu1 %v11460_v61  ;;  %4007 = vmatpush1.msra.mxu0 %v12009_v25  ;;  %v12039_v61 = vld [vmem:[%s13638_s5 + $0x178] sm:$0xff] }
 0x32e   :  { %14421 = vst [vmem:[#allocation71_spill] sm:$0xff] %v12014_v8  ;;  %v4141_v45 = vrot.slane %v12014_v8, 1  ;;  %6880 = vmatmul.mubr.msk.f32.gmra.mxu0 %vm3633_vm3, %v12014_v8  ;;  %4552 = vmatprep.subr.mxu1 %v11471_v29  ;;  %v12049_v29 = vld [vmem:[%s13638_s5 + $0x170] sm:$0xff] }
 0x32f   :  { %3759 = vmatprep.mubr.f32.mxu0 %v14393_v42  ;;  %4008 = vmatprep.subr.mxu0 %v12021_v47 }
 0x330   :  { %v12042_v53 = vsel %vm3944_vm4, %v4139_v7, %v4141_v45  ;;  %4553 = vmatpush1.msra.mxu1 %v11490_v14  ;;  %4009 = vmatpush1.msra.mxu0 %v12028_v10  ;;  %v12061_v14 = vld [vmem:[%s13638_s5 + $0x168] sm:$0xff] }
 0x331   :  { %v3461_v32 = vpop.f32.mrf.mxu0  ;;  %v3566_v57 = vpop.f32.mrf.mxu1  ;;  %6953 = vmatmul.mubr.msk.f32.gmra.mxu1 %vm3633_vm3, %v12042_v53  ;;  %4554 = vmatprep.subr.mxu1 %v11502_v38  ;;  %v12068_v38 = vld [vmem:[%s13638_s5 + $0x160] sm:$0xff] }
 0x332   :  { %v12054_v8 = vmax.f32 %v3461_v32, %v3566_v57  ;;  %4259 = vmatprep.mubr.f32.mxu1 %v14393_v42  ;;  %4010 = vmatprep.subr.mxu0 %v12039_v61 }
 0x333   :  { %v3463_v7 = vpop.f32.mrf.mxu0  ;;  %v3568_v59 = vpop.f32.mrf.mxu1  ;;  %4555 = vmatpush1.msra.mxu1 %v11516_v41  ;;  %4011 = vmatpush1.msra.mxu0 %v12049_v29 }
 0x334   :  { %14422 = vst [vmem:[#allocation50_spill] sm:$0xff] %v12054_v8  ;;  %v4143_v32 = vrot.slane %v12054_v8, 1  ;;  %6881 = vmatmul.mubr.msk.f32.gmra.mxu0 %vm3633_vm3, %v12054_v8  ;;  %4556 = vmatprep.subr.mxu1 %v11525_v13  ;;  %v12084_v59 = vld [vmem:[%s13638_s5 + $0x368] sm:$0xf] }
 0x335   :  { %3765 = vmatprep.mubr.f32.mxu0 %v14393_v42  ;;  %4012 = vmatprep.subr.mxu0 %v12061_v14 }
 0x336   :  { %v12077_v41 = vsel %vm3944_vm4, %v4141_v45, %v4143_v32  ;;  %4557 = vmatpush1.msra.mxu1 %v11544_v26  ;;  %4013 = vmatpush1.msra.mxu0 %v12068_v38 }
 0x337   :  { %v3466_v57 = vpop.f32.mrf.mxu0  ;;  %v3571_v7 = vpop.f32.mrf.mxu1  ;;  %6954 = vmatmul.mubr.msk.f32.gmra.mxu1 %vm3633_vm3, %v12077_v41  ;;  %4558 = vmatprep.subr.mxu1 %v11556_v4 }
 0x338   :  { %v12089_v13 = vmax.f32 %v3466_v57, %v3571_v7  ;;  %4265 = vmatprep.mubr.f32.mxu1 %v14393_v42  ;;  %4559 = vmatpush1.msra.mxu1 %v11568_v16  ;;  %v12160_v7 = vld [vmem:[%s13638_s5 + $0x340] sm:$0xff] }
 0x339   :  { %v3468_v26 = vpop.f32.mrf.mxu0  ;;  %v3573_v45 = vpop.f32.mrf.mxu1  ;;  %4560 = vmatprep.subr.mxu1 %v11579_v15  ;;  %6980 = vmatprep.subr.msk.mxu0 %vm3658_vm2, %v12084_v59 }
 0x33a   :  { %v4145_v8 = vrot.slane %v12089_v13, 1  ;;  %6882 = vmatmul.mubr.msk.f32.gmra.mxu0 %vm3633_vm3, %v12089_v13  ;;  %4561 = vmatpush1.msra.mxu1 %v11598_v50  ;;  %v12168_v26 = vld [vmem:[%s13638_s5 + $0x338] sm:$0xff]  ;;  %v12176_v45 = vld [vmem:[%s13638_s5 + $0x330] sm:$0xff] }
 0x33b   :  { %3771 = vmatprep.mubr.f32.mxu0 %v14393_v42  ;;  %4562 = vmatprep.subr.mxu1 %v11612_v40 }
 0x33c   :  { %v12103_v4 = vsel %vm3944_vm4, %v4143_v32, %v4145_v8  ;;  %4563 = vmatpush1.msra.mxu1 %v11759_v3  ;;  %v12152_v32 = vld [vmem:[%s13638_s5 + $0x348] sm:$0xff] }
 0x33d   :  { %v3471_v16 = vpop.f32.mrf.mxu0  ;;  %v3576_v15 = vpop.f32.mrf.mxu1  ;;  %6955 = vmatmul.mubr.msk.f32.gmra.mxu1 %vm3633_vm3, %v12103_v4  ;;  %4564 = vmatprep.subr.mxu1 %v11769_v44 }
 0x33e   :  { %v12109_v57 = vmax.f32 %v3471_v16, %v3576_v15  ;;  %4271 = vmatprep.mubr.f32.mxu1 %v14393_v42  ;;  %4565 = vmatpush1.msra.mxu1 %v11781_v31  ;;  %v12128_v31 = vld [vmem:[%s13638_s5 + $0x360] sm:$0xf]  ;;  %v12184_v16 = vld [vmem:[%s13638_s5 + $0x328] sm:$0xff] }
 0x33f   :  { %v3473_v50 = vpop.f32.mrf.mxu0  ;;  %v3578_v40 = vpop.f32.mrf.mxu1  ;;  %7010 = vmatprep.subr.msk.mxu1 %vm3658_vm2, %v11873_v39  ;;  %v12135_v39 = vld [vmem:[%s13638_s5 + $0x358] sm:$0xff]  ;;  %v12192_v15 = vld [vmem:[%s13638_s5 + $0x320] sm:$0xff] }
 0x340   :  { %v12116_v3 = vrot.slane %v12109_v57, 1  ;;  %6883 = vmatmul.mubr.msk.f32.gmra.mxu0 %vm3633_vm3, %v12109_v57  ;;  %v12213_v50 = vld [vmem:[%s13638_s5 + $0x310] sm:$0xff]  ;;  %v14432_v40 = vld [vmem:[#allocation11_spill] sm:$0xff] }
 0x341   :  { %4046 = vmatprep.mubr.f32.mxu0 %v14393_v42 }
 0x342   :  { %v12123_v44 = vsel %vm3944_vm4, %v4145_v8, %v12116_v3  ;;  %v12143_v8 = vld [vmem:[%s13638_s5 + $0x350] sm:$0xff] }
 0x343   :  { %6956 = vmatmul.mubr.msk.f32.gmra.mxu1 %vm3633_vm3, %v12123_v44 }
 0x344   :  { %6918 = vmatmul.mubr.msk.f32.vlgmr.msra.gmra.mxu0 %vm3633_vm3, %v11705_v0  ;;  %4277 = vmatprep.mubr.f32.mxu1 %v14393_v42 }
 0x345   :  { %4052 = vmatprep.mubr.f32.mxu0 %v14393_v42  ;;  %6981 = vmatpush1.msk.msra.mxu0 %vm3658_vm2, %v12128_v31 }
 0x346   :  { %4373 = vmatprep.subr.mxu0 %v12135_v39 }
 0x347   :  { %6957 = vmatmul.mubr.msk.f32.gmra.mxu1 %vm3633_vm3, %v12116_v3  ;;  %4374 = vmatpush1.msra.mxu0 %v12143_v8 }
 0x348   :  { %6919 = vmatmul.mubr.msk.f32.gmra.mxu0 %vm3633_vm3, %v11733_v27  ;;  %4598 = vmatprep.mubr.f32.mxu1 %v14393_v42 }
 0x349   :  { %4058 = vmatprep.mubr.f32.mxu0 %v14393_v42  ;;  %4375 = vmatprep.subr.mxu0 %v12152_v32 }
 0x34a   :  { %4376 = vmatpush1.msra.mxu0 %v12160_v7 }
 0x34b   :  { %6992 = vmatmul.mubr.msk.f32.vlgmr.msra.gmra.mxu1 %vm3633_vm3, %v11705_v0  ;;  %4377 = vmatprep.subr.mxu0 %v12168_v26  ;;  %v12205_v0 = vld [vmem:[%s13638_s5 + $0x318] sm:$0xff] }
 0x34c   :  { %6920 = vmatmul.mubr.msk.f32.gmra.mxu0 %vm3633_vm3, %v11742_v22  ;;  %4604 = vmatprep.mubr.f32.mxu1 %v14393_v42 }
 0x34d   :  { %4064 = vmatprep.mubr.f32.mxu0 %v14393_v42  ;;  %4378 = vmatpush1.msra.mxu0 %v12176_v45 }
 0x34e   :  { %4379 = vmatprep.subr.mxu0 %v12184_v16  ;;  %7011 = vmatpush1.msk.msra.mxu1 %vm3658_vm2, %v11882_v20  ;;  %v12233_v20 = vld [vmem:[%s13638_s5 + $0x300] sm:$0xff] }
 0x34f   :  { %6993 = vmatmul.mubr.msk.f32.gmra.mxu1 %vm3633_vm3, %v11733_v27  ;;  %4380 = vmatpush1.msra.mxu0 %v12192_v15  ;;  %v12225_v27 = vld [vmem:[%s13638_s5 + $0x308] sm:$0xff] }
 0x350   :  { %6921 = vmatmul.mubr.msk.f32.gmra.mxu0 %vm3633_vm3, %v11750_v63  ;;  %4610 = vmatprep.mubr.f32.mxu1 %v14393_v42 }
 0x351   :  { %4070 = vmatprep.mubr.f32.mxu0 %v14393_v42  ;;  %4772 = vmatprep.subr.mxu1 %v11887_v36  ;;  %v12253_v36 = vld [vmem:[%s13638_s5 + $0x2f0] sm:$0xff] }
 0x352   :  { %4381 = vmatprep.subr.mxu0 %v12205_v0  ;;  %4773 = vmatpush1.msra.mxu1 %v11894_v24  ;;  %v7655_v24 = vld [vmem:[%s13638_s5 + $0xa8] sm:$0xf] }
 0x353   :  { %6994 = vmatmul.mubr.msk.f32.gmra.mxu1 %vm3633_vm3, %v11742_v22  ;;  %4382 = vmatpush1.msra.mxu0 %v12213_v50  ;;  %v12245_v22 = vld [vmem:[%s13638_s5 + $0x2f8] sm:$0xff] }
 0x354   :  { %6922 = vmatmul.mubr.msk.f32.gmra.mxu0 %vm3633_vm3, %v11798_v33  ;;  %4616 = vmatprep.mubr.f32.mxu1 %v14393_v42 }
 0x355   :  { %4076 = vmatprep.mubr.f32.mxu0 %v14393_v42  ;;  %4774 = vmatprep.subr.mxu1 %v11902_v17  ;;  %v7659_v17 = vld [vmem:[%s13638_s5 + $0x88] sm:$0xff] }
 0x356   :  { %4383 = vmatprep.subr.mxu0 %v12225_v27  ;;  %4775 = vmatpush1.msra.mxu1 %v11910_v12  ;;  %v12298_v12 = vld [vmem:[%s13638_s5 + $0x2c8] sm:$0xff] }
 0x357   :  { %6995 = vmatmul.mubr.msk.f32.gmra.mxu1 %vm3633_vm3, %v11750_v63  ;;  %4384 = vmatpush1.msra.mxu0 %v12233_v20  ;;  %v12262_v63 = vld [vmem:[%s13638_s5 + $0x2e8] sm:$0xff] }
 0x358   :  { %6923 = vmatmul.mubr.msk.f32.gmra.mxu0 %vm3633_vm3, %v11836_v56  ;;  %4622 = vmatprep.mubr.f32.mxu1 %v14393_v42 }
 0x359   :  { %4082 = vmatprep.mubr.f32.mxu0 %v14393_v42  ;;  %4776 = vmatprep.subr.mxu1 %v11916_v37  ;;  %v12273_v37 = vld [vmem:[%s13638_s5 + $0x2e0] sm:$0xff] }
 0x35a   :  { %4385 = vmatprep.subr.mxu0 %v12245_v22  ;;  %4777 = vmatpush1.msra.mxu1 %v11926_v23  ;;  %v7660_v23 = vld [vmem:[%s13638_s5 + $0x80] sm:$0xff] }
 0x35b   :  { %6996 = vmatmul.mubr.msk.f32.gmra.mxu1 %vm3633_vm3, %v11798_v33  ;;  %4386 = vmatpush1.msra.mxu0 %v12253_v36  ;;  %v12282_v33 = vld [vmem:[%s13638_s5 + $0x2d8] sm:$0xff] }
 0x35c   :  { %6924 = vmatmul.mubr.msk.f32.gmra.mxu0 %vm3633_vm3, %v11865_v51  ;;  %4778 = vmatprep.subr.mxu1 %v11939_v62  ;;  %v12290_v62 = vld [vmem:[%s13638_s5 + $0x2d0] sm:$0xff] }
 0x35d   :  { %4387 = vmatprep.subr.mxu0 %v12262_v63  ;;  %4628 = vmatprep.mubr.f32.mxu1 %v14393_v42 }
 0x35e   :  { %4779 = vmatpush1.msra.mxu1 %v11947_v11  ;;  %4088 = vmatprep.mubr.f32.mxu0 %v14393_v42  ;;  %v7661_v11 = vld [vmem:[%s13638_s5 + $0x78] sm:$0xff] }
 0x35f   :  { %4388 = vmatpush1.msra.mxu0 %v12273_v37  ;;  %6997 = vmatmul.mubr.msk.f32.gmra.mxu1 %vm3633_vm3, %v11836_v56  ;;  %v12305_v56 = vld [vmem:[%s13638_s5 + $0x2c0] sm:$0xff] }
 0x360   :  { %4780 = vmatprep.subr.mxu1 %v11958_v21  ;;  %6925 = vmatmul.mubr.msk.f32.gmra.mxu0 %vm3633_vm3, %v11845_v19  ;;  %v7662_v21 = vld [vmem:[%s13638_s5 + $0x70] sm:$0xff] }
 0x361   :  { %4389 = vmatprep.subr.mxu0 %v12282_v33  ;;  %4781 = vmatpush1.msra.mxu1 %v11969_v58  ;;  %v7664_v58 = vld [vmem:[%s13638_s5 + $0x60] sm:$0xff] }
 0x362   :  { %4390 = vmatpush1.msra.mxu0 %v12290_v62  ;;  %4782 = vmatprep.subr.mxu1 %v11981_v54  ;;  %v7665_v54 = vld [vmem:[%s13638_s5 + $0x58] sm:$0xff] }
 0x363   :  { %4391 = vmatprep.subr.mxu0 %v12298_v12  ;;  %4634 = vmatprep.mubr.f32.mxu1 %v14393_v42 }
 0x364   :  { %4783 = vmatpush1.msra.mxu1 %v11988_v35  ;;  %4392 = vmatpush1.msra.mxu0 %v12305_v56  ;;  %v12395_v35 = vrot.slane %v11827_v18, 2  ;;  %v7668_v18 = vld [vmem:[%s13638_s5 + $0x40] sm:$0xff] }
 0x365   :  { %4425 = vmatprep.mubr.f32.mxu0 %v14393_v42  ;;  %6998 = vmatmul.mubr.msk.f32.gmra.mxu1 %vm3633_vm3, %v11865_v51  ;;  %v7657_v51 = vld [vmem:[%s13638_s5 + $0x98] sm:$0xff] }
 0x366   :  { %4784 = vmatprep.subr.mxu1 %v11999_v60  ;;  %6982 = vmatmul.mubr.msk.f32.vlgmr.msra.gmra.mxu0 %vm3633_vm3, %v11708_v55  ;;  %v7666_v60 = vld [vmem:[%s13638_s5 + $0x50] sm:$0xff] }
 0x367   :  { %4785 = vmatpush1.msra.mxu1 %v12009_v25  ;;  %4640 = vmatprep.mubr.f32.mxu1 %v14393_v42  ;;  %v14423_v25 = vrot.slane %v11788_v52, 2 }
 0x368   :  { %4786 = vmatprep.subr.mxu1 %v12021_v47  ;;  %4431 = vmatprep.mubr.f32.mxu0 %v14393_v42 }
 0x369   :  { %4787 = vmatpush1.msra.mxu1 %v12028_v10  ;;  %7000 = vmatprep.subr.msk.mxu0 %vm3658_vm2, %v7655_v24  ;;  %v12419_v47 = vsel %vm4323_vm5, %v14423_v25, %v12395_v35  ;;  %v7669_v10 = vld [vmem:[%s13638_s5 + $0x38] sm:$0xff]  ;;  %v14447_v24 = vld [vmem:[#allocation95_spill] sm:$0xff] }
 0x36a   :  { %6999 = vmatmul.mubr.msk.f32.gmra.mxu1 %vm3633_vm3, %v11845_v19  ;;  %4788 = vmatprep.subr.mxu1 %v12039_v61  ;;  %v7656_v19 = vld [vmem:[%s13638_s5 + $0xa0] sm:$0xf]  ;;  %v7670_v61 = vld [vmem:[%s13638_s5 + $0x30] sm:$0xff] }
 0x36b   :  { %6983 = vmatmul.mubr.msk.f32.gmra.mxu0 %vm3633_vm3, %v11736_v28  ;;  %4789 = vmatpush1.msra.mxu1 %v12049_v29 }
 0x36c   :  { %4790 = vmatprep.subr.mxu1 %v12061_v14  ;;  %4824 = vmatprep.mubr.f32.mxu1 %v14393_v42  ;;  %v14429_v14 = vld [vmem:[#allocation49_spill] sm:$0xff] }
 0x36d   :  { %4791 = vmatpush1.msra.mxu1 %v12068_v38  ;;  %4437 = vmatprep.mubr.f32.mxu0 %v14393_v42  ;;  %v5021_v38 = vrot.slane %v14429_v14, 2 }
 0x36e   :  { %7012 = vmatmul.mubr.msk.f32.vlgmr.msra.gmra.mxu1 %vm3633_vm3, %v11933_v1  ;;  %7001 = vmatpush1.msk.msra.mxu0 %vm3658_vm2, %v7656_v19  ;;  %v7658_v1 = vld [vmem:[%s13638_s5 + $0x90] sm:$0xff]  ;;  %v5031_v19 = vrot.slane %v12109_v57, 2 }
 0x36f   :  { %6984 = vmatmul.mubr.msk.f32.gmra.mxu0 %vm3633_vm3, %v11745_v9  ;;  %4830 = vmatprep.mubr.f32.mxu1 %v14393_v42 }
 0x370   :  { %4443 = vmatprep.mubr.f32.mxu0 %v14393_v42  ;;  %4659 = vmatprep.subr.mxu0 %v7657_v51 }
 0x371   :  { %4660 = vmatpush1.msra.mxu0 %v7658_v1  ;;  %7030 = vmatprep.subr.msk.mxu1 %vm3658_vm2, %v12084_v59  ;;  %v14430_v59 = vld [vmem:[#allocation90_spill] sm:$0xff]  ;;  %v14448_v1 = vld [vmem:[#allocation5_spill] sm:$0xff] }
 0x372   :  { %7013 = vmatmul.mubr.msk.f32.gmra.mxu1 %vm3633_vm3, %v11961_v6  ;;  %4661 = vmatprep.subr.mxu0 %v7659_v17  ;;  %v7663_v6 = vld [vmem:[%s13638_s5 + $0x68] sm:$0xff] }
 0x373   :  { %6985 = vmatmul.mubr.msk.f32.gmra.mxu0 %vm3633_vm3, %v11753_v5  ;;  %4836 = vmatprep.mubr.f32.mxu1 %v14393_v42 }
 0x374   :  { %4449 = vmatprep.mubr.f32.mxu0 %v14393_v42  ;;  %4662 = vmatpush1.msra.mxu0 %v7660_v23  ;;  %v14449_v23 = vld [vmem:[#allocation96_spill] sm:$0xff] }
 0x375   :  { %4663 = vmatprep.subr.mxu0 %v7661_v11  ;;  %7031 = vmatpush1.msk.msra.mxu1 %vm3658_vm2, %v12128_v31  ;;  %v14433_v31 = vld [vmem:[#allocation30_spill] sm:$0xff]  ;;  %v14451_v11 = vld [vmem:[#allocation64_spill] sm:$0xff] }
 0x376   :  { %7014 = vmatmul.mubr.msk.f32.gmra.mxu1 %vm3633_vm3, %v12002_v30  ;;  %4664 = vmatpush1.msra.mxu0 %v7662_v21  ;;  %v7667_v30 = vld [vmem:[%s13638_s5 + $0x48] sm:$0xff] }
 0x377   :  { %6986 = vmatmul.mubr.msk.f32.gmra.mxu0 %vm3633_vm3, %v11801_v49  ;;  %4665 = vmatprep.subr.mxu0 %v7663_v6  ;;  %v14452_v6 = vld [vmem:[#allocation73_spill] sm:$0xff] }
 0x378   :  { %4842 = vmatprep.mubr.f32.mxu1 %v14393_v42  ;;  %4455 = vmatprep.mubr.f32.mxu0 %v14393_v42 }
 0x379   :  { %4666 = vmatpush1.msra.mxu0 %v7664_v58  ;;  %5061 = vmatprep.subr.mxu1 %v12135_v39  ;;  %v14434_v39 = vld [vmem:[#allocation91_spill] sm:$0xff] }
 0x37a   :  { %7015 = vmatmul.mubr.msk.f32.gmra.mxu1 %vm3633_vm3, %v12042_v53  ;;  %4667 = vmatprep.subr.mxu0 %v7665_v54  ;;  %v14428_v53 = vld [vmem:[#allocation33_spill] sm:$0xff]  ;;  %v14453_v54 = vld [vmem:[#allocation10_spill] sm:$0xff] }
 0x37b   :  { %6987 = vmatmul.mubr.msk.f32.gmra.mxu0 %vm3633_vm3, %v11841_v2  ;;  %5062 = vmatpush1.msra.mxu1 %v12143_v8  ;;  %v14435_v8 = vld [vmem:[#allocation63_spill] sm:$0xff] }
 0x37c   :  { %4668 = vmatpush1.msra.mxu0 %v7666_v60  ;;  %5063 = vmatprep.subr.mxu1 %v12152_v32  ;;  %v14436_v32 = vld [vmem:[#allocation71_spill] sm:$0xff] }
 0x37d   :  { %4669 = vmatprep.subr.mxu0 %v7667_v30  ;;  %4848 = vmatprep.mubr.f32.mxu1 %v14393_v42 }
 0x37e   :  { %5064 = vmatpush1.msra.mxu1 %v12160_v7  ;;  %4461 = vmatprep.mubr.f32.mxu0 %v14393_v42  ;;  %v5025_v7 = vrot.slane %v14436_v32, 2 }
 0x37f   :  { %4670 = vmatpush1.msra.mxu0 %v7668_v18  ;;  %7016 = vmatmul.mubr.msk.f32.gmra.mxu1 %vm3633_vm3, %v12077_v41 }
 0x380   :  { %5065 = vmatprep.subr.mxu1 %v12168_v26  ;;  %6988 = vmatmul.mubr.msk.f32.gmra.mxu0 %vm3633_vm3, %v12419_v47 }
 0x381   :  { %4671 = vmatprep.subr.mxu0 %v7669_v10  ;;  %5066 = vmatpush1.msra.mxu1 %v12176_v45  ;;  %v14437_v45 = vld [vmem:[#allocation43_spill] sm:$0xff]  ;;  %v5390_v10 = vld [vmem:[%s13640_s8 + $0x70] sm:$0xff] }
 0x382   :  { %4672 = vmatpush1.msra.mxu0 %v7670_v61  ;;  %5067 = vmatprep.subr.mxu1 %v12184_v16  ;;  %v14438_v16 = vld [vmem:[#allocation36_spill] sm:$0xff] }
 0x383   :  { %4673 = vmatprep.subr.mxu0 %v11573_v46  ;;  %4854 = vmatprep.mubr.f32.mxu1 %v14393_v42  ;;  %v14424_v46 = vld [vmem:[#allocation88_spill] sm:$0xff] }
 0x384   :  { %5068 = vmatpush1.msra.mxu1 %v12192_v15  ;;  %4467 = vmatprep.mubr.f32.mxu0 %v14393_v42  ;;  %v14439_v15 = vld [vmem:[#allocation7_spill] sm:$0xff] }
 0x385   :  { %4674 = vmatpush1.msra.mxu0 %v11592_v34  ;;  %7017 = vmatmul.mubr.msk.f32.gmra.mxu1 %vm3633_vm3, %v12103_v4  ;;  %v14425_v34 = vld [vmem:[#allocation32_spill] sm:$0xff]  ;;  %v14431_v4 = vld [vmem:[#allocation2_spill] sm:$0xff] }
 0x386   :  { %5069 = vmatprep.subr.mxu1 %v12205_v0  ;;  %6989 = vmatmul.mubr.msk.f32.gmra.mxu0 %vm3633_vm3, %v12395_v35  ;;  %v14440_v0 = vld [vmem:[#allocation50_spill] sm:$0xff] }
 0x387   :  { %4675 = vmatprep.subr.mxu0 %v11607_v43  ;;  %5070 = vmatpush1.msra.mxu1 %v12213_v50  ;;  %v14426_v43 = vld [vmem:[#allocation66_spill] sm:$0xff]  ;;  %v5027_v50 = vrot.slane %v14440_v0, 2 }
 0x388   :  { %4676 = vmatpush1.msra.mxu0 %v11619_v48  ;;  %5071 = vmatprep.subr.mxu1 %v12225_v27  ;;  %v14427_v48 = vld [vmem:[#allocation53_spill] sm:$0xff]  ;;  %v5018_v29 = vrot.slane %v14426_v43, 2  ;;  %v14441_v27 = vld [vmem:[#allocation92_spill] sm:$0xff] }
 0x389   :  { %4677 = vmatprep.subr.mxu0 %v14424_v46  ;;  %4860 = vmatprep.mubr.f32.mxu1 %v14393_v42  ;;  %v5019_v52 = vrot.slane %v14427_v48, 2  ;;  %v5239_v46 = vld [vmem:[%s13639_s7 + $0x68] sm:$0xff] }
 0x38a   :  { %5072 = vmatpush1.msra.mxu1 %v12233_v20  ;;  %4678 = vmatpush1.msra.mxu0 %v14425_v34  ;;  %v5389_v34 = vld [vmem:[%s13640_s8 + $0x68] sm:$0xff] }
 0x38b   :  { %4711 = vmatprep.mubr.f32.mxu0 %v14393_v42  ;;  %7018 = vmatmul.mubr.msk.f32.gmra.mxu1 %vm3633_vm3, %v12123_v44  ;;  %v5020_v41 = vsel %vm4323_vm5, %v5018_v29, %v5019_v52  ;;  %v5022_v44 = vsel %vm4323_vm5, %v5019_v52, %v5021_v38  ;;  %v5237_v29 = vld [vmem:[%s13639_s7 + $0x58] sm:$0xff] }
 0x38c   :  { %5073 = vmatprep.subr.mxu1 %v12245_v22  ;;  %7002 = vmatmul.mubr.msk.f32.vlgmr.msra.gmra.mxu0 %vm3633_vm3, %v14426_v43  ;;  %v14442_v22 = vld [vmem:[#allocation93_spill] sm:$0xff]  ;;  %v5238_v43 = vld [vmem:[%s13639_s7 + $0x60] sm:$0xff] }
 0x38d   :  { %5074 = vmatpush1.msra.mxu1 %v12253_v36  ;;  %4866 = vmatprep.mubr.f32.mxu1 %v14393_v42  ;;  %v14443_v36 = vld [vmem:[#allocation68_spill] sm:$0xff] }
 0x38e   :  { %5075 = vmatprep.subr.mxu1 %v12262_v63  ;;  %4717 = vmatprep.mubr.f32.mxu0 %v14393_v42  ;;  %v5029_v63 = vrot.slane %v12089_v13, 2 }
 0x38f   :  { %5076 = vmatpush1.msra.mxu1 %v12273_v37  ;;  %7020 = vmatprep.subr.msk.mxu0 %vm3658_vm2, %v14428_v53  ;;  %v12517_v37 = vpop.f32.mrf.mxu1 }
 0x390   :  { %7019 = vmatmul.mubr.msk.f32.gmra.mxu1 %vm3633_vm3, %v12116_v3  ;;  %5077 = vmatprep.subr.mxu1 %v12282_v33  ;;  %v5023_v3 = vrot.slane %v14432_v40, 2  ;;  %v14444_v33 = vld [vmem:[#allocation69_spill] sm:$0xff]  ;;  %v5030_v17 = vsel %vm4323_vm5, %v5027_v50, %v5029_v63  ;;  %v5032_v58 = vsel %vm4323_vm5, %v5029_v63, %v5031_v19 }
 0x391   :  { %7003 = vmatmul.mubr.msk.f32.gmra.mxu0 %vm3633_vm3, %v14427_v48  ;;  %5078 = vmatpush1.msra.mxu1 %v12290_v62  ;;  %v5028_v62 = vsel %vm4323_vm5, %v5025_v7, %v5027_v50  ;;  %v12529_v51 = vpop.f32.mrf.mxu1  ;;  %v5388_v48 = vld [vmem:[%s13640_s8 + $0x60] sm:$0xff]  ;;  %v5232_v50 = vld [vmem:[%s13639_s7 + $0x30] sm:$0xff] }
 0x392   :  { %5079 = vmatprep.subr.mxu1 %v12298_v12  ;;  %5113 = vmatprep.mubr.f32.mxu1 %v14393_v42  ;;  %v5024_v26 = vsel %vm4323_vm5, %v5021_v38, %v5023_v3  ;;  %v5026_v20 = vsel %vm4323_vm5, %v5023_v3, %v5025_v7  ;;  %v14445_v12 = vld [vmem:[#allocation27_spill] sm:$0xff] }
 0x393   :  { %5080 = vmatpush1.msra.mxu1 %v12305_v56  ;;  %4723 = vmatprep.mubr.f32.mxu0 %v14393_v42  ;;  %v14446_v56 = vld [vmem:[#allocation94_spill] sm:$0xff]  ;;  %v12541_v21 = vpop.f32.mrf.mxu1  ;;  %v5235_v3 = vld [vmem:[%s13639_s7 + $0x48] sm:$0xff] }
 0x394   :  { %7032 = vmatmul.mubr.msk.f32.vlgmr.msra.gmra.mxu1 %vm3633_vm3, %v5020_v41  ;;  %7021 = vmatpush1.msk.msra.mxu0 %vm3658_vm2, %v14430_v59  ;;  %v5236_v41 = vld [vmem:[%s13639_s7 + $0x50] sm:$0xff] }
 0x395   :  { %7004 = vmatmul.mubr.msk.f32.gmra.mxu0 %vm3633_vm3, %v14429_v14  ;;  %5119 = vmatprep.mubr.f32.mxu1 %v14393_v42  ;;  %v5387_v14 = vld [vmem:[%s13640_s8 + $0x58] sm:$0xff]  ;;  %v5386_v59 = vld [vmem:[%s13640_s8 + $0x50] sm:$0xff] }
 0x396   :  { %4729 = vmatprep.mubr.f32.mxu0 %v14393_v42  ;;  %4901 = vmatprep.subr.mxu0 %v14431_v4 }
 0x397   :  { %4902 = vmatpush1.msra.mxu0 %v14433_v31  ;;  %5396 = vmatprep.subr.mxu1 %v14393_v42 }
 0x398   :  { %7033 = vmatmul.mubr.msk.f32.gmra.mxu1 %vm3633_vm3, %v5022_v44  ;;  %4903 = vmatprep.subr.mxu0 %v14434_v39  ;;  %v5385_v44 = vld [vmem:[%s13640_s8 + $0x48] sm:$0xff] }
 0x399   :  { %7005 = vmatmul.mubr.msk.f32.gmra.mxu0 %vm3633_vm3, %v14432_v40  ;;  %5125 = vmatprep.mubr.f32.mxu1 %v14393_v42 }
 0x39a   :  { %4735 = vmatprep.mubr.f32.mxu0 %v14393_v42  ;;  %4904 = vmatpush1.msra.mxu0 %v14435_v8  ;;  %v5234_v8 = vld [vmem:[%s13639_s7 + $0x40] sm:$0xff] }
 0x39b   :  { %4905 = vmatprep.subr.mxu0 %v14437_v45  ;;  %v5233_v45 = vld [vmem:[%s13639_s7 + $0x38] sm:$0xff] }
 0x39c   :  { %7034 = vmatmul.mubr.msk.f32.gmra.mxu1 %vm3633_vm3, %v5024_v26  ;;  %4906 = vmatpush1.msra.mxu0 %v14438_v16  ;;  %v5383_v16 = vld [vmem:[%s13640_s8 + $0x38] sm:$0xff] }
 0x39d   :  { %7006 = vmatmul.mubr.msk.f32.gmra.mxu0 %vm3633_vm3, %v14436_v32  ;;  %4907 = vmatprep.subr.mxu0 %v14439_v15  ;;  %v5384_v32 = vld [vmem:[%s13640_s8 + $0x40] sm:$0xff] }
 0x39e   :  { %5131 = vmatprep.mubr.f32.mxu1 %v14393_v42  ;;  %4741 = vmatprep.mubr.f32.mxu0 %v14393_v42 }
 0x39f   :  { %4908 = vmatpush1.msra.mxu0 %v14441_v27  ;;  %v5382_v27 = vld [vmem:[%s13640_s8 + $0x30] sm:$0xff] }
 0x3a0   :  { %7035 = vmatmul.mubr.msk.f32.gmra.mxu1 %vm3633_vm3, %v5026_v20  ;;  %4909 = vmatprep.subr.mxu0 %v14442_v22  ;;  %v5231_v22 = vld [vmem:[%s13639_s7 + $0x28] sm:$0xff] }
 0x3a1   :  { %7007 = vmatmul.mubr.msk.f32.gmra.mxu0 %vm3633_vm3, %v14440_v0  ;;  %5137 = vmatprep.mubr.f32.mxu1 %v14393_v42 }
 0x3a2   :  { %4910 = vmatpush1.msra.mxu0 %v14443_v36  ;;  %4747 = vmatprep.mubr.f32.mxu0 %v14393_v42  ;;  %v5381_v36 = vld [vmem:[%s13640_s8 + $0x28] sm:$0xff] }
 0x3a3   :  { %4911 = vmatprep.subr.mxu0 %v14444_v33  ;;  %v5230_v33 = vld [vmem:[%s13639_s7 + $0x20] sm:$0xff] }
 0x3a4   :  { %4912 = vmatpush1.msra.mxu0 %v14445_v12  ;;  %7036 = vmatmul.mubr.msk.f32.gmra.mxu1 %vm3633_vm3, %v5028_v62  ;;  %v5380_v62 = vld [vmem:[%s13640_s8 + $0x20] sm:$0xff] }
 0x3a5   :  { %7008 = vmatmul.mubr.msk.f32.gmra.mxu0 %vm3633_vm3, %v12089_v13  ;;  %4913 = vmatprep.subr.mxu0 %v14446_v56  ;;  %v14450_v13 = vld [vmem:[#allocation35_spill] sm:$0xff] }
 0x3a6   :  { %4914 = vmatpush1.msra.mxu0 %v14447_v24  ;;  %5143 = vmatprep.mubr.f32.mxu1 %v14393_v42  ;;  %v5229_v24 = vld [vmem:[%s13639_s7 + $0x18] sm:$0xff] }
 0x3a7   :  { %4915 = vmatprep.subr.mxu0 %v14448_v1  ;;  %4753 = vmatprep.mubr.f32.mxu0 %v14393_v42 }
 0x3a8   :  { %4916 = vmatpush1.msra.mxu0 %v14449_v23  ;;  %7037 = vmatmul.mubr.msk.f32.gmra.mxu1 %vm3633_vm3, %v5030_v17  ;;  %v5228_v17 = vld [vmem:[%s13639_s7 + $0x10] sm:$0xff] }
 0x3a9   :  { %7009 = vmatmul.mubr.msk.f32.gmra.mxu0 %vm3633_vm3, %v12109_v57  ;;  %4917 = vmatprep.subr.mxu0 %v14450_v13  ;;  %v12553_v57 = vpop.f32.mrf.mxu1  ;;  %v5378_v23 = vld [vmem:[%s13640_s8 + $0x10] sm:$0xff] }
 0x3aa   :  { %4918 = vmatpush1.msra.mxu0 %v14451_v11  ;;  %5149 = vmatprep.mubr.f32.mxu1 %v14393_v42  ;;  %v5227_v11 = vld [vmem:[%s13639_s7 + $0x8] sm:$0xff] }
 0x3ab   :  { %4919 = vmatprep.subr.mxu0 %v14452_v6  ;;  %4953 = vmatprep.mubr.f32.mxu0 %v14393_v42  ;;  %v12559_v60 = vpop.f32.mrf.mxu1  ;;  %v5377_v6 = vld [vmem:[%s13640_s8 + $0x8] sm:$0xff] }
 0x3ac   :  { %4920 = vmatpush1.msra.mxu0 %v14453_v54  ;;  %7038 = vmatmul.mubr.msk.f32.gmra.mxu1 %vm3633_vm3, %v5032_v58 }
 0x3ad   :  { %7022 = vmatmul.mubr.msk.f32.vlgmr.msra.gmra.mxu0 %vm3633_vm3, %v11708_v55  ;;  %5155 = vmatprep.mubr.f32.mxu1 %v14393_v42  ;;  %v12564_v55 = vpop.f32.mrf.mxu1 }
 0x3ae   :  { %4959 = vmatprep.mubr.f32.mxu0 %v14393_v42  ;;  %5271 = vmatprep.subr.mxu0 %v14393_v42 }
 0x3af   :  { %v12569_v30 = vpop.f32.mrf.mxu1 }
 0x3b0   :  { %7039 = vmatmul.mubr.msk.f32.gmra.mxu1 %vm3633_vm3, %v5031_v19  ;;  %v5379_v19 = vld [vmem:[%s13640_s8 + $0x18] sm:$0xff] }
 0x3b1   :  { %7023 = vmatmul.mubr.msk.f32.gmra.mxu0 %vm3633_vm3, %v11736_v28  ;;  %v12574_v28 = vpop.f32.mrf.mxu1 }
 0x3b2   :  { %4965 = vmatprep.mubr.f32.mxu0 %v14393_v42 }
 0x3b5   :  { %7024 = vmatmul.mubr.msk.f32.gmra.mxu0 %vm3633_vm3, %v11745_v9  ;;  %v12579_v9 = vpop.f32.mrf.mxu1 }
 0x3b6   :  { %4971 = vmatprep.mubr.f32.mxu0 %v14393_v42 }
 0x3b9   :  { %7025 = vmatmul.mubr.msk.f32.gmra.mxu0 %vm3633_vm3, %v11753_v5  ;;  %v12584_v5 = vpop.f32.mrf.mxu1 }
 0x3ba   :  { %4977 = vmatprep.mubr.f32.mxu0 %v14393_v42 }
 0x3bd   :  { %7026 = vmatmul.mubr.msk.f32.gmra.mxu0 %vm3633_vm3, %v11801_v49  ;;  %v12588_v49 = vpop.f32.mrf.mxu1 }
 0x3be   :  { %4983 = vmatprep.mubr.f32.mxu0 %v14393_v42 }
 0x3bf   :  { %v12590_v18 = vpop.f32.mrf.mxu1 }
 0x3c1   :  { %7027 = vmatmul.mubr.msk.f32.gmra.mxu0 %vm3633_vm3, %v11841_v2  ;;  %v12592_v25 = vpop.f32.mrf.mxu1  ;;  %v5241_v2 = vld [vmem:[%s13639_s7 + $0x78] sm:$0xff] }
 0x3c2   :  { %4989 = vmatprep.mubr.f32.mxu0 %v14393_v42  ;;  %5272 = vmatpush1.msra.mxu0 %v5241_v2  ;;  %v5226_v2 = vld [vmem:[%s13639_s7] sm:$0xff] }
 0x3c3   :  { %5273 = vmatprep.subr.mxu0 %v14393_v42  ;;  %v12608_v61 = vpop.f32.mrf.mxu1 }
 0x3c5   :  { %7028 = vmatmul.mubr.msk.f32.gmra.mxu0 %vm3633_vm3, %v12419_v47  ;;  %v5391_v47 = vld [vmem:[%s13640_s8 + $0x78] sm:$0xff]  ;;  %v12628_v53 = vpop.f32.mrf.mxu1 }
 0x3c6   :  { %4995 = vmatprep.mubr.f32.mxu0 %v14393_v42  ;;  %5397 = vmatpush1.msra.mxu1 %v5391_v47  ;;  %v5376_v47 = vld [vmem:[%s13640_s8] sm:$0xff] }
 0x3c7   :  { %5398 = vmatprep.subr.mxu1 %v14393_v42  ;;  %v12650_v40 = vpop.f32.mrf.mxu1 }
 0x3c8   :  { %5399 = vmatpush1.msra.mxu1 %v5390_v10  ;;  %v5245_v10 = vld [vmem:[%s13639_s7 + $0x98] sm:$0xff] }
 0x3c9   :  { %7029 = vmatmul.mubr.msk.f32.gmra.mxu0 %vm3633_vm3, %v12395_v35  ;;  %v5240_v35 = vld [vmem:[%s13639_s7 + $0x70] sm:$0xff]  ;;  %5400 = vmatprep.subr.mxu1 %v14393_v42 }
 0x3ca   :  { %5274 = vmatpush1.msra.mxu0 %v5240_v35  ;;  %5401 = vmatpush1.msra.mxu1 %v5389_v34 }
 0x3cb   :  { %5275 = vmatprep.subr.mxu0 %v14393_v42  ;;  %5402 = vmatprep.subr.mxu1 %v14393_v42 }
 0x3cc   :  { %5276 = vmatpush1.msra.mxu0 %v5239_v46  ;;  %5403 = vmatpush1.msra.mxu1 %v5388_v48  ;;  %v5395_v46 = vld [vmem:[%s13640_s8 + $0x98] sm:$0xff]  ;;  %v5244_v48 = vld [vmem:[%s13639_s7 + $0x90] sm:$0xff] }
 0x3cd   :  { %5277 = vmatprep.subr.mxu0 %v14393_v42  ;;  %5404 = vmatprep.subr.mxu1 %v14393_v42 }
 0x3ce   :  { %5278 = vmatpush1.msra.mxu0 %v5238_v43  ;;  %5405 = vmatpush1.msra.mxu1 %v5387_v14 }
 0x3cf   :  { %5279 = vmatprep.subr.mxu0 %v14393_v42  ;;  %5406 = vmatprep.subr.mxu1 %v14393_v42 }
 0x3d0   :  { %5280 = vmatpush1.msra.mxu0 %v5237_v29  ;;  %5407 = vmatpush1.msra.mxu1 %v5386_v59  ;;  %v5394_v29 = vld [vmem:[%s13640_s8 + $0x90] sm:$0xff]  ;;  %v5393_v59 = vld [vmem:[%s13640_s8 + $0x88] sm:$0xff] }
 0x3d1   :  { %5281 = vmatprep.subr.mxu0 %v14393_v42  ;;  %5408 = vmatprep.subr.mxu1 %v14393_v42 }
 0x3d2   :  { %5282 = vmatpush1.msra.mxu0 %v5236_v41  ;;  %5409 = vmatpush1.msra.mxu1 %v5385_v44  ;;  %v5243_v41 = vld [vmem:[%s13639_s7 + $0x88] sm:$0xff] }
 0x3d3   :  { %5283 = vmatprep.subr.mxu0 %v14393_v42  ;;  %5410 = vmatprep.subr.mxu1 %v14393_v42 }
 0x3d4   :  { %5284 = vmatpush1.msra.mxu0 %v5235_v3  ;;  %5411 = vmatpush1.msra.mxu1 %v5384_v32  ;;  %v5392_v32 = vld [vmem:[%s13640_s8 + $0x80] sm:$0xff] }
 0x3d5   :  { %5285 = vmatprep.subr.mxu0 %v14393_v42  ;;  %5412 = vmatprep.subr.mxu1 %v14393_v42 }
 0x3d6   :  { %5286 = vmatpush1.msra.mxu0 %v5234_v8  ;;  %5413 = vmatpush1.msra.mxu1 %v5383_v16  ;;  %v5242_v8 = vld [vmem:[%s13639_s7 + $0x80] sm:$0xff] }
 0x3d7   :  { %5287 = vmatprep.subr.mxu0 %v14393_v42  ;;  %5414 = vmatprep.subr.mxu1 %v14393_v42 }
 0x3d8   :  { %5288 = vmatpush1.msra.mxu0 %v5233_v45  ;;  %5415 = vmatpush1.msra.mxu1 %v5382_v27 }
 0x3d9   :  { %5289 = vmatprep.subr.mxu0 %v14393_v42  ;;  %5416 = vmatprep.subr.mxu1 %v14393_v42 }
 0x3da   :  { %v12626_v52 = vpop.f32.mrf.mxu0  ;;  %5290 = vmatpush1.msra.mxu0 %v5232_v50  ;;  %5417 = vmatpush1.msra.mxu1 %v5381_v36 }
 0x3db   :  { %5291 = vmatprep.subr.mxu0 %v14393_v42  ;;  %5418 = vmatprep.subr.mxu1 %v14393_v42  ;;  %v3875_v36 = vadd.f32 %v12517_v37, %v12626_v52 }
 0x3dc   :  { %v12638_v38 = vpop.f32.mrf.mxu0  ;;  %5292 = vmatpush1.msra.mxu0 %v5231_v22  ;;  %5419 = vmatpush1.msra.mxu1 %v5380_v62 }
 0x3dd   :  { %5293 = vmatprep.subr.mxu0 %v14393_v42  ;;  %5420 = vmatprep.subr.mxu1 %v14393_v42 }
 0x3de   :  { %v12648_v4 = vpop.f32.mrf.mxu0  ;;  %5294 = vmatpush1.msra.mxu0 %v5230_v33  ;;  %5421 = vmatpush1.msra.mxu1 %v5379_v19  ;;  %v3877_v19 = vadd.f32 %v12529_v51, %v12638_v38 }
 0x3df   :  { %5295 = vmatprep.subr.mxu0 %v14393_v42  ;;  %5422 = vmatprep.subr.mxu1 %v14393_v42 }
 0x3e0   :  { %v12660_v31 = vpop.f32.mrf.mxu0  ;;  %5296 = vmatpush1.msra.mxu0 %v5229_v24  ;;  %5423 = vmatpush1.msra.mxu1 %v5378_v23 }
 0x3e1   :  { %v12662_v39 = vpop.f32.mrf.mxu1  ;;  %5297 = vmatprep.subr.mxu0 %v14393_v42  ;;  %5424 = vmatprep.subr.mxu1 %v14393_v42 }
 0x3e2   :  { %v12672_v7 = vpop.f32.mrf.mxu0  ;;  %5298 = vmatpush1.msra.mxu0 %v5228_v17  ;;  %5425 = vmatpush1.msra.mxu1 %v5377_v6  ;;  %v3881_v6 = vadd.f32 %v12541_v21, %v12648_v4 }
 0x3e3   :  { %v12674_v26 = vpop.f32.mrf.mxu1  ;;  %5299 = vmatprep.subr.mxu0 %v14393_v42  ;;  %5426 = vmatprep.subr.mxu1 %v14393_v42  ;;  %v3887_v21 = vadd.f32 %v12559_v60, %v12672_v7 }
 0x3e4   :  { %v12684_v15 = vpop.f32.mrf.mxu0  ;;  %5300 = vmatpush1.msra.mxu0 %v5227_v11  ;;  %5427 = vmatpush1.msra.mxu1 %v5376_v47 }
 0x3e5   :  { %v12686_v0 = vpop.f32.mrf.mxu1  ;;  %5301 = vmatprep.subr.mxu0 %v14393_v42  ;;  %5452 = vmatprep.subr.mxu1 %v14393_v42 }
 0x3e6   :  { %5302 = vmatpush1.msra.mxu0 %v5226_v2  ;;  %5453 = vmatpush2.msra.mxu1 %v5395_v46 }
 0x3e7   :  { %v12696_v20 = vpop.f32.mrf.mxu1  ;;  %5327 = vmatprep.subr.mxu0 %v14393_v42  ;;  %5454 = vmatprep.subr.mxu1 %v14393_v42 }
 0x3e8   :  { %v12706_v63 = vpop.f32.mrf.mxu0  ;;  %5328 = vmatpush2.msra.mxu0 %v5245_v10  ;;  %5455 = vmatpush2.msra.mxu1 %v5394_v29 }
 0x3e9   :  { %5329 = vmatprep.subr.mxu0 %v14393_v42  ;;  %5456 = vmatprep.subr.mxu1 %v14393_v42  ;;  %v3893_v60 = vadd.f32 %v12569_v30, %v12706_v63 }
 0x3ea   :  { %v12716_v12 = vpop.f32.mrf.mxu0  ;;  %5330 = vmatpush2.msra.mxu0 %v5244_v48  ;;  %5457 = vmatpush2.msra.mxu1 %v5393_v59 }
 0x3eb   :  { %v12718_v56 = vpop.f32.mrf.mxu1  ;;  %5331 = vmatprep.subr.mxu0 %v14393_v42  ;;  %5458 = vmatprep.subr.mxu1 %v14393_v42 }
 0x3ec   :  { %5332 = vmatpush2.msra.mxu0 %v5243_v41  ;;  %5459 = vmatpush2.msra.mxu1 %v5392_v32 }
 0x3ed   :  { %v12728_v1 = vpop.f32.mrf.mxu1  ;;  %5333 = vmatprep.subr.mxu0 %v14393_v42  ;;  %7268 = vmatprep.subr.mxu1 %v14393_v42 }
 0x3ee   :  { %v12738_v13 = vpop.f32.mrf.mxu0  ;;  %5334 = vmatpush2.msra.mxu0 %v5242_v8 }
 0x3ef   :  { %7249 = vmatprep.subr.mxu0 %v14393_v42 }
 0x3f0   :  { %v12748_v58 = vpop.f32.mrf.mxu0 }
 0x3f1   :  { %v12750_v54 = vpop.f32.mrf.mxu1 }
 0x3f3   :  { %v12760_v35 = vpop.f32.mrf.mxu1 }
 0x3f4   :  { %v12770_v34 = vpop.f32.mrf.mxu0 }
 0x3f6   :  { %v12774_v43 = vpop.f32.mrf.mxu0 }
 0x3f7   :  { %v12782_v14 = vpop.f32.mrf.mxu1 }
 0x3f9   :  { %v12792_v3 = vpop.f32.mrf.mxu1 }
 0x3fa   :  { %v12794_v44 = vpop.f32.mrf.mxu0 }
 0x3fc   :  { %v12804_v45 = vpop.f32.mrf.mxu0 }
 0x3fd   :  { %v12808_v16 = vpop.f32.mrf.mxu1 }
 0x3ff   :  { %v12810_v50 = vpop.f32.mrf.mxu1 }
 0x400   :  { %v12812_v27 = vpop.f32.mrf.mxu0 }
 0x402   :  { %v3775_v22 = vpop.f32.mrf.mxu0 }
 0x403   :  { %v12817_v33 = vadd.f32 %v12650_v40, %v3775_v22  ;;  %v12819_v62 = vpop.f32.mrf.mxu1  ;;  %v3883_v40 = vadd.f32 %v12553_v57, %v12660_v31  ;;  %v3889_v57 = vadd.f32 %v12564_v55, %v12684_v15  ;;  %v3895_v55 = vadd.f32 %v12574_v28, %v12716_v12 }
 0x404   :  { %v4048_v24 = vpop.f32.mrf.mxu0 }
 0x405   :  { %v4095_v17 = vadd.f32 %v4048_v24, %v3875_v36  ;;  %v12823_v23 = vpop.f32.mrf.mxu1  ;;  %v3899_v24 = vadd.f32 %v12579_v9, %v12738_v13 }
 0x406   :  { %v4050_v11 = vpop.f32.mrf.mxu0 }
 0x407   :  { %v4096_v2 = vadd.f32 %v4050_v11, %v3877_v19  ;;  %v12827_v47 = vpop.f32.mrf.mxu1  ;;  %v12830_v37 = vadd.f32 %v12662_v39, %v4095_v17  ;;  %v3901_v17 = vadd.f32 %v12584_v5, %v12748_v58 }
 0x408   :  { %v4054_v52 = vpop.f32.mrf.mxu0 }
 0x409   :  { %v4097_v10 = vadd.f32 %v4054_v52, %v3881_v6  ;;  %v12834_v46 = vpop.f32.mrf.mxu1  ;;  %v12837_v51 = vadd.f32 %v12674_v26, %v4096_v2 }
 0x40a   :  { %v4056_v38 = vpop.f32.mrf.mxu0 }
 0x40b   :  { %v4098_v4 = vadd.f32 %v4056_v38, %v3883_v40  ;;  %v12841_v48 = vpop.f32.mrf.mxu1  ;;  %v12844_v39 = vadd.f32 %v12686_v0, %v4097_v10 }
 0x40c   :  { %v4060_v29 = vpop.f32.mrf.mxu0 }
 0x40d   :  { %v4099_v31 = vadd.f32 %v4060_v29, %v3887_v21  ;;  %v12848_v41 = vpop.f32.mrf.mxu1  ;;  %v12851_v26 = vadd.f32 %v12696_v20, %v4098_v4 }
 0x40e   :  { %v4062_v59 = vpop.f32.mrf.mxu0 }
 0x40f   :  { %v4100_v7 = vadd.f32 %v4062_v59, %v3889_v57  ;;  %v12855_v8 = vpop.f32.mrf.mxu1  ;;  %v12858_v0 = vadd.f32 %v12718_v56, %v4099_v31 }
 0x410   :  { %v4066_v32 = vpop.f32.mrf.mxu0 }
 0x411   :  { %v4101_v15 = vadd.f32 %v4066_v32, %v3893_v60  ;;  %v12862_v22 = vpop.f32.mrf.mxu1  ;;  %v4289_v20 = vadd.f32 %v12728_v1, %v4100_v7  ;;  %v3905_v1 = vadd.f32 %v12588_v49, %v12770_v34 }
 0x412   :  { %v4068_v36 = vpop.f32.mrf.mxu0 }
 0x413   :  { %v4102_v30 = vadd.f32 %v4068_v36, %v3895_v55  ;;  %v12867_v63 = vpop.f32.mrf.mxu1  ;;  %v4290_v19 = vadd.f32 %v12750_v54, %v4101_v15  ;;  %v3907_v54 = vadd.f32 %v12590_v18, %v12774_v43 }
 0x414   :  { %v4072_v56 = vpop.f32.mrf.mxu0 }
 0x415   :  { %v4103_v11 = vadd.f32 %v4072_v56, %v3899_v24  ;;  %v12872_v28 = vpop.f32.mrf.mxu1  ;;  %v4291_v12 = vadd.f32 %v12760_v35, %v4102_v30  ;;  %v3911_v35 = vadd.f32 %v12592_v25, %v12794_v44 }
 0x416   :  { %v4074_v6 = vpop.f32.mrf.mxu0 }
 0x417   :  { %v4104_v2 = vadd.f32 %v4074_v6, %v3901_v17  ;;  %v12877_v9 = vpop.f32.mrf.mxu1  ;;  %v4292_v13 = vadd.f32 %v12782_v14, %v4103_v11  ;;  %v3913_v14 = vadd.f32 %v12608_v61, %v12804_v45 }
 0x418   :  { %v4078_v52 = vpop.f32.mrf.mxu0 }
 0x419   :  { %v4105_v40 = vadd.f32 %v4078_v52, %v3905_v1  ;;  %v12882_v5 = vpop.f32.mrf.mxu1  ;;  %v4293_v58 = vadd.f32 %v12792_v3, %v4104_v2  ;;  %v3917_v3 = vadd.f32 %v12628_v53, %v12812_v27 }
 0x41a   :  { %v4080_v10 = vpop.f32.mrf.mxu0 }
 0x41b   :  { %v4106_v38 = vadd.f32 %v4080_v10, %v3907_v54  ;;  %v12887_v49 = vpop.f32.mrf.mxu1  ;;  %v4294_v34 = vadd.f32 %v12808_v16, %v4105_v40 }
 0x41c   :  { %v4084_v21 = vpop.f32.mrf.mxu0 }
 0x41d   :  { %v4107_v4 = vadd.f32 %v4084_v21, %v3911_v35  ;;  %v12892_v18 = vpop.f32.mrf.mxu1  ;;  %v4295_v43 = vadd.f32 %v12810_v50, %v4106_v38 }
 0x41e   :  { %v4086_v29 = vpop.f32.mrf.mxu0 }
 0x41f   :  { %v4108_v57 = vadd.f32 %v4086_v29, %v3913_v14  ;;  %v12897_v25 = vpop.f32.mrf.mxu1  ;;  %v4296_v44 = vadd.f32 %v12819_v62, %v4107_v4 }
 0x420   :  { %v4090_v31 = vpop.f32.mrf.mxu0 }
 0x421   :  { %v4109_v16 = vadd.f32 %v4090_v31, %v3917_v3  ;;  %v12900_v59 = vpop.f32.mrf.mxu1  ;;  %v4297_v61 = vadd.f32 %v12823_v23, %v4108_v57 }
 0x422   :  { %v4092_v45 = vpop.f32.mrf.mxu0 }
 0x423   :  { %v4110_v60 = vadd.f32 %v4092_v45, %v12817_v33  ;;  %v4298_v50 = vadd.f32 %v12827_v47, %v4109_v16 }
 0x425   :  { %v12905_v7 = vpop.f32.mrf.mxu1  ;;  %v4299_v53 = vadd.f32 %v12834_v46, %v4110_v60 }
 0x426   :  { %v4427_v27 = vpop.f32.mrf.mxu0 }
 0x427   :  { %v12909_v32 = vadd.f32 %v4427_v27, %v12830_v37  ;;  %v12911_v62 = vpop.f32.mrf.mxu1 }
 0x428   :  { %14454 = vst [vmem:[#allocation12_spill] sm:$0xff] %v12911_v62  ;;  %v4429_v55 = vpop.f32.mrf.mxu0 }
 0x429   :  { %v12914_v15 = vadd.f32 %v4429_v55, %v12837_v51 }
 0x42a   :  { %v12916_v23 = vpop.f32.mrf.mxu1 }
 0x42b   :  { %14455 = vst [vmem:[#allocation75_spill] sm:$0xff] %v12916_v23  ;;  %v4433_v36 = vpop.f32.mrf.mxu0 }
 0x42c   :  { %v12919_v33 = vadd.f32 %v4433_v36, %v12844_v39  ;;  %v12921_v47 = vpop.f32.mrf.mxu1 }
 0x42d   :  { %14456 = vst [vmem:[#allocation14_spill] sm:$0xff] %v12921_v47  ;;  %v4435_v24 = vpop.f32.mrf.mxu0 }
 0x42e   :  { %v12924_v46 = vadd.f32 %v4435_v24, %v12851_v26  ;;  %v12926_v37 = vpop.f32.mrf.mxu1 }
 0x42f   :  { %v4439_v30 = vpop.f32.mrf.mxu0 }
 0x430   :  { %v12929_v56 = vadd.f32 %v4439_v30, %v12858_v0  ;;  %v12931_v51 = vpop.f32.mrf.mxu1 }
 0x431   :  { %v4441_v17 = vpop.f32.mrf.mxu0 }
 0x432   :  { %v12933_v11 = vadd.f32 %v4441_v17, %v4289_v20  ;;  %v12935_v6 = vpop.f32.mrf.mxu1 }
 0x433   :  { %v4445_v39 = vpop.f32.mrf.mxu0 }
 0x434   :  { %v12937_v1 = vadd.f32 %v4445_v39, %v4290_v19  ;;  %v12939_v2 = vpop.f32.mrf.mxu1 }
 0x435   :  { %v4447_v26 = vpop.f32.mrf.mxu0 }
 0x436   :  { %v12941_v52 = vadd.f32 %v4447_v26, %v4291_v12  ;;  %v12943_v54 = vpop.f32.mrf.mxu1 }
 0x437   :  { %v4451_v40 = vpop.f32.mrf.mxu0 }
 0x438   :  { %v12945_v0 = vadd.f32 %v4451_v40, %v4292_v13  ;;  %v12947_v10 = vpop.f32.mrf.mxu1 }
 0x439   :  { %v4453_v35 = vpop.f32.mrf.mxu0 }
 0x43a   :  { %v12949_v20 = vadd.f32 %v4453_v35, %v4293_v58  ;;  %v12951_v38 = vpop.f32.mrf.mxu1 }
 0x43b   :  { %v4457_v21 = vpop.f32.mrf.mxu0 }
 0x43c   :  { %v12953_v19 = vadd.f32 %v4457_v21, %v4294_v34  ;;  %v12955_v14 = vpop.f32.mrf.mxu1 }
 0x43d   :  { %v4459_v4 = vpop.f32.mrf.mxu0 }
 0x43e   :  { %14457 = vst [vmem:[#allocation15_spill] sm:$0xff] %v12953_v19  ;;  %v12957_v12 = vadd.f32 %v4459_v4, %v4295_v43  ;;  %v14472_v19 = vld [vmem:[#allocation46_spill] sm:$0xff] }
 0x43f   :  { %v12959_v29 = vpop.f32.mrf.mxu1  ;;  %v14475_v62 = vsub.s32 1, %v14472_v19 }
 0x440   :  { %14458 = vst [vmem:[#allocation81_spill] sm:$0xff] %v12957_v12  ;;  %v4463_v3 = vpop.f32.mrf.mxu0 }
 0x441   :  { %v12961_v13 = vadd.f32 %v4463_v3, %v4296_v44  ;;  %v12963_v57 = vpop.f32.mrf.mxu1 }
 0x442   :  { %14460 = vst [vmem:[#allocation19_spill] sm:$0xff] %v12963_v57  ;;  %v4465_v31 = vpop.f32.mrf.mxu0 }
 0x443   :  { %14459 = vst [vmem:[#allocation18_spill] sm:$0xff] %v12961_v13  ;;  %v12965_v58 = vadd.f32 %v4465_v31, %v4297_v61 }
 0x445   :  { %14461 = vst [vmem:[#allocation56_spill] sm:$0xff] %v12965_v58  ;;  %v12967_v16 = vpop.f32.mrf.mxu1 }
 0x446   :  { %14462 = vst [vmem:[#allocation25_spill] sm:$0xff] %v12967_v16  ;;  %v4469_v45 = vpop.f32.mrf.mxu0 }
 0x447   :  { %v12969_v34 = vadd.f32 %v4469_v45, %v4298_v50  ;;  %v12971_v60 = vpop.f32.mrf.mxu1 }
 0x448   :  { %14464 = vst [vmem:[#allocation61_spill] sm:$0xff] %v12971_v60  ;;  %v4471_v27 = vpop.f32.mrf.mxu0 }
 0x449   :  { %14463 = vst [vmem:[#allocation59_spill] sm:$0xff] %v12969_v34  ;;  %v12973_v43 = vadd.f32 %v4471_v27, %v4299_v53 }
 0x44b   :  { %14465 = vst [vmem:[#allocation37_spill] sm:$0xff] %v12973_v43  ;;  %v12975_v55 = vpop.f32.mrf.mxu1 }
 0x44c   :  { %14466 = vst [vmem:[#allocation62_spill] sm:$0xff] %v12975_v55  ;;  %v4713_v36 = vpop.f32.mrf.mxu0 }
 0x44d   :  { %v12977_v44 = vpop.f32.mrf.mxu1  ;;  %v4714_v58 = vadd.f32 %v4713_v36, %v12841_v48 }
 0x44e   :  { %14467 = vst [vmem:[#allocation42_spill] sm:$0xff] %v12977_v44  ;;  %v4715_v24 = vpop.f32.mrf.mxu0  ;;  %v14473_v44 = vsub.s32 0, %v14472_v19 }
 0x44f   :  { %v4716_v12 = vadd.f32 %v4715_v24, %v12848_v41  ;;  %v4873_v48 = vadd.f32 %v12926_v37, %v4714_v58 }
 0x450   :  { %v12979_v30 = vpop.f32.mrf.mxu1 }
 0x451   :  { %14468 = vst [vmem:[#allocation65_spill] sm:$0xff] %v12979_v30  ;;  %v4719_v61 = vpop.f32.mrf.mxu0  ;;  %v4874_v41 = vadd.f32 %v12931_v51, %v4716_v12 }
 0x452   :  { %v12981_v17 = vpop.f32.mrf.mxu1 }
 0x453   :  { %14469 = vst [vmem:[#allocation67_spill] sm:$0xff] %v12981_v17  ;;  %v4721_v39 = vpop.f32.mrf.mxu0  ;;  %v4490_v17 = vld [vmem:[%s13641_s6] sm:$0x3] }
 0x454   :  { %v5115_v26 = vpop.f32.mrf.mxu1  ;;  %v13005_v47 = vrot.slane %v4490_v17, %v14473_v44  ;;  %v13014_v60 = vrot.slane %v4490_v17, %v14475_v62  ;;  %v4722_v44 = vadd.f32 %v4721_v39, %v12862_v22 }
 0x455   :  { %v4725_v50 = vpop.f32.mrf.mxu0 }
 0x456   :  { %v5117_v40 = vpop.f32.mrf.mxu1  ;;  %v4502_v36 = vadd.f32 %v13005_v47, %v12909_v32  ;;  %v4503_v62 = vadd.f32 %v13014_v60, %v12914_v15  ;;  %v13030_v19 = vadd.f32 %v13005_v47, %v12919_v33  ;;  %v13038_v22 = vadd.f32 %v13005_v47, %v12929_v56 }
 0x457   :  { %v4727_v35 = vpop.f32.mrf.mxu0  ;;  %v13043_v15 = vadd.f32 %v13014_v60, %v12933_v11  ;;  %v4726_v33 = vadd.f32 %v4725_v50, %v12867_v63  ;;  %v4876_v24 = vadd.f32 %v12939_v2, %v4722_v44 }
 0x458   :  { %v5121_v21 = vpop.f32.mrf.mxu1  ;;  %v4518_v12 = vmax.f32 %v4502_v36, 0.0  ;;  %v4728_v56 = vadd.f32 %v4727_v35, %v12872_v28  ;;  %v4522_v11 = vmax.f32 %v13038_v22, 0.0  ;;  %v14482_v22 = vld [vmem:[#allocation81_spill] sm:$0xff] }
 0x459   :  { %v4731_v4 = vpop.f32.mrf.mxu0  ;;  %v4523_v28 = vmax.f32 %v13043_v15, 0.0  ;;  %v4877_v44 = vadd.f32 %v12943_v54, %v4726_v33 }
 0x45a   :  { %v5123_v3 = vpop.f32.mrf.mxu1  ;;  %v4732_v63 = vadd.f32 %v4731_v4, %v12877_v9  ;;  %v4878_v9 = vadd.f32 %v12947_v10, %v4728_v56  ;;  %v13069_v4 = vadd.f32 %v13014_v60, %v12941_v52 }
 0x45b   :  { %v4733_v53 = vpop.f32.mrf.mxu0 }
 0x45c   :  { %v12987_v27 = vpop.f32.mrf.mxu1  ;;  %v4734_v35 = vadd.f32 %v4733_v53, %v12882_v5 }
 0x45d   :  { %v12983_v31 = vpop.f32.mrf.mxu0 }
 0x45e   :  { %v12993_v43 = vpop.f32.mrf.mxu1  ;;  %v4738_v5 = vadd.f32 %v12983_v31, %v12887_v49  ;;  %v4880_v52 = vadd.f32 %v12955_v14, %v4734_v35 }
 0x45f   :  { %v12985_v45 = vpop.f32.mrf.mxu0 }
 0x460   :  { %v13007_v23 = vpop.f32.mrf.mxu1  ;;  %v4740_v49 = vadd.f32 %v12985_v45, %v12892_v18  ;;  %v4881_v18 = vadd.f32 %v12959_v29, %v4738_v5 }
 0x461   :  { %v12989_v42 = vpop.f32.mrf.mxu0 }
 0x462   :  { %v13023_v57 = vpop.f32.mrf.mxu1 }
 0x463   :  { %v12991_v34 = vpop.f32.mrf.mxu0 }
 0x465   :  { %v12995_v13 = vpop.f32.mrf.mxu0 }
 0x466   :  { %14470 = vst [vmem:[#allocation70_spill] sm:$0xff] %v12995_v13 }
 0x467   :  { %v13000_v30 = vpop.f32.mrf.mxu0 }
 0x468   :  { %14471 = vst [vmem:[#allocation80_spill] sm:$0xff] %v13000_v30  ;;  %v4720_v30 = vadd.f32 %v4719_v61, %v12855_v8  ;;  %v13034_v8 = vadd.f32 %v13014_v60, %v12924_v46 }
 0x469   :  { %v13009_v55 = vpop.f32.mrf.mxu0 }
 0x46a   :  { %14474 = vst [vmem:[#allocation82_spill] sm:$0xff] %v13009_v55  ;;  %v4875_v51 = vadd.f32 %v12935_v6, %v4720_v30  ;;  %v4519_v6 = vmax.f32 %v4503_v62, 0.0  ;;  %v4520_v30 = vmax.f32 %v13030_v19, 0.0  ;;  %v4521_v39 = vmax.f32 %v13034_v8, 0.0 }
 0x46b   :  { %v13016_v16 = vpop.f32.mrf.mxu0 }
 0x46d   :  { %v4955_v55 = vpop.f32.mrf.mxu0 }
 0x46e   :  { %v5002_v13 = vadd.f32 %v4955_v55, %v4873_v48  ;;  %v13046_v55 = vpop.f32.mrf.mxu1 }
 0x46f   :  { %v4957_v32 = vpop.f32.mrf.mxu0  ;;  %v14481_v5 = vld [vmem:[#allocation80_spill] sm:$0xff] }
 0x470   :  { %v5162_v37 = vadd.f32 %v5115_v26, %v5002_v13  ;;  %v5003_v58 = vadd.f32 %v4957_v32, %v4874_v41 }
 0x471   :  { %v4961_v46 = vpop.f32.mrf.mxu0 }
 0x472   :  { %v5178_v13 = vadd.f32 %v5162_v37, %v13005_v47  ;;  %v5163_v61 = vadd.f32 %v5117_v40, %v5003_v58  ;;  %v5004_v17 = vadd.f32 %v4961_v46, %v4875_v51  ;;  %v13058_v40 = vpop.f32.mrf.mxu1 }
 0x473   :  { %v4963_v26 = vpop.f32.mrf.mxu0 }
 0x474   :  { %v5179_v50 = vadd.f32 %v5163_v61, %v13014_v60  ;;  %v5164_v48 = vadd.f32 %v5121_v21, %v5004_v17  ;;  %v5005_v2 = vadd.f32 %v4963_v26, %v4876_v24  ;;  %v5194_v36 = vmax.f32 %v5178_v13, 0.0  ;;  %v13075_v10 = vpop.f32.mrf.mxu1 }
 0x475   :  { %v4967_v41 = vpop.f32.mrf.mxu0  ;;  %v13065_v21 = vadd.f32 %v13005_v47, %v12937_v1  ;;  %v13093_v61 = vadd.f32 %v13005_v47, %v12945_v0  ;;  %v4511_v0 = vadd.f32 %v13014_v60, %v12949_v20 }
 0x476   :  { %v5195_v62 = vmax.f32 %v5179_v50, 0.0  ;;  %v5180_v19 = vadd.f32 %v5164_v48, %v13005_v47  ;;  %v5165_v8 = vadd.f32 %v5123_v3, %v5005_v2  ;;  %v5006_v53 = vadd.f32 %v4967_v41, %v4877_v44  ;;  %v14478_v44 = vld [vmem:[#allocation25_spill] sm:$0xff] }
 0x477   :  { %v4969_v54 = vpop.f32.mrf.mxu0  ;;  %v4879_v3 = vadd.f32 %v12951_v38, %v4732_v63  ;;  %v5210_v51 = vmax.f32 %v4518_v12, %v5194_v36  ;;  %v4524_v38 = vmax.f32 %v13065_v21, 0.0  ;;  %v4744_v12 = vadd.f32 %v12989_v42, %v12897_v25  ;;  %v5147_v25 = vpop.f32.mrf.mxu1 }
 0x478   :  { %v5211_v32 = vmax.f32 %v4519_v6, %v5195_v62  ;;  %v5181_v37 = vadd.f32 %v5165_v8, %v13014_v60  ;;  %v5007_v58 = vadd.f32 %v4969_v54, %v4878_v9  ;;  %v5196_v1 = vmax.f32 %v5180_v19, 0.0 }
 0x479   :  { %v5166_v15 = vadd.f32 %v12987_v27, %v5006_v53  ;;  %v4973_v33 = vpop.f32.mrf.mxu0  ;;  %v4746_v42 = vadd.f32 %v12991_v34, %v12900_v59  ;;  %v14476_v59 = vld [vmem:[#allocation70_spill] sm:$0xff]  ;;  %v4883_v41 = vadd.f32 %v14478_v44, %v4744_v12  ;;  %v5151_v62 = vpop.f32.mrf.mxu1 }
 0x47a   :  { %v5197_v31 = vmax.f32 %v5181_v37, 0.0  ;;  %v5167_v46 = vadd.f32 %v12993_v43, %v5007_v58  ;;  %v5008_v24 = vadd.f32 %v4973_v33, %v4879_v3  ;;  %7040 = vmatprep.mubr.msk.f32.mxu0 %vm5246_vm6, %v5211_v32  ;;  %7048 = vmatprep.mubr.msk.f32.mxu1 %vm5246_vm6, %v5211_v32  ;;  %v5212_v17 = vmax.f32 %v4520_v30, %v5196_v1  ;;  %v14477_v30 = vld [vmem:[#allocation19_spill] sm:$0xff]  ;;  %v14483_v3 = vld [vmem:[#allocation62_spill] sm:$0xff] }
 0x47b   :  { %v5182_v27 = vadd.f32 %v5166_v15, %v13005_v47  ;;  %v4975_v56 = vpop.f32.mrf.mxu0  ;;  %5336 = vmatmul.mubr.f32.vlgmr.msra.gmra.mxu0 %v5210_v51  ;;  %5461 = vmatmul.mubr.f32.vlgmr.msra.gmra.mxu1 %v5210_v51  ;;  %v4750_v34 = vadd.f32 %v14476_v59, %v12905_v7  ;;  %v4882_v48 = vadd.f32 %v14477_v30, %v4740_v49  ;;  %v14479_v7 = vld [vmem:[#allocation61_spill] sm:$0xff]  ;;  %v14484_v1 = vld [vmem:[#allocation75_spill] sm:$0xff]  ;;  %v14485_v15 = vld [vmem:[#allocation82_spill] sm:$0xff]  ;;  %v5153_v12 = vpop.f32.mrf.mxu1 }
 0x47c   :  { %v5213_v14 = vmax.f32 %v4521_v39, %v5197_v31  ;;  %v5183_v43 = vadd.f32 %v5167_v46, %v13014_v60  ;;  %v5168_v45 = vadd.f32 %v13007_v23, %v5008_v24  ;;  %v5009_v13 = vadd.f32 %v4975_v56, %v4880_v52  ;;  %v14486_v46 = vld [vmem:[#allocation14_spill] sm:$0xff]  ;;  %v14490_v59 = vld [vmem:[#allocation65_spill] sm:$0xff] }
 0x47d   :  { %v5198_v6 = vmax.f32 %v5182_v27, 0.0  ;;  %v4979_v26 = vpop.f32.mrf.mxu0  ;;  %v4525_v23 = vmax.f32 %v13069_v4, 0.0  ;;  %v4884_v21 = vadd.f32 %v14479_v7, %v4746_v42  ;;  %v14480_v4 = vld [vmem:[#allocation12_spill] sm:$0xff]  ;;  %v4885_v51 = vadd.f32 %v14483_v3, %v4750_v34  ;;  %v14494_v3 = vld [vmem:[#allocation59_spill] sm:$0xff] }
 0x47e   :  { %v5199_v63 = vmax.f32 %v5183_v43, 0.0  ;;  %v5184_v29 = vadd.f32 %v5168_v45, %v13005_v47  ;;  %v5169_v39 = vadd.f32 %v13023_v57, %v5009_v13  ;;  %v5010_v50 = vadd.f32 %v4979_v26, %v4881_v18  ;;  %7041 = vmatprep.mubr.msk.f32.mxu0 %vm5246_vm6, %v5213_v14  ;;  %7049 = vmatprep.mubr.msk.f32.mxu1 %vm5246_vm6, %v5213_v14  ;;  %v14487_v13 = vld [vmem:[#allocation42_spill] sm:$0xff]  ;;  %v14489_v26 = vld [vmem:[#allocation56_spill] sm:$0xff] }
 0x47f   :  { %v4981_v2 = vpop.f32.mrf.mxu0  ;;  %5341 = vmatmul.mubr.f32.gmra.mxu0 %v5212_v17  ;;  %5466 = vmatmul.mubr.f32.gmra.mxu1 %v5212_v17  ;;  %v5214_v19 = vmax.f32 %v4522_v11, %v5198_v6  ;;  %v4752_v53 = vadd.f32 %v14481_v5, %v14480_v4  ;;  %v4513_v11 = vadd.f32 %v13014_v60, %v14482_v22  ;;  %v4527_v42 = vmax.f32 %v4511_v0, 0.0  ;;  %v14493_v5 = vld [vmem:[#allocation37_spill] sm:$0xff] }
 0x480   :  { %v5215_v35 = vmax.f32 %v4523_v28, %v5199_v63  ;;  %v5185_v57 = vadd.f32 %v5169_v39, %v13014_v60  ;;  %v5170_v36 = vadd.f32 %v13046_v55, %v5010_v50  ;;  %v5200_v20 = vmax.f32 %v5184_v29, 0.0  ;;  %v5157_v50 = vpop.f32.mrf.mxu1 }
 0x481   :  { %v5011_v8 = vadd.f32 %v4981_v2, %v4882_v48  ;;  %v4985_v9 = vpop.f32.mrf.mxu0  ;;  %v4526_v55 = vmax.f32 %v13093_v61, 0.0  ;;  %v4756_v33 = vadd.f32 %v14485_v15, %v14484_v1  ;;  %v4758_v24 = vadd.f32 %v13016_v16, %v14486_v46  ;;  %v14491_v48 = vld [vmem:[#allocation67_spill] sm:$0xff] }
 0x482   :  { %v5201_v54 = vmax.f32 %v5185_v57, 0.0  ;;  %v5186_v28 = vadd.f32 %v5170_v36, %v13005_v47  ;;  %v5012_v32 = vadd.f32 %v4985_v9, %v4883_v41  ;;  %7042 = vmatprep.mubr.msk.f32.mxu0 %vm5246_vm6, %v5215_v35  ;;  %7050 = vmatprep.mubr.msk.f32.mxu1 %vm5246_vm6, %v5215_v35  ;;  %v5216_v27 = vmax.f32 %v4524_v38, %v5200_v20  ;;  %v14492_v41 = vld [vmem:[#allocation18_spill] sm:$0xff] }
 0x483   :  { %v5171_v37 = vadd.f32 %v13058_v40, %v5011_v8  ;;  %v4987_v58 = vpop.f32.mrf.mxu0  ;;  %5346 = vmatmul.mubr.f32.gmra.mxu0 %v5214_v19  ;;  %5471 = vmatmul.mubr.f32.gmra.mxu1 %v5214_v19  ;;  %v4886_v61 = vadd.f32 %v14487_v13, %v4752_v53  ;;  %v4529_v6 = vmax.f32 %v4513_v11, 0.0  ;;  %v4515_v63 = vadd.f32 %v13014_v60, %v14489_v26 }
 0x484   :  { %v5217_v52 = vmax.f32 %v4525_v23, %v5201_v54  ;;  %v5172_v49 = vadd.f32 %v13075_v10, %v5012_v32  ;;  %v5013_v31 = vadd.f32 %v4987_v58, %v4884_v21  ;;  %v5202_v56 = vmax.f32 %v5186_v28, 0.0  ;;  %v14488_v10 = vld [vmem:[#allocation15_spill] sm:$0xff]  ;;  %v5159_v54 = vpop.f32.mrf.mxu1 }
 0x485   :  { %v5187_v40 = vadd.f32 %v5171_v37, %v13014_v60  ;;  %v4991_v18 = vpop.f32.mrf.mxu0  ;;  %v4512_v17 = vadd.f32 %v13005_v47, %v14488_v10  ;;  %v4887_v34 = vadd.f32 %v14490_v59, %v4756_v33  ;;  %v4888_v2 = vadd.f32 %v14491_v48, %v4758_v24 }
 0x486   :  { %v5188_v14 = vadd.f32 %v5172_v49, %v13005_v47  ;;  %v5173_v43 = vadd.f32 %v5147_v25, %v5013_v31  ;;  %v5014_v45 = vadd.f32 %v4991_v18, %v4885_v51  ;;  %7043 = vmatprep.mubr.msk.f32.mxu0 %vm5246_vm6, %v5217_v52  ;;  %7051 = vmatprep.mubr.msk.f32.mxu1 %vm5246_vm6, %v5217_v52  ;;  %v4531_v4 = vmax.f32 %v4515_v63, 0.0 }
 0x487   :  { %v5203_v16 = vmax.f32 %v5187_v40, 0.0  ;;  %v4993_v38 = vpop.f32.mrf.mxu0  ;;  %5351 = vmatmul.mubr.f32.gmra.mxu0 %v5216_v27  ;;  %5476 = vmatmul.mubr.f32.gmra.mxu1 %v5216_v27  ;;  %v5218_v23 = vmax.f32 %v4526_v55, %v5202_v56  ;;  %v4514_v19 = vadd.f32 %v13005_v47, %v14492_v41  ;;  %v4528_v8 = vmax.f32 %v4512_v17, 0.0 }
 0x488   :  { %v5189_v25 = vadd.f32 %v5173_v43, %v13014_v60  ;;  %v5174_v29 = vadd.f32 %v5151_v62, %v5014_v45  ;;  %v5015_v39 = vadd.f32 %v4993_v38, %v4886_v61  ;;  %v5204_v35 = vmax.f32 %v5188_v14, 0.0 }
 0x489   :  { %v5219_v0 = vmax.f32 %v4527_v42, %v5203_v16  ;;  %v4997_v30 = vpop.f32.mrf.mxu0  ;;  %v4517_v53 = vadd.f32 %v13014_v60, %v14493_v5  ;;  %v4530_v58 = vmax.f32 %v4514_v19, 0.0  ;;  %v4516_v51 = vadd.f32 %v13005_v47, %v14494_v3  ;;  %v7070_v5 = vld [vmem:[%s13643_s9 + $0x98] sm:$0xff]  ;;  %v7061_v3 = vld [vmem:[%s13643_s9 + $0x50] sm:$0xff] }
 0x48a   :  { %v5205_v57 = vmax.f32 %v5189_v25, 0.0  ;;  %v5190_v36 = vadd.f32 %v5174_v29, %v13005_v47  ;;  %v5175_v44 = vadd.f32 %v5153_v12, %v5015_v39  ;;  %v5016_v20 = vadd.f32 %v4997_v30, %v4887_v34 }
 0x48b   :  { %7044 = vmatprep.mubr.msk.f32.mxu0 %vm5246_vm6, %v5219_v0  ;;  %7052 = vmatprep.mubr.msk.f32.mxu1 %vm5246_vm6, %v5219_v0  ;;  %v4999_v62 = vpop.f32.mrf.mxu0  ;;  %v5220_v32 = vmax.f32 %v4528_v8, %v5204_v35  ;;  %v4533_v33 = vmax.f32 %v4517_v53, 0.0  ;;  %v4532_v46 = vmax.f32 %v4516_v51, 0.0  ;;  %v5597_v53 = vld [vmem:[%s13643_s9 + $0x48] sm:$0xff]  ;;  %v5596_v51 = vld [vmem:[%s13643_s9 + $0x40] sm:$0xff] }
 0x48c   :  { %v5221_v9 = vmax.f32 %v4529_v6, %v5205_v57  ;;  %v5191_v7 = vadd.f32 %v5175_v44, %v13014_v60  ;;  %v5017_v21 = vadd.f32 %v4999_v62, %v4888_v2  ;;  %5356 = vmatmul.mubr.f32.gmra.mxu0 %v5218_v23  ;;  %5481 = vmatmul.mubr.f32.gmra.mxu1 %v5218_v23  ;;  %v5206_v55 = vmax.f32 %v5190_v36, 0.0 }
 0x48d   :  { %v5176_v28 = vadd.f32 %v5157_v50, %v5016_v20 }
 0x48e   :  { %v5207_v22 = vmax.f32 %v5191_v7, 0.0  ;;  %v5177_v11 = vadd.f32 %v5159_v54, %v5017_v21  ;;  %7045 = vmatprep.mubr.msk.f32.mxu0 %vm5246_vm6, %v5221_v9  ;;  %7053 = vmatprep.mubr.msk.f32.mxu1 %vm5246_vm6, %v5221_v9  ;;  %v5222_v52 = vmax.f32 %v4530_v58, %v5206_v55  ;;  %v7058_v21 = vld [vmem:[%s13642_s15 + $0x8] sm:$0xff]  ;;  %v7069_v54 = vld [vmem:[%s13643_s9 + $0x90] sm:$0xff]  ;;  %v7066_v55 = vld [vmem:[%s13643_s9 + $0x78] sm:$0xff] }
 0x48f   :  { %v5192_v37 = vadd.f32 %v5176_v28, %v13005_v47  ;;  %v14495_v47 = vmov 0.0   ;;  %v7068_v28 = vld [vmem:[%s13643_s9 + $0x88] sm:$0xff]  ;;  %v7062_v58 = vld [vmem:[%s13643_s9 + $0x58] sm:$0xff] }
 0x490   :  { %v5223_v1 = vmax.f32 %v4531_v4, %v5207_v22  ;;  %v5193_v15 = vadd.f32 %v5177_v11, %v13014_v60  ;;  %5361 = vmatmul.mubr.f32.gmra.mxu0 %v5220_v32  ;;  %5486 = vmatmul.mubr.f32.gmra.mxu1 %v5220_v32  ;;  %v5509_v4 = vld [vmem:[%s13642_s15] sm:$0xff]  ;;  %v7065_v22 = vld [vmem:[%s13643_s9 + $0x70] sm:$0xff]  ;;  %v7064_v11 = vld [vmem:[%s13643_s9 + $0x68] sm:$0xff] }
 0x491   :  { %v5208_v49 = vmax.f32 %v5192_v37, 0.0  ;;  %v7067_v32 = vld [vmem:[%s13643_s9 + $0x80] sm:$0xff] }
 0x492   :  { %v5209_v31 = vmax.f32 %v5193_v15, 0.0  ;;  %7046 = vmatprep.mubr.msk.f32.mxu0 %vm5246_vm6, %v5223_v1  ;;  %7054 = vmatprep.mubr.msk.f32.mxu1 %vm5246_vm6, %v5223_v1  ;;  %v7063_v37 = vld [vmem:[%s13643_s9 + $0x60] sm:$0xff]  ;;  %v5595_v1 = vld [vmem:[%s13643_s9 + $0x38] sm:$0xff]  ;;  %v5594_v15 = vld [vmem:[%s13643_s9 + $0x30] sm:$0xff] }
 0x493   :  { %v5224_v12 = vmax.f32 %v4532_v46, %v5208_v49  ;;  %v5591_v49 = vld [vmem:[%s13643_s9 + $0x18] sm:$0xff]  ;;  %v5589_v46 = vld [vmem:[%s13643_s9 + $0x8] sm:$0xff] }
 0x494   :  { %v5225_v24 = vmax.f32 %v4533_v33, %v5209_v31  ;;  %5366 = vmatmul.mubr.f32.gmra.mxu0 %v5222_v52  ;;  %5491 = vmatmul.mubr.f32.gmra.mxu1 %v5222_v52  ;;  %v5593_v33 = vld [vmem:[%s13643_s9 + $0x28] sm:$0xff]  ;;  %v5592_v52 = vld [vmem:[%s13643_s9 + $0x20] sm:$0xff]  ;;  %v5590_v31 = vld [vmem:[%s13643_s9 + $0x10] sm:$0xff] }
 0x496   :  { %7047 = vmatprep.mubr.msk.f32.mxu0 %vm5246_vm6, %v5225_v24  ;;  %7055 = vmatprep.mubr.msk.f32.mxu1 %vm5246_vm6, %v5225_v24  ;;  %v5588_v24 = vld [vmem:[%s13643_s9] sm:$0xff] }
 0x498   :  { %5371 = vmatmul.mubr.f32.gmra.mxu0 %v5224_v12  ;;  %5496 = vmatmul.mubr.f32.gmra.mxu1 %v5224_v12 }
 0x499   :  { %7284 = vmatprep.mubr.msk.f32.mxu1 %vm7672_vm7, %v14495_v47  ;;  %7265 = vmatprep.mubr.msk.f32.mxu0 %vm7672_vm7, %v14495_v47 }
 0x53b   :  { %v13162_v60 = vpop.f32.mrf.mxu0  ;;  %v13164_v27 = vpop.f32.mrf.mxu1 }
 0x53c   :  { %v13208_v7 = vmax.f32 %v13162_v60, %v13164_v27  ;;  %v7085_v27 = vld [vmem:[%s13643_s9 + $0xe8] sm:$0xff] }
 0x53d   :  { %v5339_v56 = vpop.f32.mrf.mxu0  ;;  %v5464_v40 = vpop.f32.mrf.mxu1 }
 0x53f   :  { %v5342_v18 = vpop.f32.mrf.mxu0  ;;  %v5467_v14 = vpop.f32.mrf.mxu1 }
 0x540   :  { %v13200_v9 = vmax.f32 %v5342_v18, %v5467_v14  ;;  %v7084_v18 = vld [vmem:[%s13643_s9 + $0xe0] sm:$0xff]  ;;  %v7083_v14 = vld [vmem:[%s13643_s9 + $0xd8] sm:$0xff] }
 0x541   :  { %v5344_v43 = vpop.f32.mrf.mxu0  ;;  %v5469_v45 = vpop.f32.mrf.mxu1 }
 0x542   :  { %v7082_v43 = vld [vmem:[%s13643_s9 + $0xd0] sm:$0xff]  ;;  %v7081_v45 = vld [vmem:[%s13643_s9 + $0xc8] sm:$0xff] }
 0x543   :  { %v5347_v13 = vpop.f32.mrf.mxu0  ;;  %v5472_v61 = vpop.f32.mrf.mxu1 }
 0x544   :  { %v13194_v8 = vmax.f32 %v5347_v13, %v5472_v61  ;;  %v7080_v13 = vld [vmem:[%s13643_s9 + $0xc0] sm:$0xff]  ;;  %v7079_v61 = vld [vmem:[%s13643_s9 + $0xb8] sm:$0xff] }
 0x545   :  { %v5349_v42 = vpop.f32.mrf.mxu0  ;;  %v5474_v10 = vpop.f32.mrf.mxu1 }
 0x546   :  { %v7073_v42 = vld [vmem:[%s13642_s15 + $0x10] sm:$0xff] }
 0x547   :  { %v5352_v17 = vpop.f32.mrf.mxu0  ;;  %v5477_v6 = vpop.f32.mrf.mxu1  ;;  %v7078_v10 = vld [vmem:[%s13643_s9 + $0xb0] sm:$0xff] }
 0x548   :  { %v13188_v62 = vmax.f32 %v5352_v17, %v5477_v6  ;;  %v7087_v17 = vld [vmem:[%s13642_s15 + $0x18] sm:$0xff]  ;;  %v7101_v6 = vld [vmem:[%s13642_s15 + $0x20] sm:$0xff] }
 0x549   :  { %v5354_v16 = vpop.f32.mrf.mxu0  ;;  %v5479_v38 = vpop.f32.mrf.mxu1 }
 0x54a   :  { %v7077_v16 = vld [vmem:[%s13643_s9 + $0xa8] sm:$0xff]  ;;  %v7076_v38 = vld [vmem:[%s13643_s9 + $0xa0] sm:$0xff] }
 0x54c   :  { %v5357_v26 = vpop.f32.mrf.mxu0  ;;  %v5482_v63 = vpop.f32.mrf.mxu1 }
 0x54d   :  { %v13182_v20 = vmax.f32 %v5357_v26, %v5482_v63 }
 0x54e   :  { %v5359_v25 = vpop.f32.mrf.mxu0  ;;  %v5484_v29 = vpop.f32.mrf.mxu1 }
 0x550   :  { %v5362_v39 = vpop.f32.mrf.mxu0  ;;  %v5487_v50 = vpop.f32.mrf.mxu1 }
 0x551   :  { %v13176_v19 = vmax.f32 %v5362_v39, %v5487_v50  ;;  %v7099_v50 = vld [vmem:[%s13643_s9 + $0x138] sm:$0xff] }
 0x552   :  { %v5364_v23 = vpop.f32.mrf.mxu0  ;;  %v5489_v0 = vpop.f32.mrf.mxu1 }
 0x553   :  { %v7098_v0 = vld [vmem:[%s13643_s9 + $0x130] sm:$0xff] }
 0x554   :  { %v5367_v59 = vpop.f32.mrf.mxu0  ;;  %v5492_v34 = vpop.f32.mrf.mxu1 }
 0x555   :  { %v13168_v41 = vmax.f32 %v5367_v59, %v5492_v34  ;;  %v7097_v34 = vld [vmem:[%s13643_s9 + $0x128] sm:$0xff] }
 0x556   :  { %v5369_v30 = vpop.f32.mrf.mxu0  ;;  %v5494_v48 = vpop.f32.mrf.mxu1 }
 0x557   :  { %v7096_v30 = vld [vmem:[%s13643_s9 + $0x120] sm:$0xff]  ;;  %v7095_v48 = vld [vmem:[%s13643_s9 + $0x118] sm:$0xff] }
 0x558   :  { %v5372_v2 = vpop.f32.mrf.mxu0  ;;  %v5497_v35 = vpop.f32.mrf.mxu1 }
 0x559   :  { %v13166_v57 = vmax.f32 %v5372_v2, %v5497_v35  ;;  %v7094_v2 = vld [vmem:[%s13643_s9 + $0x110] sm:$0xff]  ;;  %v7093_v35 = vld [vmem:[%s13643_s9 + $0x108] sm:$0xff] }
 0x55a   :  { %v5374_v36 = vpop.f32.mrf.mxu0  ;;  %v5499_v44 = vpop.f32.mrf.mxu1 }
 0x55b   :  { %7250 = vmatpush3.msk.msra.mxu0 %vm5514_vm8, %v13166_v57  ;;  %7269 = vmatpush3.msk.msra.mxu1 %vm5514_vm8, %v13166_v57  ;;  %v7091_v36 = vld [vmem:[%s13643_s9 + $0xf8] sm:$0xff] }
 0x55c   :  { %7251 = vmatprep.subr.mxu0 %v14495_v47  ;;  %7270 = vmatprep.subr.mxu1 %v14495_v47 }
 0x55d   :  { %7252 = vmatpush3.msra.mxu0 %v13168_v41  ;;  %7271 = vmatpush3.msra.mxu1 %v13168_v41 }
 0x55e   :  { %7253 = vmatprep.subr.mxu0 %v14495_v47  ;;  %7272 = vmatprep.subr.mxu1 %v14495_v47 }
 0x55f   :  { %7254 = vmatpush3.msra.mxu0 %v13176_v19  ;;  %7273 = vmatpush3.msra.mxu1 %v13176_v19 }
 0x560   :  { %7255 = vmatprep.subr.mxu0 %v14495_v47  ;;  %7274 = vmatprep.subr.mxu1 %v14495_v47 }
 0x561   :  { %7256 = vmatpush3.msra.mxu0 %v13182_v20  ;;  %7275 = vmatpush3.msra.mxu1 %v13182_v20 }
 0x562   :  { %7257 = vmatprep.subr.mxu0 %v14495_v47  ;;  %7276 = vmatprep.subr.mxu1 %v14495_v47 }
 0x563   :  { %7258 = vmatpush3.msra.mxu0 %v13188_v62  ;;  %7277 = vmatpush3.msra.mxu1 %v13188_v62 }
 0x564   :  { %7259 = vmatprep.subr.mxu0 %v14495_v47  ;;  %7278 = vmatprep.subr.mxu1 %v14495_v47 }
 0x565   :  { %7260 = vmatpush3.msra.mxu0 %v13194_v8  ;;  %7279 = vmatpush3.msra.mxu1 %v13194_v8 }
 0x566   :  { %7261 = vmatprep.subr.mxu0 %v14495_v47  ;;  %7280 = vmatprep.subr.mxu1 %v14495_v47 }
 0x567   :  { %7262 = vmatpush3.msra.mxu0 %v13200_v9  ;;  %7281 = vmatpush3.msra.mxu1 %v13200_v9 }
 0x568   :  { %7263 = vmatprep.subr.mxu0 %v14495_v47  ;;  %7282 = vmatprep.subr.mxu1 %v14495_v47 }
 0x569   :  { %7264 = vmatpush3.msra.mxu0 %v13208_v7  ;;  %7283 = vmatpush3.msra.mxu1 %v13208_v7 }
 0x56a   :  { %7285 = vmatmul.mubr.msk.f32.vlgmr.msra.gmra.mxu1 %vm5510_vm9, %v7058_v21  ;;  %7266 = vmatmul.mubr.msk.f32.vlgmr.msra.gmra.mxu0 %vm5510_vm9, %v5509_v4  ;;  %v7108_v21 = vld [vmem:[%s13643_s9 + $0x160] sm:$0xff]  ;;  %v7107_v4 = vld [vmem:[%s13643_s9 + $0x158] sm:$0xff] }
 0x56b   :  { %7287 = vmatprep.subr.mxu0 %v14495_v47  ;;  %7310 = vmatprep.subr.mxu1 %v14495_v47 }
 0x56c   :  { %7288 = vmatpush3.msra.mxu0 %v7070_v5  ;;  %7311 = vmatpush3.msra.mxu1 %v5597_v53  ;;  %v7106_v53 = vld [vmem:[%s13643_s9 + $0x150] sm:$0xff] }
 0x56d   :  { %7289 = vmatprep.subr.mxu0 %v14495_v47  ;;  %7307 = vmatprep.mubr.msk.f32.mxu0 %vm7672_vm7, %v14495_v47 }
 0x56e   :  { %7290 = vmatpush3.msra.mxu0 %v7069_v54  ;;  %7312 = vmatprep.subr.mxu1 %v14495_v47 }
 0x56f   :  { %7291 = vmatprep.subr.mxu0 %v14495_v47  ;;  %7330 = vmatprep.mubr.msk.f32.mxu1 %vm7672_vm7, %v14495_v47 }
 0x570   :  { %7292 = vmatpush3.msra.mxu0 %v7068_v28  ;;  %7313 = vmatpush3.msra.mxu1 %v5596_v51  ;;  %v7105_v28 = vld [vmem:[%s13643_s9 + $0x148] sm:$0xff]  ;;  %v6328_v51 = vld [vmem:[%s13644_s11 + $0x40] sm:$0xff] }
 0x571   :  { %7293 = vmatprep.subr.mxu0 %v14495_v47  ;;  %7314 = vmatprep.subr.mxu1 %v14495_v47 }
 0x572   :  { %7294 = vmatpush3.msra.mxu0 %v7067_v32  ;;  %7315 = vmatpush3.msra.mxu1 %v5595_v1  ;;  %v7104_v32 = vld [vmem:[%s13643_s9 + $0x140] sm:$0xff]  ;;  %v6327_v1 = vld [vmem:[%s13644_s11 + $0x38] sm:$0xff] }
 0x573   :  { %7295 = vmatprep.subr.mxu0 %v14495_v47  ;;  %7316 = vmatprep.subr.mxu1 %v14495_v47 }
 0x574   :  { %7296 = vmatpush3.msra.mxu0 %v7066_v55  ;;  %7317 = vmatpush3.msra.mxu1 %v5594_v15  ;;  %v6334_v55 = vld [vmem:[%s13644_s11 + $0x70] sm:$0xff] }
 0x575   :  { %7297 = vmatprep.subr.mxu0 %v14495_v47  ;;  %7318 = vmatprep.subr.mxu1 %v14495_v47  ;;  %v6326_v15 = vld [vmem:[%s13644_s11 + $0x30] sm:$0xff] }
 0x576   :  { %7298 = vmatpush3.msra.mxu0 %v7065_v22  ;;  %7319 = vmatpush3.msra.mxu1 %v5593_v33  ;;  %v6333_v22 = vld [vmem:[%s13644_s11 + $0x68] sm:$0xff] }
 0x577   :  { %7299 = vmatprep.subr.mxu0 %v14495_v47  ;;  %7320 = vmatprep.subr.mxu1 %v14495_v47  ;;  %v6325_v33 = vld [vmem:[%s13644_s11 + $0x28] sm:$0xff] }
 0x578   :  { %7300 = vmatpush3.msra.mxu0 %v7064_v11  ;;  %7321 = vmatpush3.msra.mxu1 %v5592_v52  ;;  %v6332_v11 = vld [vmem:[%s13644_s11 + $0x60] sm:$0xff] }
 0x579   :  { %7301 = vmatprep.subr.mxu0 %v14495_v47  ;;  %7322 = vmatprep.subr.mxu1 %v14495_v47  ;;  %v6324_v52 = vld [vmem:[%s13644_s11 + $0x20] sm:$0xff] }
 0x57a   :  { %7302 = vmatpush3.msra.mxu0 %v7063_v37  ;;  %7323 = vmatpush3.msra.mxu1 %v5591_v49  ;;  %v6331_v37 = vld [vmem:[%s13644_s11 + $0x58] sm:$0xff] }
 0x57b   :  { %7303 = vmatprep.subr.mxu0 %v14495_v47  ;;  %7324 = vmatprep.subr.mxu1 %v14495_v47  ;;  %v6323_v49 = vld [vmem:[%s13644_s11 + $0x18] sm:$0xff] }
 0x57c   :  { %7304 = vmatpush3.msra.mxu0 %v7062_v58  ;;  %7325 = vmatpush3.msra.mxu1 %v5590_v31  ;;  %v6330_v58 = vld [vmem:[%s13644_s11 + $0x50] sm:$0xff] }
 0x57d   :  { %7305 = vmatprep.subr.mxu0 %v14495_v47  ;;  %7326 = vmatprep.subr.mxu1 %v14495_v47  ;;  %v6322_v31 = vld [vmem:[%s13644_s11 + $0x10] sm:$0xff] }
 0x57e   :  { %7306 = vmatpush3.msra.mxu0 %v7061_v3  ;;  %7327 = vmatpush3.msra.mxu1 %v5589_v46  ;;  %v6329_v3 = vld [vmem:[%s13644_s11 + $0x48] sm:$0xff] }
 0x57f   :  { %7333 = vmatprep.subr.mxu0 %v14495_v47  ;;  %7328 = vmatprep.subr.mxu1 %v14495_v47  ;;  %v6321_v46 = vld [vmem:[%s13644_s11 + $0x8] sm:$0xff] }
 0x580   :  { %7329 = vmatpush3.msra.mxu1 %v5588_v24  ;;  %v6320_v24 = vld [vmem:[%s13644_s11] sm:$0xff] }
 0x581   :  { %7352 = vmatprep.subr.mxu1 %v14495_v47 }
 0x62a   :  { %v5669_v12 = vpop.f32.mrf.mxu1  ;;  %v5584_v60 = vpop.f32.mrf.mxu0 }
 0x62b   :  { %7308 = vmatmul.mubr.msk.f32.vlgmr.msra.gmra.mxu0 %vm5684_vm10, %v5669_v12  ;;  %7331 = vmatmul.mubr.msk.f32.vlgmr.msra.gmra.mxu1 %vm5684_vm10, %v5584_v60  ;;  %v6427_v12 = vld [vmem:[%s13645_s13 + $0x50] sm:$0xf]  ;;  %v6426_v60 = vld [vmem:[%s13645_s13 + $0x48] sm:$0xff] }
 0x62c   :  { %7334 = vmatpush3.msk.msra.mxu0 %vm5514_vm8, %v13166_v57  ;;  %7349 = vmatprep.mubr.msk.f32.mxu0 %vm7672_vm7, %v14495_v47  ;;  %v7286_v56 = vpop.f32.mrf.mxu1  ;;  %v7267_v40 = vpop.f32.mrf.mxu0 }
 0x62d   :  { %7335 = vmatprep.subr.mxu0 %v14495_v47  ;;  %7353 = vmatpush3.msra.mxu1 %v7085_v27  ;;  %v6425_v27 = vld [vmem:[%s13645_s13 + $0x40] sm:$0xff]  ;;  %v6424_v56 = vld [vmem:[%s13645_s13 + $0x38] sm:$0xff]  ;;  %v6423_v40 = vld [vmem:[%s13645_s13 + $0x30] sm:$0xff] }
 0x62e   :  { %7336 = vmatpush3.msra.mxu0 %v13168_v41  ;;  %7354 = vmatprep.subr.mxu1 %v14495_v47 }
 0x62f   :  { %7337 = vmatprep.subr.mxu0 %v14495_v47  ;;  %7355 = vmatpush3.msra.mxu1 %v7084_v18  ;;  %v6422_v18 = vld [vmem:[%s13645_s13 + $0x28] sm:$0xff] }
 0x630   :  { %7338 = vmatpush3.msra.mxu0 %v13176_v19  ;;  %7356 = vmatprep.subr.mxu1 %v14495_v47 }
 0x631   :  { %7339 = vmatprep.subr.mxu0 %v14495_v47  ;;  %7357 = vmatpush3.msra.mxu1 %v7083_v14  ;;  %v6421_v14 = vld [vmem:[%s13645_s13 + $0x20] sm:$0xff] }
 0x632   :  { %7340 = vmatpush3.msra.mxu0 %v13182_v20  ;;  %7358 = vmatprep.subr.mxu1 %v14495_v47 }
 0x633   :  { %7341 = vmatprep.subr.mxu0 %v14495_v47  ;;  %7359 = vmatpush3.msra.mxu1 %v7082_v43  ;;  %v6420_v43 = vld [vmem:[%s13645_s13 + $0x18] sm:$0xff] }
 0x634   :  { %7342 = vmatpush3.msra.mxu0 %v13188_v62  ;;  %7360 = vmatprep.subr.mxu1 %v14495_v47 }
 0x635   :  { %7343 = vmatprep.subr.mxu0 %v14495_v47  ;;  %7361 = vmatpush3.msra.mxu1 %v7081_v45 }
 0x636   :  { %7344 = vmatpush3.msra.mxu0 %v13194_v8  ;;  %7362 = vmatprep.subr.mxu1 %v14495_v47 }
 0x637   :  { %7345 = vmatprep.subr.mxu0 %v14495_v47  ;;  %7363 = vmatpush3.msra.mxu1 %v7080_v13 }
 0x638   :  { %7346 = vmatpush3.msra.mxu0 %v13200_v9  ;;  %7364 = vmatprep.subr.mxu1 %v14495_v47 }
 0x639   :  { %7347 = vmatprep.subr.mxu0 %v14495_v47  ;;  %7365 = vmatpush3.msra.mxu1 %v7079_v61 }
 0x63a   :  { %7348 = vmatpush3.msra.mxu0 %v13208_v7  ;;  %7366 = vmatprep.subr.mxu1 %v14495_v47 }
 0x63b   :  { %7350 = vmatmul.mubr.msk.f32.vlgmr.msra.gmra.mxu0 %vm5510_vm9, %v7073_v42  ;;  %7375 = vmatprep.subr.mxu0 %v14495_v47 }
 0x63c   :  { %7376 = vmatpush3.msk.msra.mxu0 %vm5514_vm8, %v13166_v57  ;;  %7391 = vmatprep.mubr.msk.f32.mxu0 %vm7672_vm7, %v14495_v47 }
 0x63d   :  { %7377 = vmatprep.subr.mxu0 %v14495_v47  ;;  %7367 = vmatpush3.msra.mxu1 %v7078_v10 }
 0x63e   :  { %7378 = vmatpush3.msra.mxu0 %v13168_v41  ;;  %7368 = vmatprep.subr.mxu1 %v14495_v47 }
 0x63f   :  { %7379 = vmatprep.subr.mxu0 %v14495_v47  ;;  %7372 = vmatprep.mubr.msk.f32.mxu1 %vm7672_vm7, %v14495_v47 }
 0x640   :  { %7380 = vmatpush3.msra.mxu0 %v13176_v19  ;;  %7369 = vmatpush3.msra.mxu1 %v7077_v16  ;;  %v7115_v16 = vld [vmem:[%s13646_s10] ss:$0 sm:$0xff] }
 0x641   :  { %7381 = vmatprep.subr.mxu0 %v14495_v47  ;;  %7370 = vmatprep.subr.mxu1 %v14495_v47 }
 0x642   :  { %7382 = vmatpush3.msra.mxu0 %v13182_v20  ;;  %7371 = vmatpush3.msra.mxu1 %v7076_v38 }
 0x643   :  { %7383 = vmatprep.subr.mxu0 %v14495_v47  ;;  %7394 = vmatprep.subr.mxu1 %v14495_v47 }
 0x644   :  { %7384 = vmatpush3.msra.mxu0 %v13188_v62 }
 0x645   :  { %7385 = vmatprep.subr.mxu0 %v14495_v47 }
 0x646   :  { %7386 = vmatpush3.msra.mxu0 %v13194_v8 }
 0x647   :  { %7387 = vmatprep.subr.mxu0 %v14495_v47 }
 0x648   :  { %7388 = vmatpush3.msra.mxu0 %v13200_v9 }
 0x649   :  { %7389 = vmatprep.subr.mxu0 %v14495_v47 }
 0x64a   :  { %7390 = vmatpush3.msra.mxu0 %v13208_v7 }
 0x64b   :  { %7417 = vmatprep.subr.mxu0 %v14495_v47  ;;  %7392 = vmatmul.mubr.msk.f32.vlgmr.msra.gmra.mxu0 %vm5510_vm9, %v7087_v17 }
 0x64c   :  { %7418 = vmatpush3.msk.msra.mxu0 %vm5514_vm8, %v13166_v57  ;;  %7433 = vmatprep.mubr.msk.f32.mxu0 %vm7672_vm7, %v14495_v47  ;;  %v7092_v57 = vld [vmem:[%s13643_s9 + $0x100] sm:$0xff] }
 0x64d   :  { %7419 = vmatprep.subr.mxu0 %v14495_v47 }
 0x64e   :  { %7420 = vmatpush3.msra.mxu0 %v13168_v41  ;;  %v7090_v41 = vld [vmem:[%s13643_s9 + $0xf0] sm:$0xff] }
 0x64f   :  { %7421 = vmatprep.subr.mxu0 %v14495_v47 }
 0x650   :  { %7422 = vmatpush3.msra.mxu0 %v13176_v19 }
 0x651   :  { %7423 = vmatprep.subr.mxu0 %v14495_v47 }
 0x652   :  { %7424 = vmatpush3.msra.mxu0 %v13182_v20  ;;  %v7113_v20 = vld [vmem:[%s13643_s9 + $0x188] sm:$0xff] }
 0x653   :  { %7425 = vmatprep.subr.mxu0 %v14495_v47 }
 0x654   :  { %7426 = vmatpush3.msra.mxu0 %v13188_v62  ;;  %v7112_v62 = vld [vmem:[%s13643_s9 + $0x180] sm:$0xff] }
 0x655   :  { %7427 = vmatprep.subr.mxu0 %v14495_v47 }
 0x656   :  { %7428 = vmatpush3.msra.mxu0 %v13194_v8  ;;  %v7111_v8 = vld [vmem:[%s13643_s9 + $0x178] sm:$0xff] }
 0x657   :  { %7429 = vmatprep.subr.mxu0 %v14495_v47 }
 0x658   :  { %7430 = vmatpush3.msra.mxu0 %v13200_v9  ;;  %v7110_v9 = vld [vmem:[%s13643_s9 + $0x170] sm:$0xff] }
 0x659   :  { %7431 = vmatprep.subr.mxu0 %v14495_v47 }
 0x65a   :  { %7432 = vmatpush3.msra.mxu0 %v13208_v7  ;;  %v7109_v7 = vld [vmem:[%s13643_s9 + $0x168] sm:$0xff] }
 0x65b   :  { %7434 = vmatmul.mubr.msk.f32.vlgmr.msra.gmra.mxu0 %vm5510_vm9, %v7101_v6  ;;  %7459 = vmatprep.subr.mxu0 %v14495_v47 }
 0x65c   :  { %7489 = vmatprep.mubr.msk.f32.mxu0 %vm7672_vm7, %v14495_v47  ;;  %7460 = vmatpush3.msra.mxu0 %v6334_v55 }
 0x65d   :  { %7461 = vmatprep.subr.mxu0 %v14495_v47 }
 0x65e   :  { %7462 = vmatpush3.msra.mxu0 %v6333_v22 }
 0x65f   :  { %7463 = vmatprep.subr.mxu0 %v14495_v47 }
 0x660   :  { %7464 = vmatpush3.msra.mxu0 %v6332_v11 }
 0x661   :  { %7465 = vmatprep.subr.mxu0 %v14495_v47 }
 0x662   :  { %7466 = vmatpush3.msra.mxu0 %v6331_v37 }
 0x663   :  { %7467 = vmatprep.subr.mxu0 %v14495_v47 }
 0x664   :  { %7468 = vmatpush3.msra.mxu0 %v6330_v58 }
 0x665   :  { %7469 = vmatprep.subr.mxu0 %v14495_v47 }
 0x666   :  { %7470 = vmatpush3.msra.mxu0 %v6329_v3 }
 0x667   :  { %7471 = vmatprep.subr.mxu0 %v14495_v47 }
 0x668   :  { %7472 = vmatpush3.msra.mxu0 %v6328_v51 }
 0x669   :  { %7473 = vmatprep.subr.mxu0 %v14495_v47 }
 0x66a   :  { %7474 = vmatpush3.msra.mxu0 %v6327_v1 }
 0x66b   :  { %7475 = vmatprep.subr.mxu0 %v14495_v47 }
 0x66c   :  { %7476 = vmatpush3.msra.mxu0 %v6326_v15 }
 0x66d   :  { %7477 = vmatprep.subr.mxu0 %v14495_v47 }
 0x66e   :  { %7478 = vmatpush3.msra.mxu0 %v6325_v33 }
 0x66f   :  { %7479 = vmatprep.subr.mxu0 %v14495_v47 }
 0x670   :  { %7480 = vmatpush3.msra.mxu0 %v6324_v52 }
 0x671   :  { %7481 = vmatprep.subr.mxu0 %v14495_v47 }
 0x672   :  { %7482 = vmatpush3.msra.mxu0 %v6323_v49 }
 0x673   :  { %7483 = vmatprep.subr.mxu0 %v14495_v47 }
 0x674   :  { %7484 = vmatpush3.msra.mxu0 %v6322_v31 }
 0x675   :  { %7485 = vmatprep.subr.mxu0 %v14495_v47 }
 0x676   :  { %7486 = vmatpush3.msra.mxu0 %v6321_v46 }
 0x677   :  { %7487 = vmatprep.subr.mxu0 %v14495_v47 }
 0x678   :  { %7488 = vmatpush3.msra.mxu0 %v6320_v24 }
 0x6eb   :  { %v5754_v26 = vpop.f32.mrf.mxu0  ;;  %v5827_v63 = vpop.f32.mrf.mxu1 }
 0x6ec   :  { %v13425_v25 = vadd.f32 %v5827_v63, %v5754_v26 }
 0x6ed   :  { %v7309_v29 = vpop.f32.mrf.mxu0  ;;  %v7332_v39 = vpop.f32.mrf.mxu1 }
 0x6ee   :  { %v6419_v39 = vld [vmem:[%s13645_s13 + $0x10] sm:$0xff] }
 0x6fb   :  { %v5902_v23 = vpop.f32.mrf.mxu0 }
 0x6fc   :  { %7373 = vmatmul.mubr.msk.f32.vlgmr.msra.gmra.mxu1 %vm5684_vm10, %v5902_v23  ;;  %v7116_v23 = vld [vmem:[%s13647_s12] ss:$0 sm:$0xff] }
 0x6fd   :  { %7395 = vmatpush3.msra.mxu1 %v7099_v50  ;;  %v7351_v59 = vpop.f32.mrf.mxu0  ;;  %7414 = vmatprep.mubr.msk.f32.mxu1 %vm7672_vm7, %v14495_v47  ;;  %v6417_v50 = vld [vmem:[%s13645_s13] sm:$0xff] }
 0x6fe   :  { %7396 = vmatprep.subr.mxu1 %v14495_v47 }
 0x6ff   :  { %7397 = vmatpush3.msra.mxu1 %v7098_v0 }
 0x700   :  { %7398 = vmatprep.subr.mxu1 %v14495_v47 }
 0x701   :  { %7399 = vmatpush3.msra.mxu1 %v7097_v34 }
 0x702   :  { %7400 = vmatprep.subr.mxu1 %v14495_v47 }
 0x703   :  { %7401 = vmatpush3.msra.mxu1 %v7096_v30 }
 0x704   :  { %7402 = vmatprep.subr.mxu1 %v14495_v47 }
 0x705   :  { %7403 = vmatpush3.msra.mxu1 %v7095_v48  ;;  %v7118_v48 = vld [vmem:[%s13648_s14] ss:$0 sm:$0xff] }
 0x706   :  { %7404 = vmatprep.subr.mxu1 %v14495_v47 }
 0x707   :  { %7405 = vmatpush3.msra.mxu1 %v7094_v2 }
 0x708   :  { %7406 = vmatprep.subr.mxu1 %v14495_v47 }
 0x709   :  { %7407 = vmatpush3.msra.mxu1 %v7093_v35 }
 0x70a   :  { %7408 = vmatprep.subr.mxu1 %v14495_v47 }
 0x70b   :  { %7409 = vmatpush3.msra.mxu1 %v7092_v57  ;;  %v6062_v44 = vpop.f32.mrf.mxu0 }
 0x70c   :  { %7410 = vmatprep.subr.mxu1 %v14495_v47 }
 0x70d   :  { %7411 = vmatpush3.msra.mxu1 %v7091_v36  ;;  %v7393_v19 = vpop.f32.mrf.mxu0 }
 0x70e   :  { %7412 = vmatprep.subr.mxu1 %v14495_v47 }
 0x70f   :  { %7413 = vmatpush3.msra.mxu1 %v7090_v41 }
 0x710   :  { %7415 = vmatmul.mubr.msk.f32.vlgmr.msra.gmra.mxu1 %vm5684_vm10, %v6062_v44  ;;  %7436 = vmatprep.subr.mxu1 %v14495_v47 }
 0x711   :  { %7437 = vmatpush3.msra.mxu1 %v7113_v20  ;;  %7456 = vmatprep.mubr.msk.f32.mxu1 %vm7672_vm7, %v14495_v47 }
 0x712   :  { %7438 = vmatprep.subr.mxu1 %v14495_v47 }
 0x713   :  { %7439 = vmatpush3.msra.mxu1 %v7112_v62 }
 0x714   :  { %7440 = vmatprep.subr.mxu1 %v14495_v47 }
 0x715   :  { %7441 = vmatpush3.msra.mxu1 %v7111_v8 }
 0x716   :  { %7442 = vmatprep.subr.mxu1 %v14495_v47 }
 0x717   :  { %7443 = vmatpush3.msra.mxu1 %v7110_v9 }
 0x718   :  { %7444 = vmatprep.subr.mxu1 %v14495_v47 }
 0x719   :  { %7445 = vmatpush3.msra.mxu1 %v7109_v7 }
 0x71a   :  { %7446 = vmatprep.subr.mxu1 %v14495_v47 }
 0x71b   :  { %7447 = vmatpush3.msra.mxu1 %v7108_v21  ;;  %v6222_v5 = vpop.f32.mrf.mxu0 }
 0x71c   :  { %7448 = vmatprep.subr.mxu1 %v14495_v47 }
 0x71d   :  { %7449 = vmatpush3.msra.mxu1 %v7107_v4  ;;  %v7435_v54 = vpop.f32.mrf.mxu0 }
 0x71e   :  { %7450 = vmatprep.subr.mxu1 %v14495_v47 }
 0x71f   :  { %7451 = vmatpush3.msra.mxu1 %v7106_v53 }
 0x720   :  { %7452 = vmatprep.subr.mxu1 %v14495_v47 }
 0x721   :  { %7453 = vmatpush3.msra.mxu1 %v7105_v28 }
 0x722   :  { %7454 = vmatprep.subr.mxu1 %v14495_v47 }
 0x723   :  { %7455 = vmatpush3.msra.mxu1 %v7104_v32 }
 0x724   :  { %7457 = vmatmul.mubr.msk.f32.vlgmr.msra.gmra.mxu1 %vm5684_vm10, %v6222_v5  ;;  %7492 = vmatprep.subr.mxu1 %v14495_v47 }
 0x725   :  { %7514 = vmatprep.mubr.msk.f32.mxu1 %vm7672_vm7, %v14495_v47  ;;  %7493 = vmatpush3.msk.msra.mxu1 %vm3658_vm2, %v6427_v12 }
 0x726   :  { %7494 = vmatprep.subr.mxu1 %v14495_v47 }
 0x727   :  { %7495 = vmatpush3.msra.mxu1 %v6426_v60 }
 0x728   :  { %7496 = vmatprep.subr.mxu1 %v14495_v47 }
 0x729   :  { %7497 = vmatpush3.msra.mxu1 %v6425_v27 }
 0x72a   :  { %7498 = vmatprep.subr.mxu1 %v14495_v47 }
 0x72b   :  { %7499 = vmatpush3.msra.mxu1 %v6424_v56 }
 0x72c   :  { %7500 = vmatprep.subr.mxu1 %v14495_v47 }
 0x72d   :  { %7501 = vmatpush3.msra.mxu1 %v6423_v40 }
 0x72e   :  { %7502 = vmatprep.subr.mxu1 %v14495_v47 }
 0x72f   :  { %7503 = vmatpush3.msra.mxu1 %v6422_v18 }
 0x730   :  { %7504 = vmatprep.subr.mxu1 %v14495_v47 }
 0x731   :  { %7505 = vmatpush3.msra.mxu1 %v6421_v14 }
 0x732   :  { %7506 = vmatprep.subr.mxu1 %v14495_v47 }
 0x733   :  { %7507 = vmatpush3.msra.mxu1 %v6420_v43 }
 0x734   :  { %7508 = vmatprep.subr.mxu1 %v14495_v47 }
 0x735   :  { %7509 = vmatpush3.msra.mxu1 %v6419_v39 }
 0x736   :  { %7510 = vmatprep.subr.mxu1 %v14495_v47 }
 0x7bc   :  { %v5986_v45 = vpop.f32.mrf.mxu1 }
 0x7bd   :  { %v5990_v10 = vadd.f32 %v5986_v45, %v13425_v25  ;;  %v6418_v25 = vld [vmem:[%s13645_s13 + $0x8] sm:$0xff] }
 0x7be   :  { %v7374_v13 = vpop.f32.mrf.mxu1  ;;  %7511 = vmatpush3.msra.mxu1 %v6418_v25 }
 0x7bf   :  { %7512 = vmatprep.subr.mxu1 %v14495_v47 }
 0x7c0   :  { %7513 = vmatpush3.msra.mxu1 %v6417_v50 }
 0x7d0   :  { %v6146_v61 = vpop.f32.mrf.mxu1 }
 0x7d1   :  { %v6150_v17 = vadd.f32 %v6146_v61, %v5990_v10 }
 0x7d2   :  { %v7416_v42 = vpop.f32.mrf.mxu1 }
 0x7e4   :  { %v6306_v6 = vpop.f32.mrf.mxu1 }
 0x7e5   :  { %v6310_v38 = vadd.f32 %v6306_v6, %v6150_v17 }
 0x7e6   :  { %v7458_v26 = vpop.f32.mrf.mxu1 }
 0x7e7   :  { %v6318_v63 = vadd.f32 %v7115_v16, %v6310_v38 }
 0x7e9   :  { %v6319_v29 = vmax.f32 %v6318_v63, 0.0 }
 0x7eb   :  { %7490 = vmatmul.mubr.msk.f32.vlgmr.msra.gmra.mxu0 %vm6342_vm11, %v6319_v29 }
 0x8ab   :  { %v6412_v0 = vpop.f32.mrf.mxu0 }
 0x8ac   :  { %v6413_v59 = vadd.f32 %v7116_v23, %v6412_v0 }
 0x8ad   :  { %v7491_v34 = vpop.f32.mrf.mxu0 }
 0x8ae   :  { %v6416_v30 = vmax.f32 %v6413_v59, 0.0 }
 0x8b0   :  { %7515 = vmatmul.mubr.msk.f32.vlgmr.msra.gmra.mxu1 %vm3633_vm3, %v6416_v30 }
 0x970   :  { %v6507_v47 = vpop.f32.mrf.mxu1 }
 0x971   :  { %v6508_v2 = vadd.f32 %v7118_v48, %v6507_v47 }
 0x972   :  { %v7516_v35 = vpop.f32.mrf.mxu1 }
 0x973   :  { %6511 = vst [vmem:[%s13649_s16] sm:$0xff] %v6508_v2 }

</bundles_post_ra>
